<compile_context>
chip_gen: v7x
topology: tpu7x:2x2x1
jax: 0.10.0
libtpu: 0.0.40
codegen_flags: <defaults>
</compile_context>

<pallas_src>
import functools
import math

import jax
import jax.numpy as jnp
from jax import lax
from jax.experimental import pallas as pl
from jax.experimental.pallas import tpu as pltpu

NEG = -1e30  # stands in for -inf in masked softmax (exp underflows to exactly 0)


def decoder_kernel(
    # inputs
    e_ref, ctxe_ref, fi_ref, bmask_ref, bmask_t_ref, maskf_ref,
    w_ih_ref, w_hh_ref, b_gates_ref,
    w_of_f_ref, w_of_b_ref, b_of_ref,
    w_al_ref, b_al_ref, v_att_ref,
    w_q_ref, b_q_ref, w_k_ref, b_k_ref, w_v_ref, b_v_ref,
    head_mix_ref,
    # outputs (per-chunk blocks)
    out_ref, ptr_ref,
    # scratch (persistent recurrent state)
    h_s, c_s, x_s, selmask_s, k_cache_s, v_cache_s,
    *, t_chunk, num_chunks,
):
    Bp, L, H = e_ref.shape
    chunk = pl.program_id(0)

    E = e_ref[...]                                        # (Bp, L, H)
    ctx_e = ctxe_ref[...]                                 # (Bp, L, H)

    @pl.when(chunk == 0)
    def _init():
        s = jnp.sum(E, axis=1)                            # decoder_input0 = inputs.sum(dim=1)
        h_s[...] = s
        c_s[...] = s
        x_s[...] = jnp.broadcast_to(fi_ref[...], (Bp, H))  # first_input broadcast
        selmask_s[...] = maskf_ref[...]                   # selection mask
        # zero-init is load-bearing: rows >= t are read (then masked) every step.
        k_cache_s[...] = jnp.zeros(k_cache_s.shape, k_cache_s.dtype)
        v_cache_s[...] = jnp.zeros(v_cache_s.shape, v_cache_s.dtype)

    # ---- loop-invariant loads / constants (hoisted out of the step loop) ----
    w_ih = w_ih_ref[...]
    w_hh = w_hh_ref[...]
    b_gates = b_gates_ref[...]
    w_of_f = w_of_f_ref[...]
    w_of_b = w_of_b_ref[...]
    b_of = b_of_ref[...]
    w_al = w_al_ref[...]
    b_al = b_al_ref[...]
    v_att = v_att_ref[...][None, :, :]                    # (1, 1, H)
    w_q = w_q_ref[...]                                    # pre-scaled by 1/sqrt(hd)
    b_q = b_q_ref[...]
    w_k = w_k_ref[...]
    b_k = b_k_ref[...]
    w_v = w_v_ref[...]
    b_v = b_v_ref[...]
    head_mix = head_mix_ref[...]                          # (H, H) block-diag head mask
    key_mask = bmask_t_ref[...] > 0.0                     # (L, Bp) backward-mask (keys)
    ptr_mask = bmask_ref[...] > 0.0                       # (Bp, L) pointer-att mask
    l_iota = lax.broadcasted_iota(jnp.int32, (L, Bp), 0)
    j_iota = lax.broadcasted_iota(jnp.int32, (Bp, L), 1)

    t_base = 0 if num_chunks == 1 else chunk * t_chunk

    # Recurrent state threaded as values within the chunk (ref traffic only at
    # chunk boundaries).
    h = h_s[...]
    c = c_s[...]
    x = x_s[...]
    selmask = selmask_s[...]

    for i in range(t_chunk):                              # statically unrolled
        t = t_base + i                                    # python int when num_chunks == 1

        # ---- incremental K/V cache: row t = projections of current input ----
        k_cache_s[pl.ds(t, 1)] = (x @ w_k + b_k)[None]
        v_cache_s[pl.ds(t, 1)] = (x @ w_v + b_v)[None]

        # ---- LSTM-style gates: two accumulating matmuls (no lane concat) ----
        gates = x @ w_ih + h @ w_hh + b_gates             # (Bp, 4H)
        ig = jax.nn.sigmoid(gates[:, 0:H])
        fg = jax.nn.sigmoid(gates[:, H:2 * H])
        cg = jnp.tanh(gates[:, 2 * H:3 * H])
        og = jax.nn.sigmoid(gates[:, 3 * H:4 * H])
        c_t = fg * c + ig * cg

        # ---- backward BertSelfAttention over cached past inputs (keys j < t) ----
        # TODO(synk): the PyTorch reference builds its additive mask as
        #   (-inf) * (attention_mask == 0).float(), giving -inf*0 = NaN on valid
        #   positions (a reference bug); we implement the intended semantics
        #   (0 on valid keys, -inf on padded / out-of-range keys).
        # TODO(synk): attention dropout omitted (inference / eval mode).
        if isinstance(t, int) and t == 0:
            back_ctx = x                                  # reference: t == 0 path
        else:
            q = c @ w_q + b_q                             # query from previous cell state
            add_mask = jnp.where((l_iota < t) & key_mask, 0.0, NEG)   # (L, Bp)
            kq = k_cache_s[...] * q[None]                 # (L, Bp, H)
            # per-head score, replicated onto each lane of its head (MXU):
            scores = (kq.reshape(L * Bp, H) @ head_mix).reshape(L, Bp, H)
            scores = scores + add_mask[:, :, None]
            m = jnp.max(scores, axis=0, keepdims=True)
            ee = jnp.exp(scores - m)
            probs = ee / jnp.sum(ee, axis=0, keepdims=True)   # exact divide
            b_back = jnp.sum(probs * v_cache_s[...], axis=0)  # (Bp, H)
            mixed = og * x + (1.0 - og) * b_back
            back_ctx = mixed if isinstance(t, int) else jnp.where(t > 0, mixed, x)

        # ---- pointer Attention over embedded inputs (ctx_e precomputed) ----
        u = jnp.tanh((back_ctx @ w_al + b_al)[:, None, :] + ctx_e)   # (Bp, L, H)
        att = jnp.sum(u * v_att, axis=-1)                 # (Bp, L)
        att = jnp.where(ptr_mask, att, NEG)               # att[mask] = -inf
        m2 = jnp.max(att, axis=-1, keepdims=True)
        e2 = jnp.exp(att - m2)
        alpha = e2 / jnp.sum(e2, axis=-1, keepdims=True)  # exact div: module output
        fwd_ctx = jnp.sum(alpha[:, :, None] * ctx_e, axis=1)          # (Bp, H)

        # ---- new hidden state (split W_of: no lane concat) ----
        h_t = jnp.tanh(fwd_ctx @ w_of_f + back_ctx @ w_of_b + b_of)

        # ---- pointer selection (argmax, first-index tie-break) ----
        masked_outs = alpha * selmask
        mx = jnp.max(masked_outs, axis=1, keepdims=True)
        cand = jnp.where(masked_outs == mx, j_iota, L)
        idx = jnp.min(cand, axis=1, keepdims=True)        # (Bp, 1) int32 argmax
        one_hot = (j_iota == idx).astype(jnp.float32)     # (Bp, L)
        new_x = jnp.sum(one_hot[:, :, None] * E, axis=1)  # gather selected embedding (VPU)

        # ---- streamed outputs: static row write into the chunk block ----
        out_ref[pl.ds(i, 1)] = alpha[None]                # (1, Bp, L)
        ptr_ref[pl.ds(i, 1)] = idx[None]                  # (1, Bp, 1)

        # ---- state update ----
        selmask = selmask * (1.0 - one_hot)
        h, c, x = h_t, c_t, new_x

    h_s[...] = h
    c_s[...] = c
    x_s[...] = x
    selmask_s[...] = selmask


def run_decoder(embedded_inputs, mask_length, params, num_heads, t_chunk=None):
    """embedded_inputs: (B, L, H) f32, mask_length: (B, L) int (1=valid)."""
    B, L, H = embedded_inputs.shape
    assert H % num_heads == 0
    Bp = ((B + 7) // 8) * 8                               # pad batch to sublane granule
    if t_chunk is None:
        t_chunk = L                                       # single grid step by default
    assert L % t_chunk == 0
    num_chunks = L // t_chunk

    E = jnp.pad(embedded_inputs.astype(jnp.float32), ((0, Bp - B), (0, 0), (0, 0)))
    maskf = jnp.pad(mask_length.astype(jnp.float32), ((0, Bp - B), (0, 0)))
    bmask = jnp.concatenate([jnp.ones((Bp, 1), jnp.float32), maskf[:, :-1]], axis=1)
    bmask_t = bmask.T                                     # (L, Bp) for the K/V-cache layout

    hd = H // num_heads
    inv_sqrt = 1.0 / math.sqrt(hd)

    # Hoisted / fused projections (done once in XLA, outside the decode loop).
    ctx_e = jnp.einsum("blh,hk->blk", E, params["w_ac"]) + params["b_ac"][None, None, :]
    b_gates = (params["b_ih"] + params["b_hh"]).reshape(1, -1)
    w_of_f = params["w_of"][:H]                           # applied to forward context
    w_of_b = params["w_of"][H:]                           # applied to backward context
    head_ids = jnp.arange(H) // hd
    head_mix = (head_ids[:, None] == head_ids[None, :]).astype(jnp.float32)  # (H, H)

    r2 = lambda v: v.reshape(1, -1)   # 1-D params -> (1, N) for TPU layout
    args = [
        E, ctx_e.astype(jnp.float32), r2(params["first_input"]),
        bmask, bmask_t, maskf,
        params["w_ih"], params["w_hh"], b_gates,
        w_of_f, w_of_b, r2(params["b_of"]),
        params["w_al"], r2(params["b_al"]), r2(params["v_att"]),
        params["w_q"] * inv_sqrt, r2(params["b_q"] * inv_sqrt),   # 1/sqrt(hd) folded in
        params["w_k"], r2(params["b_k"]),
        params["w_v"], r2(params["b_v"]),
        head_mix,
    ]

    in_specs = [pl.BlockSpec(a.shape, lambda c, n=a.ndim: (0,) * n) for a in args]
    out_specs = [
        pl.BlockSpec((t_chunk, Bp, L), lambda c: (c, 0, 0)),   # alphas for this chunk
        pl.BlockSpec((t_chunk, Bp, 1), lambda c: (c, 0, 0)),   # pointers for this chunk
    ]
    out_shape = (
        jax.ShapeDtypeStruct((L, Bp, L), jnp.float32),    # time-leading alphas
        jax.ShapeDtypeStruct((L, Bp, 1), jnp.int32),      # time-leading pointers
    )
    grid_spec = pltpu.PrefetchScalarGridSpec(
        num_scalar_prefetch=0,
        grid=(num_chunks,),
        in_specs=in_specs,
        out_specs=out_specs,
        scratch_shapes=[
            pltpu.VMEM((Bp, H), jnp.float32),             # h
            pltpu.VMEM((Bp, H), jnp.float32),             # c
            pltpu.VMEM((Bp, H), jnp.float32),             # decoder_input
            pltpu.VMEM((Bp, L), jnp.float32),             # selection mask
            pltpu.VMEM((L, Bp, H), jnp.float32),          # K cache
            pltpu.VMEM((L, Bp, H), jnp.float32),          # V cache
        ],
    )
    # TODO(synk): at production L*B*H, budget the VMEM explicitly per chip
    # generation (v7x: 64 MiB) and spill the K/V cache to HBM with manual DMA.
    kernel = functools.partial(decoder_kernel, t_chunk=t_chunk, num_chunks=num_chunks)
    raw_alpha, raw_ptr = pl.pallas_call(
        kernel,
        out_shape=out_shape,
        grid_spec=grid_spec,
        compiler_params=pltpu.CompilerParams(
            dimension_semantics=("arbitrary",),
        ),
    )(*args)

    outputs = jnp.transpose(raw_alpha[:, :B, :], (1, 2, 0))   # (batch, position, time)
    pointers = raw_ptr[:, :B, 0].T                            # (batch, time)
    return outputs, pointers


if __name__ == "__main__":
    B, L, H, NH = 2, 8, 32, 4   # batch, seq, hidden_size, num_attention_heads

    key = jax.random.PRNGKey(0)
    ks = jax.random.split(key, 20)

    def u(k, shape, scale=0.2):
        return jax.random.uniform(k, shape, jnp.float32, -scale, scale)

    # Deterministic synthetic parameters (Linear weights stored as (in, out)).
    params = dict(
        w_ih=u(ks[0], (H, 4 * H)), b_ih=u(ks[1], (4 * H,)),
        w_hh=u(ks[2], (H, 4 * H)), b_hh=u(ks[3], (4 * H,)),
        w_of=u(ks[4], (2 * H, H)), b_of=u(ks[5], (H,)),
        w_al=u(ks[6], (H, H)), b_al=u(ks[7], (H,)),
        w_ac=u(ks[8], (H, H)), b_ac=u(ks[9], (H,)),
        v_att=u(ks[10], (H,), 1.0),
        w_q=u(ks[11], (H, H)), b_q=u(ks[12], (H,)),
        w_k=u(ks[13], (H, H)), b_k=u(ks[14], (H,)),
        w_v=u(ks[15], (H, H)), b_v=u(ks[16], (H,)),
        first_input=u(ks[17], (H,), 1.0),
    )

    embedded_inputs = jax.random.normal(ks[18], (B, L, H), jnp.float32)
    passage_length = [L, L - 2]
    mask_length = jnp.array(
        [[1] * n + [0] * (L - n) for n in passage_length], jnp.int32
    )

    outputs, pointers = run_decoder(embedded_inputs, mask_length, params, NH)
    outputs = jax.block_until_ready(outputs)
    pointers = jax.block_until_ready(pointers)

    # sanity checks: finite, each step's alpha is a proper distribution,
    # valid indices, and the full-length sequence selects a permutation.
    assert bool(jnp.all(jnp.isfinite(outputs)))
    col_sums = jnp.sum(outputs, axis=1)            # (B, L): sum of alpha per time step
    assert bool(jnp.all(jnp.abs(col_sums - 1.0) < 1e-3))
    assert bool(jnp.all((pointers >= 0) & (pointers < L)))
    assert bool(jnp.all(jnp.sort(pointers[0]) == jnp.arange(L)))

    print("KERNEL_OK")
</pallas_src>

<mosaic_0001>
module attributes {stable_mosaic.version = 11 : i64} {
  func.func @decoder_kernel(%arg0: i32, %arg1: memref<8x8x32xf32, #tpu.memory_space<vmem>>, %arg2: memref<8x8x32xf32, #tpu.memory_space<vmem>>, %arg3: memref<1x32xf32, #tpu.memory_space<vmem>>, %arg4: memref<8x8xf32, #tpu.memory_space<vmem>>, %arg5: memref<8x8xf32, #tpu.memory_space<vmem>>, %arg6: memref<8x8xf32, #tpu.memory_space<vmem>>, %arg7: memref<32x128xf32, #tpu.memory_space<vmem>>, %arg8: memref<32x128xf32, #tpu.memory_space<vmem>>, %arg9: memref<1x128xf32, #tpu.memory_space<vmem>>, %arg10: memref<32x32xf32, #tpu.memory_space<vmem>>, %arg11: memref<32x32xf32, #tpu.memory_space<vmem>>, %arg12: memref<1x32xf32, #tpu.memory_space<vmem>>, %arg13: memref<32x32xf32, #tpu.memory_space<vmem>>, %arg14: memref<1x32xf32, #tpu.memory_space<vmem>>, %arg15: memref<1x32xf32, #tpu.memory_space<vmem>>, %arg16: memref<32x32xf32, #tpu.memory_space<vmem>>, %arg17: memref<1x32xf32, #tpu.memory_space<vmem>>, %arg18: memref<32x32xf32, #tpu.memory_space<vmem>>, %arg19: memref<1x32xf32, #tpu.memory_space<vmem>>, %arg20: memref<32x32xf32, #tpu.memory_space<vmem>>, %arg21: memref<1x32xf32, #tpu.memory_space<vmem>>, %arg22: memref<32x32xf32, #tpu.memory_space<vmem>>, %arg23: memref<8x8x8xf32, #tpu.memory_space<vmem>>, %arg24: memref<8x8x1xi32, #tpu.memory_space<vmem>>, %arg25: memref<8x32xf32, #tpu.memory_space<vmem>>, %arg26: memref<8x32xf32, #tpu.memory_space<vmem>>, %arg27: memref<8x32xf32, #tpu.memory_space<vmem>>, %arg28: memref<8x8xf32, #tpu.memory_space<vmem>>, %arg29: memref<8x8x32xf32, #tpu.memory_space<vmem>>, %arg30: memref<8x8x32xf32, #tpu.memory_space<vmem>>) attributes {dimension_semantics = [#tpu.dimension_semantics<arbitrary>], iteration_bounds = array<i64: 1>, scalar_prefetch = 0 : i64, scratch_operands = 6 : i64, tpu.core_type = #tpu.core_type<tc>, window_params = [{pipeline_mode = #tpu.pipeline_mode<synchronous>, transform_indices = @transform_0, window_bounds = array<i64: 8, 8, 32>}, {pipeline_mode = #tpu.pipeline_mode<synchronous>, transform_indices = @transform_1, window_bounds = array<i64: 8, 8, 32>}, {pipeline_mode = #tpu.pipeline_mode<synchronous>, transform_indices = @transform_2, window_bounds = array<i64: 1, 32>}, {pipeline_mode = #tpu.pipeline_mode<synchronous>, transform_indices = @transform_3, window_bounds = array<i64: 8, 8>}, {pipeline_mode = #tpu.pipeline_mode<synchronous>, transform_indices = @transform_4, window_bounds = array<i64: 8, 8>}, {pipeline_mode = #tpu.pipeline_mode<synchronous>, transform_indices = @transform_5, window_bounds = array<i64: 8, 8>}, {pipeline_mode = #tpu.pipeline_mode<synchronous>, transform_indices = @transform_6, window_bounds = array<i64: 32, 128>}, {pipeline_mode = #tpu.pipeline_mode<synchronous>, transform_indices = @transform_7, window_bounds = array<i64: 32, 128>}, {pipeline_mode = #tpu.pipeline_mode<synchronous>, transform_indices = @transform_8, window_bounds = array<i64: 1, 128>}, {pipeline_mode = #tpu.pipeline_mode<synchronous>, transform_indices = @transform_9, window_bounds = array<i64: 32, 32>}, {pipeline_mode = #tpu.pipeline_mode<synchronous>, transform_indices = @transform_10, window_bounds = array<i64: 32, 32>}, {pipeline_mode = #tpu.pipeline_mode<synchronous>, transform_indices = @transform_11, window_bounds = array<i64: 1, 32>}, {pipeline_mode = #tpu.pipeline_mode<synchronous>, transform_indices = @transform_12, window_bounds = array<i64: 32, 32>}, {pipeline_mode = #tpu.pipeline_mode<synchronous>, transform_indices = @transform_13, window_bounds = array<i64: 1, 32>}, {pipeline_mode = #tpu.pipeline_mode<synchronous>, transform_indices = @transform_14, window_bounds = array<i64: 1, 32>}, {pipeline_mode = #tpu.pipeline_mode<synchronous>, transform_indices = @transform_15, window_bounds = array<i64: 32, 32>}, {pipeline_mode = #tpu.pipeline_mode<synchronous>, transform_indices = @transform_16, window_bounds = array<i64: 1, 32>}, {pipeline_mode = #tpu.pipeline_mode<synchronous>, transform_indices = @transform_17, window_bounds = array<i64: 32, 32>}, {pipeline_mode = #tpu.pipeline_mode<synchronous>, transform_indices = @transform_18, window_bounds = array<i64: 1, 32>}, {pipeline_mode = #tpu.pipeline_mode<synchronous>, transform_indices = @transform_19, window_bounds = array<i64: 32, 32>}, {pipeline_mode = #tpu.pipeline_mode<synchronous>, transform_indices = @transform_20, window_bounds = array<i64: 1, 32>}, {pipeline_mode = #tpu.pipeline_mode<synchronous>, transform_indices = @transform_21, window_bounds = array<i64: 32, 32>}, {transform_indices = @transform_22, window_bounds = array<i64: 8, 8, 8>}, {transform_indices = @transform_23, window_bounds = array<i64: 8, 8, 1>}]} {
    %c0 = arith.constant 0 : index
    %c0_0 = arith.constant 0 : index
    %c0_1 = arith.constant 0 : index
    %0 = vector.load %arg1[%c0, %c0_0, %c0_1] : memref<8x8x32xf32, #tpu.memory_space<vmem>>, vector<8x8x32xf32>
    %c0_2 = arith.constant 0 : index
    %c0_3 = arith.constant 0 : index
    %c0_4 = arith.constant 0 : index
    %1 = vector.load %arg2[%c0_2, %c0_3, %c0_4] : memref<8x8x32xf32, #tpu.memory_space<vmem>>, vector<8x8x32xf32>
    %c0_i32 = arith.constant 0 : i32
    %2 = arith.cmpi eq, %arg0, %c0_i32 : i32
    %3 = arith.extui %2 : i1 to i32
    %c0_i32_5 = arith.constant 0 : i32
    %4 = arith.cmpi ne, %3, %c0_i32_5 : i32
    scf.if %4 {
      %cst_404 = arith.constant dense<0.000000e+00> : vector<8x32xf32>
      %1028 = vector.multi_reduction <add>, %0, %cst_404 [1] : vector<8x8x32xf32> to vector<8x32xf32>
      %c0_405 = arith.constant 0 : index
      %c0_406 = arith.constant 0 : index
      %1029 = vector.load %arg25[%c0_405, %c0_406] : memref<8x32xf32, #tpu.memory_space<vmem>>, vector<8x32xf32>
      tpu.vector_store %arg25[%c0_405, %c0_406], %1028 {strides = array<i32>} : memref<8x32xf32, #tpu.memory_space<vmem>>, vector<8x32xf32>,
      %c0_407 = arith.constant 0 : index
      %c0_408 = arith.constant 0 : index
      %1030 = vector.load %arg26[%c0_407, %c0_408] : memref<8x32xf32, #tpu.memory_space<vmem>>, vector<8x32xf32>
      tpu.vector_store %arg26[%c0_407, %c0_408], %1028 {strides = array<i32>} : memref<8x32xf32, #tpu.memory_space<vmem>>, vector<8x32xf32>,
      %c0_409 = arith.constant 0 : index
      %c0_410 = arith.constant 0 : index
      %1031 = vector.load %arg3[%c0_409, %c0_410] : memref<1x32xf32, #tpu.memory_space<vmem>>, vector<1x32xf32>
      %1032 = vector.shape_cast %1031 : vector<1x32xf32> to vector<1x32xf32>
      %1033 = vector.broadcast %1032 : vector<1x32xf32> to vector<8x32xf32>
      %c0_411 = arith.constant 0 : index
      %c0_412 = arith.constant 0 : index
      %1034 = vector.load %arg27[%c0_411, %c0_412] : memref<8x32xf32, #tpu.memory_space<vmem>>, vector<8x32xf32>
      tpu.vector_store %arg27[%c0_411, %c0_412], %1033 {strides = array<i32>} : memref<8x32xf32, #tpu.memory_space<vmem>>, vector<8x32xf32>,
      %c0_413 = arith.constant 0 : index
      %c0_414 = arith.constant 0 : index
      %1035 = vector.load %arg6[%c0_413, %c0_414] : memref<8x8xf32, #tpu.memory_space<vmem>>, vector<8x8xf32>
      %c0_415 = arith.constant 0 : index
      %c0_416 = arith.constant 0 : index
      %1036 = vector.load %arg28[%c0_415, %c0_416] : memref<8x8xf32, #tpu.memory_space<vmem>>, vector<8x8xf32>
      tpu.vector_store %arg28[%c0_415, %c0_416], %1035 {strides = array<i32>} : memref<8x8xf32, #tpu.memory_space<vmem>>, vector<8x8xf32>,
      %cst_417 = arith.constant 0.000000e+00 : f32
      %1037 = vector.broadcast %cst_417 : f32 to vector<8x8x32xf32>
      %c0_418 = arith.constant 0 : index
      %c0_419 = arith.constant 0 : index
      %c0_420 = arith.constant 0 : index
      %1038 = vector.load %arg29[%c0_418, %c0_419, %c0_420] : memref<8x8x32xf32, #tpu.memory_space<vmem>>, vector<8x8x32xf32>
      tpu.vector_store %arg29[%c0_418, %c0_419, %c0_420], %1037 {strides = array<i32>} : memref<8x8x32xf32, #tpu.memory_space<vmem>>, vector<8x8x32xf32>,
      %cst_421 = arith.constant 0.000000e+00 : f32
      %1039 = vector.broadcast %cst_421 : f32 to vector<8x8x32xf32>
      %c0_422 = arith.constant 0 : index
      %c0_423 = arith.constant 0 : index
      %c0_424 = arith.constant 0 : index
      %1040 = vector.load %arg30[%c0_422, %c0_423, %c0_424] : memref<8x8x32xf32, #tpu.memory_space<vmem>>, vector<8x8x32xf32>
      tpu.vector_store %arg30[%c0_422, %c0_423, %c0_424], %1039 {strides = array<i32>} : memref<8x8x32xf32, #tpu.memory_space<vmem>>, vector<8x8x32xf32>,
    } else {
    }
    %c0_6 = arith.constant 0 : index
    %c0_7 = arith.constant 0 : index
    %5 = vector.load %arg7[%c0_6, %c0_7] : memref<32x128xf32, #tpu.memory_space<vmem>>, vector<32x128xf32>
    %c0_8 = arith.constant 0 : index
    %c0_9 = arith.constant 0 : index
    %6 = vector.load %arg8[%c0_8, %c0_9] : memref<32x128xf32, #tpu.memory_space<vmem>>, vector<32x128xf32>
    %c0_10 = arith.constant 0 : index
    %c0_11 = arith.constant 0 : index
    %7 = vector.load %arg9[%c0_10, %c0_11] : memref<1x128xf32, #tpu.memory_space<vmem>>, vector<1x128xf32>
    %c0_12 = arith.constant 0 : index
    %c0_13 = arith.constant 0 : index
    %8 = vector.load %arg10[%c0_12, %c0_13] : memref<32x32xf32, #tpu.memory_space<vmem>>, vector<32x32xf32>
    %c0_14 = arith.constant 0 : index
    %c0_15 = arith.constant 0 : index
    %9 = vector.load %arg11[%c0_14, %c0_15] : memref<32x32xf32, #tpu.memory_space<vmem>>, vector<32x32xf32>
    %c0_16 = arith.constant 0 : index
    %c0_17 = arith.constant 0 : index
    %10 = vector.load %arg12[%c0_16, %c0_17] : memref<1x32xf32, #tpu.memory_space<vmem>>, vector<1x32xf32>
    %c0_18 = arith.constant 0 : index
    %c0_19 = arith.constant 0 : index
    %11 = vector.load %arg13[%c0_18, %c0_19] : memref<32x32xf32, #tpu.memory_space<vmem>>, vector<32x32xf32>
    %c0_20 = arith.constant 0 : index
    %c0_21 = arith.constant 0 : index
    %12 = vector.load %arg14[%c0_20, %c0_21] : memref<1x32xf32, #tpu.memory_space<vmem>>, vector<1x32xf32>
    %c0_22 = arith.constant 0 : index
    %c0_23 = arith.constant 0 : index
    %13 = vector.load %arg15[%c0_22, %c0_23] : memref<1x32xf32, #tpu.memory_space<vmem>>, vector<1x32xf32>
    %14 = vector.shape_cast %13 : vector<1x32xf32> to vector<1x1x32xf32>
    %c0_24 = arith.constant 0 : index
    %c0_25 = arith.constant 0 : index
    %15 = vector.load %arg16[%c0_24, %c0_25] : memref<32x32xf32, #tpu.memory_space<vmem>>, vector<32x32xf32>
    %c0_26 = arith.constant 0 : index
    %c0_27 = arith.constant 0 : index
    %16 = vector.load %arg17[%c0_26, %c0_27] : memref<1x32xf32, #tpu.memory_space<vmem>>, vector<1x32xf32>
    %c0_28 = arith.constant 0 : index
    %c0_29 = arith.constant 0 : index
    %17 = vector.load %arg18[%c0_28, %c0_29] : memref<32x32xf32, #tpu.memory_space<vmem>>, vector<32x32xf32>
    %c0_30 = arith.constant 0 : index
    %c0_31 = arith.constant 0 : index
    %18 = vector.load %arg19[%c0_30, %c0_31] : memref<1x32xf32, #tpu.memory_space<vmem>>, vector<1x32xf32>
    %c0_32 = arith.constant 0 : index
    %c0_33 = arith.constant 0 : index
    %19 = vector.load %arg20[%c0_32, %c0_33] : memref<32x32xf32, #tpu.memory_space<vmem>>, vector<32x32xf32>
    %c0_34 = arith.constant 0 : index
    %c0_35 = arith.constant 0 : index
    %20 = vector.load %arg21[%c0_34, %c0_35] : memref<1x32xf32, #tpu.memory_space<vmem>>, vector<1x32xf32>
    %c0_36 = arith.constant 0 : index
    %c0_37 = arith.constant 0 : index
    %21 = vector.load %arg22[%c0_36, %c0_37] : memref<32x32xf32, #tpu.memory_space<vmem>>, vector<32x32xf32>
    %c0_38 = arith.constant 0 : index
    %c0_39 = arith.constant 0 : index
    %22 = vector.load %arg5[%c0_38, %c0_39] : memref<8x8xf32, #tpu.memory_space<vmem>>, vector<8x8xf32>
    %cst = arith.constant 0.000000e+00 : f32
    %23 = vector.broadcast %cst : f32 to vector<8x8xf32>
    %24 = arith.cmpf ogt, %22, %23 : vector<8x8xf32>
    %c0_40 = arith.constant 0 : index
    %c0_41 = arith.constant 0 : index
    %25 = vector.load %arg4[%c0_40, %c0_41] : memref<8x8xf32, #tpu.memory_space<vmem>>, vector<8x8xf32>
    %cst_42 = arith.constant 0.000000e+00 : f32
    %26 = vector.broadcast %cst_42 : f32 to vector<8x8xf32>
    %27 = arith.cmpf ogt, %25, %26 : vector<8x8xf32>
    %28 = tpu.iota {dimensions = array<i32: 0>} : vector<8x8xi32>
    %29 = tpu.iota {dimensions = array<i32: 1>} : vector<8x8xi32>
    %c0_43 = arith.constant 0 : index
    %c0_44 = arith.constant 0 : index
    %30 = vector.load %arg25[%c0_43, %c0_44] : memref<8x32xf32, #tpu.memory_space<vmem>>, vector<8x32xf32>
    %c0_45 = arith.constant 0 : index
    %c0_46 = arith.constant 0 : index
    %31 = vector.load %arg26[%c0_45, %c0_46] : memref<8x32xf32, #tpu.memory_space<vmem>>, vector<8x32xf32>
    %c0_47 = arith.constant 0 : index
    %c0_48 = arith.constant 0 : index
    %32 = vector.load %arg27[%c0_47, %c0_48] : memref<8x32xf32, #tpu.memory_space<vmem>>, vector<8x32xf32>
    %c0_49 = arith.constant 0 : index
    %c0_50 = arith.constant 0 : index
    %33 = vector.load %arg28[%c0_49, %c0_50] : memref<8x8xf32, #tpu.memory_space<vmem>>, vector<8x8xf32>
    %cst_51 = arith.constant dense<0.000000e+00> : vector<8x32xf32>
    %34 = tpu.matmul %32, %17, %cst_51 {dimension_numbers = #tpu.dot_dimension_numbers<[1], [0], [0], [1], [0, 0, 1, 1], [], []>} : vector<8x32xf32>, vector<32x32xf32>, vector<8x32xf32> -> vector<8x32xf32>
    %35 = vector.broadcast %18 : vector<1x32xf32> to vector<8x32xf32>
    %36 = arith.addf %34, %35 : vector<8x32xf32>
    %37 = vector.shape_cast %36 : vector<8x32xf32> to vector<1x8x32xf32>
    %c0_52 = arith.constant 0 : index
    %c0_53 = arith.constant 0 : index
    %c0_54 = arith.constant 0 : index
    %38 = vector.load %arg29[%c0_52, %c0_53, %c0_54] : memref<8x8x32xf32, #tpu.memory_space<vmem>>, vector<1x8x32xf32>
    tpu.vector_store %arg29[%c0_52, %c0_53, %c0_54], %37 {strides = array<i32>} : memref<8x8x32xf32, #tpu.memory_space<vmem>>, vector<1x8x32xf32>,
    %cst_55 = arith.constant dense<0.000000e+00> : vector<8x32xf32>
    %39 = tpu.matmul %32, %19, %cst_55 {dimension_numbers = #tpu.dot_dimension_numbers<[1], [0], [0], [1], [0, 0, 1, 1], [], []>} : vector<8x32xf32>, vector<32x32xf32>, vector<8x32xf32> -> vector<8x32xf32>
    %40 = vector.broadcast %20 : vector<1x32xf32> to vector<8x32xf32>
    %41 = arith.addf %39, %40 : vector<8x32xf32>
    %42 = vector.shape_cast %41 : vector<8x32xf32> to vector<1x8x32xf32>
    %c0_56 = arith.constant 0 : index
    %c0_57 = arith.constant 0 : index
    %c0_58 = arith.constant 0 : index
    %43 = vector.load %arg30[%c0_56, %c0_57, %c0_58] : memref<8x8x32xf32, #tpu.memory_space<vmem>>, vector<1x8x32xf32>
    tpu.vector_store %arg30[%c0_56, %c0_57, %c0_58], %42 {strides = array<i32>} : memref<8x8x32xf32, #tpu.memory_space<vmem>>, vector<1x8x32xf32>,
    %cst_59 = arith.constant dense<0.000000e+00> : vector<8x128xf32>
    %44 = tpu.matmul %32, %5, %cst_59 {dimension_numbers = #tpu.dot_dimension_numbers<[1], [0], [0], [1], [0, 0, 1, 1], [], []>} : vector<8x32xf32>, vector<32x128xf32>, vector<8x128xf32> -> vector<8x128xf32>
    %cst_60 = arith.constant dense<0.000000e+00> : vector<8x128xf32>
    %45 = tpu.matmul %30, %6, %cst_60 {dimension_numbers = #tpu.dot_dimension_numbers<[1], [0], [0], [1], [0, 0, 1, 1], [], []>} : vector<8x32xf32>, vector<32x128xf32>, vector<8x128xf32> -> vector<8x128xf32>
    %46 = arith.addf %44, %45 : vector<8x128xf32>
    %47 = vector.broadcast %7 : vector<1x128xf32> to vector<8x128xf32>
    %48 = arith.addf %46, %47 : vector<8x128xf32>
    %49 = vector.extract_strided_slice %48 {offsets = [0, 0], sizes = [8, 32], strides = [1, 1]} : vector<8x128xf32> to vector<8x32xf32>
    %50 = arith.negf %49 : vector<8x32xf32>
    %51 = math.exp %50 : vector<8x32xf32>
    %cst_61 = arith.constant 1.000000e+00 : f32
    %52 = vector.broadcast %cst_61 : f32 to vector<8x32xf32>
    %53 = arith.addf %52, %51 : vector<8x32xf32>
    %54 = arith.divf %52, %53 : vector<8x32xf32>
    %55 = vector.extract_strided_slice %48 {offsets = [0, 32], sizes = [8, 32], strides = [1, 1]} : vector<8x128xf32> to vector<8x32xf32>
    %56 = arith.negf %55 : vector<8x32xf32>
    %57 = math.exp %56 : vector<8x32xf32>
    %cst_62 = arith.constant 1.000000e+00 : f32
    %58 = vector.broadcast %cst_62 : f32 to vector<8x32xf32>
    %59 = arith.addf %58, %57 : vector<8x32xf32>
    %60 = arith.divf %58, %59 : vector<8x32xf32>
    %61 = vector.extract_strided_slice %48 {offsets = [0, 64], sizes = [8, 32], strides = [1, 1]} : vector<8x128xf32> to vector<8x32xf32>
    %62 = math.tanh %61 : vector<8x32xf32>
    %63 = arith.mulf %60, %31 : vector<8x32xf32>
    %64 = arith.mulf %54, %62 : vector<8x32xf32>
    %65 = arith.addf %63, %64 : vector<8x32xf32>
    %cst_63 = arith.constant dense<0.000000e+00> : vector<8x32xf32>
    %66 = tpu.matmul %32, %11, %cst_63 {dimension_numbers = #tpu.dot_dimension_numbers<[1], [0], [0], [1], [0, 0, 1, 1], [], []>} : vector<8x32xf32>, vector<32x32xf32>, vector<8x32xf32> -> vector<8x32xf32>
    %67 = vector.broadcast %12 : vector<1x32xf32> to vector<8x32xf32>
    %68 = arith.addf %66, %67 : vector<8x32xf32>
    %69 = vector.shape_cast %68 : vector<8x32xf32> to vector<8x1x32xf32>
    %70 = vector.broadcast %69 : vector<8x1x32xf32> to vector<8x8x32xf32>
    %71 = arith.addf %70, %1 : vector<8x8x32xf32>
    %72 = math.tanh %71 : vector<8x8x32xf32>
    %73 = vector.broadcast %14 : vector<1x1x32xf32> to vector<8x8x32xf32>
    %74 = arith.mulf %72, %73 : vector<8x8x32xf32>
    %cst_64 = arith.constant dense<0.000000e+00> : vector<8x8xf32>
    %75 = vector.multi_reduction <add>, %74, %cst_64 [2] : vector<8x8x32xf32> to vector<8x8xf32>
    %cst_65 = arith.constant -1.000000e+30 : f32
    %76 = vector.broadcast %cst_65 : f32 to vector<8x8xf32>
    %77 = arith.select %27, %75, %76 : vector<8x8xi1>, vector<8x8xf32>
    %cst_66 = arith.constant dense<0xFF800000> : vector<8xf32>
    %78 = vector.multi_reduction <maximumf>, %77, %cst_66 [1] : vector<8x8xf32> to vector<8xf32>
    %79 = vector.shape_cast %78 : vector<8xf32> to vector<8x1xf32>
    %80 = vector.broadcast %79 : vector<8x1xf32> to vector<8x8xf32>
    %81 = arith.subf %77, %80 : vector<8x8xf32>
    %82 = math.exp %81 : vector<8x8xf32>
    %cst_67 = arith.constant dense<0.000000e+00> : vector<8xf32>
    %83 = vector.multi_reduction <add>, %82, %cst_67 [1] : vector<8x8xf32> to vector<8xf32>
    %84 = vector.shape_cast %83 : vector<8xf32> to vector<8x1xf32>
    %85 = vector.broadcast %84 : vector<8x1xf32> to vector<8x8xf32>
    %86 = arith.divf %82, %85 : vector<8x8xf32>
    %87 = vector.shape_cast %86 : vector<8x8xf32> to vector<8x8x1xf32>
    %88 = vector.broadcast %87 : vector<8x8x1xf32> to vector<8x8x32xf32>
    %89 = arith.mulf %88, %1 : vector<8x8x32xf32>
    %cst_68 = arith.constant dense<0.000000e+00> : vector<8x32xf32>
    %90 = vector.multi_reduction <add>, %89, %cst_68 [1] : vector<8x8x32xf32> to vector<8x32xf32>
    %cst_69 = arith.constant dense<0.000000e+00> : vector<8x32xf32>
    %91 = tpu.matmul %90, %8, %cst_69 {dimension_numbers = #tpu.dot_dimension_numbers<[1], [0], [0], [1], [0, 0, 1, 1], [], []>} : vector<8x32xf32>, vector<32x32xf32>, vector<8x32xf32> -> vector<8x32xf32>
    %cst_70 = arith.constant dense<0.000000e+00> : vector<8x32xf32>
    %92 = tpu.matmul %32, %9, %cst_70 {dimension_numbers = #tpu.dot_dimension_numbers<[1], [0], [0], [1], [0, 0, 1, 1], [], []>} : vector<8x32xf32>, vector<32x32xf32>, vector<8x32xf32> -> vector<8x32xf32>
    %93 = arith.addf %91, %92 : vector<8x32xf32>
    %94 = vector.broadcast %10 : vector<1x32xf32> to vector<8x32xf32>
    %95 = arith.addf %93, %94 : vector<8x32xf32>
    %96 = math.tanh %95 : vector<8x32xf32>
    %97 = arith.mulf %86, %33 : vector<8x8xf32>
    %cst_71 = arith.constant dense<0xFF800000> : vector<8xf32>
    %98 = vector.multi_reduction <maximumf>, %97, %cst_71 [1] : vector<8x8xf32> to vector<8xf32>
    %99 = vector.shape_cast %98 : vector<8xf32> to vector<8x1xf32>
    %100 = vector.broadcast %99 : vector<8x1xf32> to vector<8x8xf32>
    %101 = arith.cmpf oeq, %97, %100 : vector<8x8xf32>
    %c8_i32 = arith.constant 8 : i32
    %102 = vector.broadcast %c8_i32 : i32 to vector<8x8xi32>
    %103 = arith.select %101, %29, %102 : vector<8x8xi1>, vector<8x8xi32>
    %cst_72 = arith.constant dense<2147483647> : vector<8xi32>
    %104 = vector.multi_reduction <minsi>, %103, %cst_72 [1] : vector<8x8xi32> to vector<8xi32>
    %105 = vector.shape_cast %104 : vector<8xi32> to vector<8x1xi32>
    %106 = vector.broadcast %105 : vector<8x1xi32> to vector<8x8xi32>
    %107 = arith.cmpi eq, %29, %106 : vector<8x8xi32>
    %108 = arith.extui %107 : vector<8x8xi1> to vector<8x8xi32>
    %109 = arith.sitofp %108 : vector<8x8xi32> to vector<8x8xf32>
    %110 = vector.shape_cast %109 : vector<8x8xf32> to vector<8x8x1xf32>
    %111 = vector.broadcast %110 : vector<8x8x1xf32> to vector<8x8x32xf32>
    %112 = arith.mulf %111, %0 : vector<8x8x32xf32>
    %cst_73 = arith.constant dense<0.000000e+00> : vector<8x32xf32>
    %113 = vector.multi_reduction <add>, %112, %cst_73 [1] : vector<8x8x32xf32> to vector<8x32xf32>
    %114 = vector.shape_cast %86 : vector<8x8xf32> to vector<1x8x8xf32>
    %c0_74 = arith.constant 0 : index
    %c0_75 = arith.constant 0 : index
    %c0_76 = arith.constant 0 : index
    %115 = vector.load %arg23[%c0_74, %c0_75, %c0_76] : memref<8x8x8xf32, #tpu.memory_space<vmem>>, vector<1x8x8xf32>
    tpu.vector_store %arg23[%c0_74, %c0_75, %c0_76], %114 {strides = array<i32>} : memref<8x8x8xf32, #tpu.memory_space<vmem>>, vector<1x8x8xf32>,
    %116 = vector.shape_cast %105 : vector<8x1xi32> to vector<1x8x1xi32>
    %c0_77 = arith.constant 0 : index
    %c0_78 = arith.constant 0 : index
    %c0_79 = arith.constant 0 : index
    %117 = vector.load %arg24[%c0_77, %c0_78, %c0_79] : memref<8x8x1xi32, #tpu.memory_space<vmem>>, vector<1x8x1xi32>
    tpu.vector_store %arg24[%c0_77, %c0_78, %c0_79], %116 {strides = array<i32>} : memref<8x8x1xi32, #tpu.memory_space<vmem>>, vector<1x8x1xi32>,
    %cst_80 = arith.constant 1.000000e+00 : f32
    %118 = vector.broadcast %cst_80 : f32 to vector<8x8xf32>
    %119 = arith.subf %118, %109 : vector<8x8xf32>
    %120 = arith.mulf %33, %119 : vector<8x8xf32>
    %cst_81 = arith.constant dense<0.000000e+00> : vector<8x32xf32>
    %121 = tpu.matmul %113, %17, %cst_81 {dimension_numbers = #tpu.dot_dimension_numbers<[1], [0], [0], [1], [0, 0, 1, 1], [], []>} : vector<8x32xf32>, vector<32x32xf32>, vector<8x32xf32> -> vector<8x32xf32>
    %122 = vector.broadcast %18 : vector<1x32xf32> to vector<8x32xf32>
    %123 = arith.addf %121, %122 : vector<8x32xf32>
    %124 = vector.shape_cast %123 : vector<8x32xf32> to vector<1x8x32xf32>
    %c1 = arith.constant 1 : index
    %c0_82 = arith.constant 0 : index
    %c0_83 = arith.constant 0 : index
    %125 = vector.load %arg29[%c1, %c0_82, %c0_83] : memref<8x8x32xf32, #tpu.memory_space<vmem>>, vector<1x8x32xf32>
    tpu.vector_store %arg29[%c1, %c0_82, %c0_83], %124 {strides = array<i32>} : memref<8x8x32xf32, #tpu.memory_space<vmem>>, vector<1x8x32xf32>,
    %cst_84 = arith.constant dense<0.000000e+00> : vector<8x32xf32>
    %126 = tpu.matmul %113, %19, %cst_84 {dimension_numbers = #tpu.dot_dimension_numbers<[1], [0], [0], [1], [0, 0, 1, 1], [], []>} : vector<8x32xf32>, vector<32x32xf32>, vector<8x32xf32> -> vector<8x32xf32>
    %127 = vector.broadcast %20 : vector<1x32xf32> to vector<8x32xf32>
    %128 = arith.addf %126, %127 : vector<8x32xf32>
    %129 = vector.shape_cast %128 : vector<8x32xf32> to vector<1x8x32xf32>
    %c1_85 = arith.constant 1 : index
    %c0_86 = arith.constant 0 : index
    %c0_87 = arith.constant 0 : index
    %130 = vector.load %arg30[%c1_85, %c0_86, %c0_87] : memref<8x8x32xf32, #tpu.memory_space<vmem>>, vector<1x8x32xf32>
    tpu.vector_store %arg30[%c1_85, %c0_86, %c0_87], %129 {strides = array<i32>} : memref<8x8x32xf32, #tpu.memory_space<vmem>>, vector<1x8x32xf32>,
    %cst_88 = arith.constant dense<0.000000e+00> : vector<8x128xf32>
    %131 = tpu.matmul %113, %5, %cst_88 {dimension_numbers = #tpu.dot_dimension_numbers<[1], [0], [0], [1], [0, 0, 1, 1], [], []>} : vector<8x32xf32>, vector<32x128xf32>, vector<8x128xf32> -> vector<8x128xf32>
    %cst_89 = arith.constant dense<0.000000e+00> : vector<8x128xf32>
    %132 = tpu.matmul %96, %6, %cst_89 {dimension_numbers = #tpu.dot_dimension_numbers<[1], [0], [0], [1], [0, 0, 1, 1], [], []>} : vector<8x32xf32>, vector<32x128xf32>, vector<8x128xf32> -> vector<8x128xf32>
    %133 = arith.addf %131, %132 : vector<8x128xf32>
    %134 = vector.broadcast %7 : vector<1x128xf32> to vector<8x128xf32>
    %135 = arith.addf %133, %134 : vector<8x128xf32>
    %136 = vector.extract_strided_slice %135 {offsets = [0, 0], sizes = [8, 32], strides = [1, 1]} : vector<8x128xf32> to vector<8x32xf32>
    %137 = arith.negf %136 : vector<8x32xf32>
    %138 = math.exp %137 : vector<8x32xf32>
    %cst_90 = arith.constant 1.000000e+00 : f32
    %139 = vector.broadcast %cst_90 : f32 to vector<8x32xf32>
    %140 = arith.addf %139, %138 : vector<8x32xf32>
    %141 = arith.divf %139, %140 : vector<8x32xf32>
    %142 = vector.extract_strided_slice %135 {offsets = [0, 32], sizes = [8, 32], strides = [1, 1]} : vector<8x128xf32> to vector<8x32xf32>
    %143 = arith.negf %142 : vector<8x32xf32>
    %144 = math.exp %143 : vector<8x32xf32>
    %cst_91 = arith.constant 1.000000e+00 : f32
    %145 = vector.broadcast %cst_91 : f32 to vector<8x32xf32>
    %146 = arith.addf %145, %144 : vector<8x32xf32>
    %147 = arith.divf %145, %146 : vector<8x32xf32>
    %148 = vector.extract_strided_slice %135 {offsets = [0, 64], sizes = [8, 32], strides = [1, 1]} : vector<8x128xf32> to vector<8x32xf32>
    %149 = math.tanh %148 : vector<8x32xf32>
    %150 = vector.extract_strided_slice %135 {offsets = [0, 96], sizes = [8, 32], strides = [1, 1]} : vector<8x128xf32> to vector<8x32xf32>
    %151 = arith.negf %150 : vector<8x32xf32>
    %152 = math.exp %151 : vector<8x32xf32>
    %cst_92 = arith.constant 1.000000e+00 : f32
    %153 = vector.broadcast %cst_92 : f32 to vector<8x32xf32>
    %154 = arith.addf %153, %152 : vector<8x32xf32>
    %155 = arith.divf %153, %154 : vector<8x32xf32>
    %156 = arith.mulf %147, %65 : vector<8x32xf32>
    %157 = arith.mulf %141, %149 : vector<8x32xf32>
    %158 = arith.addf %156, %157 : vector<8x32xf32>
    %cst_93 = arith.constant dense<0.000000e+00> : vector<8x32xf32>
    %159 = tpu.matmul %65, %15, %cst_93 {dimension_numbers = #tpu.dot_dimension_numbers<[1], [0], [0], [1], [0, 0, 1, 1], [], []>} : vector<8x32xf32>, vector<32x32xf32>, vector<8x32xf32> -> vector<8x32xf32>
    %160 = vector.broadcast %16 : vector<1x32xf32> to vector<8x32xf32>
    %161 = arith.addf %159, %160 : vector<8x32xf32>
    %c1_i32 = arith.constant 1 : i32
    %162 = vector.broadcast %c1_i32 : i32 to vector<8x8xi32>
    %163 = arith.cmpi slt, %28, %162 : vector<8x8xi32>
    %164 = arith.andi %163, %24 : vector<8x8xi1>
    %cst_94 = arith.constant 0.000000e+00 : f32
    %cst_95 = arith.constant -1.000000e+30 : f32
    %165 = vector.broadcast %cst_94 : f32 to vector<8x8xf32>
    %166 = vector.broadcast %cst_95 : f32 to vector<8x8xf32>
    %167 = arith.select %164, %165, %166 : vector<8x8xi1>, vector<8x8xf32>
    %c0_96 = arith.constant 0 : index
    %c0_97 = arith.constant 0 : index
    %c0_98 = arith.constant 0 : index
    %168 = vector.load %arg29[%c0_96, %c0_97, %c0_98] : memref<8x8x32xf32, #tpu.memory_space<vmem>>, vector<8x8x32xf32>
    %169 = vector.shape_cast %161 : vector<8x32xf32> to vector<1x8x32xf32>
    %170 = vector.broadcast %169 : vector<1x8x32xf32> to vector<8x8x32xf32>
    %171 = arith.mulf %168, %170 : vector<8x8x32xf32>
    %172 = vector.shape_cast %171 : vector<8x8x32xf32> to vector<64x32xf32>
    %cst_99 = arith.constant dense<0.000000e+00> : vector<64x32xf32>
    %173 = tpu.matmul %172, %21, %cst_99 {dimension_numbers = #tpu.dot_dimension_numbers<[1], [0], [0], [1], [0, 0, 1, 1], [], []>} : vector<64x32xf32>, vector<32x32xf32>, vector<64x32xf32> -> vector<64x32xf32>
    %174 = vector.shape_cast %173 : vector<64x32xf32> to vector<8x8x32xf32>
    %175 = vector.shape_cast %167 : vector<8x8xf32> to vector<8x8x1xf32>
    %176 = vector.broadcast %175 : vector<8x8x1xf32> to vector<8x8x32xf32>
    %177 = arith.addf %174, %176 : vector<8x8x32xf32>
    %cst_100 = arith.constant dense<0xFF800000> : vector<8x32xf32>
    %178 = vector.multi_reduction <maximumf>, %177, %cst_100 [0] : vector<8x8x32xf32> to vector<8x32xf32>
    %179 = vector.shape_cast %178 : vector<8x32xf32> to vector<1x8x32xf32>
    %180 = vector.broadcast %179 : vector<1x8x32xf32> to vector<8x8x32xf32>
    %181 = arith.subf %177, %180 : vector<8x8x32xf32>
    %182 = math.exp %181 : vector<8x8x32xf32>
    %cst_101 = arith.constant dense<0.000000e+00> : vector<8x32xf32>
    %183 = vector.multi_reduction <add>, %182, %cst_101 [0] : vector<8x8x32xf32> to vector<8x32xf32>
    %184 = vector.shape_cast %183 : vector<8x32xf32> to vector<1x8x32xf32>
    %185 = vector.broadcast %184 : vector<1x8x32xf32> to vector<8x8x32xf32>
    %186 = arith.divf %182, %185 : vector<8x8x32xf32>
    %c0_102 = arith.constant 0 : index
    %c0_103 = arith.constant 0 : index
    %c0_104 = arith.constant 0 : index
    %187 = vector.load %arg30[%c0_102, %c0_103, %c0_104] : memref<8x8x32xf32, #tpu.memory_space<vmem>>, vector<8x8x32xf32>
    %188 = arith.mulf %186, %187 : vector<8x8x32xf32>
    %cst_105 = arith.constant dense<0.000000e+00> : vector<8x32xf32>
    %189 = vector.multi_reduction <add>, %188, %cst_105 [0] : vector<8x8x32xf32> to vector<8x32xf32>
    %190 = arith.mulf %155, %113 : vector<8x32xf32>
    %cst_106 = arith.constant 1.000000e+00 : f32
    %191 = vector.broadcast %cst_106 : f32 to vector<8x32xf32>
    %192 = arith.subf %191, %155 : vector<8x32xf32>
    %193 = arith.mulf %192, %189 : vector<8x32xf32>
    %194 = arith.addf %190, %193 : vector<8x32xf32>
    %cst_107 = arith.constant dense<0.000000e+00> : vector<8x32xf32>
    %195 = tpu.matmul %194, %11, %cst_107 {dimension_numbers = #tpu.dot_dimension_numbers<[1], [0], [0], [1], [0, 0, 1, 1], [], []>} : vector<8x32xf32>, vector<32x32xf32>, vector<8x32xf32> -> vector<8x32xf32>
    %196 = vector.broadcast %12 : vector<1x32xf32> to vector<8x32xf32>
    %197 = arith.addf %195, %196 : vector<8x32xf32>
    %198 = vector.shape_cast %197 : vector<8x32xf32> to vector<8x1x32xf32>
    %199 = vector.broadcast %198 : vector<8x1x32xf32> to vector<8x8x32xf32>
    %200 = arith.addf %199, %1 : vector<8x8x32xf32>
    %201 = math.tanh %200 : vector<8x8x32xf32>
    %202 = vector.broadcast %14 : vector<1x1x32xf32> to vector<8x8x32xf32>
    %203 = arith.mulf %201, %202 : vector<8x8x32xf32>
    %cst_108 = arith.constant dense<0.000000e+00> : vector<8x8xf32>
    %204 = vector.multi_reduction <add>, %203, %cst_108 [2] : vector<8x8x32xf32> to vector<8x8xf32>
    %cst_109 = arith.constant -1.000000e+30 : f32
    %205 = vector.broadcast %cst_109 : f32 to vector<8x8xf32>
    %206 = arith.select %27, %204, %205 : vector<8x8xi1>, vector<8x8xf32>
    %cst_110 = arith.constant dense<0xFF800000> : vector<8xf32>
    %207 = vector.multi_reduction <maximumf>, %206, %cst_110 [1] : vector<8x8xf32> to vector<8xf32>
    %208 = vector.shape_cast %207 : vector<8xf32> to vector<8x1xf32>
    %209 = vector.broadcast %208 : vector<8x1xf32> to vector<8x8xf32>
    %210 = arith.subf %206, %209 : vector<8x8xf32>
    %211 = math.exp %210 : vector<8x8xf32>
    %cst_111 = arith.constant dense<0.000000e+00> : vector<8xf32>
    %212 = vector.multi_reduction <add>, %211, %cst_111 [1] : vector<8x8xf32> to vector<8xf32>
    %213 = vector.shape_cast %212 : vector<8xf32> to vector<8x1xf32>
    %214 = vector.broadcast %213 : vector<8x1xf32> to vector<8x8xf32>
    %215 = arith.divf %211, %214 : vector<8x8xf32>
    %216 = vector.shape_cast %215 : vector<8x8xf32> to vector<8x8x1xf32>
    %217 = vector.broadcast %216 : vector<8x8x1xf32> to vector<8x8x32xf32>
    %218 = arith.mulf %217, %1 : vector<8x8x32xf32>
    %cst_112 = arith.constant dense<0.000000e+00> : vector<8x32xf32>
    %219 = vector.multi_reduction <add>, %218, %cst_112 [1] : vector<8x8x32xf32> to vector<8x32xf32>
    %cst_113 = arith.constant dense<0.000000e+00> : vector<8x32xf32>
    %220 = tpu.matmul %219, %8, %cst_113 {dimension_numbers = #tpu.dot_dimension_numbers<[1], [0], [0], [1], [0, 0, 1, 1], [], []>} : vector<8x32xf32>, vector<32x32xf32>, vector<8x32xf32> -> vector<8x32xf32>
    %cst_114 = arith.constant dense<0.000000e+00> : vector<8x32xf32>
    %221 = tpu.matmul %194, %9, %cst_114 {dimension_numbers = #tpu.dot_dimension_numbers<[1], [0], [0], [1], [0, 0, 1, 1], [], []>} : vector<8x32xf32>, vector<32x32xf32>, vector<8x32xf32> -> vector<8x32xf32>
    %222 = arith.addf %220, %221 : vector<8x32xf32>
    %223 = vector.broadcast %10 : vector<1x32xf32> to vector<8x32xf32>
    %224 = arith.addf %222, %223 : vector<8x32xf32>
    %225 = math.tanh %224 : vector<8x32xf32>
    %226 = arith.mulf %215, %120 : vector<8x8xf32>
    %cst_115 = arith.constant dense<0xFF800000> : vector<8xf32>
    %227 = vector.multi_reduction <maximumf>, %226, %cst_115 [1] : vector<8x8xf32> to vector<8xf32>
    %228 = vector.shape_cast %227 : vector<8xf32> to vector<8x1xf32>
    %229 = vector.broadcast %228 : vector<8x1xf32> to vector<8x8xf32>
    %230 = arith.cmpf oeq, %226, %229 : vector<8x8xf32>
    %c8_i32_116 = arith.constant 8 : i32
    %231 = vector.broadcast %c8_i32_116 : i32 to vector<8x8xi32>
    %232 = arith.select %230, %29, %231 : vector<8x8xi1>, vector<8x8xi32>
    %cst_117 = arith.constant dense<2147483647> : vector<8xi32>
    %233 = vector.multi_reduction <minsi>, %232, %cst_117 [1] : vector<8x8xi32> to vector<8xi32>
    %234 = vector.shape_cast %233 : vector<8xi32> to vector<8x1xi32>
    %235 = vector.broadcast %234 : vector<8x1xi32> to vector<8x8xi32>
    %236 = arith.cmpi eq, %29, %235 : vector<8x8xi32>
    %237 = arith.extui %236 : vector<8x8xi1> to vector<8x8xi32>
    %238 = arith.sitofp %237 : vector<8x8xi32> to vector<8x8xf32>
    %239 = vector.shape_cast %238 : vector<8x8xf32> to vector<8x8x1xf32>
    %240 = vector.broadcast %239 : vector<8x8x1xf32> to vector<8x8x32xf32>
    %241 = arith.mulf %240, %0 : vector<8x8x32xf32>
    %cst_118 = arith.constant dense<0.000000e+00> : vector<8x32xf32>
    %242 = vector.multi_reduction <add>, %241, %cst_118 [1] : vector<8x8x32xf32> to vector<8x32xf32>
    %243 = vector.shape_cast %215 : vector<8x8xf32> to vector<1x8x8xf32>
    %c1_119 = arith.constant 1 : index
    %c0_120 = arith.constant 0 : index
    %c0_121 = arith.constant 0 : index
    %244 = vector.load %arg23[%c1_119, %c0_120, %c0_121] : memref<8x8x8xf32, #tpu.memory_space<vmem>>, vector<1x8x8xf32>
    tpu.vector_store %arg23[%c1_119, %c0_120, %c0_121], %243 {strides = array<i32>} : memref<8x8x8xf32, #tpu.memory_space<vmem>>, vector<1x8x8xf32>,
    %245 = vector.shape_cast %234 : vector<8x1xi32> to vector<1x8x1xi32>
    %c1_122 = arith.constant 1 : index
    %c0_123 = arith.constant 0 : index
    %c0_124 = arith.constant 0 : index
    %246 = vector.load %arg24[%c1_122, %c0_123, %c0_124] : memref<8x8x1xi32, #tpu.memory_space<vmem>>, vector<1x8x1xi32>
    tpu.vector_store %arg24[%c1_122, %c0_123, %c0_124], %245 {strides = array<i32>} : memref<8x8x1xi32, #tpu.memory_space<vmem>>, vector<1x8x1xi32>,
    %cst_125 = arith.constant 1.000000e+00 : f32
    %247 = vector.broadcast %cst_125 : f32 to vector<8x8xf32>
    %248 = arith.subf %247, %238 : vector<8x8xf32>
    %249 = arith.mulf %120, %248 : vector<8x8xf32>
    %cst_126 = arith.constant dense<0.000000e+00> : vector<8x32xf32>
    %250 = tpu.matmul %242, %17, %cst_126 {dimension_numbers = #tpu.dot_dimension_numbers<[1], [0], [0], [1], [0, 0, 1, 1], [], []>} : vector<8x32xf32>, vector<32x32xf32>, vector<8x32xf32> -> vector<8x32xf32>
    %251 = vector.broadcast %18 : vector<1x32xf32> to vector<8x32xf32>
    %252 = arith.addf %250, %251 : vector<8x32xf32>
    %253 = vector.shape_cast %252 : vector<8x32xf32> to vector<1x8x32xf32>
    %c2 = arith.constant 2 : index
    %c0_127 = arith.constant 0 : index
    %c0_128 = arith.constant 0 : index
    %254 = vector.load %arg29[%c2, %c0_127, %c0_128] : memref<8x8x32xf32, #tpu.memory_space<vmem>>, vector<1x8x32xf32>
    tpu.vector_store %arg29[%c2, %c0_127, %c0_128], %253 {strides = array<i32>} : memref<8x8x32xf32, #tpu.memory_space<vmem>>, vector<1x8x32xf32>,
    %cst_129 = arith.constant dense<0.000000e+00> : vector<8x32xf32>
    %255 = tpu.matmul %242, %19, %cst_129 {dimension_numbers = #tpu.dot_dimension_numbers<[1], [0], [0], [1], [0, 0, 1, 1], [], []>} : vector<8x32xf32>, vector<32x32xf32>, vector<8x32xf32> -> vector<8x32xf32>
    %256 = vector.broadcast %20 : vector<1x32xf32> to vector<8x32xf32>
    %257 = arith.addf %255, %256 : vector<8x32xf32>
    %258 = vector.shape_cast %257 : vector<8x32xf32> to vector<1x8x32xf32>
    %c2_130 = arith.constant 2 : index
    %c0_131 = arith.constant 0 : index
    %c0_132 = arith.constant 0 : index
    %259 = vector.load %arg30[%c2_130, %c0_131, %c0_132] : memref<8x8x32xf32, #tpu.memory_space<vmem>>, vector<1x8x32xf32>
    tpu.vector_store %arg30[%c2_130, %c0_131, %c0_132], %258 {strides = array<i32>} : memref<8x8x32xf32, #tpu.memory_space<vmem>>, vector<1x8x32xf32>,
    %cst_133 = arith.constant dense<0.000000e+00> : vector<8x128xf32>
    %260 = tpu.matmul %242, %5, %cst_133 {dimension_numbers = #tpu.dot_dimension_numbers<[1], [0], [0], [1], [0, 0, 1, 1], [], []>} : vector<8x32xf32>, vector<32x128xf32>, vector<8x128xf32> -> vector<8x128xf32>
    %cst_134 = arith.constant dense<0.000000e+00> : vector<8x128xf32>
    %261 = tpu.matmul %225, %6, %cst_134 {dimension_numbers = #tpu.dot_dimension_numbers<[1], [0], [0], [1], [0, 0, 1, 1], [], []>} : vector<8x32xf32>, vector<32x128xf32>, vector<8x128xf32> -> vector<8x128xf32>
    %262 = arith.addf %260, %261 : vector<8x128xf32>
    %263 = vector.broadcast %7 : vector<1x128xf32> to vector<8x128xf32>
    %264 = arith.addf %262, %263 : vector<8x128xf32>
    %265 = vector.extract_strided_slice %264 {offsets = [0, 0], sizes = [8, 32], strides = [1, 1]} : vector<8x128xf32> to vector<8x32xf32>
    %266 = arith.negf %265 : vector<8x32xf32>
    %267 = math.exp %266 : vector<8x32xf32>
    %cst_135 = arith.constant 1.000000e+00 : f32
    %268 = vector.broadcast %cst_135 : f32 to vector<8x32xf32>
    %269 = arith.addf %268, %267 : vector<8x32xf32>
    %270 = arith.divf %268, %269 : vector<8x32xf32>
    %271 = vector.extract_strided_slice %264 {offsets = [0, 32], sizes = [8, 32], strides = [1, 1]} : vector<8x128xf32> to vector<8x32xf32>
    %272 = arith.negf %271 : vector<8x32xf32>
    %273 = math.exp %272 : vector<8x32xf32>
    %cst_136 = arith.constant 1.000000e+00 : f32
    %274 = vector.broadcast %cst_136 : f32 to vector<8x32xf32>
    %275 = arith.addf %274, %273 : vector<8x32xf32>
    %276 = arith.divf %274, %275 : vector<8x32xf32>
    %277 = vector.extract_strided_slice %264 {offsets = [0, 64], sizes = [8, 32], strides = [1, 1]} : vector<8x128xf32> to vector<8x32xf32>
    %278 = math.tanh %277 : vector<8x32xf32>
    %279 = vector.extract_strided_slice %264 {offsets = [0, 96], sizes = [8, 32], strides = [1, 1]} : vector<8x128xf32> to vector<8x32xf32>
    %280 = arith.negf %279 : vector<8x32xf32>
    %281 = math.exp %280 : vector<8x32xf32>
    %cst_137 = arith.constant 1.000000e+00 : f32
    %282 = vector.broadcast %cst_137 : f32 to vector<8x32xf32>
    %283 = arith.addf %282, %281 : vector<8x32xf32>
    %284 = arith.divf %282, %283 : vector<8x32xf32>
    %285 = arith.mulf %276, %158 : vector<8x32xf32>
    %286 = arith.mulf %270, %278 : vector<8x32xf32>
    %287 = arith.addf %285, %286 : vector<8x32xf32>
    %cst_138 = arith.constant dense<0.000000e+00> : vector<8x32xf32>
    %288 = tpu.matmul %158, %15, %cst_138 {dimension_numbers = #tpu.dot_dimension_numbers<[1], [0], [0], [1], [0, 0, 1, 1], [], []>} : vector<8x32xf32>, vector<32x32xf32>, vector<8x32xf32> -> vector<8x32xf32>
    %289 = vector.broadcast %16 : vector<1x32xf32> to vector<8x32xf32>
    %290 = arith.addf %288, %289 : vector<8x32xf32>
    %c2_i32 = arith.constant 2 : i32
    %291 = vector.broadcast %c2_i32 : i32 to vector<8x8xi32>
    %292 = arith.cmpi slt, %28, %291 : vector<8x8xi32>
    %293 = arith.andi %292, %24 : vector<8x8xi1>
    %cst_139 = arith.constant 0.000000e+00 : f32
    %cst_140 = arith.constant -1.000000e+30 : f32
    %294 = vector.broadcast %cst_139 : f32 to vector<8x8xf32>
    %295 = vector.broadcast %cst_140 : f32 to vector<8x8xf32>
    %296 = arith.select %293, %294, %295 : vector<8x8xi1>, vector<8x8xf32>
    %c0_141 = arith.constant 0 : index
    %c0_142 = arith.constant 0 : index
    %c0_143 = arith.constant 0 : index
    %297 = vector.load %arg29[%c0_141, %c0_142, %c0_143] : memref<8x8x32xf32, #tpu.memory_space<vmem>>, vector<8x8x32xf32>
    %298 = vector.shape_cast %290 : vector<8x32xf32> to vector<1x8x32xf32>
    %299 = vector.broadcast %298 : vector<1x8x32xf32> to vector<8x8x32xf32>
    %300 = arith.mulf %297, %299 : vector<8x8x32xf32>
    %301 = vector.shape_cast %300 : vector<8x8x32xf32> to vector<64x32xf32>
    %cst_144 = arith.constant dense<0.000000e+00> : vector<64x32xf32>
    %302 = tpu.matmul %301, %21, %cst_144 {dimension_numbers = #tpu.dot_dimension_numbers<[1], [0], [0], [1], [0, 0, 1, 1], [], []>} : vector<64x32xf32>, vector<32x32xf32>, vector<64x32xf32> -> vector<64x32xf32>
    %303 = vector.shape_cast %302 : vector<64x32xf32> to vector<8x8x32xf32>
    %304 = vector.shape_cast %296 : vector<8x8xf32> to vector<8x8x1xf32>
    %305 = vector.broadcast %304 : vector<8x8x1xf32> to vector<8x8x32xf32>
    %306 = arith.addf %303, %305 : vector<8x8x32xf32>
    %cst_145 = arith.constant dense<0xFF800000> : vector<8x32xf32>
    %307 = vector.multi_reduction <maximumf>, %306, %cst_145 [0] : vector<8x8x32xf32> to vector<8x32xf32>
    %308 = vector.shape_cast %307 : vector<8x32xf32> to vector<1x8x32xf32>
    %309 = vector.broadcast %308 : vector<1x8x32xf32> to vector<8x8x32xf32>
    %310 = arith.subf %306, %309 : vector<8x8x32xf32>
    %311 = math.exp %310 : vector<8x8x32xf32>
    %cst_146 = arith.constant dense<0.000000e+00> : vector<8x32xf32>
    %312 = vector.multi_reduction <add>, %311, %cst_146 [0] : vector<8x8x32xf32> to vector<8x32xf32>
    %313 = vector.shape_cast %312 : vector<8x32xf32> to vector<1x8x32xf32>
    %314 = vector.broadcast %313 : vector<1x8x32xf32> to vector<8x8x32xf32>
    %315 = arith.divf %311, %314 : vector<8x8x32xf32>
    %c0_147 = arith.constant 0 : index
    %c0_148 = arith.constant 0 : index
    %c0_149 = arith.constant 0 : index
    %316 = vector.load %arg30[%c0_147, %c0_148, %c0_149] : memref<8x8x32xf32, #tpu.memory_space<vmem>>, vector<8x8x32xf32>
    %317 = arith.mulf %315, %316 : vector<8x8x32xf32>
    %cst_150 = arith.constant dense<0.000000e+00> : vector<8x32xf32>
    %318 = vector.multi_reduction <add>, %317, %cst_150 [0] : vector<8x8x32xf32> to vector<8x32xf32>
    %319 = arith.mulf %284, %242 : vector<8x32xf32>
    %cst_151 = arith.constant 1.000000e+00 : f32
    %320 = vector.broadcast %cst_151 : f32 to vector<8x32xf32>
    %321 = arith.subf %320, %284 : vector<8x32xf32>
    %322 = arith.mulf %321, %318 : vector<8x32xf32>
    %323 = arith.addf %319, %322 : vector<8x32xf32>
    %cst_152 = arith.constant dense<0.000000e+00> : vector<8x32xf32>
    %324 = tpu.matmul %323, %11, %cst_152 {dimension_numbers = #tpu.dot_dimension_numbers<[1], [0], [0], [1], [0, 0, 1, 1], [], []>} : vector<8x32xf32>, vector<32x32xf32>, vector<8x32xf32> -> vector<8x32xf32>
    %325 = vector.broadcast %12 : vector<1x32xf32> to vector<8x32xf32>
    %326 = arith.addf %324, %325 : vector<8x32xf32>
    %327 = vector.shape_cast %326 : vector<8x32xf32> to vector<8x1x32xf32>
    %328 = vector.broadcast %327 : vector<8x1x32xf32> to vector<8x8x32xf32>
    %329 = arith.addf %328, %1 : vector<8x8x32xf32>
    %330 = math.tanh %329 : vector<8x8x32xf32>
    %331 = vector.broadcast %14 : vector<1x1x32xf32> to vector<8x8x32xf32>
    %332 = arith.mulf %330, %331 : vector<8x8x32xf32>
    %cst_153 = arith.constant dense<0.000000e+00> : vector<8x8xf32>
    %333 = vector.multi_reduction <add>, %332, %cst_153 [2] : vector<8x8x32xf32> to vector<8x8xf32>
    %cst_154 = arith.constant -1.000000e+30 : f32
    %334 = vector.broadcast %cst_154 : f32 to vector<8x8xf32>
    %335 = arith.select %27, %333, %334 : vector<8x8xi1>, vector<8x8xf32>
    %cst_155 = arith.constant dense<0xFF800000> : vector<8xf32>
    %336 = vector.multi_reduction <maximumf>, %335, %cst_155 [1] : vector<8x8xf32> to vector<8xf32>
    %337 = vector.shape_cast %336 : vector<8xf32> to vector<8x1xf32>
    %338 = vector.broadcast %337 : vector<8x1xf32> to vector<8x8xf32>
    %339 = arith.subf %335, %338 : vector<8x8xf32>
    %340 = math.exp %339 : vector<8x8xf32>
    %cst_156 = arith.constant dense<0.000000e+00> : vector<8xf32>
    %341 = vector.multi_reduction <add>, %340, %cst_156 [1] : vector<8x8xf32> to vector<8xf32>
    %342 = vector.shape_cast %341 : vector<8xf32> to vector<8x1xf32>
    %343 = vector.broadcast %342 : vector<8x1xf32> to vector<8x8xf32>
    %344 = arith.divf %340, %343 : vector<8x8xf32>
    %345 = vector.shape_cast %344 : vector<8x8xf32> to vector<8x8x1xf32>
    %346 = vector.broadcast %345 : vector<8x8x1xf32> to vector<8x8x32xf32>
    %347 = arith.mulf %346, %1 : vector<8x8x32xf32>
    %cst_157 = arith.constant dense<0.000000e+00> : vector<8x32xf32>
    %348 = vector.multi_reduction <add>, %347, %cst_157 [1] : vector<8x8x32xf32> to vector<8x32xf32>
    %cst_158 = arith.constant dense<0.000000e+00> : vector<8x32xf32>
    %349 = tpu.matmul %348, %8, %cst_158 {dimension_numbers = #tpu.dot_dimension_numbers<[1], [0], [0], [1], [0, 0, 1, 1], [], []>} : vector<8x32xf32>, vector<32x32xf32>, vector<8x32xf32> -> vector<8x32xf32>
    %cst_159 = arith.constant dense<0.000000e+00> : vector<8x32xf32>
    %350 = tpu.matmul %323, %9, %cst_159 {dimension_numbers = #tpu.dot_dimension_numbers<[1], [0], [0], [1], [0, 0, 1, 1], [], []>} : vector<8x32xf32>, vector<32x32xf32>, vector<8x32xf32> -> vector<8x32xf32>
    %351 = arith.addf %349, %350 : vector<8x32xf32>
    %352 = vector.broadcast %10 : vector<1x32xf32> to vector<8x32xf32>
    %353 = arith.addf %351, %352 : vector<8x32xf32>
    %354 = math.tanh %353 : vector<8x32xf32>
    %355 = arith.mulf %344, %249 : vector<8x8xf32>
    %cst_160 = arith.constant dense<0xFF800000> : vector<8xf32>
    %356 = vector.multi_reduction <maximumf>, %355, %cst_160 [1] : vector<8x8xf32> to vector<8xf32>
    %357 = vector.shape_cast %356 : vector<8xf32> to vector<8x1xf32>
    %358 = vector.broadcast %357 : vector<8x1xf32> to vector<8x8xf32>
    %359 = arith.cmpf oeq, %355, %358 : vector<8x8xf32>
    %c8_i32_161 = arith.constant 8 : i32
    %360 = vector.broadcast %c8_i32_161 : i32 to vector<8x8xi32>
    %361 = arith.select %359, %29, %360 : vector<8x8xi1>, vector<8x8xi32>
    %cst_162 = arith.constant dense<2147483647> : vector<8xi32>
    %362 = vector.multi_reduction <minsi>, %361, %cst_162 [1] : vector<8x8xi32> to vector<8xi32>
    %363 = vector.shape_cast %362 : vector<8xi32> to vector<8x1xi32>
    %364 = vector.broadcast %363 : vector<8x1xi32> to vector<8x8xi32>
    %365 = arith.cmpi eq, %29, %364 : vector<8x8xi32>
    %366 = arith.extui %365 : vector<8x8xi1> to vector<8x8xi32>
    %367 = arith.sitofp %366 : vector<8x8xi32> to vector<8x8xf32>
    %368 = vector.shape_cast %367 : vector<8x8xf32> to vector<8x8x1xf32>
    %369 = vector.broadcast %368 : vector<8x8x1xf32> to vector<8x8x32xf32>
    %370 = arith.mulf %369, %0 : vector<8x8x32xf32>
    %cst_163 = arith.constant dense<0.000000e+00> : vector<8x32xf32>
    %371 = vector.multi_reduction <add>, %370, %cst_163 [1] : vector<8x8x32xf32> to vector<8x32xf32>
    %372 = vector.shape_cast %344 : vector<8x8xf32> to vector<1x8x8xf32>
    %c2_164 = arith.constant 2 : index
    %c0_165 = arith.constant 0 : index
    %c0_166 = arith.constant 0 : index
    %373 = vector.load %arg23[%c2_164, %c0_165, %c0_166] : memref<8x8x8xf32, #tpu.memory_space<vmem>>, vector<1x8x8xf32>
    tpu.vector_store %arg23[%c2_164, %c0_165, %c0_166], %372 {strides = array<i32>} : memref<8x8x8xf32, #tpu.memory_space<vmem>>, vector<1x8x8xf32>,
    %374 = vector.shape_cast %363 : vector<8x1xi32> to vector<1x8x1xi32>
    %c2_167 = arith.constant 2 : index
    %c0_168 = arith.constant 0 : index
    %c0_169 = arith.constant 0 : index
    %375 = vector.load %arg24[%c2_167, %c0_168, %c0_169] : memref<8x8x1xi32, #tpu.memory_space<vmem>>, vector<1x8x1xi32>
    tpu.vector_store %arg24[%c2_167, %c0_168, %c0_169], %374 {strides = array<i32>} : memref<8x8x1xi32, #tpu.memory_space<vmem>>, vector<1x8x1xi32>,
    %cst_170 = arith.constant 1.000000e+00 : f32
    %376 = vector.broadcast %cst_170 : f32 to vector<8x8xf32>
    %377 = arith.subf %376, %367 : vector<8x8xf32>
    %378 = arith.mulf %249, %377 : vector<8x8xf32>
    %cst_171 = arith.constant dense<0.000000e+00> : vector<8x32xf32>
    %379 = tpu.matmul %371, %17, %cst_171 {dimension_numbers = #tpu.dot_dimension_numbers<[1], [0], [0], [1], [0, 0, 1, 1], [], []>} : vector<8x32xf32>, vector<32x32xf32>, vector<8x32xf32> -> vector<8x32xf32>
    %380 = vector.broadcast %18 : vector<1x32xf32> to vector<8x32xf32>
    %381 = arith.addf %379, %380 : vector<8x32xf32>
    %382 = vector.shape_cast %381 : vector<8x32xf32> to vector<1x8x32xf32>
    %c3 = arith.constant 3 : index
    %c0_172 = arith.constant 0 : index
    %c0_173 = arith.constant 0 : index
    %383 = vector.load %arg29[%c3, %c0_172, %c0_173] : memref<8x8x32xf32, #tpu.memory_space<vmem>>, vector<1x8x32xf32>
    tpu.vector_store %arg29[%c3, %c0_172, %c0_173], %382 {strides = array<i32>} : memref<8x8x32xf32, #tpu.memory_space<vmem>>, vector<1x8x32xf32>,
    %cst_174 = arith.constant dense<0.000000e+00> : vector<8x32xf32>
    %384 = tpu.matmul %371, %19, %cst_174 {dimension_numbers = #tpu.dot_dimension_numbers<[1], [0], [0], [1], [0, 0, 1, 1], [], []>} : vector<8x32xf32>, vector<32x32xf32>, vector<8x32xf32> -> vector<8x32xf32>
    %385 = vector.broadcast %20 : vector<1x32xf32> to vector<8x32xf32>
    %386 = arith.addf %384, %385 : vector<8x32xf32>
    %387 = vector.shape_cast %386 : vector<8x32xf32> to vector<1x8x32xf32>
    %c3_175 = arith.constant 3 : index
    %c0_176 = arith.constant 0 : index
    %c0_177 = arith.constant 0 : index
    %388 = vector.load %arg30[%c3_175, %c0_176, %c0_177] : memref<8x8x32xf32, #tpu.memory_space<vmem>>, vector<1x8x32xf32>
    tpu.vector_store %arg30[%c3_175, %c0_176, %c0_177], %387 {strides = array<i32>} : memref<8x8x32xf32, #tpu.memory_space<vmem>>, vector<1x8x32xf32>,
    %cst_178 = arith.constant dense<0.000000e+00> : vector<8x128xf32>
    %389 = tpu.matmul %371, %5, %cst_178 {dimension_numbers = #tpu.dot_dimension_numbers<[1], [0], [0], [1], [0, 0, 1, 1], [], []>} : vector<8x32xf32>, vector<32x128xf32>, vector<8x128xf32> -> vector<8x128xf32>
    %cst_179 = arith.constant dense<0.000000e+00> : vector<8x128xf32>
    %390 = tpu.matmul %354, %6, %cst_179 {dimension_numbers = #tpu.dot_dimension_numbers<[1], [0], [0], [1], [0, 0, 1, 1], [], []>} : vector<8x32xf32>, vector<32x128xf32>, vector<8x128xf32> -> vector<8x128xf32>
    %391 = arith.addf %389, %390 : vector<8x128xf32>
    %392 = vector.broadcast %7 : vector<1x128xf32> to vector<8x128xf32>
    %393 = arith.addf %391, %392 : vector<8x128xf32>
    %394 = vector.extract_strided_slice %393 {offsets = [0, 0], sizes = [8, 32], strides = [1, 1]} : vector<8x128xf32> to vector<8x32xf32>
    %395 = arith.negf %394 : vector<8x32xf32>
    %396 = math.exp %395 : vector<8x32xf32>
    %cst_180 = arith.constant 1.000000e+00 : f32
    %397 = vector.broadcast %cst_180 : f32 to vector<8x32xf32>
    %398 = arith.addf %397, %396 : vector<8x32xf32>
    %399 = arith.divf %397, %398 : vector<8x32xf32>
    %400 = vector.extract_strided_slice %393 {offsets = [0, 32], sizes = [8, 32], strides = [1, 1]} : vector<8x128xf32> to vector<8x32xf32>
    %401 = arith.negf %400 : vector<8x32xf32>
    %402 = math.exp %401 : vector<8x32xf32>
    %cst_181 = arith.constant 1.000000e+00 : f32
    %403 = vector.broadcast %cst_181 : f32 to vector<8x32xf32>
    %404 = arith.addf %403, %402 : vector<8x32xf32>
    %405 = arith.divf %403, %404 : vector<8x32xf32>
    %406 = vector.extract_strided_slice %393 {offsets = [0, 64], sizes = [8, 32], strides = [1, 1]} : vector<8x128xf32> to vector<8x32xf32>
    %407 = math.tanh %406 : vector<8x32xf32>
    %408 = vector.extract_strided_slice %393 {offsets = [0, 96], sizes = [8, 32], strides = [1, 1]} : vector<8x128xf32> to vector<8x32xf32>
    %409 = arith.negf %408 : vector<8x32xf32>
    %410 = math.exp %409 : vector<8x32xf32>
    %cst_182 = arith.constant 1.000000e+00 : f32
    %411 = vector.broadcast %cst_182 : f32 to vector<8x32xf32>
    %412 = arith.addf %411, %410 : vector<8x32xf32>
    %413 = arith.divf %411, %412 : vector<8x32xf32>
    %414 = arith.mulf %405, %287 : vector<8x32xf32>
    %415 = arith.mulf %399, %407 : vector<8x32xf32>
    %416 = arith.addf %414, %415 : vector<8x32xf32>
    %cst_183 = arith.constant dense<0.000000e+00> : vector<8x32xf32>
    %417 = tpu.matmul %287, %15, %cst_183 {dimension_numbers = #tpu.dot_dimension_numbers<[1], [0], [0], [1], [0, 0, 1, 1], [], []>} : vector<8x32xf32>, vector<32x32xf32>, vector<8x32xf32> -> vector<8x32xf32>
    %418 = vector.broadcast %16 : vector<1x32xf32> to vector<8x32xf32>
    %419 = arith.addf %417, %418 : vector<8x32xf32>
    %c3_i32 = arith.constant 3 : i32
    %420 = vector.broadcast %c3_i32 : i32 to vector<8x8xi32>
    %421 = arith.cmpi slt, %28, %420 : vector<8x8xi32>
    %422 = arith.andi %421, %24 : vector<8x8xi1>
    %cst_184 = arith.constant 0.000000e+00 : f32
    %cst_185 = arith.constant -1.000000e+30 : f32
    %423 = vector.broadcast %cst_184 : f32 to vector<8x8xf32>
    %424 = vector.broadcast %cst_185 : f32 to vector<8x8xf32>
    %425 = arith.select %422, %423, %424 : vector<8x8xi1>, vector<8x8xf32>
    %c0_186 = arith.constant 0 : index
    %c0_187 = arith.constant 0 : index
    %c0_188 = arith.constant 0 : index
    %426 = vector.load %arg29[%c0_186, %c0_187, %c0_188] : memref<8x8x32xf32, #tpu.memory_space<vmem>>, vector<8x8x32xf32>
    %427 = vector.shape_cast %419 : vector<8x32xf32> to vector<1x8x32xf32>
    %428 = vector.broadcast %427 : vector<1x8x32xf32> to vector<8x8x32xf32>
    %429 = arith.mulf %426, %428 : vector<8x8x32xf32>
    %430 = vector.shape_cast %429 : vector<8x8x32xf32> to vector<64x32xf32>
    %cst_189 = arith.constant dense<0.000000e+00> : vector<64x32xf32>
    %431 = tpu.matmul %430, %21, %cst_189 {dimension_numbers = #tpu.dot_dimension_numbers<[1], [0], [0], [1], [0, 0, 1, 1], [], []>} : vector<64x32xf32>, vector<32x32xf32>, vector<64x32xf32> -> vector<64x32xf32>
    %432 = vector.shape_cast %431 : vector<64x32xf32> to vector<8x8x32xf32>
    %433 = vector.shape_cast %425 : vector<8x8xf32> to vector<8x8x1xf32>
    %434 = vector.broadcast %433 : vector<8x8x1xf32> to vector<8x8x32xf32>
    %435 = arith.addf %432, %434 : vector<8x8x32xf32>
    %cst_190 = arith.constant dense<0xFF800000> : vector<8x32xf32>
    %436 = vector.multi_reduction <maximumf>, %435, %cst_190 [0] : vector<8x8x32xf32> to vector<8x32xf32>
    %437 = vector.shape_cast %436 : vector<8x32xf32> to vector<1x8x32xf32>
    %438 = vector.broadcast %437 : vector<1x8x32xf32> to vector<8x8x32xf32>
    %439 = arith.subf %435, %438 : vector<8x8x32xf32>
    %440 = math.exp %439 : vector<8x8x32xf32>
    %cst_191 = arith.constant dense<0.000000e+00> : vector<8x32xf32>
    %441 = vector.multi_reduction <add>, %440, %cst_191 [0] : vector<8x8x32xf32> to vector<8x32xf32>
    %442 = vector.shape_cast %441 : vector<8x32xf32> to vector<1x8x32xf32>
    %443 = vector.broadcast %442 : vector<1x8x32xf32> to vector<8x8x32xf32>
    %444 = arith.divf %440, %443 : vector<8x8x32xf32>
    %c0_192 = arith.constant 0 : index
    %c0_193 = arith.constant 0 : index
    %c0_194 = arith.constant 0 : index
    %445 = vector.load %arg30[%c0_192, %c0_193, %c0_194] : memref<8x8x32xf32, #tpu.memory_space<vmem>>, vector<8x8x32xf32>
    %446 = arith.mulf %444, %445 : vector<8x8x32xf32>
    %cst_195 = arith.constant dense<0.000000e+00> : vector<8x32xf32>
    %447 = vector.multi_reduction <add>, %446, %cst_195 [0] : vector<8x8x32xf32> to vector<8x32xf32>
    %448 = arith.mulf %413, %371 : vector<8x32xf32>
    %cst_196 = arith.constant 1.000000e+00 : f32
    %449 = vector.broadcast %cst_196 : f32 to vector<8x32xf32>
    %450 = arith.subf %449, %413 : vector<8x32xf32>
    %451 = arith.mulf %450, %447 : vector<8x32xf32>
    %452 = arith.addf %448, %451 : vector<8x32xf32>
    %cst_197 = arith.constant dense<0.000000e+00> : vector<8x32xf32>
    %453 = tpu.matmul %452, %11, %cst_197 {dimension_numbers = #tpu.dot_dimension_numbers<[1], [0], [0], [1], [0, 0, 1, 1], [], []>} : vector<8x32xf32>, vector<32x32xf32>, vector<8x32xf32> -> vector<8x32xf32>
    %454 = vector.broadcast %12 : vector<1x32xf32> to vector<8x32xf32>
    %455 = arith.addf %453, %454 : vector<8x32xf32>
    %456 = vector.shape_cast %455 : vector<8x32xf32> to vector<8x1x32xf32>
    %457 = vector.broadcast %456 : vector<8x1x32xf32> to vector<8x8x32xf32>
    %458 = arith.addf %457, %1 : vector<8x8x32xf32>
    %459 = math.tanh %458 : vector<8x8x32xf32>
    %460 = vector.broadcast %14 : vector<1x1x32xf32> to vector<8x8x32xf32>
    %461 = arith.mulf %459, %460 : vector<8x8x32xf32>
    %cst_198 = arith.constant dense<0.000000e+00> : vector<8x8xf32>
    %462 = vector.multi_reduction <add>, %461, %cst_198 [2] : vector<8x8x32xf32> to vector<8x8xf32>
    %cst_199 = arith.constant -1.000000e+30 : f32
    %463 = vector.broadcast %cst_199 : f32 to vector<8x8xf32>
    %464 = arith.select %27, %462, %463 : vector<8x8xi1>, vector<8x8xf32>
    %cst_200 = arith.constant dense<0xFF800000> : vector<8xf32>
    %465 = vector.multi_reduction <maximumf>, %464, %cst_200 [1] : vector<8x8xf32> to vector<8xf32>
    %466 = vector.shape_cast %465 : vector<8xf32> to vector<8x1xf32>
    %467 = vector.broadcast %466 : vector<8x1xf32> to vector<8x8xf32>
    %468 = arith.subf %464, %467 : vector<8x8xf32>
    %469 = math.exp %468 : vector<8x8xf32>
    %cst_201 = arith.constant dense<0.000000e+00> : vector<8xf32>
    %470 = vector.multi_reduction <add>, %469, %cst_201 [1] : vector<8x8xf32> to vector<8xf32>
    %471 = vector.shape_cast %470 : vector<8xf32> to vector<8x1xf32>
    %472 = vector.broadcast %471 : vector<8x1xf32> to vector<8x8xf32>
    %473 = arith.divf %469, %472 : vector<8x8xf32>
    %474 = vector.shape_cast %473 : vector<8x8xf32> to vector<8x8x1xf32>
    %475 = vector.broadcast %474 : vector<8x8x1xf32> to vector<8x8x32xf32>
    %476 = arith.mulf %475, %1 : vector<8x8x32xf32>
    %cst_202 = arith.constant dense<0.000000e+00> : vector<8x32xf32>
    %477 = vector.multi_reduction <add>, %476, %cst_202 [1] : vector<8x8x32xf32> to vector<8x32xf32>
    %cst_203 = arith.constant dense<0.000000e+00> : vector<8x32xf32>
    %478 = tpu.matmul %477, %8, %cst_203 {dimension_numbers = #tpu.dot_dimension_numbers<[1], [0], [0], [1], [0, 0, 1, 1], [], []>} : vector<8x32xf32>, vector<32x32xf32>, vector<8x32xf32> -> vector<8x32xf32>
    %cst_204 = arith.constant dense<0.000000e+00> : vector<8x32xf32>
    %479 = tpu.matmul %452, %9, %cst_204 {dimension_numbers = #tpu.dot_dimension_numbers<[1], [0], [0], [1], [0, 0, 1, 1], [], []>} : vector<8x32xf32>, vector<32x32xf32>, vector<8x32xf32> -> vector<8x32xf32>
    %480 = arith.addf %478, %479 : vector<8x32xf32>
    %481 = vector.broadcast %10 : vector<1x32xf32> to vector<8x32xf32>
    %482 = arith.addf %480, %481 : vector<8x32xf32>
    %483 = math.tanh %482 : vector<8x32xf32>
    %484 = arith.mulf %473, %378 : vector<8x8xf32>
    %cst_205 = arith.constant dense<0xFF800000> : vector<8xf32>
    %485 = vector.multi_reduction <maximumf>, %484, %cst_205 [1] : vector<8x8xf32> to vector<8xf32>
    %486 = vector.shape_cast %485 : vector<8xf32> to vector<8x1xf32>
    %487 = vector.broadcast %486 : vector<8x1xf32> to vector<8x8xf32>
    %488 = arith.cmpf oeq, %484, %487 : vector<8x8xf32>
    %c8_i32_206 = arith.constant 8 : i32
    %489 = vector.broadcast %c8_i32_206 : i32 to vector<8x8xi32>
    %490 = arith.select %488, %29, %489 : vector<8x8xi1>, vector<8x8xi32>
    %cst_207 = arith.constant dense<2147483647> : vector<8xi32>
    %491 = vector.multi_reduction <minsi>, %490, %cst_207 [1] : vector<8x8xi32> to vector<8xi32>
    %492 = vector.shape_cast %491 : vector<8xi32> to vector<8x1xi32>
    %493 = vector.broadcast %492 : vector<8x1xi32> to vector<8x8xi32>
    %494 = arith.cmpi eq, %29, %493 : vector<8x8xi32>
    %495 = arith.extui %494 : vector<8x8xi1> to vector<8x8xi32>
    %496 = arith.sitofp %495 : vector<8x8xi32> to vector<8x8xf32>
    %497 = vector.shape_cast %496 : vector<8x8xf32> to vector<8x8x1xf32>
    %498 = vector.broadcast %497 : vector<8x8x1xf32> to vector<8x8x32xf32>
    %499 = arith.mulf %498, %0 : vector<8x8x32xf32>
    %cst_208 = arith.constant dense<0.000000e+00> : vector<8x32xf32>
    %500 = vector.multi_reduction <add>, %499, %cst_208 [1] : vector<8x8x32xf32> to vector<8x32xf32>
    %501 = vector.shape_cast %473 : vector<8x8xf32> to vector<1x8x8xf32>
    %c3_209 = arith.constant 3 : index
    %c0_210 = arith.constant 0 : index
    %c0_211 = arith.constant 0 : index
    %502 = vector.load %arg23[%c3_209, %c0_210, %c0_211] : memref<8x8x8xf32, #tpu.memory_space<vmem>>, vector<1x8x8xf32>
    tpu.vector_store %arg23[%c3_209, %c0_210, %c0_211], %501 {strides = array<i32>} : memref<8x8x8xf32, #tpu.memory_space<vmem>>, vector<1x8x8xf32>,
    %503 = vector.shape_cast %492 : vector<8x1xi32> to vector<1x8x1xi32>
    %c3_212 = arith.constant 3 : index
    %c0_213 = arith.constant 0 : index
    %c0_214 = arith.constant 0 : index
    %504 = vector.load %arg24[%c3_212, %c0_213, %c0_214] : memref<8x8x1xi32, #tpu.memory_space<vmem>>, vector<1x8x1xi32>
    tpu.vector_store %arg24[%c3_212, %c0_213, %c0_214], %503 {strides = array<i32>} : memref<8x8x1xi32, #tpu.memory_space<vmem>>, vector<1x8x1xi32>,
    %cst_215 = arith.constant 1.000000e+00 : f32
    %505 = vector.broadcast %cst_215 : f32 to vector<8x8xf32>
    %506 = arith.subf %505, %496 : vector<8x8xf32>
    %507 = arith.mulf %378, %506 : vector<8x8xf32>
    %cst_216 = arith.constant dense<0.000000e+00> : vector<8x32xf32>
    %508 = tpu.matmul %500, %17, %cst_216 {dimension_numbers = #tpu.dot_dimension_numbers<[1], [0], [0], [1], [0, 0, 1, 1], [], []>} : vector<8x32xf32>, vector<32x32xf32>, vector<8x32xf32> -> vector<8x32xf32>
    %509 = vector.broadcast %18 : vector<1x32xf32> to vector<8x32xf32>
    %510 = arith.addf %508, %509 : vector<8x32xf32>
    %511 = vector.shape_cast %510 : vector<8x32xf32> to vector<1x8x32xf32>
    %c4 = arith.constant 4 : index
    %c0_217 = arith.constant 0 : index
    %c0_218 = arith.constant 0 : index
    %512 = vector.load %arg29[%c4, %c0_217, %c0_218] : memref<8x8x32xf32, #tpu.memory_space<vmem>>, vector<1x8x32xf32>
    tpu.vector_store %arg29[%c4, %c0_217, %c0_218], %511 {strides = array<i32>} : memref<8x8x32xf32, #tpu.memory_space<vmem>>, vector<1x8x32xf32>,
    %cst_219 = arith.constant dense<0.000000e+00> : vector<8x32xf32>
    %513 = tpu.matmul %500, %19, %cst_219 {dimension_numbers = #tpu.dot_dimension_numbers<[1], [0], [0], [1], [0, 0, 1, 1], [], []>} : vector<8x32xf32>, vector<32x32xf32>, vector<8x32xf32> -> vector<8x32xf32>
    %514 = vector.broadcast %20 : vector<1x32xf32> to vector<8x32xf32>
    %515 = arith.addf %513, %514 : vector<8x32xf32>
    %516 = vector.shape_cast %515 : vector<8x32xf32> to vector<1x8x32xf32>
    %c4_220 = arith.constant 4 : index
    %c0_221 = arith.constant 0 : index
    %c0_222 = arith.constant 0 : index
    %517 = vector.load %arg30[%c4_220, %c0_221, %c0_222] : memref<8x8x32xf32, #tpu.memory_space<vmem>>, vector<1x8x32xf32>
    tpu.vector_store %arg30[%c4_220, %c0_221, %c0_222], %516 {strides = array<i32>} : memref<8x8x32xf32, #tpu.memory_space<vmem>>, vector<1x8x32xf32>,
    %cst_223 = arith.constant dense<0.000000e+00> : vector<8x128xf32>
    %518 = tpu.matmul %500, %5, %cst_223 {dimension_numbers = #tpu.dot_dimension_numbers<[1], [0], [0], [1], [0, 0, 1, 1], [], []>} : vector<8x32xf32>, vector<32x128xf32>, vector<8x128xf32> -> vector<8x128xf32>
    %cst_224 = arith.constant dense<0.000000e+00> : vector<8x128xf32>
    %519 = tpu.matmul %483, %6, %cst_224 {dimension_numbers = #tpu.dot_dimension_numbers<[1], [0], [0], [1], [0, 0, 1, 1], [], []>} : vector<8x32xf32>, vector<32x128xf32>, vector<8x128xf32> -> vector<8x128xf32>
    %520 = arith.addf %518, %519 : vector<8x128xf32>
    %521 = vector.broadcast %7 : vector<1x128xf32> to vector<8x128xf32>
    %522 = arith.addf %520, %521 : vector<8x128xf32>
    %523 = vector.extract_strided_slice %522 {offsets = [0, 0], sizes = [8, 32], strides = [1, 1]} : vector<8x128xf32> to vector<8x32xf32>
    %524 = arith.negf %523 : vector<8x32xf32>
    %525 = math.exp %524 : vector<8x32xf32>
    %cst_225 = arith.constant 1.000000e+00 : f32
    %526 = vector.broadcast %cst_225 : f32 to vector<8x32xf32>
    %527 = arith.addf %526, %525 : vector<8x32xf32>
    %528 = arith.divf %526, %527 : vector<8x32xf32>
    %529 = vector.extract_strided_slice %522 {offsets = [0, 32], sizes = [8, 32], strides = [1, 1]} : vector<8x128xf32> to vector<8x32xf32>
    %530 = arith.negf %529 : vector<8x32xf32>
    %531 = math.exp %530 : vector<8x32xf32>
    %cst_226 = arith.constant 1.000000e+00 : f32
    %532 = vector.broadcast %cst_226 : f32 to vector<8x32xf32>
    %533 = arith.addf %532, %531 : vector<8x32xf32>
    %534 = arith.divf %532, %533 : vector<8x32xf32>
    %535 = vector.extract_strided_slice %522 {offsets = [0, 64], sizes = [8, 32], strides = [1, 1]} : vector<8x128xf32> to vector<8x32xf32>
    %536 = math.tanh %535 : vector<8x32xf32>
    %537 = vector.extract_strided_slice %522 {offsets = [0, 96], sizes = [8, 32], strides = [1, 1]} : vector<8x128xf32> to vector<8x32xf32>
    %538 = arith.negf %537 : vector<8x32xf32>
    %539 = math.exp %538 : vector<8x32xf32>
    %cst_227 = arith.constant 1.000000e+00 : f32
    %540 = vector.broadcast %cst_227 : f32 to vector<8x32xf32>
    %541 = arith.addf %540, %539 : vector<8x32xf32>
    %542 = arith.divf %540, %541 : vector<8x32xf32>
    %543 = arith.mulf %534, %416 : vector<8x32xf32>
    %544 = arith.mulf %528, %536 : vector<8x32xf32>
    %545 = arith.addf %543, %544 : vector<8x32xf32>
    %cst_228 = arith.constant dense<0.000000e+00> : vector<8x32xf32>
    %546 = tpu.matmul %416, %15, %cst_228 {dimension_numbers = #tpu.dot_dimension_numbers<[1], [0], [0], [1], [0, 0, 1, 1], [], []>} : vector<8x32xf32>, vector<32x32xf32>, vector<8x32xf32> -> vector<8x32xf32>
    %547 = vector.broadcast %16 : vector<1x32xf32> to vector<8x32xf32>
    %548 = arith.addf %546, %547 : vector<8x32xf32>
    %c4_i32 = arith.constant 4 : i32
    %549 = vector.broadcast %c4_i32 : i32 to vector<8x8xi32>
    %550 = arith.cmpi slt, %28, %549 : vector<8x8xi32>
    %551 = arith.andi %550, %24 : vector<8x8xi1>
    %cst_229 = arith.constant 0.000000e+00 : f32
    %cst_230 = arith.constant -1.000000e+30 : f32
    %552 = vector.broadcast %cst_229 : f32 to vector<8x8xf32>
    %553 = vector.broadcast %cst_230 : f32 to vector<8x8xf32>
    %554 = arith.select %551, %552, %553 : vector<8x8xi1>, vector<8x8xf32>
    %c0_231 = arith.constant 0 : index
    %c0_232 = arith.constant 0 : index
    %c0_233 = arith.constant 0 : index
    %555 = vector.load %arg29[%c0_231, %c0_232, %c0_233] : memref<8x8x32xf32, #tpu.memory_space<vmem>>, vector<8x8x32xf32>
    %556 = vector.shape_cast %548 : vector<8x32xf32> to vector<1x8x32xf32>
    %557 = vector.broadcast %556 : vector<1x8x32xf32> to vector<8x8x32xf32>
    %558 = arith.mulf %555, %557 : vector<8x8x32xf32>
    %559 = vector.shape_cast %558 : vector<8x8x32xf32> to vector<64x32xf32>
    %cst_234 = arith.constant dense<0.000000e+00> : vector<64x32xf32>
    %560 = tpu.matmul %559, %21, %cst_234 {dimension_numbers = #tpu.dot_dimension_numbers<[1], [0], [0], [1], [0, 0, 1, 1], [], []>} : vector<64x32xf32>, vector<32x32xf32>, vector<64x32xf32> -> vector<64x32xf32>
    %561 = vector.shape_cast %560 : vector<64x32xf32> to vector<8x8x32xf32>
    %562 = vector.shape_cast %554 : vector<8x8xf32> to vector<8x8x1xf32>
    %563 = vector.broadcast %562 : vector<8x8x1xf32> to vector<8x8x32xf32>
    %564 = arith.addf %561, %563 : vector<8x8x32xf32>
    %cst_235 = arith.constant dense<0xFF800000> : vector<8x32xf32>
    %565 = vector.multi_reduction <maximumf>, %564, %cst_235 [0] : vector<8x8x32xf32> to vector<8x32xf32>
    %566 = vector.shape_cast %565 : vector<8x32xf32> to vector<1x8x32xf32>
    %567 = vector.broadcast %566 : vector<1x8x32xf32> to vector<8x8x32xf32>
    %568 = arith.subf %564, %567 : vector<8x8x32xf32>
    %569 = math.exp %568 : vector<8x8x32xf32>
    %cst_236 = arith.constant dense<0.000000e+00> : vector<8x32xf32>
    %570 = vector.multi_reduction <add>, %569, %cst_236 [0] : vector<8x8x32xf32> to vector<8x32xf32>
    %571 = vector.shape_cast %570 : vector<8x32xf32> to vector<1x8x32xf32>
    %572 = vector.broadcast %571 : vector<1x8x32xf32> to vector<8x8x32xf32>
    %573 = arith.divf %569, %572 : vector<8x8x32xf32>
    %c0_237 = arith.constant 0 : index
    %c0_238 = arith.constant 0 : index
    %c0_239 = arith.constant 0 : index
    %574 = vector.load %arg30[%c0_237, %c0_238, %c0_239] : memref<8x8x32xf32, #tpu.memory_space<vmem>>, vector<8x8x32xf32>
    %575 = arith.mulf %573, %574 : vector<8x8x32xf32>
    %cst_240 = arith.constant dense<0.000000e+00> : vector<8x32xf32>
    %576 = vector.multi_reduction <add>, %575, %cst_240 [0] : vector<8x8x32xf32> to vector<8x32xf32>
    %577 = arith.mulf %542, %500 : vector<8x32xf32>
    %cst_241 = arith.constant 1.000000e+00 : f32
    %578 = vector.broadcast %cst_241 : f32 to vector<8x32xf32>
    %579 = arith.subf %578, %542 : vector<8x32xf32>
    %580 = arith.mulf %579, %576 : vector<8x32xf32>
    %581 = arith.addf %577, %580 : vector<8x32xf32>
    %cst_242 = arith.constant dense<0.000000e+00> : vector<8x32xf32>
    %582 = tpu.matmul %581, %11, %cst_242 {dimension_numbers = #tpu.dot_dimension_numbers<[1], [0], [0], [1], [0, 0, 1, 1], [], []>} : vector<8x32xf32>, vector<32x32xf32>, vector<8x32xf32> -> vector<8x32xf32>
    %583 = vector.broadcast %12 : vector<1x32xf32> to vector<8x32xf32>
    %584 = arith.addf %582, %583 : vector<8x32xf32>
    %585 = vector.shape_cast %584 : vector<8x32xf32> to vector<8x1x32xf32>
    %586 = vector.broadcast %585 : vector<8x1x32xf32> to vector<8x8x32xf32>
    %587 = arith.addf %586, %1 : vector<8x8x32xf32>
    %588 = math.tanh %587 : vector<8x8x32xf32>
    %589 = vector.broadcast %14 : vector<1x1x32xf32> to vector<8x8x32xf32>
    %590 = arith.mulf %588, %589 : vector<8x8x32xf32>
    %cst_243 = arith.constant dense<0.000000e+00> : vector<8x8xf32>
    %591 = vector.multi_reduction <add>, %590, %cst_243 [2] : vector<8x8x32xf32> to vector<8x8xf32>
    %cst_244 = arith.constant -1.000000e+30 : f32
    %592 = vector.broadcast %cst_244 : f32 to vector<8x8xf32>
    %593 = arith.select %27, %591, %592 : vector<8x8xi1>, vector<8x8xf32>
    %cst_245 = arith.constant dense<0xFF800000> : vector<8xf32>
    %594 = vector.multi_reduction <maximumf>, %593, %cst_245 [1] : vector<8x8xf32> to vector<8xf32>
    %595 = vector.shape_cast %594 : vector<8xf32> to vector<8x1xf32>
    %596 = vector.broadcast %595 : vector<8x1xf32> to vector<8x8xf32>
    %597 = arith.subf %593, %596 : vector<8x8xf32>
    %598 = math.exp %597 : vector<8x8xf32>
    %cst_246 = arith.constant dense<0.000000e+00> : vector<8xf32>
    %599 = vector.multi_reduction <add>, %598, %cst_246 [1] : vector<8x8xf32> to vector<8xf32>
    %600 = vector.shape_cast %599 : vector<8xf32> to vector<8x1xf32>
    %601 = vector.broadcast %600 : vector<8x1xf32> to vector<8x8xf32>
    %602 = arith.divf %598, %601 : vector<8x8xf32>
    %603 = vector.shape_cast %602 : vector<8x8xf32> to vector<8x8x1xf32>
    %604 = vector.broadcast %603 : vector<8x8x1xf32> to vector<8x8x32xf32>
    %605 = arith.mulf %604, %1 : vector<8x8x32xf32>
    %cst_247 = arith.constant dense<0.000000e+00> : vector<8x32xf32>
    %606 = vector.multi_reduction <add>, %605, %cst_247 [1] : vector<8x8x32xf32> to vector<8x32xf32>
    %cst_248 = arith.constant dense<0.000000e+00> : vector<8x32xf32>
    %607 = tpu.matmul %606, %8, %cst_248 {dimension_numbers = #tpu.dot_dimension_numbers<[1], [0], [0], [1], [0, 0, 1, 1], [], []>} : vector<8x32xf32>, vector<32x32xf32>, vector<8x32xf32> -> vector<8x32xf32>
    %cst_249 = arith.constant dense<0.000000e+00> : vector<8x32xf32>
    %608 = tpu.matmul %581, %9, %cst_249 {dimension_numbers = #tpu.dot_dimension_numbers<[1], [0], [0], [1], [0, 0, 1, 1], [], []>} : vector<8x32xf32>, vector<32x32xf32>, vector<8x32xf32> -> vector<8x32xf32>
    %609 = arith.addf %607, %608 : vector<8x32xf32>
    %610 = vector.broadcast %10 : vector<1x32xf32> to vector<8x32xf32>
    %611 = arith.addf %609, %610 : vector<8x32xf32>
    %612 = math.tanh %611 : vector<8x32xf32>
    %613 = arith.mulf %602, %507 : vector<8x8xf32>
    %cst_250 = arith.constant dense<0xFF800000> : vector<8xf32>
    %614 = vector.multi_reduction <maximumf>, %613, %cst_250 [1] : vector<8x8xf32> to vector<8xf32>
    %615 = vector.shape_cast %614 : vector<8xf32> to vector<8x1xf32>
    %616 = vector.broadcast %615 : vector<8x1xf32> to vector<8x8xf32>
    %617 = arith.cmpf oeq, %613, %616 : vector<8x8xf32>
    %c8_i32_251 = arith.constant 8 : i32
    %618 = vector.broadcast %c8_i32_251 : i32 to vector<8x8xi32>
    %619 = arith.select %617, %29, %618 : vector<8x8xi1>, vector<8x8xi32>
    %cst_252 = arith.constant dense<2147483647> : vector<8xi32>
    %620 = vector.multi_reduction <minsi>, %619, %cst_252 [1] : vector<8x8xi32> to vector<8xi32>
    %621 = vector.shape_cast %620 : vector<8xi32> to vector<8x1xi32>
    %622 = vector.broadcast %621 : vector<8x1xi32> to vector<8x8xi32>
    %623 = arith.cmpi eq, %29, %622 : vector<8x8xi32>
    %624 = arith.extui %623 : vector<8x8xi1> to vector<8x8xi32>
    %625 = arith.sitofp %624 : vector<8x8xi32> to vector<8x8xf32>
    %626 = vector.shape_cast %625 : vector<8x8xf32> to vector<8x8x1xf32>
    %627 = vector.broadcast %626 : vector<8x8x1xf32> to vector<8x8x32xf32>
    %628 = arith.mulf %627, %0 : vector<8x8x32xf32>
    %cst_253 = arith.constant dense<0.000000e+00> : vector<8x32xf32>
    %629 = vector.multi_reduction <add>, %628, %cst_253 [1] : vector<8x8x32xf32> to vector<8x32xf32>
    %630 = vector.shape_cast %602 : vector<8x8xf32> to vector<1x8x8xf32>
    %c4_254 = arith.constant 4 : index
    %c0_255 = arith.constant 0 : index
    %c0_256 = arith.constant 0 : index
    %631 = vector.load %arg23[%c4_254, %c0_255, %c0_256] : memref<8x8x8xf32, #tpu.memory_space<vmem>>, vector<1x8x8xf32>
    tpu.vector_store %arg23[%c4_254, %c0_255, %c0_256], %630 {strides = array<i32>} : memref<8x8x8xf32, #tpu.memory_space<vmem>>, vector<1x8x8xf32>,
    %632 = vector.shape_cast %621 : vector<8x1xi32> to vector<1x8x1xi32>
    %c4_257 = arith.constant 4 : index
    %c0_258 = arith.constant 0 : index
    %c0_259 = arith.constant 0 : index
    %633 = vector.load %arg24[%c4_257, %c0_258, %c0_259] : memref<8x8x1xi32, #tpu.memory_space<vmem>>, vector<1x8x1xi32>
    tpu.vector_store %arg24[%c4_257, %c0_258, %c0_259], %632 {strides = array<i32>} : memref<8x8x1xi32, #tpu.memory_space<vmem>>, vector<1x8x1xi32>,
    %cst_260 = arith.constant 1.000000e+00 : f32
    %634 = vector.broadcast %cst_260 : f32 to vector<8x8xf32>
    %635 = arith.subf %634, %625 : vector<8x8xf32>
    %636 = arith.mulf %507, %635 : vector<8x8xf32>
    %cst_261 = arith.constant dense<0.000000e+00> : vector<8x32xf32>
    %637 = tpu.matmul %629, %17, %cst_261 {dimension_numbers = #tpu.dot_dimension_numbers<[1], [0], [0], [1], [0, 0, 1, 1], [], []>} : vector<8x32xf32>, vector<32x32xf32>, vector<8x32xf32> -> vector<8x32xf32>
    %638 = vector.broadcast %18 : vector<1x32xf32> to vector<8x32xf32>
    %639 = arith.addf %637, %638 : vector<8x32xf32>
    %640 = vector.shape_cast %639 : vector<8x32xf32> to vector<1x8x32xf32>
    %c5 = arith.constant 5 : index
    %c0_262 = arith.constant 0 : index
    %c0_263 = arith.constant 0 : index
    %641 = vector.load %arg29[%c5, %c0_262, %c0_263] : memref<8x8x32xf32, #tpu.memory_space<vmem>>, vector<1x8x32xf32>
    tpu.vector_store %arg29[%c5, %c0_262, %c0_263], %640 {strides = array<i32>} : memref<8x8x32xf32, #tpu.memory_space<vmem>>, vector<1x8x32xf32>,
    %cst_264 = arith.constant dense<0.000000e+00> : vector<8x32xf32>
    %642 = tpu.matmul %629, %19, %cst_264 {dimension_numbers = #tpu.dot_dimension_numbers<[1], [0], [0], [1], [0, 0, 1, 1], [], []>} : vector<8x32xf32>, vector<32x32xf32>, vector<8x32xf32> -> vector<8x32xf32>
    %643 = vector.broadcast %20 : vector<1x32xf32> to vector<8x32xf32>
    %644 = arith.addf %642, %643 : vector<8x32xf32>
    %645 = vector.shape_cast %644 : vector<8x32xf32> to vector<1x8x32xf32>
    %c5_265 = arith.constant 5 : index
    %c0_266 = arith.constant 0 : index
    %c0_267 = arith.constant 0 : index
    %646 = vector.load %arg30[%c5_265, %c0_266, %c0_267] : memref<8x8x32xf32, #tpu.memory_space<vmem>>, vector<1x8x32xf32>
    tpu.vector_store %arg30[%c5_265, %c0_266, %c0_267], %645 {strides = array<i32>} : memref<8x8x32xf32, #tpu.memory_space<vmem>>, vector<1x8x32xf32>,
    %cst_268 = arith.constant dense<0.000000e+00> : vector<8x128xf32>
    %647 = tpu.matmul %629, %5, %cst_268 {dimension_numbers = #tpu.dot_dimension_numbers<[1], [0], [0], [1], [0, 0, 1, 1], [], []>} : vector<8x32xf32>, vector<32x128xf32>, vector<8x128xf32> -> vector<8x128xf32>
    %cst_269 = arith.constant dense<0.000000e+00> : vector<8x128xf32>
    %648 = tpu.matmul %612, %6, %cst_269 {dimension_numbers = #tpu.dot_dimension_numbers<[1], [0], [0], [1], [0, 0, 1, 1], [], []>} : vector<8x32xf32>, vector<32x128xf32>, vector<8x128xf32> -> vector<8x128xf32>
    %649 = arith.addf %647, %648 : vector<8x128xf32>
    %650 = vector.broadcast %7 : vector<1x128xf32> to vector<8x128xf32>
    %651 = arith.addf %649, %650 : vector<8x128xf32>
    %652 = vector.extract_strided_slice %651 {offsets = [0, 0], sizes = [8, 32], strides = [1, 1]} : vector<8x128xf32> to vector<8x32xf32>
    %653 = arith.negf %652 : vector<8x32xf32>
    %654 = math.exp %653 : vector<8x32xf32>
    %cst_270 = arith.constant 1.000000e+00 : f32
    %655 = vector.broadcast %cst_270 : f32 to vector<8x32xf32>
    %656 = arith.addf %655, %654 : vector<8x32xf32>
    %657 = arith.divf %655, %656 : vector<8x32xf32>
    %658 = vector.extract_strided_slice %651 {offsets = [0, 32], sizes = [8, 32], strides = [1, 1]} : vector<8x128xf32> to vector<8x32xf32>
    %659 = arith.negf %658 : vector<8x32xf32>
    %660 = math.exp %659 : vector<8x32xf32>
    %cst_271 = arith.constant 1.000000e+00 : f32
    %661 = vector.broadcast %cst_271 : f32 to vector<8x32xf32>
    %662 = arith.addf %661, %660 : vector<8x32xf32>
    %663 = arith.divf %661, %662 : vector<8x32xf32>
    %664 = vector.extract_strided_slice %651 {offsets = [0, 64], sizes = [8, 32], strides = [1, 1]} : vector<8x128xf32> to vector<8x32xf32>
    %665 = math.tanh %664 : vector<8x32xf32>
    %666 = vector.extract_strided_slice %651 {offsets = [0, 96], sizes = [8, 32], strides = [1, 1]} : vector<8x128xf32> to vector<8x32xf32>
    %667 = arith.negf %666 : vector<8x32xf32>
    %668 = math.exp %667 : vector<8x32xf32>
    %cst_272 = arith.constant 1.000000e+00 : f32
    %669 = vector.broadcast %cst_272 : f32 to vector<8x32xf32>
    %670 = arith.addf %669, %668 : vector<8x32xf32>
    %671 = arith.divf %669, %670 : vector<8x32xf32>
    %672 = arith.mulf %663, %545 : vector<8x32xf32>
    %673 = arith.mulf %657, %665 : vector<8x32xf32>
    %674 = arith.addf %672, %673 : vector<8x32xf32>
    %cst_273 = arith.constant dense<0.000000e+00> : vector<8x32xf32>
    %675 = tpu.matmul %545, %15, %cst_273 {dimension_numbers = #tpu.dot_dimension_numbers<[1], [0], [0], [1], [0, 0, 1, 1], [], []>} : vector<8x32xf32>, vector<32x32xf32>, vector<8x32xf32> -> vector<8x32xf32>
    %676 = vector.broadcast %16 : vector<1x32xf32> to vector<8x32xf32>
    %677 = arith.addf %675, %676 : vector<8x32xf32>
    %c5_i32 = arith.constant 5 : i32
    %678 = vector.broadcast %c5_i32 : i32 to vector<8x8xi32>
    %679 = arith.cmpi slt, %28, %678 : vector<8x8xi32>
    %680 = arith.andi %679, %24 : vector<8x8xi1>
    %cst_274 = arith.constant 0.000000e+00 : f32
    %cst_275 = arith.constant -1.000000e+30 : f32
    %681 = vector.broadcast %cst_274 : f32 to vector<8x8xf32>
    %682 = vector.broadcast %cst_275 : f32 to vector<8x8xf32>
    %683 = arith.select %680, %681, %682 : vector<8x8xi1>, vector<8x8xf32>
    %c0_276 = arith.constant 0 : index
    %c0_277 = arith.constant 0 : index
    %c0_278 = arith.constant 0 : index
    %684 = vector.load %arg29[%c0_276, %c0_277, %c0_278] : memref<8x8x32xf32, #tpu.memory_space<vmem>>, vector<8x8x32xf32>
    %685 = vector.shape_cast %677 : vector<8x32xf32> to vector<1x8x32xf32>
    %686 = vector.broadcast %685 : vector<1x8x32xf32> to vector<8x8x32xf32>
    %687 = arith.mulf %684, %686 : vector<8x8x32xf32>
    %688 = vector.shape_cast %687 : vector<8x8x32xf32> to vector<64x32xf32>
    %cst_279 = arith.constant dense<0.000000e+00> : vector<64x32xf32>
    %689 = tpu.matmul %688, %21, %cst_279 {dimension_numbers = #tpu.dot_dimension_numbers<[1], [0], [0], [1], [0, 0, 1, 1], [], []>} : vector<64x32xf32>, vector<32x32xf32>, vector<64x32xf32> -> vector<64x32xf32>
    %690 = vector.shape_cast %689 : vector<64x32xf32> to vector<8x8x32xf32>
    %691 = vector.shape_cast %683 : vector<8x8xf32> to vector<8x8x1xf32>
    %692 = vector.broadcast %691 : vector<8x8x1xf32> to vector<8x8x32xf32>
    %693 = arith.addf %690, %692 : vector<8x8x32xf32>
    %cst_280 = arith.constant dense<0xFF800000> : vector<8x32xf32>
    %694 = vector.multi_reduction <maximumf>, %693, %cst_280 [0] : vector<8x8x32xf32> to vector<8x32xf32>
    %695 = vector.shape_cast %694 : vector<8x32xf32> to vector<1x8x32xf32>
    %696 = vector.broadcast %695 : vector<1x8x32xf32> to vector<8x8x32xf32>
    %697 = arith.subf %693, %696 : vector<8x8x32xf32>
    %698 = math.exp %697 : vector<8x8x32xf32>
    %cst_281 = arith.constant dense<0.000000e+00> : vector<8x32xf32>
    %699 = vector.multi_reduction <add>, %698, %cst_281 [0] : vector<8x8x32xf32> to vector<8x32xf32>
    %700 = vector.shape_cast %699 : vector<8x32xf32> to vector<1x8x32xf32>
    %701 = vector.broadcast %700 : vector<1x8x32xf32> to vector<8x8x32xf32>
    %702 = arith.divf %698, %701 : vector<8x8x32xf32>
    %c0_282 = arith.constant 0 : index
    %c0_283 = arith.constant 0 : index
    %c0_284 = arith.constant 0 : index
    %703 = vector.load %arg30[%c0_282, %c0_283, %c0_284] : memref<8x8x32xf32, #tpu.memory_space<vmem>>, vector<8x8x32xf32>
    %704 = arith.mulf %702, %703 : vector<8x8x32xf32>
    %cst_285 = arith.constant dense<0.000000e+00> : vector<8x32xf32>
    %705 = vector.multi_reduction <add>, %704, %cst_285 [0] : vector<8x8x32xf32> to vector<8x32xf32>
    %706 = arith.mulf %671, %629 : vector<8x32xf32>
    %cst_286 = arith.constant 1.000000e+00 : f32
    %707 = vector.broadcast %cst_286 : f32 to vector<8x32xf32>
    %708 = arith.subf %707, %671 : vector<8x32xf32>
    %709 = arith.mulf %708, %705 : vector<8x32xf32>
    %710 = arith.addf %706, %709 : vector<8x32xf32>
    %cst_287 = arith.constant dense<0.000000e+00> : vector<8x32xf32>
    %711 = tpu.matmul %710, %11, %cst_287 {dimension_numbers = #tpu.dot_dimension_numbers<[1], [0], [0], [1], [0, 0, 1, 1], [], []>} : vector<8x32xf32>, vector<32x32xf32>, vector<8x32xf32> -> vector<8x32xf32>
    %712 = vector.broadcast %12 : vector<1x32xf32> to vector<8x32xf32>
    %713 = arith.addf %711, %712 : vector<8x32xf32>
    %714 = vector.shape_cast %713 : vector<8x32xf32> to vector<8x1x32xf32>
    %715 = vector.broadcast %714 : vector<8x1x32xf32> to vector<8x8x32xf32>
    %716 = arith.addf %715, %1 : vector<8x8x32xf32>
    %717 = math.tanh %716 : vector<8x8x32xf32>
    %718 = vector.broadcast %14 : vector<1x1x32xf32> to vector<8x8x32xf32>
    %719 = arith.mulf %717, %718 : vector<8x8x32xf32>
    %cst_288 = arith.constant dense<0.000000e+00> : vector<8x8xf32>
    %720 = vector.multi_reduction <add>, %719, %cst_288 [2] : vector<8x8x32xf32> to vector<8x8xf32>
    %cst_289 = arith.constant -1.000000e+30 : f32
    %721 = vector.broadcast %cst_289 : f32 to vector<8x8xf32>
    %722 = arith.select %27, %720, %721 : vector<8x8xi1>, vector<8x8xf32>
    %cst_290 = arith.constant dense<0xFF800000> : vector<8xf32>
    %723 = vector.multi_reduction <maximumf>, %722, %cst_290 [1] : vector<8x8xf32> to vector<8xf32>
    %724 = vector.shape_cast %723 : vector<8xf32> to vector<8x1xf32>
    %725 = vector.broadcast %724 : vector<8x1xf32> to vector<8x8xf32>
    %726 = arith.subf %722, %725 : vector<8x8xf32>
    %727 = math.exp %726 : vector<8x8xf32>
    %cst_291 = arith.constant dense<0.000000e+00> : vector<8xf32>
    %728 = vector.multi_reduction <add>, %727, %cst_291 [1] : vector<8x8xf32> to vector<8xf32>
    %729 = vector.shape_cast %728 : vector<8xf32> to vector<8x1xf32>
    %730 = vector.broadcast %729 : vector<8x1xf32> to vector<8x8xf32>
    %731 = arith.divf %727, %730 : vector<8x8xf32>
    %732 = vector.shape_cast %731 : vector<8x8xf32> to vector<8x8x1xf32>
    %733 = vector.broadcast %732 : vector<8x8x1xf32> to vector<8x8x32xf32>
    %734 = arith.mulf %733, %1 : vector<8x8x32xf32>
    %cst_292 = arith.constant dense<0.000000e+00> : vector<8x32xf32>
    %735 = vector.multi_reduction <add>, %734, %cst_292 [1] : vector<8x8x32xf32> to vector<8x32xf32>
    %cst_293 = arith.constant dense<0.000000e+00> : vector<8x32xf32>
    %736 = tpu.matmul %735, %8, %cst_293 {dimension_numbers = #tpu.dot_dimension_numbers<[1], [0], [0], [1], [0, 0, 1, 1], [], []>} : vector<8x32xf32>, vector<32x32xf32>, vector<8x32xf32> -> vector<8x32xf32>
    %cst_294 = arith.constant dense<0.000000e+00> : vector<8x32xf32>
    %737 = tpu.matmul %710, %9, %cst_294 {dimension_numbers = #tpu.dot_dimension_numbers<[1], [0], [0], [1], [0, 0, 1, 1], [], []>} : vector<8x32xf32>, vector<32x32xf32>, vector<8x32xf32> -> vector<8x32xf32>
    %738 = arith.addf %736, %737 : vector<8x32xf32>
    %739 = vector.broadcast %10 : vector<1x32xf32> to vector<8x32xf32>
    %740 = arith.addf %738, %739 : vector<8x32xf32>
    %741 = math.tanh %740 : vector<8x32xf32>
    %742 = arith.mulf %731, %636 : vector<8x8xf32>
    %cst_295 = arith.constant dense<0xFF800000> : vector<8xf32>
    %743 = vector.multi_reduction <maximumf>, %742, %cst_295 [1] : vector<8x8xf32> to vector<8xf32>
    %744 = vector.shape_cast %743 : vector<8xf32> to vector<8x1xf32>
    %745 = vector.broadcast %744 : vector<8x1xf32> to vector<8x8xf32>
    %746 = arith.cmpf oeq, %742, %745 : vector<8x8xf32>
    %c8_i32_296 = arith.constant 8 : i32
    %747 = vector.broadcast %c8_i32_296 : i32 to vector<8x8xi32>
    %748 = arith.select %746, %29, %747 : vector<8x8xi1>, vector<8x8xi32>
    %cst_297 = arith.constant dense<2147483647> : vector<8xi32>
    %749 = vector.multi_reduction <minsi>, %748, %cst_297 [1] : vector<8x8xi32> to vector<8xi32>
    %750 = vector.shape_cast %749 : vector<8xi32> to vector<8x1xi32>
    %751 = vector.broadcast %750 : vector<8x1xi32> to vector<8x8xi32>
    %752 = arith.cmpi eq, %29, %751 : vector<8x8xi32>
    %753 = arith.extui %752 : vector<8x8xi1> to vector<8x8xi32>
    %754 = arith.sitofp %753 : vector<8x8xi32> to vector<8x8xf32>
    %755 = vector.shape_cast %754 : vector<8x8xf32> to vector<8x8x1xf32>
    %756 = vector.broadcast %755 : vector<8x8x1xf32> to vector<8x8x32xf32>
    %757 = arith.mulf %756, %0 : vector<8x8x32xf32>
    %cst_298 = arith.constant dense<0.000000e+00> : vector<8x32xf32>
    %758 = vector.multi_reduction <add>, %757, %cst_298 [1] : vector<8x8x32xf32> to vector<8x32xf32>
    %759 = vector.shape_cast %731 : vector<8x8xf32> to vector<1x8x8xf32>
    %c5_299 = arith.constant 5 : index
    %c0_300 = arith.constant 0 : index
    %c0_301 = arith.constant 0 : index
    %760 = vector.load %arg23[%c5_299, %c0_300, %c0_301] : memref<8x8x8xf32, #tpu.memory_space<vmem>>, vector<1x8x8xf32>
    tpu.vector_store %arg23[%c5_299, %c0_300, %c0_301], %759 {strides = array<i32>} : memref<8x8x8xf32, #tpu.memory_space<vmem>>, vector<1x8x8xf32>,
    %761 = vector.shape_cast %750 : vector<8x1xi32> to vector<1x8x1xi32>
    %c5_302 = arith.constant 5 : index
    %c0_303 = arith.constant 0 : index
    %c0_304 = arith.constant 0 : index
    %762 = vector.load %arg24[%c5_302, %c0_303, %c0_304] : memref<8x8x1xi32, #tpu.memory_space<vmem>>, vector<1x8x1xi32>
    tpu.vector_store %arg24[%c5_302, %c0_303, %c0_304], %761 {strides = array<i32>} : memref<8x8x1xi32, #tpu.memory_space<vmem>>, vector<1x8x1xi32>,
    %cst_305 = arith.constant 1.000000e+00 : f32
    %763 = vector.broadcast %cst_305 : f32 to vector<8x8xf32>
    %764 = arith.subf %763, %754 : vector<8x8xf32>
    %765 = arith.mulf %636, %764 : vector<8x8xf32>
    %cst_306 = arith.constant dense<0.000000e+00> : vector<8x32xf32>
    %766 = tpu.matmul %758, %17, %cst_306 {dimension_numbers = #tpu.dot_dimension_numbers<[1], [0], [0], [1], [0, 0, 1, 1], [], []>} : vector<8x32xf32>, vector<32x32xf32>, vector<8x32xf32> -> vector<8x32xf32>
    %767 = vector.broadcast %18 : vector<1x32xf32> to vector<8x32xf32>
    %768 = arith.addf %766, %767 : vector<8x32xf32>
    %769 = vector.shape_cast %768 : vector<8x32xf32> to vector<1x8x32xf32>
    %c6 = arith.constant 6 : index
    %c0_307 = arith.constant 0 : index
    %c0_308 = arith.constant 0 : index
    %770 = vector.load %arg29[%c6, %c0_307, %c0_308] : memref<8x8x32xf32, #tpu.memory_space<vmem>>, vector<1x8x32xf32>
    tpu.vector_store %arg29[%c6, %c0_307, %c0_308], %769 {strides = array<i32>} : memref<8x8x32xf32, #tpu.memory_space<vmem>>, vector<1x8x32xf32>,
    %cst_309 = arith.constant dense<0.000000e+00> : vector<8x32xf32>
    %771 = tpu.matmul %758, %19, %cst_309 {dimension_numbers = #tpu.dot_dimension_numbers<[1], [0], [0], [1], [0, 0, 1, 1], [], []>} : vector<8x32xf32>, vector<32x32xf32>, vector<8x32xf32> -> vector<8x32xf32>
    %772 = vector.broadcast %20 : vector<1x32xf32> to vector<8x32xf32>
    %773 = arith.addf %771, %772 : vector<8x32xf32>
    %774 = vector.shape_cast %773 : vector<8x32xf32> to vector<1x8x32xf32>
    %c6_310 = arith.constant 6 : index
    %c0_311 = arith.constant 0 : index
    %c0_312 = arith.constant 0 : index
    %775 = vector.load %arg30[%c6_310, %c0_311, %c0_312] : memref<8x8x32xf32, #tpu.memory_space<vmem>>, vector<1x8x32xf32>
    tpu.vector_store %arg30[%c6_310, %c0_311, %c0_312], %774 {strides = array<i32>} : memref<8x8x32xf32, #tpu.memory_space<vmem>>, vector<1x8x32xf32>,
    %cst_313 = arith.constant dense<0.000000e+00> : vector<8x128xf32>
    %776 = tpu.matmul %758, %5, %cst_313 {dimension_numbers = #tpu.dot_dimension_numbers<[1], [0], [0], [1], [0, 0, 1, 1], [], []>} : vector<8x32xf32>, vector<32x128xf32>, vector<8x128xf32> -> vector<8x128xf32>
    %cst_314 = arith.constant dense<0.000000e+00> : vector<8x128xf32>
    %777 = tpu.matmul %741, %6, %cst_314 {dimension_numbers = #tpu.dot_dimension_numbers<[1], [0], [0], [1], [0, 0, 1, 1], [], []>} : vector<8x32xf32>, vector<32x128xf32>, vector<8x128xf32> -> vector<8x128xf32>
    %778 = arith.addf %776, %777 : vector<8x128xf32>
    %779 = vector.broadcast %7 : vector<1x128xf32> to vector<8x128xf32>
    %780 = arith.addf %778, %779 : vector<8x128xf32>
    %781 = vector.extract_strided_slice %780 {offsets = [0, 0], sizes = [8, 32], strides = [1, 1]} : vector<8x128xf32> to vector<8x32xf32>
    %782 = arith.negf %781 : vector<8x32xf32>
    %783 = math.exp %782 : vector<8x32xf32>
    %cst_315 = arith.constant 1.000000e+00 : f32
    %784 = vector.broadcast %cst_315 : f32 to vector<8x32xf32>
    %785 = arith.addf %784, %783 : vector<8x32xf32>
    %786 = arith.divf %784, %785 : vector<8x32xf32>
    %787 = vector.extract_strided_slice %780 {offsets = [0, 32], sizes = [8, 32], strides = [1, 1]} : vector<8x128xf32> to vector<8x32xf32>
    %788 = arith.negf %787 : vector<8x32xf32>
    %789 = math.exp %788 : vector<8x32xf32>
    %cst_316 = arith.constant 1.000000e+00 : f32
    %790 = vector.broadcast %cst_316 : f32 to vector<8x32xf32>
    %791 = arith.addf %790, %789 : vector<8x32xf32>
    %792 = arith.divf %790, %791 : vector<8x32xf32>
    %793 = vector.extract_strided_slice %780 {offsets = [0, 64], sizes = [8, 32], strides = [1, 1]} : vector<8x128xf32> to vector<8x32xf32>
    %794 = math.tanh %793 : vector<8x32xf32>
    %795 = vector.extract_strided_slice %780 {offsets = [0, 96], sizes = [8, 32], strides = [1, 1]} : vector<8x128xf32> to vector<8x32xf32>
    %796 = arith.negf %795 : vector<8x32xf32>
    %797 = math.exp %796 : vector<8x32xf32>
    %cst_317 = arith.constant 1.000000e+00 : f32
    %798 = vector.broadcast %cst_317 : f32 to vector<8x32xf32>
    %799 = arith.addf %798, %797 : vector<8x32xf32>
    %800 = arith.divf %798, %799 : vector<8x32xf32>
    %801 = arith.mulf %792, %674 : vector<8x32xf32>
    %802 = arith.mulf %786, %794 : vector<8x32xf32>
    %803 = arith.addf %801, %802 : vector<8x32xf32>
    %cst_318 = arith.constant dense<0.000000e+00> : vector<8x32xf32>
    %804 = tpu.matmul %674, %15, %cst_318 {dimension_numbers = #tpu.dot_dimension_numbers<[1], [0], [0], [1], [0, 0, 1, 1], [], []>} : vector<8x32xf32>, vector<32x32xf32>, vector<8x32xf32> -> vector<8x32xf32>
    %805 = vector.broadcast %16 : vector<1x32xf32> to vector<8x32xf32>
    %806 = arith.addf %804, %805 : vector<8x32xf32>
    %c6_i32 = arith.constant 6 : i32
    %807 = vector.broadcast %c6_i32 : i32 to vector<8x8xi32>
    %808 = arith.cmpi slt, %28, %807 : vector<8x8xi32>
    %809 = arith.andi %808, %24 : vector<8x8xi1>
    %cst_319 = arith.constant 0.000000e+00 : f32
    %cst_320 = arith.constant -1.000000e+30 : f32
    %810 = vector.broadcast %cst_319 : f32 to vector<8x8xf32>
    %811 = vector.broadcast %cst_320 : f32 to vector<8x8xf32>
    %812 = arith.select %809, %810, %811 : vector<8x8xi1>, vector<8x8xf32>
    %c0_321 = arith.constant 0 : index
    %c0_322 = arith.constant 0 : index
    %c0_323 = arith.constant 0 : index
    %813 = vector.load %arg29[%c0_321, %c0_322, %c0_323] : memref<8x8x32xf32, #tpu.memory_space<vmem>>, vector<8x8x32xf32>
    %814 = vector.shape_cast %806 : vector<8x32xf32> to vector<1x8x32xf32>
    %815 = vector.broadcast %814 : vector<1x8x32xf32> to vector<8x8x32xf32>
    %816 = arith.mulf %813, %815 : vector<8x8x32xf32>
    %817 = vector.shape_cast %816 : vector<8x8x32xf32> to vector<64x32xf32>
    %cst_324 = arith.constant dense<0.000000e+00> : vector<64x32xf32>
    %818 = tpu.matmul %817, %21, %cst_324 {dimension_numbers = #tpu.dot_dimension_numbers<[1], [0], [0], [1], [0, 0, 1, 1], [], []>} : vector<64x32xf32>, vector<32x32xf32>, vector<64x32xf32> -> vector<64x32xf32>
    %819 = vector.shape_cast %818 : vector<64x32xf32> to vector<8x8x32xf32>
    %820 = vector.shape_cast %812 : vector<8x8xf32> to vector<8x8x1xf32>
    %821 = vector.broadcast %820 : vector<8x8x1xf32> to vector<8x8x32xf32>
    %822 = arith.addf %819, %821 : vector<8x8x32xf32>
    %cst_325 = arith.constant dense<0xFF800000> : vector<8x32xf32>
    %823 = vector.multi_reduction <maximumf>, %822, %cst_325 [0] : vector<8x8x32xf32> to vector<8x32xf32>
    %824 = vector.shape_cast %823 : vector<8x32xf32> to vector<1x8x32xf32>
    %825 = vector.broadcast %824 : vector<1x8x32xf32> to vector<8x8x32xf32>
    %826 = arith.subf %822, %825 : vector<8x8x32xf32>
    %827 = math.exp %826 : vector<8x8x32xf32>
    %cst_326 = arith.constant dense<0.000000e+00> : vector<8x32xf32>
    %828 = vector.multi_reduction <add>, %827, %cst_326 [0] : vector<8x8x32xf32> to vector<8x32xf32>
    %829 = vector.shape_cast %828 : vector<8x32xf32> to vector<1x8x32xf32>
    %830 = vector.broadcast %829 : vector<1x8x32xf32> to vector<8x8x32xf32>
    %831 = arith.divf %827, %830 : vector<8x8x32xf32>
    %c0_327 = arith.constant 0 : index
    %c0_328 = arith.constant 0 : index
    %c0_329 = arith.constant 0 : index
    %832 = vector.load %arg30[%c0_327, %c0_328, %c0_329] : memref<8x8x32xf32, #tpu.memory_space<vmem>>, vector<8x8x32xf32>
    %833 = arith.mulf %831, %832 : vector<8x8x32xf32>
    %cst_330 = arith.constant dense<0.000000e+00> : vector<8x32xf32>
    %834 = vector.multi_reduction <add>, %833, %cst_330 [0] : vector<8x8x32xf32> to vector<8x32xf32>
    %835 = arith.mulf %800, %758 : vector<8x32xf32>
    %cst_331 = arith.constant 1.000000e+00 : f32
    %836 = vector.broadcast %cst_331 : f32 to vector<8x32xf32>
    %837 = arith.subf %836, %800 : vector<8x32xf32>
    %838 = arith.mulf %837, %834 : vector<8x32xf32>
    %839 = arith.addf %835, %838 : vector<8x32xf32>
    %cst_332 = arith.constant dense<0.000000e+00> : vector<8x32xf32>
    %840 = tpu.matmul %839, %11, %cst_332 {dimension_numbers = #tpu.dot_dimension_numbers<[1], [0], [0], [1], [0, 0, 1, 1], [], []>} : vector<8x32xf32>, vector<32x32xf32>, vector<8x32xf32> -> vector<8x32xf32>
    %841 = vector.broadcast %12 : vector<1x32xf32> to vector<8x32xf32>
    %842 = arith.addf %840, %841 : vector<8x32xf32>
    %843 = vector.shape_cast %842 : vector<8x32xf32> to vector<8x1x32xf32>
    %844 = vector.broadcast %843 : vector<8x1x32xf32> to vector<8x8x32xf32>
    %845 = arith.addf %844, %1 : vector<8x8x32xf32>
    %846 = math.tanh %845 : vector<8x8x32xf32>
    %847 = vector.broadcast %14 : vector<1x1x32xf32> to vector<8x8x32xf32>
    %848 = arith.mulf %846, %847 : vector<8x8x32xf32>
    %cst_333 = arith.constant dense<0.000000e+00> : vector<8x8xf32>
    %849 = vector.multi_reduction <add>, %848, %cst_333 [2] : vector<8x8x32xf32> to vector<8x8xf32>
    %cst_334 = arith.constant -1.000000e+30 : f32
    %850 = vector.broadcast %cst_334 : f32 to vector<8x8xf32>
    %851 = arith.select %27, %849, %850 : vector<8x8xi1>, vector<8x8xf32>
    %cst_335 = arith.constant dense<0xFF800000> : vector<8xf32>
    %852 = vector.multi_reduction <maximumf>, %851, %cst_335 [1] : vector<8x8xf32> to vector<8xf32>
    %853 = vector.shape_cast %852 : vector<8xf32> to vector<8x1xf32>
    %854 = vector.broadcast %853 : vector<8x1xf32> to vector<8x8xf32>
    %855 = arith.subf %851, %854 : vector<8x8xf32>
    %856 = math.exp %855 : vector<8x8xf32>
    %cst_336 = arith.constant dense<0.000000e+00> : vector<8xf32>
    %857 = vector.multi_reduction <add>, %856, %cst_336 [1] : vector<8x8xf32> to vector<8xf32>
    %858 = vector.shape_cast %857 : vector<8xf32> to vector<8x1xf32>
    %859 = vector.broadcast %858 : vector<8x1xf32> to vector<8x8xf32>
    %860 = arith.divf %856, %859 : vector<8x8xf32>
    %861 = vector.shape_cast %860 : vector<8x8xf32> to vector<8x8x1xf32>
    %862 = vector.broadcast %861 : vector<8x8x1xf32> to vector<8x8x32xf32>
    %863 = arith.mulf %862, %1 : vector<8x8x32xf32>
    %cst_337 = arith.constant dense<0.000000e+00> : vector<8x32xf32>
    %864 = vector.multi_reduction <add>, %863, %cst_337 [1] : vector<8x8x32xf32> to vector<8x32xf32>
    %cst_338 = arith.constant dense<0.000000e+00> : vector<8x32xf32>
    %865 = tpu.matmul %864, %8, %cst_338 {dimension_numbers = #tpu.dot_dimension_numbers<[1], [0], [0], [1], [0, 0, 1, 1], [], []>} : vector<8x32xf32>, vector<32x32xf32>, vector<8x32xf32> -> vector<8x32xf32>
    %cst_339 = arith.constant dense<0.000000e+00> : vector<8x32xf32>
    %866 = tpu.matmul %839, %9, %cst_339 {dimension_numbers = #tpu.dot_dimension_numbers<[1], [0], [0], [1], [0, 0, 1, 1], [], []>} : vector<8x32xf32>, vector<32x32xf32>, vector<8x32xf32> -> vector<8x32xf32>
    %867 = arith.addf %865, %866 : vector<8x32xf32>
    %868 = vector.broadcast %10 : vector<1x32xf32> to vector<8x32xf32>
    %869 = arith.addf %867, %868 : vector<8x32xf32>
    %870 = math.tanh %869 : vector<8x32xf32>
    %871 = arith.mulf %860, %765 : vector<8x8xf32>
    %cst_340 = arith.constant dense<0xFF800000> : vector<8xf32>
    %872 = vector.multi_reduction <maximumf>, %871, %cst_340 [1] : vector<8x8xf32> to vector<8xf32>
    %873 = vector.shape_cast %872 : vector<8xf32> to vector<8x1xf32>
    %874 = vector.broadcast %873 : vector<8x1xf32> to vector<8x8xf32>
    %875 = arith.cmpf oeq, %871, %874 : vector<8x8xf32>
    %c8_i32_341 = arith.constant 8 : i32
    %876 = vector.broadcast %c8_i32_341 : i32 to vector<8x8xi32>
    %877 = arith.select %875, %29, %876 : vector<8x8xi1>, vector<8x8xi32>
    %cst_342 = arith.constant dense<2147483647> : vector<8xi32>
    %878 = vector.multi_reduction <minsi>, %877, %cst_342 [1] : vector<8x8xi32> to vector<8xi32>
    %879 = vector.shape_cast %878 : vector<8xi32> to vector<8x1xi32>
    %880 = vector.broadcast %879 : vector<8x1xi32> to vector<8x8xi32>
    %881 = arith.cmpi eq, %29, %880 : vector<8x8xi32>
    %882 = arith.extui %881 : vector<8x8xi1> to vector<8x8xi32>
    %883 = arith.sitofp %882 : vector<8x8xi32> to vector<8x8xf32>
    %884 = vector.shape_cast %883 : vector<8x8xf32> to vector<8x8x1xf32>
    %885 = vector.broadcast %884 : vector<8x8x1xf32> to vector<8x8x32xf32>
    %886 = arith.mulf %885, %0 : vector<8x8x32xf32>
    %cst_343 = arith.constant dense<0.000000e+00> : vector<8x32xf32>
    %887 = vector.multi_reduction <add>, %886, %cst_343 [1] : vector<8x8x32xf32> to vector<8x32xf32>
    %888 = vector.shape_cast %860 : vector<8x8xf32> to vector<1x8x8xf32>
    %c6_344 = arith.constant 6 : index
    %c0_345 = arith.constant 0 : index
    %c0_346 = arith.constant 0 : index
    %889 = vector.load %arg23[%c6_344, %c0_345, %c0_346] : memref<8x8x8xf32, #tpu.memory_space<vmem>>, vector<1x8x8xf32>
    tpu.vector_store %arg23[%c6_344, %c0_345, %c0_346], %888 {strides = array<i32>} : memref<8x8x8xf32, #tpu.memory_space<vmem>>, vector<1x8x8xf32>,
    %890 = vector.shape_cast %879 : vector<8x1xi32> to vector<1x8x1xi32>
    %c6_347 = arith.constant 6 : index
    %c0_348 = arith.constant 0 : index
    %c0_349 = arith.constant 0 : index
    %891 = vector.load %arg24[%c6_347, %c0_348, %c0_349] : memref<8x8x1xi32, #tpu.memory_space<vmem>>, vector<1x8x1xi32>
    tpu.vector_store %arg24[%c6_347, %c0_348, %c0_349], %890 {strides = array<i32>} : memref<8x8x1xi32, #tpu.memory_space<vmem>>, vector<1x8x1xi32>,
    %cst_350 = arith.constant 1.000000e+00 : f32
    %892 = vector.broadcast %cst_350 : f32 to vector<8x8xf32>
    %893 = arith.subf %892, %883 : vector<8x8xf32>
    %894 = arith.mulf %765, %893 : vector<8x8xf32>
    %cst_351 = arith.constant dense<0.000000e+00> : vector<8x32xf32>
    %895 = tpu.matmul %887, %17, %cst_351 {dimension_numbers = #tpu.dot_dimension_numbers<[1], [0], [0], [1], [0, 0, 1, 1], [], []>} : vector<8x32xf32>, vector<32x32xf32>, vector<8x32xf32> -> vector<8x32xf32>
    %896 = vector.broadcast %18 : vector<1x32xf32> to vector<8x32xf32>
    %897 = arith.addf %895, %896 : vector<8x32xf32>
    %898 = vector.shape_cast %897 : vector<8x32xf32> to vector<1x8x32xf32>
    %c7 = arith.constant 7 : index
    %c0_352 = arith.constant 0 : index
    %c0_353 = arith.constant 0 : index
    %899 = vector.load %arg29[%c7, %c0_352, %c0_353] : memref<8x8x32xf32, #tpu.memory_space<vmem>>, vector<1x8x32xf32>
    tpu.vector_store %arg29[%c7, %c0_352, %c0_353], %898 {strides = array<i32>} : memref<8x8x32xf32, #tpu.memory_space<vmem>>, vector<1x8x32xf32>,
    %cst_354 = arith.constant dense<0.000000e+00> : vector<8x32xf32>
    %900 = tpu.matmul %887, %19, %cst_354 {dimension_numbers = #tpu.dot_dimension_numbers<[1], [0], [0], [1], [0, 0, 1, 1], [], []>} : vector<8x32xf32>, vector<32x32xf32>, vector<8x32xf32> -> vector<8x32xf32>
    %901 = vector.broadcast %20 : vector<1x32xf32> to vector<8x32xf32>
    %902 = arith.addf %900, %901 : vector<8x32xf32>
    %903 = vector.shape_cast %902 : vector<8x32xf32> to vector<1x8x32xf32>
    %c7_355 = arith.constant 7 : index
    %c0_356 = arith.constant 0 : index
    %c0_357 = arith.constant 0 : index
    %904 = vector.load %arg30[%c7_355, %c0_356, %c0_357] : memref<8x8x32xf32, #tpu.memory_space<vmem>>, vector<1x8x32xf32>
    tpu.vector_store %arg30[%c7_355, %c0_356, %c0_357], %903 {strides = array<i32>} : memref<8x8x32xf32, #tpu.memory_space<vmem>>, vector<1x8x32xf32>,
    %cst_358 = arith.constant dense<0.000000e+00> : vector<8x128xf32>
    %905 = tpu.matmul %887, %5, %cst_358 {dimension_numbers = #tpu.dot_dimension_numbers<[1], [0], [0], [1], [0, 0, 1, 1], [], []>} : vector<8x32xf32>, vector<32x128xf32>, vector<8x128xf32> -> vector<8x128xf32>
    %cst_359 = arith.constant dense<0.000000e+00> : vector<8x128xf32>
    %906 = tpu.matmul %870, %6, %cst_359 {dimension_numbers = #tpu.dot_dimension_numbers<[1], [0], [0], [1], [0, 0, 1, 1], [], []>} : vector<8x32xf32>, vector<32x128xf32>, vector<8x128xf32> -> vector<8x128xf32>
    %907 = arith.addf %905, %906 : vector<8x128xf32>
    %908 = vector.broadcast %7 : vector<1x128xf32> to vector<8x128xf32>
    %909 = arith.addf %907, %908 : vector<8x128xf32>
    %910 = vector.extract_strided_slice %909 {offsets = [0, 0], sizes = [8, 32], strides = [1, 1]} : vector<8x128xf32> to vector<8x32xf32>
    %911 = arith.negf %910 : vector<8x32xf32>
    %912 = math.exp %911 : vector<8x32xf32>
    %cst_360 = arith.constant 1.000000e+00 : f32
    %913 = vector.broadcast %cst_360 : f32 to vector<8x32xf32>
    %914 = arith.addf %913, %912 : vector<8x32xf32>
    %915 = arith.divf %913, %914 : vector<8x32xf32>
    %916 = vector.extract_strided_slice %909 {offsets = [0, 32], sizes = [8, 32], strides = [1, 1]} : vector<8x128xf32> to vector<8x32xf32>
    %917 = arith.negf %916 : vector<8x32xf32>
    %918 = math.exp %917 : vector<8x32xf32>
    %cst_361 = arith.constant 1.000000e+00 : f32
    %919 = vector.broadcast %cst_361 : f32 to vector<8x32xf32>
    %920 = arith.addf %919, %918 : vector<8x32xf32>
    %921 = arith.divf %919, %920 : vector<8x32xf32>
    %922 = vector.extract_strided_slice %909 {offsets = [0, 64], sizes = [8, 32], strides = [1, 1]} : vector<8x128xf32> to vector<8x32xf32>
    %923 = math.tanh %922 : vector<8x32xf32>
    %924 = vector.extract_strided_slice %909 {offsets = [0, 96], sizes = [8, 32], strides = [1, 1]} : vector<8x128xf32> to vector<8x32xf32>
    %925 = arith.negf %924 : vector<8x32xf32>
    %926 = math.exp %925 : vector<8x32xf32>
    %cst_362 = arith.constant 1.000000e+00 : f32
    %927 = vector.broadcast %cst_362 : f32 to vector<8x32xf32>
    %928 = arith.addf %927, %926 : vector<8x32xf32>
    %929 = arith.divf %927, %928 : vector<8x32xf32>
    %930 = arith.mulf %921, %803 : vector<8x32xf32>
    %931 = arith.mulf %915, %923 : vector<8x32xf32>
    %932 = arith.addf %930, %931 : vector<8x32xf32>
    %cst_363 = arith.constant dense<0.000000e+00> : vector<8x32xf32>
    %933 = tpu.matmul %803, %15, %cst_363 {dimension_numbers = #tpu.dot_dimension_numbers<[1], [0], [0], [1], [0, 0, 1, 1], [], []>} : vector<8x32xf32>, vector<32x32xf32>, vector<8x32xf32> -> vector<8x32xf32>
    %934 = vector.broadcast %16 : vector<1x32xf32> to vector<8x32xf32>
    %935 = arith.addf %933, %934 : vector<8x32xf32>
    %c7_i32 = arith.constant 7 : i32
    %936 = vector.broadcast %c7_i32 : i32 to vector<8x8xi32>
    %937 = arith.cmpi slt, %28, %936 : vector<8x8xi32>
    %938 = arith.andi %937, %24 : vector<8x8xi1>
    %cst_364 = arith.constant 0.000000e+00 : f32
    %cst_365 = arith.constant -1.000000e+30 : f32
    %939 = vector.broadcast %cst_364 : f32 to vector<8x8xf32>
    %940 = vector.broadcast %cst_365 : f32 to vector<8x8xf32>
    %941 = arith.select %938, %939, %940 : vector<8x8xi1>, vector<8x8xf32>
    %c0_366 = arith.constant 0 : index
    %c0_367 = arith.constant 0 : index
    %c0_368 = arith.constant 0 : index
    %942 = vector.load %arg29[%c0_366, %c0_367, %c0_368] : memref<8x8x32xf32, #tpu.memory_space<vmem>>, vector<8x8x32xf32>
    %943 = vector.shape_cast %935 : vector<8x32xf32> to vector<1x8x32xf32>
    %944 = vector.broadcast %943 : vector<1x8x32xf32> to vector<8x8x32xf32>
    %945 = arith.mulf %942, %944 : vector<8x8x32xf32>
    %946 = vector.shape_cast %945 : vector<8x8x32xf32> to vector<64x32xf32>
    %cst_369 = arith.constant dense<0.000000e+00> : vector<64x32xf32>
    %947 = tpu.matmul %946, %21, %cst_369 {dimension_numbers = #tpu.dot_dimension_numbers<[1], [0], [0], [1], [0, 0, 1, 1], [], []>} : vector<64x32xf32>, vector<32x32xf32>, vector<64x32xf32> -> vector<64x32xf32>
    %948 = vector.shape_cast %947 : vector<64x32xf32> to vector<8x8x32xf32>
    %949 = vector.shape_cast %941 : vector<8x8xf32> to vector<8x8x1xf32>
    %950 = vector.broadcast %949 : vector<8x8x1xf32> to vector<8x8x32xf32>
    %951 = arith.addf %948, %950 : vector<8x8x32xf32>
    %cst_370 = arith.constant dense<0xFF800000> : vector<8x32xf32>
    %952 = vector.multi_reduction <maximumf>, %951, %cst_370 [0] : vector<8x8x32xf32> to vector<8x32xf32>
    %953 = vector.shape_cast %952 : vector<8x32xf32> to vector<1x8x32xf32>
    %954 = vector.broadcast %953 : vector<1x8x32xf32> to vector<8x8x32xf32>
    %955 = arith.subf %951, %954 : vector<8x8x32xf32>
    %956 = math.exp %955 : vector<8x8x32xf32>
    %cst_371 = arith.constant dense<0.000000e+00> : vector<8x32xf32>
    %957 = vector.multi_reduction <add>, %956, %cst_371 [0] : vector<8x8x32xf32> to vector<8x32xf32>
    %958 = vector.shape_cast %957 : vector<8x32xf32> to vector<1x8x32xf32>
    %959 = vector.broadcast %958 : vector<1x8x32xf32> to vector<8x8x32xf32>
    %960 = arith.divf %956, %959 : vector<8x8x32xf32>
    %c0_372 = arith.constant 0 : index
    %c0_373 = arith.constant 0 : index
    %c0_374 = arith.constant 0 : index
    %961 = vector.load %arg30[%c0_372, %c0_373, %c0_374] : memref<8x8x32xf32, #tpu.memory_space<vmem>>, vector<8x8x32xf32>
    %962 = arith.mulf %960, %961 : vector<8x8x32xf32>
    %cst_375 = arith.constant dense<0.000000e+00> : vector<8x32xf32>
    %963 = vector.multi_reduction <add>, %962, %cst_375 [0] : vector<8x8x32xf32> to vector<8x32xf32>
    %964 = arith.mulf %929, %887 : vector<8x32xf32>
    %cst_376 = arith.constant 1.000000e+00 : f32
    %965 = vector.broadcast %cst_376 : f32 to vector<8x32xf32>
    %966 = arith.subf %965, %929 : vector<8x32xf32>
    %967 = arith.mulf %966, %963 : vector<8x32xf32>
    %968 = arith.addf %964, %967 : vector<8x32xf32>
    %cst_377 = arith.constant dense<0.000000e+00> : vector<8x32xf32>
    %969 = tpu.matmul %968, %11, %cst_377 {dimension_numbers = #tpu.dot_dimension_numbers<[1], [0], [0], [1], [0, 0, 1, 1], [], []>} : vector<8x32xf32>, vector<32x32xf32>, vector<8x32xf32> -> vector<8x32xf32>
    %970 = vector.broadcast %12 : vector<1x32xf32> to vector<8x32xf32>
    %971 = arith.addf %969, %970 : vector<8x32xf32>
    %972 = vector.shape_cast %971 : vector<8x32xf32> to vector<8x1x32xf32>
    %973 = vector.broadcast %972 : vector<8x1x32xf32> to vector<8x8x32xf32>
    %974 = arith.addf %973, %1 : vector<8x8x32xf32>
    %975 = math.tanh %974 : vector<8x8x32xf32>
    %976 = vector.broadcast %14 : vector<1x1x32xf32> to vector<8x8x32xf32>
    %977 = arith.mulf %975, %976 : vector<8x8x32xf32>
    %cst_378 = arith.constant dense<0.000000e+00> : vector<8x8xf32>
    %978 = vector.multi_reduction <add>, %977, %cst_378 [2] : vector<8x8x32xf32> to vector<8x8xf32>
    %cst_379 = arith.constant -1.000000e+30 : f32
    %979 = vector.broadcast %cst_379 : f32 to vector<8x8xf32>
    %980 = arith.select %27, %978, %979 : vector<8x8xi1>, vector<8x8xf32>
    %cst_380 = arith.constant dense<0xFF800000> : vector<8xf32>
    %981 = vector.multi_reduction <maximumf>, %980, %cst_380 [1] : vector<8x8xf32> to vector<8xf32>
    %982 = vector.shape_cast %981 : vector<8xf32> to vector<8x1xf32>
    %983 = vector.broadcast %982 : vector<8x1xf32> to vector<8x8xf32>
    %984 = arith.subf %980, %983 : vector<8x8xf32>
    %985 = math.exp %984 : vector<8x8xf32>
    %cst_381 = arith.constant dense<0.000000e+00> : vector<8xf32>
    %986 = vector.multi_reduction <add>, %985, %cst_381 [1] : vector<8x8xf32> to vector<8xf32>
    %987 = vector.shape_cast %986 : vector<8xf32> to vector<8x1xf32>
    %988 = vector.broadcast %987 : vector<8x1xf32> to vector<8x8xf32>
    %989 = arith.divf %985, %988 : vector<8x8xf32>
    %990 = vector.shape_cast %989 : vector<8x8xf32> to vector<8x8x1xf32>
    %991 = vector.broadcast %990 : vector<8x8x1xf32> to vector<8x8x32xf32>
    %992 = arith.mulf %991, %1 : vector<8x8x32xf32>
    %cst_382 = arith.constant dense<0.000000e+00> : vector<8x32xf32>
    %993 = vector.multi_reduction <add>, %992, %cst_382 [1] : vector<8x8x32xf32> to vector<8x32xf32>
    %cst_383 = arith.constant dense<0.000000e+00> : vector<8x32xf32>
    %994 = tpu.matmul %993, %8, %cst_383 {dimension_numbers = #tpu.dot_dimension_numbers<[1], [0], [0], [1], [0, 0, 1, 1], [], []>} : vector<8x32xf32>, vector<32x32xf32>, vector<8x32xf32> -> vector<8x32xf32>
    %cst_384 = arith.constant dense<0.000000e+00> : vector<8x32xf32>
    %995 = tpu.matmul %968, %9, %cst_384 {dimension_numbers = #tpu.dot_dimension_numbers<[1], [0], [0], [1], [0, 0, 1, 1], [], []>} : vector<8x32xf32>, vector<32x32xf32>, vector<8x32xf32> -> vector<8x32xf32>
    %996 = arith.addf %994, %995 : vector<8x32xf32>
    %997 = vector.broadcast %10 : vector<1x32xf32> to vector<8x32xf32>
    %998 = arith.addf %996, %997 : vector<8x32xf32>
    %999 = math.tanh %998 : vector<8x32xf32>
    %1000 = arith.mulf %989, %894 : vector<8x8xf32>
    %cst_385 = arith.constant dense<0xFF800000> : vector<8xf32>
    %1001 = vector.multi_reduction <maximumf>, %1000, %cst_385 [1] : vector<8x8xf32> to vector<8xf32>
    %1002 = vector.shape_cast %1001 : vector<8xf32> to vector<8x1xf32>
    %1003 = vector.broadcast %1002 : vector<8x1xf32> to vector<8x8xf32>
    %1004 = arith.cmpf oeq, %1000, %1003 : vector<8x8xf32>
    %c8_i32_386 = arith.constant 8 : i32
    %1005 = vector.broadcast %c8_i32_386 : i32 to vector<8x8xi32>
    %1006 = arith.select %1004, %29, %1005 : vector<8x8xi1>, vector<8x8xi32>
    %cst_387 = arith.constant dense<2147483647> : vector<8xi32>
    %1007 = vector.multi_reduction <minsi>, %1006, %cst_387 [1] : vector<8x8xi32> to vector<8xi32>
    %1008 = vector.shape_cast %1007 : vector<8xi32> to vector<8x1xi32>
    %1009 = vector.broadcast %1008 : vector<8x1xi32> to vector<8x8xi32>
    %1010 = arith.cmpi eq, %29, %1009 : vector<8x8xi32>
    %1011 = arith.extui %1010 : vector<8x8xi1> to vector<8x8xi32>
    %1012 = arith.sitofp %1011 : vector<8x8xi32> to vector<8x8xf32>
    %1013 = vector.shape_cast %1012 : vector<8x8xf32> to vector<8x8x1xf32>
    %1014 = vector.broadcast %1013 : vector<8x8x1xf32> to vector<8x8x32xf32>
    %1015 = arith.mulf %1014, %0 : vector<8x8x32xf32>
    %cst_388 = arith.constant dense<0.000000e+00> : vector<8x32xf32>
    %1016 = vector.multi_reduction <add>, %1015, %cst_388 [1] : vector<8x8x32xf32> to vector<8x32xf32>
    %1017 = vector.shape_cast %989 : vector<8x8xf32> to vector<1x8x8xf32>
    %c7_389 = arith.constant 7 : index
    %c0_390 = arith.constant 0 : index
    %c0_391 = arith.constant 0 : index
    %1018 = vector.load %arg23[%c7_389, %c0_390, %c0_391] : memref<8x8x8xf32, #tpu.memory_space<vmem>>, vector<1x8x8xf32>
    tpu.vector_store %arg23[%c7_389, %c0_390, %c0_391], %1017 {strides = array<i32>} : memref<8x8x8xf32, #tpu.memory_space<vmem>>, vector<1x8x8xf32>,
    %1019 = vector.shape_cast %1008 : vector<8x1xi32> to vector<1x8x1xi32>
    %c7_392 = arith.constant 7 : index
    %c0_393 = arith.constant 0 : index
    %c0_394 = arith.constant 0 : index
    %1020 = vector.load %arg24[%c7_392, %c0_393, %c0_394] : memref<8x8x1xi32, #tpu.memory_space<vmem>>, vector<1x8x1xi32>
    tpu.vector_store %arg24[%c7_392, %c0_393, %c0_394], %1019 {strides = array<i32>} : memref<8x8x1xi32, #tpu.memory_space<vmem>>, vector<1x8x1xi32>,
    %cst_395 = arith.constant 1.000000e+00 : f32
    %1021 = vector.broadcast %cst_395 : f32 to vector<8x8xf32>
    %1022 = arith.subf %1021, %1012 : vector<8x8xf32>
    %1023 = arith.mulf %894, %1022 : vector<8x8xf32>
    %c0_396 = arith.constant 0 : index
    %c0_397 = arith.constant 0 : index
    %1024 = vector.load %arg25[%c0_396, %c0_397] : memref<8x32xf32, #tpu.memory_space<vmem>>, vector<8x32xf32>
    tpu.vector_store %arg25[%c0_396, %c0_397], %999 {strides = array<i32>} : memref<8x32xf32, #tpu.memory_space<vmem>>, vector<8x32xf32>,
    %c0_398 = arith.constant 0 : index
    %c0_399 = arith.constant 0 : index
    %1025 = vector.load %arg26[%c0_398, %c0_399] : memref<8x32xf32, #tpu.memory_space<vmem>>, vector<8x32xf32>
    tpu.vector_store %arg26[%c0_398, %c0_399], %932 {strides = array<i32>} : memref<8x32xf32, #tpu.memory_space<vmem>>, vector<8x32xf32>,
    %c0_400 = arith.constant 0 : index
    %c0_401 = arith.constant 0 : index
    %1026 = vector.load %arg27[%c0_400, %c0_401] : memref<8x32xf32, #tpu.memory_space<vmem>>, vector<8x32xf32>
    tpu.vector_store %arg27[%c0_400, %c0_401], %1016 {strides = array<i32>} : memref<8x32xf32, #tpu.memory_space<vmem>>, vector<8x32xf32>,
    %c0_402 = arith.constant 0 : index
    %c0_403 = arith.constant 0 : index
    %1027 = vector.load %arg28[%c0_402, %c0_403] : memref<8x8xf32, #tpu.memory_space<vmem>>, vector<8x8xf32>
    tpu.vector_store %arg28[%c0_402, %c0_403], %1023 {strides = array<i32>} : memref<8x8xf32, #tpu.memory_space<vmem>>, vector<8x8xf32>,
    return
  }
  func.func @transform_0(%arg0: i32) -> (i32, i32, i32) {
    %c0_i32 = arith.constant 0 : i32
    %c0_i32_0 = arith.constant 0 : i32
    %c0_i32_1 = arith.constant 0 : i32
    %c0_i32_2 = arith.constant 0 : i32
    return %c0_i32, %c0_i32_0, %c0_i32_1 : i32, i32, i32
  }
  func.func @transform_1(%arg0: i32) -> (i32, i32, i32) {
    %c0_i32 = arith.constant 0 : i32
    %c0_i32_0 = arith.constant 0 : i32
    %c0_i32_1 = arith.constant 0 : i32
    %c0_i32_2 = arith.constant 0 : i32
    return %c0_i32, %c0_i32_0, %c0_i32_1 : i32, i32, i32
  }
  func.func @transform_2(%arg0: i32) -> (i32, i32) {
    %c0_i32 = arith.constant 0 : i32
    %c0_i32_0 = arith.constant 0 : i32
    %c0_i32_1 = arith.constant 0 : i32
    return %c0_i32, %c0_i32_0 : i32, i32
  }
  func.func @transform_3(%arg0: i32) -> (i32, i32) {
    %c0_i32 = arith.constant 0 : i32
    %c0_i32_0 = arith.constant 0 : i32
    %c0_i32_1 = arith.constant 0 : i32
    return %c0_i32, %c0_i32_0 : i32, i32
  }
  func.func @transform_4(%arg0: i32) -> (i32, i32) {
    %c0_i32 = arith.constant 0 : i32
    %c0_i32_0 = arith.constant 0 : i32
    %c0_i32_1 = arith.constant 0 : i32
    return %c0_i32, %c0_i32_0 : i32, i32
  }
  func.func @transform_5(%arg0: i32) -> (i32, i32) {
    %c0_i32 = arith.constant 0 : i32
    %c0_i32_0 = arith.constant 0 : i32
    %c0_i32_1 = arith.constant 0 : i32
    return %c0_i32, %c0_i32_0 : i32, i32
  }
  func.func @transform_6(%arg0: i32) -> (i32, i32) {
    %c0_i32 = arith.constant 0 : i32
    %c0_i32_0 = arith.constant 0 : i32
    %c0_i32_1 = arith.constant 0 : i32
    return %c0_i32, %c0_i32_0 : i32, i32
  }
  func.func @transform_7(%arg0: i32) -> (i32, i32) {
    %c0_i32 = arith.constant 0 : i32
    %c0_i32_0 = arith.constant 0 : i32
    %c0_i32_1 = arith.constant 0 : i32
    return %c0_i32, %c0_i32_0 : i32, i32
  }
  func.func @transform_8(%arg0: i32) -> (i32, i32) {
    %c0_i32 = arith.constant 0 : i32
    %c0_i32_0 = arith.constant 0 : i32
    %c0_i32_1 = arith.constant 0 : i32
    return %c0_i32, %c0_i32_0 : i32, i32
  }
  func.func @transform_9(%arg0: i32) -> (i32, i32) {
    %c0_i32 = arith.constant 0 : i32
    %c0_i32_0 = arith.constant 0 : i32
    %c0_i32_1 = arith.constant 0 : i32
    return %c0_i32, %c0_i32_0 : i32, i32
  }
  func.func @transform_10(%arg0: i32) -> (i32, i32) {
    %c0_i32 = arith.constant 0 : i32
    %c0_i32_0 = arith.constant 0 : i32
    %c0_i32_1 = arith.constant 0 : i32
    return %c0_i32, %c0_i32_0 : i32, i32
  }
  func.func @transform_11(%arg0: i32) -> (i32, i32) {
    %c0_i32 = arith.constant 0 : i32
    %c0_i32_0 = arith.constant 0 : i32
    %c0_i32_1 = arith.constant 0 : i32
    return %c0_i32, %c0_i32_0 : i32, i32
  }
  func.func @transform_12(%arg0: i32) -> (i32, i32) {
    %c0_i32 = arith.constant 0 : i32
    %c0_i32_0 = arith.constant 0 : i32
    %c0_i32_1 = arith.constant 0 : i32
    return %c0_i32, %c0_i32_0 : i32, i32
  }
  func.func @transform_13(%arg0: i32) -> (i32, i32) {
    %c0_i32 = arith.constant 0 : i32
    %c0_i32_0 = arith.constant 0 : i32
    %c0_i32_1 = arith.constant 0 : i32
    return %c0_i32, %c0_i32_0 : i32, i32
  }
  func.func @transform_14(%arg0: i32) -> (i32, i32) {
    %c0_i32 = arith.constant 0 : i32
    %c0_i32_0 = arith.constant 0 : i32
    %c0_i32_1 = arith.constant 0 : i32
    return %c0_i32, %c0_i32_0 : i32, i32
  }
  func.func @transform_15(%arg0: i32) -> (i32, i32) {
    %c0_i32 = arith.constant 0 : i32
    %c0_i32_0 = arith.constant 0 : i32
    %c0_i32_1 = arith.constant 0 : i32
    return %c0_i32, %c0_i32_0 : i32, i32
  }
  func.func @transform_16(%arg0: i32) -> (i32, i32) {
    %c0_i32 = arith.constant 0 : i32
    %c0_i32_0 = arith.constant 0 : i32
    %c0_i32_1 = arith.constant 0 : i32
    return %c0_i32, %c0_i32_0 : i32, i32
  }
  func.func @transform_17(%arg0: i32) -> (i32, i32) {
    %c0_i32 = arith.constant 0 : i32
    %c0_i32_0 = arith.constant 0 : i32
    %c0_i32_1 = arith.constant 0 : i32
    return %c0_i32, %c0_i32_0 : i32, i32
  }
  func.func @transform_18(%arg0: i32) -> (i32, i32) {
    %c0_i32 = arith.constant 0 : i32
    %c0_i32_0 = arith.constant 0 : i32
    %c0_i32_1 = arith.constant 0 : i32
    return %c0_i32, %c0_i32_0 : i32, i32
  }
  func.func @transform_19(%arg0: i32) -> (i32, i32) {
    %c0_i32 = arith.constant 0 : i32
    %c0_i32_0 = arith.constant 0 : i32
    %c0_i32_1 = arith.constant 0 : i32
    return %c0_i32, %c0_i32_0 : i32, i32
  }
  func.func @transform_20(%arg0: i32) -> (i32, i32) {
    %c0_i32 = arith.constant 0 : i32
    %c0_i32_0 = arith.constant 0 : i32
    %c0_i32_1 = arith.constant 0 : i32
    return %c0_i32, %c0_i32_0 : i32, i32
  }
  func.func @transform_21(%arg0: i32) -> (i32, i32) {
    %c0_i32 = arith.constant 0 : i32
    %c0_i32_0 = arith.constant 0 : i32
    %c0_i32_1 = arith.constant 0 : i32
    return %c0_i32, %c0_i32_0 : i32, i32
  }
  func.func @transform_22(%arg0: i32) -> (i32, i32, i32) {
    %c0_i32 = arith.constant 0 : i32
    %c0_i32_0 = arith.constant 0 : i32
    %c0_i32_1 = arith.constant 0 : i32
    return %arg0, %c0_i32, %c0_i32_0 : i32, i32, i32
  }
  func.func @transform_23(%arg0: i32) -> (i32, i32, i32) {
    %c0_i32 = arith.constant 0 : i32
    %c0_i32_0 = arith.constant 0 : i32
    %c0_i32_1 = arith.constant 0 : i32
    return %arg0, %c0_i32, %c0_i32_0 : i32, i32, i32
  }
}

</mosaic_0001>

<bundles_post_ra>
// kernel: tpu_custom_call.1
= control target key start
LH: loop header
LB: loop body
LE: loop exit
PB: predicated region body
PF: predicated region fallthrough
CT: control target
= control target key end

     0   :  { %s17218_s0 = inlined_call_operand.hbm [shape: f32[8,8,32], index: 0, kind: input, shape index: {}]   ;;  %s17219_s1 = inlined_call_operand.hbm [shape: f32[8,8,32], index: 1, kind: input, shape index: {}]   ;;  %s17220_s2 = inlined_call_operand.hbm [shape: f32[1,32], index: 2, kind: input, shape index: {}]   ;;  %s17221_s3 = inlined_call_operand.hbm [shape: f32[8,8], index: 3, kind: input, shape index: {}]   ;;  %s17222_s4 = inlined_call_operand.hbm [shape: f32[8,8], index: 4, kind: input, shape index: {}]   ;;  %s17223_s5 = inlined_call_operand.hbm [shape: f32[8,8], index: 5, kind: input, shape index: {}]   ;;  %s17224_s6 = inlined_call_operand.hbm [shape: f32[32,128], index: 6, kind: input, shape index: {}]   ;;  %s17225_s7 = inlined_call_operand.hbm [shape: f32[32,128], index: 7, kind: input, shape index: {}]   ;;  %s17226_s8 = inlined_call_operand.hbm [shape: f32[1,128], index: 8, kind: input, shape index: {}]   ;;  %s17227_s9 = inlined_call_operand.vmem [shape: f32[32,32], index: 9, kind: input, shape index: {}]   ;;  %s17228_s10 = inlined_call_operand.hbm [shape: f32[32,32], index: 10, kind: input, shape index: {}]   ;;  %s17229_s11 = inlined_call_operand.hbm [shape: f32[1,32], index: 11, kind: input, shape index: {}]   ;;  %s17230_s12 = inlined_call_operand.hbm [shape: f32[32,32], index: 12, kind: input, shape index: {}]   ;;  %s17231_s13 = inlined_call_operand.hbm [shape: f32[1,32], index: 13, kind: input, shape index: {}]   ;;  %s17232_s14 = inlined_call_operand.hbm [shape: f32[1,32], index: 14, kind: input, shape index: {}]   ;;  %s17233_s15 = inlined_call_operand.hbm [shape: f32[32,32], index: 15, kind: input, shape index: {}]   ;;  %s17234_s16 = inlined_call_operand.hbm [shape: f32[1,32], index: 16, kind: input, shape index: {}]   ;;  %s17235_s17 = inlined_call_operand.vmem [shape: f32[32,32], index: 17, kind: input, shape index: {}]   ;;  %s17236_s18 = inlined_call_operand.vmem [shape: f32[1,32], index: 18, kind: input, shape index: {}]   ;;  %s17237_s19 = inlined_call_operand.hbm [shape: f32[32,32], index: 19, kind: input, shape index: {}]   ;;  %s17238_s20 = inlined_call_operand.vmem [shape: f32[1,32], index: 20, kind: input, shape index: {}]   ;;  %s17239_s21 = inlined_call_operand.hbm [shape: f32[32,32], index: 21, kind: input, shape index: {}]   ;;  %s17240_s22 = inlined_call_operand.hbm [shape: f32[8,8,8], index: 22, kind: output, shape index: {0}]   ;;  %s17241_s23 = inlined_call_operand.vmem [shape: s32[8,8,1], index: 23, kind: output, shape index: {1}]  }
   0x1   :  { %17301 = sst [smem:[#allocation58_spill]] %s17218_s0 }
   0x2   :  { %17302 = sst [smem:[#allocation59_spill]] %s17219_s1 }
   0x3   :  { %17303 = sst [smem:[#allocation60_spill]] %s17220_s2 }
   0x4   :  { %17304 = sst [smem:[#allocation61_spill]] %s17221_s3 }
   0x5   :  { %17305 = sst [smem:[#allocation62_spill]] %s17222_s4 }
   0x6   :  { %17306 = sst [smem:[#allocation63_spill]] %s17223_s5 }
   0x7   :  { %17307 = sst [smem:[#allocation64_spill]] %s17224_s6 }
   0x8   :  { %17308 = sst [smem:[#allocation65_spill]] %s17225_s7 }
   0x9   :  { %17309 = sst [smem:[#allocation66_spill]] %s17240_s22 }
   0xa   :  { %17310 = sst [smem:[#allocation67_spill]] %s17241_s23 }
   0xb   :  { %29 = vsyncpa [#allocation9], 0 }
   0xc   :  { %30 = vsyncpa [#allocation12], 0 }
   0xd   :  { %31 = vsyncpa [#allocation15], 0 }
   0xe   :  { %32 = vsyncpa [#allocation18], 0 }
   0xf   :  { %33 = vsyncpa [#allocation21], 0 }
  0x10   :  { %34 = vsyncpa [#allocation24], 0 }
  0x11   :  { %35 = vsyncpa [#allocation27], 0 }
  0x12   :  { %36 = vsyncpa [#allocation30], 0 }
  0x13   :  { %37 = vsyncpa [#allocation33], 0 }
  0x14   :  { %38 = vsyncpa [#allocation36], 0 }
  0x15   :  { %39 = vsyncpa [#allocation10], 0  ;;  %s14307_s4 = smov [#allocation11]   ;;  %s14308_s24 = smov [#allocation14]  }
  0x16   :  { %s57_s30 = sshll.u32 %s14307_s4, 4  ;;  %s80_s25 = sshll.u32 %s14308_s24, 4  ;;  %s58_s30 = int_to_ptr.vmem [resolvable:$true] %s57_s30  ;;  %s81_s25 = int_to_ptr.vmem [resolvable:$true] %s80_s25 }
  0x17   :  { %s17311_s26 = sld [smem:[#allocation59_spill]] }
  0x1d   :  { %s13867_s2 = scalar_lea.hbm %s17311_s26, 1024 }
  0x1e   :  { %p13868_p0 = scmp.ne.s32.totalorder %s17311_s26, %s13867_s2  ;;  %p13871_p1 = scmp.lt.u32.totalorder %s13867_s2, %s17311_s26 }
  0x20   :  { %p13873_p2 = pnand %p13871_p1, %p13868_p0 }
  0x22   :  { %13876 = shalt.err (!%p13873_p2)
}
  0x23   :  { %s13877_s29 = scalar_lea.vmem %s58_s30, 1024  ;;  %p13882_p4 = scmp.lt.s32.totalorder %s58_s30, %s58_s30 }
  0x24   :  { %p13878_p3 = scmp.ne.s32.totalorder %s58_s30, %s13877_s29  ;;  %p13883_p5 = scmp.lt.s32.totalorder %s13877_s29, %s13877_s29 }
  0x26   :  { %p13884_p6 = por %p13883_p5, %p13882_p4 }
  0x28   :  { %p13885_p7 = pnand %p13884_p6, %p13878_p3 }
  0x2a   :  { %13888 = shalt.err (!%p13885_p7)
}
  0x2b   :  { %s17251_s3 = smov 128   ;;  %s17253_s0 = smov 8  }
  0x2c   :  { %63 = dma.hbm_to_vmem [thread:$0]  %s17311_s26, 1024, %s58_s30, [#allocation12], %s17251_s3, %s17251_s3, %s17253_s0  }
  0x2d   :  { %s17312_s2 = sld [smem:[#allocation61_spill]] }
  0x33   :  { %s13889_s6 = scalar_lea.hbm %s17312_s2, 128 }
  0x34   :  { %p13890_p8 = scmp.ne.s32.totalorder %s17312_s2, %s13889_s6  ;;  %p13893_p9 = scmp.lt.u32.totalorder %s13889_s6, %s17312_s2 }
  0x36   :  { %p13895_p10 = pnand %p13893_p9, %p13890_p8 }
  0x38   :  { %13898 = shalt.err (!%p13895_p10)
}
  0x39   :  { %s13899_s22 = scalar_lea.vmem %s81_s25, 128  ;;  %p13904_p12 = scmp.lt.s32.totalorder %s81_s25, %s81_s25 }
  0x3a   :  { %p13900_p11 = scmp.ne.s32.totalorder %s81_s25, %s13899_s22  ;;  %p13905_p13 = scmp.lt.s32.totalorder %s13899_s22, %s13899_s22 }
  0x3c   :  { %p13906_p0 = por %p13905_p13, %p13904_p12 }
  0x3e   :  { %p13907_p1 = pnand %p13906_p0, %p13900_p11 }
  0x40   :  { %13910 = shalt.err (!%p13907_p1)
}
  0x41   :  { %83 = dma.hbm_to_vmem [thread:$0]  %s17312_s2, 128, %s81_s25, [#allocation15]  }
  0x42   :  { %s14311_s4 = smov [#allocation17]   ;;  %s14312_s5 = smov [#allocation20]  }
  0x43   :  { %s100_s24 = sshll.u32 %s14311_s4, 4  ;;  %s121_s1 = sshll.u32 %s14312_s5, 4  ;;  %s101_s24 = int_to_ptr.vmem [resolvable:$true] %s100_s24  ;;  %s14483_s1 = int_to_ptr.vmem [resolvable:$true] %s121_s1 }
  0x44   :  { %s17313_s7 = sld [smem:[#allocation63_spill]] }
  0x4a   :  { %s13911_s28 = scalar_lea.hbm %s17313_s7, 128 }
  0x4b   :  { %p13912_p2 = scmp.ne.s32.totalorder %s17313_s7, %s13911_s28  ;;  %p13915_p3 = scmp.lt.u32.totalorder %s13911_s28, %s17313_s7 }
  0x4d   :  { %p13917_p4 = pnand %p13915_p3, %p13912_p2 }
  0x4f   :  { %13920 = shalt.err (!%p13917_p4)
}
  0x50   :  { %s13921_s25 = scalar_lea.vmem %s101_s24, 128  ;;  %p13926_p6 = scmp.lt.s32.totalorder %s101_s24, %s101_s24 }
  0x51   :  { %p13922_p5 = scmp.ne.s32.totalorder %s101_s24, %s13921_s25  ;;  %p13927_p7 = scmp.lt.s32.totalorder %s13921_s25, %s13921_s25 }
  0x53   :  { %p13928_p8 = por %p13927_p7, %p13926_p6 }
  0x55   :  { %p13929_p9 = pnand %p13928_p8, %p13922_p5 }
  0x57   :  { %13932 = shalt.err (!%p13929_p9)
}
  0x58   :  { %103 = dma.hbm_to_vmem [thread:$0]  %s17313_s7, 128, %s101_s24, [#allocation18]  }
  0x59   :  { %s17314_s5 = sld [smem:[#allocation65_spill]] }
  0x5f   :  { %s13933_s6 = scalar_lea.hbm %s17314_s5, 512 }
  0x60   :  { %p13934_p10 = scmp.ne.s32.totalorder %s17314_s5, %s13933_s6  ;;  %p13937_p11 = scmp.lt.u32.totalorder %s13933_s6, %s17314_s5 }
  0x62   :  { %p13939_p12 = pnand %p13937_p11, %p13934_p10 }
  0x64   :  { %13942 = shalt.err (!%p13939_p12)
}
  0x65   :  { %s13943_s29 = scalar_lea.vmem %s14483_s1, 512  ;;  %p13948_p0 = scmp.lt.s32.totalorder %s14483_s1, %s14483_s1 }
  0x66   :  { %p13944_p13 = scmp.ne.s32.totalorder %s14483_s1, %s13943_s29  ;;  %p13949_p1 = scmp.lt.s32.totalorder %s13943_s29, %s13943_s29 }
  0x68   :  { %p13950_p2 = por %p13949_p1, %p13948_p0 }
  0x6a   :  { %p13951_p3 = pnand %p13950_p2, %p13944_p13 }
  0x6c   :  { %13954 = shalt.err (!%p13951_p3)
}
  0x6d   :  { %s17315_s24 = smov 8   ;;  %s17316_s7 = smov 128  }
  0x6e   :  { %127 = dma.hbm_to_vmem [thread:$0]  %s17314_s5, 512, %s14483_s1, [#allocation21], %s17316_s7, %s17316_s7, %s17315_s24  }
  0x6f   :  { %s14313_s2 = smov [#allocation23]   ;;  %s14314_s26 = smov [#allocation26]  }
  0x70   :  { %s145_s30 = sshll.u32 %s14313_s2, 4  ;;  %s167_s4 = sshll.u32 %s14314_s26, 4  ;;  %s146_s30 = int_to_ptr.vmem [resolvable:$true] %s145_s30  ;;  %s14517_s4 = int_to_ptr.vmem [resolvable:$true] %s167_s4 }
  0x71   :  { %s13955_s3 = scalar_lea.hbm %s17228_s10, 512 }
  0x72   :  { %p13956_p4 = scmp.ne.s32.totalorder %s17228_s10, %s13955_s3  ;;  %p13959_p5 = scmp.lt.u32.totalorder %s13955_s3, %s17228_s10 }
  0x74   :  { %p13961_p6 = pnand %p13959_p5, %p13956_p4 }
  0x76   :  { %13964 = shalt.err (!%p13961_p6)
}
  0x77   :  { %s13965_s1 = scalar_lea.vmem %s146_s30, 512  ;;  %p13970_p8 = scmp.lt.s32.totalorder %s146_s30, %s146_s30 }
  0x78   :  { %p13966_p7 = scmp.ne.s32.totalorder %s146_s30, %s13965_s1  ;;  %p13971_p9 = scmp.lt.s32.totalorder %s13965_s1, %s13965_s1 }
  0x7a   :  { %p13972_p10 = por %p13971_p9, %p13970_p8 }
  0x7c   :  { %p13973_p11 = pnand %p13972_p10, %p13966_p7 }
  0x7e   :  { %13976 = shalt.err (!%p13973_p11)
}
  0x7f   :  { %151 = dma.hbm_to_vmem [thread:$0]  %s17228_s10, 512, %s146_s30, [#allocation24], %s17316_s7, %s17316_s7, %s17315_s24  }
  0x80   :  { %s13977_s23 = scalar_lea.hbm %s17230_s12, 512 }
  0x81   :  { %p13978_p12 = scmp.ne.s32.totalorder %s17230_s12, %s13977_s23  ;;  %p13981_p13 = scmp.lt.u32.totalorder %s13977_s23, %s17230_s12 }
  0x83   :  { %p13983_p0 = pnand %p13981_p13, %p13978_p12 }
  0x85   :  { %13986 = shalt.err (!%p13983_p0)
}
  0x86   :  { %s13987_s0 = scalar_lea.vmem %s14517_s4, 512  ;;  %p13992_p2 = scmp.lt.s32.totalorder %s14517_s4, %s14517_s4 }
  0x87   :  { %p13988_p1 = scmp.ne.s32.totalorder %s14517_s4, %s13987_s0  ;;  %p13993_p3 = scmp.lt.s32.totalorder %s13987_s0, %s13987_s0 }
  0x89   :  { %p13994_p4 = por %p13993_p3, %p13992_p2 }
  0x8b   :  { %p13995_p5 = pnand %p13994_p4, %p13988_p1 }
  0x8d   :  { %13998 = shalt.err (!%p13995_p5)
}
  0x8e   :  { %173 = dma.hbm_to_vmem [thread:$0]  %s17230_s12, 512, %s14517_s4, [#allocation27], %s17316_s7, %s17316_s7, %s17315_s24  }
  0x8f   :  { %s14315_s28 = smov [#allocation29]   ;;  %s14316_s1 = smov [#allocation32]  }
  0x90   :  { %s190_s29 = sshll.u32 %s14315_s28, 4  ;;  %s212_s5 = sshll.u32 %s14316_s1, 4  ;;  %s191_s29 = int_to_ptr.vmem [resolvable:$true] %s190_s29  ;;  %s213_s5 = int_to_ptr.vmem [resolvable:$true] %s212_s5 }
  0x91   :  { %s13999_s2 = scalar_lea.hbm %s17232_s14, 16 }
  0x92   :  { %p14000_p6 = scmp.ne.s32.totalorder %s17232_s14, %s13999_s2  ;;  %p14003_p7 = scmp.lt.u32.totalorder %s13999_s2, %s17232_s14 }
  0x94   :  { %p14005_p8 = pnand %p14003_p7, %p14000_p6 }
  0x96   :  { %14008 = shalt.err (!%p14005_p8)
}
  0x97   :  { %s14009_s12 = scalar_lea.vmem %s191_s29, 16  ;;  %s14013_s4 = scalar_lea.vmem %s191_s29, 32 }
  0x98   :  { %p14010_p9 = scmp.ne.s32.totalorder %s191_s29, %s14009_s12  ;;  %p14014_p10 = scmp.lt.s32.totalorder %s191_s29, %s191_s29 }
  0x99   :  { %p14015_p11 = scmp.lt.s32.totalorder %s14013_s4, %s14009_s12 }
  0x9b   :  { %p14016_p12 = por %p14015_p11, %p14014_p10 }
  0x9d   :  { %p14017_p13 = pnand %p14016_p12, %p14010_p9 }
  0x9f   :  { %14020 = shalt.err (!%p14017_p13)
}
  0xa0   :  { %193 = dma.hbm_to_vmem [thread:$0]  %s17232_s14, 16, %s191_s29, [#allocation30]  }
  0xa1   :  { %s14021_s28 = scalar_lea.hbm %s17234_s16, 16 }
  0xa2   :  { %p14022_p0 = scmp.ne.s32.totalorder %s17234_s16, %s14021_s28  ;;  %p14025_p1 = scmp.lt.u32.totalorder %s14021_s28, %s17234_s16 }
  0xa4   :  { %p14027_p2 = pnand %p14025_p1, %p14022_p0 }
  0xa6   :  { %14030 = shalt.err (!%p14027_p2)
}
  0xa7   :  { %s14031_s23 = scalar_lea.vmem %s213_s5, 16  ;;  %s14035_s26 = scalar_lea.vmem %s213_s5, 32 }
  0xa8   :  { %p14032_p3 = scmp.ne.s32.totalorder %s213_s5, %s14031_s23  ;;  %p14036_p4 = scmp.lt.s32.totalorder %s213_s5, %s213_s5 }
  0xa9   :  { %p14037_p5 = scmp.lt.s32.totalorder %s14035_s26, %s14031_s23 }
  0xab   :  { %p14038_p6 = por %p14037_p5, %p14036_p4 }
  0xad   :  { %p14039_p7 = pnand %p14038_p6, %p14032_p3 }
  0xaf   :  { %14042 = shalt.err (!%p14039_p7)
}
  0xb0   :  { %215 = dma.hbm_to_vmem [thread:$0]  %s17234_s16, 16, %s213_s5, [#allocation33]  }
  0xb1   :  { %s14317_s6 = smov [#allocation8]   ;;  %s14318_s12 = smov [#allocation13]  }
  0xb2   :  { %s45_s27 = sshll.u32 %s14317_s6, 4  ;;  %s70_s4 = sshll.u32 %s14318_s12, 4  ;;  %s46_s27 = int_to_ptr.vmem [resolvable:$true] %s45_s27  ;;  %s71_s4 = int_to_ptr.vmem [resolvable:$true] %s70_s4 }
  0xb3   :  { %s17317_s10 = sld [smem:[#allocation58_spill]] }
  0xb9   :  { %s14043_s30 = scalar_lea.hbm %s17317_s10, 1024 }
  0xba   :  { %p14044_p8 = scmp.ne.s32.totalorder %s17317_s10, %s14043_s30  ;;  %p14047_p9 = scmp.lt.u32.totalorder %s14043_s30, %s17317_s10 }
  0xbc   :  { %p14049_p10 = pnand %p14047_p9, %p14044_p8 }
  0xbe   :  { %14052 = shalt.err (!%p14049_p10)
}
  0xbf   :  { %s14053_s16 = scalar_lea.vmem %s46_s27, 1024  ;;  %p14058_p12 = scmp.lt.s32.totalorder %s46_s27, %s46_s27 }
  0xc0   :  { %p14054_p11 = scmp.ne.s32.totalorder %s46_s27, %s14053_s16  ;;  %p14059_p13 = scmp.lt.s32.totalorder %s14053_s16, %s14053_s16 }
  0xc2   :  { %p14060_p0 = por %p14059_p13, %p14058_p12 }
  0xc4   :  { %p14061_p1 = pnand %p14060_p0, %p14054_p11 }
  0xc6   :  { %14064 = shalt.err (!%p14061_p1)
}
  0xc7   :  { %51 = dma.hbm_to_vmem [thread:$0]  %s17317_s10, 1024, %s46_s27, [#allocation9], %s17316_s7, %s17316_s7, %s17315_s24  }
  0xc8   :  { %s17318_s14 = sld [smem:[#allocation60_spill]] }
  0xce   :  { %s14065_s29 = scalar_lea.hbm %s17318_s14, 16 }
  0xcf   :  { %p14066_p2 = scmp.ne.s32.totalorder %s17318_s14, %s14065_s29  ;;  %p14069_p3 = scmp.lt.u32.totalorder %s14065_s29, %s17318_s14 }
  0xd1   :  { %p14071_p4 = pnand %p14069_p3, %p14066_p2 }
  0xd3   :  { %14074 = shalt.err (!%p14071_p4)
}
  0xd4   :  { %s14075_s30 = scalar_lea.vmem %s71_s4, 16  ;;  %s14079_s28 = scalar_lea.vmem %s71_s4, 32 }
  0xd5   :  { %p14076_p5 = scmp.ne.s32.totalorder %s71_s4, %s14075_s30  ;;  %p14080_p6 = scmp.lt.s32.totalorder %s71_s4, %s71_s4 }
  0xd6   :  { %p14081_p7 = scmp.lt.s32.totalorder %s14079_s28, %s14075_s30 }
  0xd8   :  { %p14082_p8 = por %p14081_p7, %p14080_p6 }
  0xda   :  { %p14083_p9 = pnand %p14082_p8, %p14076_p5 }
  0xdc   :  { %14086 = shalt.err (!%p14083_p9)
}
  0xdd   :  { %73 = dma.hbm_to_vmem [thread:$0]  %s17318_s14, 16, %s71_s4, [#allocation12]  }
  0xde   :  { %s14319_s1 = smov [#allocation16]   ;;  %s14320_s25 = smov [#allocation19]  }
  0xdf   :  { %s90_s22 = sshll.u32 %s14319_s1, 4  ;;  %s109_s16 = sshll.u32 %s14320_s25, 4  ;;  %s91_s22 = int_to_ptr.vmem [resolvable:$true] %s90_s22  ;;  %s14605_s16 = int_to_ptr.vmem [resolvable:$true] %s109_s16 }
  0xe0   :  { %s17319_s23 = sld [smem:[#allocation62_spill]] }
  0xe6   :  { %s14087_s26 = scalar_lea.hbm %s17319_s23, 128 }
  0xe7   :  { %p14088_p10 = scmp.ne.s32.totalorder %s17319_s23, %s14087_s26  ;;  %p14091_p11 = scmp.lt.u32.totalorder %s14087_s26, %s17319_s23 }
  0xe9   :  { %p14093_p12 = pnand %p14091_p11, %p14088_p10 }
  0xeb   :  { %14096 = shalt.err (!%p14093_p12)
}
  0xec   :  { %s14097_s4 = scalar_lea.vmem %s91_s22, 128  ;;  %p14102_p0 = scmp.lt.s32.totalorder %s91_s22, %s91_s22 }
  0xed   :  { %p14098_p13 = scmp.ne.s32.totalorder %s91_s22, %s14097_s4  ;;  %p14103_p1 = scmp.lt.s32.totalorder %s14097_s4, %s14097_s4 }
  0xef   :  { %p14104_p2 = por %p14103_p1, %p14102_p0 }
  0xf1   :  { %p14105_p3 = pnand %p14104_p2, %p14098_p13 }
  0xf3   :  { %14108 = shalt.err (!%p14105_p3)
}
  0xf4   :  { %93 = dma.hbm_to_vmem [thread:$0]  %s17319_s23, 128, %s91_s22, [#allocation15]  }
  0xf5   :  { %s17320_s27 = sld [smem:[#allocation64_spill]] }
  0xfb   :  { %s14109_s10 = scalar_lea.hbm %s17320_s27, 512 }
  0xfc   :  { %p14110_p4 = scmp.ne.s32.totalorder %s17320_s27, %s14109_s10  ;;  %p14113_p5 = scmp.lt.u32.totalorder %s14109_s10, %s17320_s27 }
  0xfe   :  { %p14115_p6 = pnand %p14113_p5, %p14110_p4 }
 0x100   :  { %14118 = shalt.err (!%p14115_p6)
}
 0x101   :  { %s14119_s26 = scalar_lea.vmem %s14605_s16, 512  ;;  %p14124_p8 = scmp.lt.s32.totalorder %s14605_s16, %s14605_s16 }
 0x102   :  { %p14120_p7 = scmp.ne.s32.totalorder %s14605_s16, %s14119_s26  ;;  %p14125_p9 = scmp.lt.s32.totalorder %s14119_s26, %s14119_s26 }
 0x104   :  { %p14126_p10 = por %p14125_p9, %p14124_p8 }
 0x106   :  { %p14127_p11 = pnand %p14126_p10, %p14120_p7 }
 0x108   :  { %14130 = shalt.err (!%p14127_p11)
}
 0x109   :  { %115 = dma.hbm_to_vmem [thread:$0]  %s17320_s27, 512, %s14605_s16, [#allocation18], %s17316_s7, %s17316_s7, %s17315_s24  }
 0x10a   :  { %s14321_s29 = smov [#allocation22]   ;;  %s14322_s12 = smov [#allocation25]  }
 0x10b   :  { %s134_s6 = sshll.u32 %s14321_s29, 4  ;;  %s158_s3 = sshll.u32 %s14322_s12, 4  ;;  %s135_s6 = int_to_ptr.vmem [resolvable:$true] %s134_s6  ;;  %s159_s3 = int_to_ptr.vmem [resolvable:$true] %s158_s3 }
 0x10c   :  { %s14131_s0 = scalar_lea.hbm %s17226_s8, 16 }
 0x10d   :  { %p14132_p12 = scmp.ne.s32.totalorder %s17226_s8, %s14131_s0  ;;  %p14135_p13 = scmp.lt.u32.totalorder %s14131_s0, %s17226_s8 }
 0x10f   :  { %p14137_p0 = pnand %p14135_p13, %p14132_p12 }
 0x111   :  { %14140 = shalt.err (!%p14137_p0)
}
 0x112   :  { %s14141_s16 = scalar_lea.vmem %s135_s6, 16  ;;  %s14145_s27 = scalar_lea.vmem %s135_s6, 32 }
 0x113   :  { %p14142_p1 = scmp.ne.s32.totalorder %s135_s6, %s14141_s16  ;;  %p14146_p2 = scmp.lt.s32.totalorder %s135_s6, %s135_s6 }
 0x114   :  { %p14147_p3 = scmp.lt.s32.totalorder %s14145_s27, %s14141_s16 }
 0x116   :  { %p14148_p4 = por %p14147_p3, %p14146_p2 }
 0x118   :  { %p14149_p5 = pnand %p14148_p4, %p14142_p1 }
 0x11a   :  { %14152 = shalt.err (!%p14149_p5)
}
 0x11b   :  { %137 = dma.hbm_to_vmem [thread:$0]  %s17226_s8, 16, %s135_s6, [#allocation21]  }
 0x11c   :  { %s14153_s22 = scalar_lea.hbm %s17229_s11, 16 }
 0x11d   :  { %p14154_p6 = scmp.ne.s32.totalorder %s17229_s11, %s14153_s22  ;;  %p14157_p7 = scmp.lt.u32.totalorder %s14153_s22, %s17229_s11 }
 0x11f   :  { %p14159_p8 = pnand %p14157_p7, %p14154_p6 }
 0x121   :  { %14162 = shalt.err (!%p14159_p8)
}
 0x122   :  { %s14163_s14 = scalar_lea.vmem %s159_s3, 16  ;;  %s14167_s0 = scalar_lea.vmem %s159_s3, 32 }
 0x123   :  { %p14164_p9 = scmp.ne.s32.totalorder %s159_s3, %s14163_s14  ;;  %p14168_p10 = scmp.lt.s32.totalorder %s159_s3, %s159_s3 }
 0x124   :  { %p14169_p11 = scmp.lt.s32.totalorder %s14167_s0, %s14163_s14 }
 0x126   :  { %p14170_p12 = por %p14169_p11, %p14168_p10 }
 0x128   :  { %p14171_p13 = pnand %p14170_p12, %p14164_p9 }
 0x12a   :  { %14174 = shalt.err (!%p14171_p13)
}
 0x12b   :  { %161 = dma.hbm_to_vmem [thread:$0]  %s17229_s11, 16, %s159_s3, [#allocation24]  }
 0x12c   :  { %s14323_s30 = smov [#allocation28]   ;;  %s14324_s10 = smov [#allocation31]  }
 0x12d   :  { %s180_s28 = sshll.u32 %s14323_s30, 4  ;;  %s199_s1 = sshll.u32 %s14324_s10, 4  ;;  %s181_s28 = int_to_ptr.vmem [resolvable:$true] %s180_s28  ;;  %s14663_s1 = int_to_ptr.vmem [resolvable:$true] %s199_s1 }
 0x12e   :  { %s14175_s25 = scalar_lea.hbm %s17231_s13, 16 }
 0x12f   :  { %p14176_p0 = scmp.ne.s32.totalorder %s17231_s13, %s14175_s25  ;;  %p14179_p1 = scmp.lt.u32.totalorder %s14175_s25, %s17231_s13 }
 0x131   :  { %p14181_p2 = pnand %p14179_p1, %p14176_p0 }
 0x133   :  { %14184 = shalt.err (!%p14181_p2)
}
 0x134   :  { %s14185_s11 = scalar_lea.vmem %s181_s28, 16  ;;  %s14189_s3 = scalar_lea.vmem %s181_s28, 32 }
 0x135   :  { %p14186_p3 = scmp.ne.s32.totalorder %s181_s28, %s14185_s11  ;;  %p14190_p4 = scmp.lt.s32.totalorder %s181_s28, %s181_s28 }
 0x136   :  { %p14191_p5 = scmp.lt.s32.totalorder %s14189_s3, %s14185_s11 }
 0x138   :  { %p14192_p6 = por %p14191_p5, %p14190_p4 }
 0x13a   :  { %p14193_p7 = pnand %p14192_p6, %p14186_p3 }
 0x13c   :  { %14196 = shalt.err (!%p14193_p7)
}
 0x13d   :  { %183 = dma.hbm_to_vmem [thread:$0]  %s17231_s13, 16, %s181_s28, [#allocation27]  }
 0x13e   :  { %s14197_s14 = scalar_lea.hbm %s17233_s15, 512 }
 0x13f   :  { %p14198_p8 = scmp.ne.s32.totalorder %s17233_s15, %s14197_s14  ;;  %p14201_p9 = scmp.lt.u32.totalorder %s14197_s14, %s17233_s15 }
 0x141   :  { %p14203_p10 = pnand %p14201_p9, %p14198_p8 }
 0x143   :  { %14206 = shalt.err (!%p14203_p10)
}
 0x144   :  { %s14207_s10 = scalar_lea.vmem %s14663_s1, 512  ;;  %p14212_p12 = scmp.lt.s32.totalorder %s14663_s1, %s14663_s1 }
 0x145   :  { %p14208_p11 = scmp.ne.s32.totalorder %s14663_s1, %s14207_s10  ;;  %p14213_p13 = scmp.lt.s32.totalorder %s14207_s10, %s14207_s10 }
 0x147   :  { %p14214_p0 = por %p14213_p13, %p14212_p12 }
 0x149   :  { %p14215_p1 = pnand %p14214_p0, %p14208_p11 }
 0x14b   :  { %14218 = shalt.err (!%p14215_p1)
}
 0x14c   :  { %205 = dma.hbm_to_vmem [thread:$0]  %s17233_s15, 512, %s14663_s1, [#allocation30], %s17316_s7, %s17316_s7, %s17315_s24  }
 0x14d   :  { %s14325_s16 = smov [#allocation34]   ;;  %s14326_s25 = smov [#allocation35]  }
 0x14e   :  { %s225_s27 = sshll.u32 %s14325_s16, 4  ;;  %s239_s5 = sshll.u32 %s14326_s25, 4  ;;  %s226_s27 = int_to_ptr.vmem [resolvable:$true] %s225_s27  ;;  %s14697_s5 = int_to_ptr.vmem [resolvable:$true] %s239_s5 }
 0x14f   :  { %s14219_s22 = scalar_lea.hbm %s17237_s19, 512 }
 0x150   :  { %p14220_p2 = scmp.ne.s32.totalorder %s17237_s19, %s14219_s22  ;;  %p14223_p3 = scmp.lt.u32.totalorder %s14219_s22, %s17237_s19 }
 0x152   :  { %p14225_p4 = pnand %p14223_p3, %p14220_p2 }
 0x154   :  { %14228 = shalt.err (!%p14225_p4)
}
 0x155   :  { %s14229_s15 = scalar_lea.vmem %s226_s27, 512  ;;  %p14234_p6 = scmp.lt.s32.totalorder %s226_s27, %s226_s27 }
 0x156   :  { %p14230_p5 = scmp.ne.s32.totalorder %s226_s27, %s14229_s15  ;;  %p14235_p7 = scmp.lt.s32.totalorder %s14229_s15, %s14229_s15 }
 0x158   :  { %p14236_p8 = por %p14235_p7, %p14234_p6 }
 0x15a   :  { %p14237_p9 = pnand %p14236_p8, %p14230_p5 }
 0x15c   :  { %14240 = shalt.err (!%p14237_p9)
}
 0x15d   :  { %231 = dma.hbm_to_vmem [thread:$0]  %s17237_s19, 512, %s226_s27, [#allocation33], %s17316_s7, %s17316_s7, %s17315_s24  }
 0x15e   :  { %s14241_s0 = scalar_lea.hbm %s17239_s21, 512 }
 0x15f   :  { %p14242_p10 = scmp.ne.s32.totalorder %s17239_s21, %s14241_s0  ;;  %p14245_p11 = scmp.lt.u32.totalorder %s14241_s0, %s17239_s21 }
 0x161   :  { %p14247_p12 = pnand %p14245_p11, %p14242_p10 }
 0x163   :  { %14250 = shalt.err (!%p14247_p12)
}
 0x164   :  { %s14251_s13 = scalar_lea.vmem %s14697_s5, 512  ;;  %p14256_p0 = scmp.lt.s32.totalorder %s14697_s5, %s14697_s5 }
 0x165   :  { %p14252_p13 = scmp.ne.s32.totalorder %s14697_s5, %s14251_s13  ;;  %p14257_p1 = scmp.lt.s32.totalorder %s14251_s13, %s14251_s13 }
 0x167   :  { %p14258_p2 = por %p14257_p1, %p14256_p0 }
 0x169   :  { %p14259_p3 = pnand %p14258_p2, %p14252_p13 }
 0x16b   :  { %14262 = shalt.err (!%p14259_p3)
}
 0x16c   :  { %245 = dma.hbm_to_vmem [thread:$0]  %s17239_s21, 512, %s14697_s5, [#allocation36], %s17316_s7, %s17316_s7, %s17315_s24  }
 0x16d   :  { %14285 = dma.done.wait [#allocation9], 1024  }
 0x16e   :  { %14286 = vsyncadd [#allocation9], 4294966272 }
 0x16f   :  { %14287 = dma.done.wait [#allocation12], 1040  }
 0x170   :  { %14288 = vsyncadd [#allocation12], 4294966256 }
 0x171   :  { %14289 = dma.done.wait [#allocation15], 256  }
 0x172   :  { %14290 = vsyncadd [#allocation15], 4294967040 }
 0x173   :  { %14291 = dma.done.wait [#allocation18], 640  }
 0x174   :  { %14292 = vsyncadd [#allocation18], 4294966656 }
 0x175   :  { %14293 = dma.done.wait [#allocation21], 528  }
 0x176   :  { %14294 = vsyncadd [#allocation21], 4294966768 }
 0x177   :  { %14295 = dma.done.wait [#allocation24], 528  }
 0x178   :  { %14296 = vsyncadd [#allocation24], 4294966768 }
 0x179   :  { %14297 = dma.done.wait [#allocation27], 528  }
 0x17a   :  { %14298 = vsyncadd [#allocation27], 4294966768 }
 0x17b   :  { %14299 = dma.done.wait [#allocation30], 528  }
 0x17c   :  { %14300 = vsyncadd [#allocation30], 4294966768 }
 0x17d   :  { %14301 = dma.done.wait [#allocation33], 528  }
 0x17e   :  { %14302 = vsyncadd [#allocation33], 4294966768 }
 0x17f   :  { %14303 = dma.done.wait [#allocation36], 512  }
 0x180   :  { %14304 = vsyncadd [#allocation36], 4294966784  ;;  %vm320_vm0 = vcmask 261120   ;;  %v17256_v0 = vmov 0.0|0.0   ;;  %v17258_v1 = vmov 0.0   ;;  %vm14329_vm1 = vmmov 0  }
 0x181   :  { %12897 = vmatprep.subr.bf16.mxu0 %v17256_v0  ;;  %12903 = vmatprep.subr.bf16.mxu1 %v17256_v0  ;;  %413 = vst.msk [vmem:[#allocation6] sm:$0xff] %vm320_vm0, %v17258_v1  ;;  %414 = vst.msk [vmem:[#allocation6 + $0x8] sm:$0xff] %vm320_vm0, %v17258_v1  ;;  %v458_v2 = vld [vmem:[%s17235_s17] sm:$0xff]  ;;  %v459_v3 = vld [vmem:[%s17235_s17 + $0x8] sm:$0xff]  ;;  %vm385_vm2 = vcmask 1041409   ;;  %vm387_vm3 = vcmask 1042434  }
 0x182   :  { %415 = vst.msk [vmem:[#allocation6 + $0x10] sm:$0xff] %vm320_vm0, %v17258_v1  ;;  %416 = vst.msk [vmem:[#allocation6 + $0x18] sm:$0xff] %vm320_vm0, %v17258_v1  ;;  %12072 = vmatprep.mubr.msk.f32.mxu0 %vm14329_vm1, %v17258_v1  ;;  %12083 = vmatprep.mubr.msk.f32.mxu1 %vm14329_vm1, %v17258_v1  ;;  %v463_v4 = vld [vmem:[#allocation34] sm:$0xff]  ;;  %v14778_v5 = vpack.c.bf16 %v459_v3, %v458_v2  ;;  %v464_v6 = vld [vmem:[#allocation34 + $0x8] sm:$0xff]  ;;  %vm389_vm4 = vcmask 1043459   ;;  %vm391_vm5 = vcmask 1044484  }
 0x183   :  { %417 = vst.msk [vmem:[#allocation6 + $0x20] sm:$0xff] %vm320_vm0, %v17258_v1  ;;  %418 = vst.msk [vmem:[#allocation6 + $0x28] sm:$0xff] %vm320_vm0, %v17258_v1  ;;  %v460_v7 = vld [vmem:[%s17235_s17 + $0x10] sm:$0xff]  ;;  %v461_v8 = vld [vmem:[%s17235_s17 + $0x18] sm:$0xff]  ;;  %v14786_v9 = vpack.c.bf16 %v464_v6, %v463_v4  ;;  %vm393_vm6 = vcmask 1045509   ;;  %vm395_vm7 = vcmask 1046534  }
 0x184   :  { %419 = vst.msk [vmem:[#allocation6 + $0x30] sm:$0xff] %vm320_vm0, %v17258_v1  ;;  %420 = vst.msk [vmem:[#allocation6 + $0x38] sm:$0xff] %vm320_vm0, %v17258_v1  ;;  %v465_v10 = vld [vmem:[#allocation34 + $0x10] sm:$0xff]  ;;  %v466_v11 = vld [vmem:[#allocation34 + $0x18] sm:$0xff]  ;;  %12899 = vmatpush3.bf16.msra.mxu0 %v14778_v5  ;;  %v14789_v13 = vpack.c.bf16 %v461_v8, %v460_v7  ;;  %vm397_vm8 = vcmask 1047559   ;;  %vm411_vm10 = vcmask 64512  }
 0x185   :  { %421 = vst.msk [vmem:[#allocation7] sm:$0xff] %vm320_vm0, %v17258_v1  ;;  %422 = vst.msk [vmem:[#allocation7 + $0x8] sm:$0xff] %vm320_vm0, %v17258_v1  ;;  %v11515_v12 = vld [vmem:[#allocation13] ss:$0 sm:$0xff]  ;;  %v434_v15 = vld [vmem:[#allocation20 + $0x8] sm:$0xff]  ;;  %12905 = vmatpush3.bf16.msra.mxu1 %v14786_v9  ;;  %12900 = vmatprep.subr.bf16.mxu0 %v17256_v0  ;;  %v14794_v17 = vpack.c.bf16 %v466_v11, %v465_v10  ;;  %s14331_s29 = smov 64  }
 0x186   :  { %423 = vst.msk [vmem:[#allocation7 + $0x10] sm:$0xff] %vm320_vm0, %v17258_v1  ;;  %424 = vst.msk [vmem:[#allocation7 + $0x18] sm:$0xff] %vm320_vm0, %v17258_v1  ;;  %v433_v14 = vld [vmem:[#allocation20] sm:$0xff]  ;;  %v430_v18 = vld [vmem:[#allocation19 + $0x8] sm:$0xff]  ;;  %12906 = vmatprep.subr.bf16.mxu1 %v17256_v0  ;;  %vm1532_vm13 = vcmask 7168   ;;  %s17330_s13 = sld [smem:[#allocation67_spill]] }
 0x187   :  { %425 = vst.msk [vmem:[#allocation7 + $0x20] sm:$0xff] %vm320_vm0, %v17258_v1  ;;  %426 = vst.msk [vmem:[#allocation7 + $0x28] sm:$0xff] %vm320_vm0, %v17258_v1  ;;  %v429_v16 = vld [vmem:[#allocation19] sm:$0xff]  ;;  %v435_v19 = vld [vmem:[#allocation20 + $0x10] sm:$0xff]  ;;  %v14799_v24 = vpack.c.bf16 %v434_v15, %v433_v14  ;;  %s14333_s19 = smov 96  }
 0x188   :  { %427 = vst.msk [vmem:[#allocation7 + $0x30] sm:$0xff] %vm320_vm0, %v17258_v1  ;;  %428 = vst.msk [vmem:[#allocation7 + $0x38] sm:$0xff] %vm320_vm0, %v17258_v1  ;;  %v436_v20 = vld [vmem:[#allocation20 + $0x18] sm:$0xff]  ;;  %v431_v21 = vld [vmem:[#allocation19 + $0x10] sm:$0xff]  ;;  %v14801_v25 = vpack.c.bf16 %v430_v18, %v429_v16  ;;  %12902 = vmatpush3.bf16.msra.mxu0 %v14789_v13 }
 0x189   :  { %17321 = vst [vmem:[#allocation49_spill] sm:$0xff] %v14778_v5  ;;  %17322 = vst [vmem:[#allocation50_spill] sm:$0xff] %v14789_v13  ;;  %v432_v22 = vld [vmem:[#allocation19 + $0x18] sm:$0xff]  ;;  %v14797_v23 = vld [vmem:[#allocation8] sm:$0xff]  ;;  %v14803_v26 = vpack.c.bf16 %v436_v20, %v435_v19  ;;  %12908 = vmatpush3.bf16.msra.mxu1 %v14794_v17  ;;  %12909 = vmatprep.subr.bf16.mxu0 %v17256_v0 }
 0x18a   :  { %409 = vst.msk [vmem:[#allocation4] sm:$0xff] %vm320_vm0, %v11515_v12  ;;  %v14805_v27 = vld [vmem:[#allocation8 + $0x8] sm:$0xff]  ;;  %v14807_v28 = vld [vmem:[#allocation8 + $0x10] sm:$0xff]  ;;  %v14809_v29 = vld [vmem:[#allocation8 + $0x18] sm:$0xff]  ;;  %v321_v30 = vsel %vm320_vm0, %v14797_v23, 0.0  ;;  %v14814_v31 = vpack.c.bf16 %v432_v22, %v431_v21  ;;  %12915 = vmatprep.subr.bf16.mxu1 %v17256_v0 }
 0x18b   :  { %v14816_v32 = vld [vmem:[#allocation8 + $0x20] sm:$0xff]  ;;  %v14818_v33 = vld [vmem:[#allocation8 + $0x28] sm:$0xff]  ;;  %v14820_v34 = vld [vmem:[#allocation8 + $0x30] sm:$0xff]  ;;  %v322_v35 = vrot.slane %v321_v30, 4  ;;  %v328_v36 = vsel %vm320_vm0, %v14805_v27, 0.0  ;;  %v335_v37 = vsel %vm320_vm0, %v14807_v28, 0.0 }
 0x18c   :  { %v329_v38 = vrot.slane %v328_v36, 4  ;;  %v336_v39 = vrot.slane %v335_v37, 4  ;;  %v342_v40 = vsel %vm320_vm0, %v14809_v29, 0.0  ;;  %v349_v41 = vsel %vm320_vm0, %v14816_v32, 0.0  ;;  %v14833_v42 = vld [vmem:[#allocation8 + $0x38] sm:$0xff] }
 0x18d   :  { %v323_v43 = vadd.f32 %v322_v35, %v321_v30  ;;  %v343_v44 = vrot.slane %v342_v40, 4  ;;  %v350_v45 = vrot.slane %v349_v41, 4  ;;  %v356_v46 = vsel %vm320_vm0, %v14818_v33, 0.0 }
 0x18e   :  { %v330_v48 = vadd.f32 %v329_v38, %v328_v36  ;;  %v337_v49 = vadd.f32 %v336_v39, %v335_v37  ;;  %v357_v50 = vrot.slane %v356_v46, 4  ;;  %v363_v51 = vsel %vm320_vm0, %v14820_v34, 0.0 }
 0x18f   :  { %v324_v52 = vrot.slane %v323_v43, 2  ;;  %v344_v53 = vadd.f32 %v343_v44, %v342_v40  ;;  %v351_v54 = vadd.f32 %v350_v45, %v349_v41  ;;  %v364_v55 = vrot.slane %v363_v51, 4 }
 0x190   :  { %v331_v56 = vrot.slane %v330_v48, 2  ;;  %v338_v57 = vrot.slane %v337_v49, 2  ;;  %v358_v58 = vadd.f32 %v357_v50, %v356_v46  ;;  %v370_v59 = vsel %vm320_vm0, %v14833_v42, 0.0 }
 0x191   :  { %v14837_v47 = vld [vmem:[#allocation4] sm:$0xff]  ;;  %v325_v60 = vadd.f32 %v324_v52, %v323_v43  ;;  %v345_v61 = vrot.slane %v344_v53, 2  ;;  %v352_v62 = vrot.slane %v351_v54, 2  ;;  %v365_v63 = vadd.f32 %v364_v55, %v363_v51  ;;  %v448_v55 = vld [vmem:[#allocation26 + $0x8] sm:$0xff] }
 0x192   :  { %12073 = vmatmul.mubr.msk.f32.vlgmr.msra.gmra.mrb[0].mxu0 %vm320_vm0, %v14837_v47  ;;  %12084 = vmatmul.mubr.msk.f32.vlgmr.msra.gmra.mrb[0].mxu1 %vm320_vm0, %v14837_v47  ;;  %v332_v2 = vadd.f32 %v331_v56, %v330_v48  ;;  %v339_v3 = vadd.f32 %v338_v57, %v337_v49  ;;  %v359_v4 = vrot.slane %v358_v58, 2  ;;  %v371_v6 = vrot.slane %v370_v59, 4  ;;  %v449_v57 = vld [vmem:[#allocation26 + $0x10] sm:$0xff] }
 0x193   :  { %12911 = vmatpush3.bf16.msra.mxu0 %v14799_v24  ;;  %12917 = vmatpush3.bf16.msra.mxu1 %v14801_v25  ;;  %v326_v7 = vrot.slane %v325_v60, 1  ;;  %v346_v8 = vadd.f32 %v345_v61, %v344_v53  ;;  %v353_v10 = vadd.f32 %v352_v62, %v351_v54  ;;  %v366_v11 = vrot.slane %v365_v63, 2  ;;  %v447_v54 = vld [vmem:[#allocation26] sm:$0xff] }
 0x194   :  { %12912 = vmatprep.subr.bf16.mxu0 %v17256_v0  ;;  %12918 = vmatprep.subr.bf16.mxu1 %v17256_v0  ;;  %v333_v12 = vrot.slane %v332_v2, 1  ;;  %v340_v14 = vrot.slane %v339_v3, 1  ;;  %v360_v15 = vadd.f32 %v359_v4, %v358_v58  ;;  %v372_v16 = vadd.f32 %v371_v6, %v370_v59  ;;  %v450_v58 = vld [vmem:[#allocation26 + $0x18] sm:$0xff]  ;;  %v14890_v61 = vld [vmem:[%s17236_s18] ss:$0 sm:$0xff] }
 0x195   :  { %12094 = vmatprep.mubr.msk.f32.mxu0 %vm14329_vm1, %v17258_v1  ;;  %12105 = vmatprep.mubr.msk.f32.mxu1 %vm14329_vm1, %v17258_v1  ;;  %v327_v18 = vadd.f32 %v326_v7, %v325_v60  ;;  %v347_v19 = vrot.slane %v346_v8, 1  ;;  %v354_v20 = vrot.slane %v353_v10, 1  ;;  %v367_v21 = vadd.f32 %v366_v11, %v365_v63  ;;  %v14895_v62 = vld [vmem:[%s17238_s20] ss:$0 sm:$0xff] }
 0x196   :  { %v334_v22 = vadd.f32 %v333_v12, %v332_v2  ;;  %v341_v30 = vadd.f32 %v340_v14, %v339_v3  ;;  %v361_v35 = vrot.slane %v360_v15, 1  ;;  %v373_v36 = vrot.slane %v372_v16, 2 }
 0x197   :  { %12914 = vmatpush3.bf16.msra.mxu0 %v14803_v26  ;;  %12920 = vmatpush3.bf16.msra.mxu1 %v14814_v31  ;;  %v348_v37 = vadd.f32 %v347_v19, %v346_v8  ;;  %v355_v38 = vadd.f32 %v354_v20, %v353_v10  ;;  %v368_v39 = vrot.slane %v367_v21, 1  ;;  %v14872_v56 = vpack.c.bf16 %v448_v55, %v447_v54 }
 0x198   :  { %12921 = vmatprep.subr.bf16.mxu0 %v17256_v0  ;;  %12927 = vmatprep.subr.bf16.mxu1 %v17256_v0  ;;  %v362_v40 = vadd.f32 %v361_v35, %v360_v15  ;;  %v374_v41 = vadd.f32 %v373_v36, %v372_v16  ;;  %v386_v43 = vsel %vm385_vm2, %v334_v22, %v327_v18  ;;  %v476_v11 = vlaneseq }
 0x199   :  { %v369_v44 = vadd.f32 %v368_v39, %v367_v21  ;;  %v388_v45 = vsel %vm387_vm3, %v341_v30, %v386_v43  ;;  %v14876_v60 = vpack.c.bf16 %v450_v58, %v449_v57  ;;  %v14330_v12 = vmov 1966171168   ;;  %v11524_v21 = vld [vmem:[#allocation28] ss:$0 sm:$0xff] }
 0x19a   :  { %12106 = vmatmul.mubr.msk.f32.vlgmr.msra.gmra.mrb[2].mxu1 %vm320_vm0, %v14837_v47  ;;  %v375_v46 = vrot.slane %v374_v41, 1  ;;  %v390_v48 = vsel %vm389_vm4, %v348_v37, %v388_v45  ;;  %v893_v14 = vunpack.c.l.s4 %v14330_v12  ;;  %v14904_v19 = vshrl.u32 %v476_v11, 7  ;;  %v14926_v57 = vld [vmem:[#allocation11 + $0x18] sm:$0xff]  ;;  %v14937_v12 = vld [vmem:[#allocation11 + $0x28] sm:$0xff] }
 0x19b   :  { %12127 = vmatprep.mubr.msk.f32.mxu1 %vm14329_vm1, %v17258_v1  ;;  %v392_v49 = vsel %vm391_vm5, %v355_v38, %v390_v48 }
 0x19c   :  { %v376_v50 = vadd.f32 %v375_v46, %v374_v41  ;;  %v394_v51 = vsel %vm393_vm6, %v362_v40, %v392_v49  ;;  %v894_v20 = vunpack.c.0.s8 %v893_v14  ;;  %v14911_v39 = vsub.s32 0, %v14904_v19 }
 0x19d   :  { %v396_v52 = vsel %vm395_vm7, %v369_v44, %v394_v51  ;;  %v14915_v44 = vld [vmem:[#allocation11] sm:$0xff]  ;;  %v14920_v51 = vld [vmem:[#allocation11 + $0x8] sm:$0xff] }
 0x19e   :  { %v398_v53 = vsel %vm397_vm8, %v376_v50, %v396_v52  ;;  %v14907_v22 = vsub.s32 %v894_v20, %v14904_v19  ;;  %v14922_v52 = vld [vmem:[#allocation11 + $0x10] sm:$0xff] }
 0x19f   :  { %400 = vst.msk [vmem:[#allocation2] sm:$0xff] %vm320_vm0, %v398_v53  ;;  %401 = vst.msk [vmem:[#allocation3] sm:$0xff] %vm320_vm0, %v398_v53  ;;  %v14942_v20 = vld [vmem:[#allocation11 + $0x30] sm:$0xff] }
 0x1a0   :  { %17323 = vst [vmem:[#allocation51_spill] sm:$0xff] %v14907_v22 }
 0x1a6   :  { %v480_v59 = vld [vmem:[#allocation2] sm:$0xff] }
 0x1a7   :  { %12095 = vmatmul.mubr.msk.f32.vlgmr.msra.gmra.mrb[2].mxu0 %vm320_vm0, %v480_v59 }
 0x1a8   :  { %12923 = vmatpush3.bf16.msra.mxu0 %v14872_v56  ;;  %12116 = vmatprep.mubr.msk.f32.mxu0 %vm14329_vm1, %v17258_v1 }
 0x1a9   :  { %12924 = vmatprep.subr.bf16.mxu0 %v17256_v0 }
 0x1ac   :  { %12926 = vmatpush3.bf16.msra.mxu0 %v14876_v60 }
 0x1ad   :  { %12933 = vmatprep.subr.bf16.mxu0 %v17256_v0 }
 0x1af   :  { %12117 = vmatmul.mubr.msk.f32.vlgmr.msra.gmra.mrb[4].mxu0 %vm320_vm0, %v14837_v47 }
 0x1b0   :  { %12138 = vmatprep.mubr.msk.f32.mxu0 %vm14329_vm1, %v17258_v1 }
 0x265   :  { %v560_v63 = vpop.f32.mrb[0].mxu0  ;;  %v637_v2 = vpop.f32.mrb[0].mxu1 }
 0x266   :  { %v561_v3 = vadd.f32 %v14890_v61, %v560_v63  ;;  %v12074_v4 = vpop.f32.mrb[1].mxu0  ;;  %v638_v6 = vadd.f32 %v14895_v62, %v637_v2  ;;  %v12085_v7 = vpop.f32.mrb[1].mxu1 }
 0x268   :  { %564 = vst.msk [vmem:[#allocation6] sm:$0xff] %vm320_vm0, %v561_v3  ;;  %641 = vst.msk [vmem:[#allocation7] sm:$0xff] %vm320_vm0, %v638_v6  ;;  %v14931_v3 = vld [vmem:[#allocation11 + $0x20] sm:$0xff] }
 0x26d   :  { %v781_v8 = vpop.f32.mrb[2].mxu1 }
 0x26e   :  { %v12107_v10 = vpop.f32.mrb[3].mxu1 }
 0x27a   :  { %v711_v15 = vpop.f32.mrb[2].mxu0 }
 0x27b   :  { %v14901_v16 = vadd.f32 %v781_v8, %v711_v15  ;;  %v12096_v18 = vpop.f32.mrb[3].mxu0 }
 0x282   :  { %v886_v30 = vpop.f32.mrb[4].mxu0 }
 0x283   :  { %v887_v35 = vadd.f32 %v11524_v21, %v886_v30  ;;  %v12118_v36 = vpop.f32.mrb[5].mxu0 }
 0x285   :  { %v891_v37 = vcombine.high %v887_v35, %v887_v35  ;;  %v898_v38 = vrot.slane %v887_v35, %v14907_v22  ;;  %v14946_v35 = vld [vmem:[#allocation11 + $0x38] sm:$0xff] }
 0x287   :  { %v905_v40 = vrot.slane %v891_v37, %v14907_v22  ;;  %v906_v41 = vcombine.high %v898_v38, %v898_v38  ;;  %v914_v43 = vrot.slane %v898_v38, %v14907_v22  ;;  %v11526_v38 = vld [vmem:[#allocation29] ss:$0 sm:$0xff] }
 0x289   :  { %v907_v45 = vcombine.high %v905_v40, %v905_v40  ;;  %v921_v46 = vrot.slane %v905_v40, %v14907_v22  ;;  %v928_v48 = vrot.slane %v906_v41, %v14907_v22  ;;  %v936_v49 = vcombine.high %v914_v43, %v914_v43 }
 0x28a   :  { %v943_v50 = vrot.slane %v914_v43, %v14911_v39 }
 0x28b   :  { %v935_v53 = vrot.slane %v907_v45, %v14907_v22  ;;  %v938_v54 = vcombine.high %v928_v48, %v928_v48  ;;  %v947_v55 = vrot.slane %v928_v48, %v14911_v39  ;;  %v937_v58 = vcombine.high %v921_v46, %v921_v46 }
 0x28c   :  { %v951_v59 = vrot.slane %v936_v49, %v14911_v39  ;;  %v959_v63 = vrot.slane %v921_v46, %v14911_v39  ;;  %v980_v2 = vadd.f32 %v943_v50, %v14915_v44 }
 0x28d   :  { %v955_v4 = vrot.slane %v938_v54, %v14911_v39  ;;  %v939_v6 = vcombine.high %v935_v53, %v935_v53  ;;  %v963_v7 = vrot.slane %v935_v53, %v14911_v39  ;;  %v981_v8 = vadd.f32 %v947_v55, %v14920_v51 }
 0x28e   :  { %v982_v10 = vadd.f32 %v951_v59, %v14922_v52  ;;  %v967_v15 = vrot.slane %v937_v58, %v14911_v39  ;;  %v984_v18 = vadd.f32 %v959_v63, %v14931_v3  ;;  %13360 = vtanh.f32 %v980_v2 }
 0x28f   :  { %v983_v14 = vadd.f32 %v955_v4, %v14926_v57  ;;  %13362 = vtanh.f32 %v981_v8  ;;  %v971_v21 = vrot.slane %v939_v6, %v14911_v39  ;;  %v985_v30 = vadd.f32 %v963_v7, %v14937_v12 }
 0x290   :  { %13364 = vtanh.f32 %v982_v10  ;;  %v986_v36 = vadd.f32 %v967_v15, %v14942_v20 }
 0x291   :  { %13366 = vtanh.f32 %v983_v14  ;;  %v987_v37 = vadd.f32 %v971_v21, %v14946_v35 }
 0x292   :  { %13368 = vtanh.f32 %v984_v18 }
 0x293   :  { %13370 = vtanh.f32 %v985_v30  ;;  %v14959_v30 = vand.u32 127, %v476_v11 }
 0x294   :  { %13372 = vtanh.f32 %v986_v36 }
 0x295   :  { %13374 = vtanh.f32 %v987_v37  ;;  %v14963_v37 = vsub.s32 %v14959_v30, %v14904_v19 }
 0x297   :  { %17324 = vst [vmem:[#allocation52_spill] sm:$0xff] %v14963_v37 }
 0x298   :  { %v13361_v40 = vpop.eup %13360 }
 0x299   :  { %v13363_v41 = vpop.eup %13362  ;;  %v1002_v43 = vmul.f32 %v13361_v40, %v11526_v38 }
 0x29a   :  { %v13365_v45 = vpop.eup %13364  ;;  %v1003_v50 = vmul.f32 %v13363_v41, %v11526_v38 }
 0x29b   :  { %v13367_v46 = vpop.eup %13366  ;;  %v1010_v48 = vsel %vm320_vm0, %v1002_v43, 0.0  ;;  %v1004_v49 = vmul.f32 %v13365_v45, %v11526_v38 }
 0x29c   :  { %v13369_v53 = vpop.eup %13368  ;;  %1011 = vadd.xlane.f32.xlu0 %v1010_v48  ;;  %v1005_v55 = vmul.f32 %v13367_v46, %v11526_v38  ;;  %v1013_v59 = vsel %vm320_vm0, %v1003_v50, 0.0 }
 0x29d   :  { %v1016_v54 = vsel %vm320_vm0, %v1004_v49, 0.0  ;;  %v13371_v58 = vpop.eup %13370  ;;  %v1006_v63 = vmul.f32 %v13369_v53, %v11526_v38 }
 0x29e   :  { %1017 = vadd.xlane.f32.xlu1 %v1016_v54  ;;  %v13373_v2 = vpop.eup %13372  ;;  %v1019_v4 = vsel %vm320_vm0, %v1005_v55, 0.0  ;;  %v1007_v6 = vmul.f32 %v13371_v58, %v11526_v38 }
 0x29f   :  { %v13375_v7 = vpop.eup %13374  ;;  %v1022_v8 = vsel %vm320_vm0, %v1006_v63, 0.0  ;;  %v1008_v10 = vmul.f32 %v13373_v2, %v11526_v38  ;;  %v14975_v2 = vld [vmem:[#allocation14] sm:$0xff] }
 0x2a0   :  { %1014 = vadd.xlane.f32.xlu0 %v1013_v59  ;;  %v1025_v14 = vsel %vm320_vm0, %v1007_v6, 0.0  ;;  %v1009_v15 = vmul.f32 %v13375_v7, %v11526_v38  ;;  %17325 = vst [vmem:[#allocation53_spill] sm:$0xff] %v14975_v2  ;;  %vm475_vm9 = vcmp.gt.f32.partialorder %v14975_v2, 0.0 }
 0x2a1   :  { %v1028_v18 = vsel %vm320_vm0, %v1008_v10, 0.0 }
 0x2a2   :  { %1020 = vadd.xlane.f32.xlu1 %v1019_v4  ;;  %v1031_v21 = vsel %vm320_vm0, %v1009_v15, 0.0 }
 0x2a4   :  { %1023 = vadd.xlane.f32.xlu0 %v1022_v8 }
 0x2a6   :  { %1026 = vadd.xlane.f32.xlu1 %v1025_v14 }
 0x2a8   :  { %1029 = vadd.xlane.f32.xlu0 %v1028_v18 }
 0x2aa   :  { %1032 = vadd.xlane.f32.xlu1 %v1031_v21 }
 0x329   :  { %v1012_v36 = vpop.xlane.xlu0 %1011 }
 0x32a   :  { %v1045_v43 = vrot.slane %v1012_v36, %v14963_v37 }
 0x32b   :  { %v1018_v40 = vpop.xlane.xlu1 %1017 }
 0x32c   :  { %v1053_v45 = vrot.slane %v1018_v40, %v14963_v37 }
 0x32d   :  { %v1015_v41 = vpop.xlane.xlu0 %1014 }
 0x32e   :  { %v1049_v38 = vrot.slane %v1015_v41, %v14963_v37 }
 0x32f   :  { %v1021_v46 = vpop.xlane.xlu1 %1020 }
 0x330   :  { %v1075_v48 = vsel %vm385_vm2, %v1049_v38, %v1045_v43  ;;  %v1057_v49 = vrot.slane %v1021_v46, %v14963_v37  ;;  %v410_v38 = vld [vmem:[#allocation17] sm:$0xff]  ;;  %v14989_v46 = vsub.s32 1, %v14904_v19 }
 0x331   :  { %v1077_v11 = vsel %vm387_vm3, %v1053_v45, %v1075_v48  ;;  %v1024_v50 = vpop.xlane.xlu0 %1023  ;;  %412 = vst.msk [vmem:[#allocation5] sm:$0xff] %vm411_vm10, %v410_v38  ;;  %v443_v38 = vld [vmem:[#allocation23 + $0x8] sm:$0xff] }
 0x332   :  { %v1079_v53 = vsel %vm389_vm4, %v1057_v49, %v1077_v11  ;;  %v1061_v54 = vrot.slane %v1024_v50, %v14963_v37 }
 0x333   :  { %v1027_v55 = vpop.xlane.xlu1 %1026 }
 0x334   :  { %v1081_v58 = vsel %vm391_vm5, %v1061_v54, %v1079_v53  ;;  %v1065_v59 = vrot.slane %v1027_v55, %v14963_v37  ;;  %v14995_v53 = vsub.s32 5, %v14904_v19  ;;  %v14998_v54 = vsub.s32 2, %v14904_v19 }
 0x335   :  { %v1030_v63 = vpop.xlane.xlu0 %1029 }
 0x336   :  { %v1083_v4 = vsel %vm393_vm6, %v1065_v59, %v1081_v58  ;;  %v1069_v6 = vrot.slane %v1030_v63, %v14963_v37  ;;  %v15003_v59 = vsub.s32 3, %v14904_v19 }
 0x337   :  { %v1033_v7 = vpop.xlane.xlu1 %1032 }
 0x338   :  { %v1073_v8 = vrot.slane %v1033_v7, %v14963_v37  ;;  %v1085_v10 = vsel %vm395_vm7, %v1069_v6, %v1083_v4  ;;  %v15007_v4 = vsub.s32 4, %v14904_v19  ;;  %v15011_v7 = vsub.s32 6, %v14904_v19 }
 0x33a   :  { %v1087_v14 = vsel %vm397_vm8, %v1073_v8, %v1085_v10  ;;  %v483_v10 = vld [vmem:[#allocation5] sm:$0xff] }
 0x33b   :  { %v1089_v15 = vsel %vm475_vm9, %v1087_v14, -1e+30 }
 0x33c   :  { %v1091_v18 = vsel %vm411_vm10, %v1089_v15, -inf }
 0x33d   :  { %1092 = vmax.xlane.f32.xlu0 %v1091_v18  ;;  %v15018_v18 = vld [vmem:[#allocation22] ss:$0 sm:$0xff] }
 0x3ca   :  { %v1093_v21 = vpop.xlane.xlu0 %1092 }
 0x3cb   :  { %v1094_v36 = vsub.f32 %v1089_v15, %v1093_v21  ;;  %v791_v21 = vadd.f32 %v15018_v18, %v14901_v16  ;;  %v439_v16 = vld [vmem:[%s17227_s9 + $0x8] sm:$0xff] }
 0x3cd   :  { %v1095_v40 = vmul.f32 1.442695, %v1094_v36  ;;  %v15023_v36 = vsub.s32 7, %v14904_v19 }
 0x3cf   :  { %13376 = vpow2.f32 %v1095_v40 }
 0x3d9   :  { %v13377_v41 = vpop.eup %13376 }
 0x3da   :  { %v1097_v43 = vsel %vm411_vm10, %v13377_v41, 0.0 }
 0x3db   :  { %1098 = vadd.xlane.f32.xlu1 %v1097_v43  ;;  %v442_v43 = vld [vmem:[#allocation23] sm:$0xff] }
 0x468   :  { %v1099_v45 = vpop.xlane.xlu1 %1098 }
 0x469   :  { %13378 = vrcp.f32 %v1099_v45  ;;  %v438_v45 = vld [vmem:[%s17227_s9] sm:$0xff] }
 0x46a   :  { %13380 = vtanh.f32 %v791_v21 }
 0x473   :  { %v13379_v48 = vpop.eup %13378 }
 0x474   :  { %v1101_v49 = vmul.f32 %v13379_v48, %v13377_v41  ;;  %v13381_v41 = vpop.eup %13380  ;;  %v15030_v48 = vpack.c.bf16 %v443_v38, %v442_v43 }
 0x476   :  { %1531 = vst.msk [vmem:[#allocation37] sm:$0xff] %vm411_vm10, %v1101_v49  ;;  %v1112_v11 = vrot.slane %v1101_v49, %v14989_v46  ;;  %v1105_v50 = vrot.slane %v1101_v49, %v14911_v39  ;;  %v1140_v55 = vrot.slane %v1101_v49, %v14995_v53  ;;  %v1119_v58 = vrot.slane %v1101_v49, %v14998_v54 }
 0x477   :  { %v1126_v63 = vrot.slane %v1101_v49, %v15003_v59  ;;  %v1133_v6 = vrot.slane %v1101_v49, %v15007_v4  ;;  %v1147_v8 = vrot.slane %v1101_v49, %v15011_v7  ;;  %v15014_v14 = vmul.f32 %v1101_v49, %v483_v10  ;;  %17326 = vst [vmem:[#allocation54_spill] sm:$0xff] %v15030_v48 }
 0x478   :  { %1114 = vbcast.lane.b32.xlu0 %v1112_v11, 256  ;;  %1107 = vbcast.lane.b32.xlu1 %v1105_v50, 256  ;;  %v1154_v40 = vrot.slane %v1101_v49, %v15023_v36  ;;  %v15035_v11 = vpack.c.bf16 %v439_v16, %v438_v45  ;;  %v444_v49 = vld [vmem:[#allocation23 + $0x10] sm:$0xff]  ;;  %v445_v50 = vld [vmem:[#allocation23 + $0x18] sm:$0xff] }
 0x479   :  { %v1388_v15 = vsel %vm411_vm10, %v15014_v14, -inf  ;;  %12929 = vmatpush3.bf16.msra.mxu1 %v15030_v48 }
 0x47a   :  { %12935 = vmatpush3.bf16.msra.mxu0 %v15035_v11  ;;  %12930 = vmatprep.subr.bf16.mxu1 %v17256_v0 }
 0x47b   :  { %12936 = vmatprep.subr.bf16.mxu0 %v17256_v0 }
 0x47c   :  { %1142 = vbcast.lane.b32.xlu0 %v1140_v55, 256  ;;  %1121 = vbcast.lane.b32.xlu1 %v1119_v58, 256  ;;  %v440_v55 = vld [vmem:[%s17227_s9 + $0x10] sm:$0xff]  ;;  %v15044_v58 = vpack.c.bf16 %v445_v50, %v444_v49 }
 0x47e   :  { %17327 = vst [vmem:[#allocation55_spill] sm:$0xff] %v15044_v58  ;;  %12932 = vmatpush3.bf16.msra.mxu1 %v15044_v58 }
 0x47f   :  { %12939 = vmatprep.subr.bf16.mxu1 %v17256_v0 }
 0x480   :  { %1128 = vbcast.lane.b32.xlu1 %v1126_v63, 256  ;;  %v441_v63 = vld [vmem:[%s17227_s9 + $0x18] sm:$0xff]  ;;  %s14332_s9 = smov 32  }
 0x481   :  { %12128 = vmatmul.mubr.msk.f32.vlgmr.msra.gmra.mrb[4].mxu1 %vm320_vm0, %v14837_v47 }
 0x482   :  { %12941 = vmatpush3.bf16.msra.mxu1 %v14778_v5  ;;  %12149 = vmatprep.mubr.msk.f32.mxu1 %vm14329_vm1, %v17258_v1 }
 0x483   :  { %12942 = vmatprep.subr.bf16.mxu1 %v17256_v0 }
 0x484   :  { %1135 = vbcast.lane.b32.xlu1 %v1133_v6, 256  ;;  %v15049_v6 = vpack.c.bf16 %v441_v63, %v440_v55 }
 0x486   :  { %12938 = vmatpush3.bf16.msra.mxu0 %v15049_v6  ;;  %12944 = vmatpush3.bf16.msra.mxu1 %v14789_v13 }
 0x487   :  { %12945 = vmatprep.subr.bf16.mxu0 %v17256_v0  ;;  %12951 = vmatprep.subr.bf16.mxu1 %v17256_v0 }
 0x488   :  { %1149 = vbcast.lane.b32.xlu1 %v1147_v8, 256 }
 0x49b   :  { %1389 = vmax.xlane.f32.xlu0 %v1388_v15 }
 0x4b1   :  { %1156 = vbcast.lane.b32.xlu0 %v1154_v40, 256 }
 0x4b5   :  { %805 = vrot.lane.b32.xlu0 %v13381_v41, %s14331_s29 }
 0x4ea   :  { %v1108_v8 = vpop.permute.xlu1 %1107  ;;  %v1115_v40 = vpop.permute.xlu0 %1114 }
 0x4eb   :  { %v1159_v43 = vmul.f32 %v1115_v40, %v14920_v51  ;;  %v1158_v47 = vmul.f32 %v1108_v8, %v14915_v44 }
 0x4ed   :  { %v1173_v49 = vsel %vm320_vm0, %v1159_v43, 0.0  ;;  %v1166_v50 = vsel %vm320_vm0, %v1158_v47, 0.0 }
 0x4ee   :  { %v1122_v10 = vpop.permute.xlu1 %1121  ;;  %v1143_v63 = vpop.permute.xlu0 %1142  ;;  %v1174_v2 = vrot.slane %v1173_v49, 4  ;;  %v1167_v51 = vrot.slane %v1166_v50, 4 }
 0x4ef   :  { %v1160_v38 = vmul.f32 %v1122_v10, %v14922_v52 }
 0x4f0   :  { %v1175_v40 = vadd.f32 %v1174_v2, %v1173_v49 }
 0x4f1   :  { %v1180_v0 = vsel %vm320_vm0, %v1160_v38, 0.0 }
 0x4f2   :  { %v1129_v15 = vpop.permute.xlu1 %1128  ;;  %v1181_v8 = vrot.slane %v1180_v0, 4 }
 0x4f3   :  { %v1161_v45 = vmul.f32 %v1129_v15, %v14926_v57  ;;  %v1163_v57 = vmul.f32 %v1143_v63, %v14937_v12 }
 0x4f4   :  { %v1182_v38 = vadd.f32 %v1181_v8, %v1180_v0 }
 0x4f5   :  { %v1187_v1 = vsel %vm320_vm0, %v1161_v45, 0.0  ;;  %v1201_v47 = vsel %vm320_vm0, %v1163_v57, 0.0 }
 0x4f6   :  { %v1136_v41 = vpop.permute.xlu1 %1135  ;;  %v1188_v10 = vrot.slane %v1187_v1, 4 }
 0x4f7   :  { %v1162_v16 = vmul.f32 %v1136_v41, %v14931_v3  ;;  %v11523_v3 = vmul.f32 -1.442695, %v791_v21  ;;  %v1168_v41 = vadd.f32 %v1167_v51, %v1166_v50 }
 0x4f8   :  { %v1189_v45 = vadd.f32 %v1188_v10, %v1187_v1 }
 0x4f9   :  { %v1194_v44 = vsel %vm320_vm0, %v1162_v16, 0.0  ;;  %13382 = vpow2.f32 %v11523_v3  ;;  %v1176_v16 = vrot.slane %v1175_v40, 2  ;;  %v1169_v13 = vrot.slane %v1168_v41, 2 }
 0x4fa   :  { %v1150_v55 = vpop.permute.xlu1 %1149  ;;  %v1195_v15 = vrot.slane %v1194_v44, 4  ;;  %v1190_v12 = vrot.slane %v1189_v45, 2 }
 0x4fb   :  { %v1164_v52 = vmul.f32 %v1150_v55, %v14942_v20  ;;  %v1202_v20 = vrot.slane %v1201_v47, 4  ;;  %v1183_v55 = vrot.slane %v1182_v38, 2  ;;  %v1177_v5 = vadd.f32 %v1176_v16, %v1175_v40 }
 0x4fc   :  { %v1196_v37 = vadd.f32 %v1195_v15, %v1194_v44  ;;  %v1170_v58 = vadd.f32 %v1169_v13, %v1168_v41  ;;  %v1191_v51 = vadd.f32 %v1190_v12, %v1189_v45 }
 0x4fd   :  { %v1208_v43 = vsel %vm320_vm0, %v1164_v52, 0.0  ;;  %v1203_v2 = vadd.f32 %v1202_v20, %v1201_v47  ;;  %v1184_v50 = vadd.f32 %v1183_v55, %v1182_v38  ;;  %v1178_v8 = vrot.slane %v1177_v5, 1 }
 0x4fe   :  { %v1209_v22 = vrot.slane %v1208_v43, 4  ;;  %v1197_v63 = vrot.slane %v1196_v37, 2  ;;  %v1171_v3 = vrot.slane %v1170_v58, 1  ;;  %v1192_v41 = vrot.slane %v1191_v51, 1 }
 0x4ff   :  { %v1204_v10 = vrot.slane %v1203_v2, 2  ;;  %v1185_v40 = vrot.slane %v1184_v50, 1 }
 0x500   :  { %v1210_v21 = vadd.f32 %v1209_v22, %v1208_v43  ;;  %v1198_v1 = vadd.f32 %v1197_v63, %v1196_v37  ;;  %v1179_v37 = vadd.f32 %v1178_v8, %v1177_v5  ;;  %v1172_v16 = vadd.f32 %v1171_v3, %v1170_v58 }
 0x501   :  { %v1205_v20 = vadd.f32 %v1204_v10, %v1203_v2  ;;  %v1186_v12 = vadd.f32 %v1185_v40, %v1184_v50  ;;  %v1193_v63 = vadd.f32 %v1192_v41, %v1191_v51  ;;  %v17329_v41 = vmov 0.0|0.0  }
 0x502   :  { %v1211_v44 = vrot.slane %v1210_v21, 2 }
 0x503   :  { %v13383_v57 = vpop.eup %13382 }
 0x504   :  { %v795_v47 = vadd.f32 1.0, %v13383_v57  ;;  %v1212_v38 = vadd.f32 %v1211_v44, %v1210_v21 }
 0x506   :  { %v1213_v48 = vrot.slane %v1212_v38, 1  ;;  %13384 = vrcp.f32 %v795_v47 }
 0x508   :  { %v1214_v5 = vadd.f32 %v1213_v48, %v1212_v38 }
 0x510   :  { %v13385_v40 = vpop.eup %13384 }
 0x528   :  { %v1390_v49 = vpop.xlane.xlu0 %1389 }
 0x529   :  { %vm1391_vm11 = vcmp.eq.f32.partialorder %v15014_v14, %v1390_v49  ;;  %v1199_v14 = vrot.slane %v1198_v1, 1 }
 0x52a   :  { %v1392_v0 = vsel %vm1391_vm11, %v14959_v30, 8  ;;  %vm1940_vm11 = vcmp.lt.s32.totalorder %v14904_v19, 1 }
 0x52b   :  { %v1393_v52 = vsel %vm411_vm10, %v1392_v0, 2147483647  ;;  %v1200_v0 = vadd.f32 %v1199_v14, %v1198_v1 }
 0x52c   :  { %v1157_v15 = vpop.permute.xlu0 %1156  ;;  %v1395_v22 = vshra.s32 %v1393_v52, 16  ;;  %v1394_v38 = vand.u32 65535, %v1393_v52 }
 0x52d   :  { %v1165_v13 = vmul.f32 %v1157_v15, %v14946_v35  ;;  %v1300_v35 = vsel %vm385_vm2, %v1179_v37, %v1172_v16  ;;  %v1206_v15 = vrot.slane %v1205_v20, 1 }
 0x52e   :  { %v1397_v43 = vcvt.s32.f32 %v1395_v22  ;;  %v1301_v57 = vsel %vm387_vm3, %v1186_v12, %v1300_v35  ;;  %v1396_v37 = vcvt.s32.f32 %v1394_v38 }
 0x52f   :  { %v1215_v45 = vsel %vm320_vm0, %v1165_v13, 0.0  ;;  %v1302_v21 = vsel %vm389_vm4, %v1193_v63, %v1301_v57  ;;  %v1207_v2 = vadd.f32 %v1206_v15, %v1205_v20  ;;  %v17328_v13 = vmov 0.0   ;;  %v481_v20 = vld [vmem:[#allocation3] sm:$0xff] }
 0x530   :  { %v1216_v55 = vrot.slane %v1215_v45, 4  ;;  %1398 = vmin.xlane.f32.xlu1 %v1397_v43  ;;  %v1303_v58 = vsel %vm391_vm5, %v1200_v0, %v1302_v21  ;;  %v806_v3 = vpop.permute.xlu0 %805 }
 0x531   :  { %v1304_v51 = vsel %vm393_vm6, %v1207_v2, %v1303_v58  ;;  %v808_v48 = vmul.f32 %v13385_v40, %v806_v3  ;;  %v15116_v58 = vld [vmem:[#allocation16] sm:$0xff] }
 0x532   :  { %v1217_v49 = vadd.f32 %v1216_v55, %v1215_v45  ;;  %v1305_v1 = vsel %vm395_vm7, %v1214_v5, %v1304_v51  ;;  %17331 = vst [vmem:[#allocation56_spill] sm:$0xff] %v15116_v58  ;;  %vm473_vm15 = vcmp.gt.f32.partialorder %v15116_v58, 0.0 }
 0x534   :  { %v1218_v22 = vrot.slane %v1217_v49, 2 }
 0x536   :  { %v1219_v44 = vadd.f32 %v1218_v22, %v1217_v49 }
 0x538   :  { %v1220_v8 = vrot.slane %v1219_v44, 1 }
 0x53a   :  { %v1221_v50 = vadd.f32 %v1220_v8, %v1219_v44 }
 0x53c   :  { %v1306_v10 = vsel %vm397_vm8, %v1221_v50, %v1305_v1 }
 0x53d   :  { %12139 = vmatmul.mubr.msk.f32.vlgmr.msra.gmra.mrb[6].mxu0 %vm320_vm0, %v1306_v10  ;;  %v17274_v10 = vmov -1e+30  }
 0x53e   :  { %12947 = vmatpush3.bf16.msra.mxu0 %v14786_v9  ;;  %12160 = vmatprep.mubr.msk.f32.mxu0 %vm14329_vm1, %v17328_v13 }
 0x53f   :  { %12948 = vmatprep.subr.bf16.mxu0 %v17329_v41 }
 0x541   :  { %810 = vrot.lane.b32.xlu1 %v808_v48, %s14332_s9 }
 0x542   :  { %12950 = vmatpush3.bf16.msra.mxu0 %v14794_v17 }
 0x543   :  { %12957 = vmatprep.subr.bf16.mxu0 %v17329_v41 }
 0x554   :  { %v1288_v47 = vpop.f32.mrb[4].mxu1 }
 0x555   :  { %v12129_v14 = vpop.f32.mrb[5].mxu1 }
 0x5bd   :  { %v1399_v45 = vpop.xlane.xlu1 %1398 }
 0x5be   :  { %vm1400_vm12 = vcmp.eq.f32.partialorder %v1397_v43, %v1399_v45  ;;  %v1405_v49 = vcvt.f32.s32 %v1399_v45 }
 0x5bf   :  { %v1401_v16 = vsel %vm1400_vm12, %v1396_v37, inf  ;;  %vm1941_vm12 = vmand %vm1940_vm11, %vm473_vm15 }
 0x5c0   :  { %1402 = vmin.xlane.f32.xlu0 %v1401_v16  ;;  %v1406_v35 = vshll.u32 %v1405_v49, 16 }
 0x5c1   :  { %v811_v51 = vpop.permute.xlu1 %810 }
 0x5d6   :  { %800 = vrot.lane.b32.xlu0 %v481_v20, %s14332_s9 }
 0x610   :  { %v1375_v55 = vpop.f32.mrb[6].mxu0 }
 0x611   :  { %v15098_v12 = vadd.f32 %v1375_v55, %v1288_v47  ;;  %v12140_v63 = vpop.f32.mrb[7].mxu0 }
 0x64d   :  { %v1403_v0 = vpop.xlane.xlu0 %1402 }
 0x64e   :  { %v1404_v15 = vcvt.f32.s32 %v1403_v0 }
 0x650   :  { %v1407_v22 = vadd.s32 %v1406_v35, %v1404_v15 }
 0x651   :  { %v801_v5 = vpop.permute.xlu0 %800 }
 0x652   :  { %vm1408_vm14 = vcmp.eq.s32.totalorder %v14959_v30, %v1407_v22  ;;  %1533 = vst.msk [vmem:[%s17330_s13] sm:$0xff] %vm1532_vm13, %v1407_v22  ;;  %v803_v2 = vmul.f32 %v13385_v40, %v801_v5  ;;  %v15133_v40 = vsel %vm1941_vm12, 0.0, %v17274_v10 }
 0x653   :  { %v15106_v52 = vsel %vm1408_vm14, 1.0, %v17328_v13  ;;  %v2091_v47 = vrot.slane %v15133_v40, %v14911_v39  ;;  %v2105_v14 = vrot.slane %v15133_v40, %v14998_v54  ;;  %v2119_v38 = vrot.slane %v15133_v40, %v15007_v4 }
 0x654   :  { %v1428_v43 = vrot.slane %v15106_v52, %v14998_v54  ;;  %v1414_v57 = vrot.slane %v15106_v52, %v14911_v39  ;;  %v1442_v21 = vrot.slane %v15106_v52, %v15007_v4  ;;  %v1421_v44 = vrot.slane %v15106_v52, %v14989_v46 }
 0x655   :  { %v1456_v8 = vrot.slane %v15106_v52, %v15011_v7  ;;  %v1435_v50 = vrot.slane %v15106_v52, %v15003_v59  ;;  %v15124_v1 = vadd.f32 %v811_v51, %v803_v2  ;;  %v1449_v3 = vrot.slane %v15106_v52, %v14995_v53 }
 0x656   :  { %1430 = vbcast.lane.b32.xlu0 %v1428_v43, 256  ;;  %1416 = vbcast.lane.b32.xlu1 %v1414_v57, 256  ;;  %v1463_v48 = vrot.slane %v15106_v52, %v15023_v36  ;;  %v2133_v45 = vrot.slane %v15133_v40, %v15011_v7 }
 0x65a   :  { %1444 = vbcast.lane.b32.xlu0 %v1442_v21, 256  ;;  %1423 = vbcast.lane.b32.xlu1 %v1421_v44, 256 }
 0x65e   :  { %1458 = vbcast.lane.b32.xlu0 %v1456_v8, 256  ;;  %1437 = vbcast.lane.b32.xlu1 %v1435_v50, 256 }
 0x662   :  { %1451 = vbcast.lane.b32.xlu1 %v1449_v3, 256  ;;  %1866 = vrot.lane.b32.xlu0 %v15124_v1, %s14333_s19 }
 0x666   :  { %1465 = vbcast.lane.b32.xlu1 %v1463_v48, 256 }
 0x66a   :  { %2093 = vbcast.lane.b32.xlu1 %v2091_v47, 256 }
 0x66e   :  { %2107 = vbcast.lane.b32.xlu1 %v2105_v14, 256 }
 0x672   :  { %2121 = vbcast.lane.b32.xlu1 %v2119_v38, 256 }
 0x676   :  { %2135 = vbcast.lane.b32.xlu1 %v2133_v45, 256 }
 0x6c8   :  { %v1431_v37 = vpop.permute.xlu0 %1430  ;;  %v1417_v16 = vpop.permute.xlu1 %1416 }
 0x6c9   :  { %v1469_v20 = vmul.f32 %v1431_v37, %v14807_v28  ;;  %v1467_v55 = vmul.f32 %v1417_v16, %v14797_v23 }
 0x6cb   :  { %v1489_v63 = vsel %vm320_vm0, %v1469_v20, 0.0  ;;  %v1475_v49 = vsel %vm320_vm0, %v1467_v55, 0.0 }
 0x6cc   :  { %v1490_v0 = vrot.slane %v1489_v63, 4  ;;  %v1476_v35 = vrot.slane %v1475_v49, 4  ;;  %v1445_v15 = vpop.permute.xlu0 %1444  ;;  %v1424_v22 = vpop.permute.xlu1 %1423 }
 0x6cd   :  { %v1471_v43 = vmul.f32 %v1445_v15, %v14816_v32  ;;  %v1468_v57 = vmul.f32 %v1424_v22, %v14805_v27 }
 0x6ce   :  { %v1491_v21 = vadd.f32 %v1490_v0, %v1489_v63  ;;  %v1477_v44 = vadd.f32 %v1476_v35, %v1475_v49 }
 0x6cf   :  { %v1503_v5 = vsel %vm320_vm0, %v1471_v43, 0.0  ;;  %v1482_v28 = vsel %vm320_vm0, %v1468_v57, 0.0 }
 0x6d0   :  { %v1478_v2 = vrot.slane %v1477_v44, 2  ;;  %v1504_v23 = vrot.slane %v1503_v5, 4  ;;  %v1483_v8 = vrot.slane %v1482_v28, 4  ;;  %v1459_v50 = vpop.permute.xlu0 %1458  ;;  %v1438_v51 = vpop.permute.xlu1 %1437  ;;  %v1492_v47 = vrot.slane %v1491_v21, 2 }
 0x6d1   :  { %v1473_v3 = vmul.f32 %v1459_v50, %v14820_v34  ;;  %v1470_v48 = vmul.f32 %v1438_v51, %v14809_v29 }
 0x6d2   :  { %v1505_v14 = vadd.f32 %v1504_v23, %v1503_v5  ;;  %v1484_v32 = vadd.f32 %v1483_v8, %v1482_v28  ;;  %v1479_v38 = vadd.f32 %v1478_v2, %v1477_v44  ;;  %v1493_v0 = vadd.f32 %v1492_v47, %v1491_v21 }
 0x6d3   :  { %v1517_v27 = vsel %vm320_vm0, %v1473_v3, 0.0  ;;  %v1496_v45 = vsel %vm320_vm0, %v1470_v48, 0.0 }
 0x6d4   :  { %v1485_v37 = vrot.slane %v1484_v32, 2  ;;  %v1452_v16 = vpop.permute.xlu1 %1451  ;;  %v1506_v20 = vrot.slane %v1505_v14, 2  ;;  %v1518_v55 = vrot.slane %v1517_v27, 4  ;;  %v1497_v63 = vrot.slane %v1496_v45, 4 }
 0x6d5   :  { %v1472_v49 = vmul.f32 %v1452_v16, %v14818_v33  ;;  %v1480_v34 = vrot.slane %v1479_v38, 1  ;;  %v1494_v8 = vrot.slane %v1493_v0, 1 }
 0x6d6   :  { %v1486_v35 = vadd.f32 %v1485_v37, %v1484_v32  ;;  %v1519_v15 = vadd.f32 %v1518_v55, %v1517_v27  ;;  %v1498_v29 = vadd.f32 %v1497_v63, %v1496_v45  ;;  %v1507_v5 = vadd.f32 %v1506_v20, %v1505_v14  ;;  %v11529_v55 = vld [vmem:[#allocation25] ss:$0 sm:$0xff] }
 0x6d7   :  { %v1510_v22 = vsel %vm320_vm0, %v1472_v49, 0.0  ;;  %v1481_v3 = vadd.f32 %v1480_v34, %v1479_v38  ;;  %v1495_v16 = vadd.f32 %v1494_v8, %v1493_v0 }
 0x6d8   :  { %v1487_v43 = vrot.slane %v1486_v35, 1  ;;  %v1511_v57 = vrot.slane %v1510_v22, 4  ;;  %v1466_v44 = vpop.permute.xlu1 %1465  ;;  %v1520_v28 = vrot.slane %v1519_v15, 2  ;;  %v1499_v2 = vrot.slane %v1498_v29, 2 }
 0x6d9   :  { %v1474_v23 = vmul.f32 %v1466_v44, %v14833_v42  ;;  %v1508_v32 = vrot.slane %v1507_v5, 1 }
 0x6da   :  { %v1488_v50 = vadd.f32 %v1487_v43, %v1486_v35  ;;  %v1512_v51 = vadd.f32 %v1511_v57, %v1510_v22  ;;  %v1500_v33 = vadd.f32 %v1499_v2, %v1498_v29  ;;  %v1521_v45 = vadd.f32 %v1520_v28, %v1519_v15 }
 0x6db   :  { %v1524_v21 = vsel %vm320_vm0, %v1474_v23, 0.0  ;;  %v1509_v38 = vadd.f32 %v1508_v32, %v1507_v5  ;;  %v1385_v22 = vadd.f32 %v11529_v55, %v15098_v12  ;;  %v453_v12 = vld [vmem:[#allocation31] sm:$0xff]  ;;  %v454_v5 = vld [vmem:[#allocation31 + $0x8] sm:$0xff]  ;;  %v2126_v55 = vrot.slane %v15133_v40, %v14995_v53 }
 0x6dc   :  { %v1513_v48 = vrot.slane %v1512_v51, 2  ;;  %v1525_v47 = vrot.slane %v1524_v21, 4  ;;  %v1544_v27 = vsel %vm385_vm2, %v1488_v50, %v1481_v3  ;;  %v1501_v37 = vrot.slane %v1500_v33, 1  ;;  %v456_v3 = vld [vmem:[#allocation31 + $0x18] sm:$0xff]  ;;  %v469_v32 = vld [vmem:[#allocation35 + $0x8] sm:$0xff] }
 0x6dd   :  { %v1545_v35 = vsel %vm387_vm3, %v1495_v16, %v1544_v27  ;;  %v1522_v34 = vrot.slane %v1521_v45, 1  ;;  %13386 = vtanh.f32 %v1385_v22  ;;  %v15181_v50 = vpack.c.bf16 %v454_v5, %v453_v12 }
 0x6de   :  { %v1514_v14 = vadd.f32 %v1513_v48, %v1512_v51  ;;  %v1526_v20 = vadd.f32 %v1525_v47, %v1524_v21  ;;  %v1502_v63 = vadd.f32 %v1501_v37, %v1500_v33  ;;  %v455_v51 = vld [vmem:[#allocation31 + $0x10] sm:$0xff]  ;;  %v1867_v48 = vpop.permute.xlu0 %1866  ;;  %v468_v47 = vld [vmem:[#allocation35] sm:$0xff]  ;;  %v471_v37 = vld [vmem:[#allocation35 + $0x18] sm:$0xff] }
 0x6df   :  { %v1523_v28 = vadd.f32 %v1522_v34, %v1521_v45  ;;  %v15188_v21 = vpack.c.bf16 %v456_v3, %v455_v51  ;;  %v15202_v27 = vpack.c.bf16 %v469_v32, %v468_v47  ;;  %v470_v45 = vld [vmem:[#allocation35 + $0x10] sm:$0xff]  ;;  %v1947_v3 = vld [vmem:[#allocation6 + $0x20] sm:$0xff]  ;;  %v1948_v47 = vld [vmem:[#allocation6 + $0x28] sm:$0xff] }
 0x6e0   :  { %v1515_v42 = vrot.slane %v1514_v14, 1  ;;  %v1527_v49 = vrot.slane %v1526_v20, 2  ;;  %v1546_v29 = vsel %vm389_vm4, %v1502_v63, %v1545_v35  ;;  %v15206_v16 = vpack.c.bf16 %v471_v37, %v470_v45  ;;  %v1946_v51 = vld [vmem:[#allocation6 + $0x18] sm:$0xff]  ;;  %v1949_v32 = vld [vmem:[#allocation6 + $0x30] sm:$0xff] }
 0x6e1   :  { %v1547_v15 = vsel %vm391_vm5, %v1509_v38, %v1546_v29  ;;  %v2140_v63 = vrot.slane %v15133_v40, %v15023_v36 }
 0x6e2   :  { %v1516_v43 = vadd.f32 %v1515_v42, %v1514_v14  ;;  %v1528_v57 = vadd.f32 %v1527_v49, %v1526_v20  ;;  %v2098_v14 = vrot.slane %v15133_v40, %v14989_v46  ;;  %v2112_v20 = vrot.slane %v15133_v40, %v15003_v59  ;;  %v11536_v40 = vld [vmem:[#allocation32] ss:$0 sm:$0xff] }
 0x6e4   :  { %v1529_v44 = vrot.slane %v1528_v57, 1  ;;  %v1548_v0 = vsel %vm393_vm6, %v1516_v43, %v1547_v15  ;;  %2100 = vbcast.lane.b32.xlu0 %v2098_v14, 256  ;;  %v1950_v14 = vld [vmem:[#allocation6 + $0x38] sm:$0xff] }
 0x6e5   :  { %v1549_v23 = vsel %vm395_vm7, %v1523_v28, %v1548_v0 }
 0x6e6   :  { %v1530_v2 = vadd.f32 %v1529_v44, %v1528_v57 }
 0x6e7   :  { %v13387_v33 = vpop.eup %13386 }
 0x6e8   :  { %v1550_v8 = vsel %vm397_vm8, %v1530_v2, %v1549_v23  ;;  %2114 = vbcast.lane.b32.xlu0 %v2112_v20, 256 }
 0x6e9   :  { %2246 = vrot.lane.b32.xlu1 %v1550_v8, %s14333_s19  ;;  %12150 = vmatmul.mubr.msk.f32.vlgmr.msra.gmra.mrb[6].mxu1 %vm320_vm0, %v1550_v8 }
 0x6ea   :  { %12161 = vmatmul.mubr.msk.f32.vlgmr.msra.gmra.mrb[8].mxu0 %vm320_vm0, %v1550_v8  ;;  %12953 = vmatpush3.bf16.msra.mxu1 %v14799_v24 }
 0x6eb   :  { %12959 = vmatpush3.bf16.msra.mxu0 %v14801_v25  ;;  %12954 = vmatprep.subr.bf16.mxu1 %v17329_v41 }
 0x6ec   :  { %12960 = vmatprep.subr.bf16.mxu0 %v17329_v41  ;;  %12171 = vmatprep.mubr.msk.f32.mxu1 %vm14329_vm1, %v17328_v13 }
 0x6ed   :  { %12182 = vmatprep.mubr.msk.f32.mxu0 %vm14329_vm1, %v17328_v13  ;;  %2128 = vbcast.lane.b32.xlu0 %v2126_v55, 256 }
 0x6ee   :  { %12956 = vmatpush3.bf16.msra.mxu1 %v14803_v26 }
 0x6ef   :  { %12962 = vmatpush3.bf16.msra.mxu0 %v14814_v31  ;;  %12963 = vmatprep.subr.bf16.mxu1 %v17329_v41 }
 0x6f0   :  { %12970 = vmatprep.subr.bf16.mxu0 %v15202_v27 }
 0x6f1   :  { %12172 = vmatmul.mubr.msk.f32.vlgmr.msra.gmra.mrb[8].mxu1 %vm320_vm0, %v13387_v33  ;;  %2142 = vbcast.lane.b32.xlu0 %v2140_v63, 256  ;;  %v2094_v63 = vpop.permute.xlu1 %2093 }
 0x6f2   :  { %12183 = vmatmul.mubr.msk.f32.vlgmr.msra.gmra.mrb[10].mxu0 %vm320_vm0, %v1550_v8  ;;  %12965 = vmatpush3.bf16.msra.mxu1 %v15181_v50  ;;  %v1945_v8 = vld [vmem:[#allocation6 + $0x10] sm:$0xff] }
 0x6f3   :  { %12966 = vmatprep.subr.bf16.mxu1 %v17329_v41  ;;  %12193 = vmatprep.mubr.msk.f32.mxu1 %vm14329_vm1, %v17328_v13 }
 0x6f4   :  { %12972 = vmatpush3.bf16.msra.mxu0 %v15202_v27 }
 0x6f5   :  { %12974 = vmatprep.subr.bf16.mxu0 %v15206_v16 }
 0x6f6   :  { %12968 = vmatpush3.bf16.msra.mxu1 %v15188_v21 }
 0x6f7   :  { %12977 = vmatprep.subr.bf16.mxu1 %v17329_v41 }
 0x6f8   :  { %12976 = vmatpush3.bf16.msra.mxu0 %v15206_v16 }
 0x6f9   :  { %12194 = vmatmul.mubr.msk.f32.vlgmr.msra.gmra.mrb[10].mxu1 %vm320_vm0, %v1867_v48  ;;  %12989 = vmatprep.subr.bf16.mxu0 %v17329_v41 }
 0x6fa   :  { %12979 = vmatpush3.bf16.msra.mxu1 %v14872_v56  ;;  %12224 = vmatprep.mubr.msk.f32.mxu1 %vm14329_vm1, %v17328_v13 }
 0x6fb   :  { %12980 = vmatprep.subr.bf16.mxu1 %v17329_v41 }
 0x6fe   :  { %12982 = vmatpush3.bf16.msra.mxu1 %v14876_v60 }
 0x6ff   :  { %12983 = vmatprep.subr.bf16.mxu1 %v17329_v41 }
 0x756   :  { %v2101_v55 = vpop.permute.xlu0 %2100 }
 0x7bc   :  { %v1619_v42 = vpop.f32.mrb[6].mxu1 }
 0x7bd   :  { %v1620_v49 = vadd.f32 %v14890_v61, %v1619_v42  ;;  %v1691_v35 = vpop.f32.mrb[8].mxu0  ;;  %v12151_v38 = vpop.f32.mrb[7].mxu1  ;;  %v1943_v61 = vld [vmem:[#allocation6] sm:$0xff] }
 0x7be   :  { %v1692_v34 = vadd.f32 %v14895_v62, %v1691_v35  ;;  %v12162_v29 = vpop.f32.mrb[9].mxu0  ;;  %v2115_v42 = vpop.permute.xlu0 %2114 }
 0x7bf   :  { %1624 = vst.msk [vmem:[#allocation6 + $0x8] sm:$0xff] %vm320_vm0, %v1620_v49  ;;  %v2108_v35 = vpop.permute.xlu1 %2107 }
 0x7c0   :  { %1696 = vst.msk [vmem:[#allocation7 + $0x8] sm:$0xff] %vm320_vm0, %v1692_v34 }
 0x7c2   :  { %v2129_v29 = vpop.permute.xlu0 %2128 }
 0x7c4   :  { %v1766_v22 = vpop.f32.mrb[8].mxu1 }
 0x7c5   :  { %v1836_v43 = vpop.f32.mrb[10].mxu0  ;;  %v12173_v57 = vpop.f32.mrb[9].mxu1 }
 0x7c6   :  { %v15223_v15 = vadd.f32 %v1836_v43, %v1766_v22  ;;  %v12184_v44 = vpop.f32.mrb[11].mxu0  ;;  %v1944_v23 = vld [vmem:[#allocation6 + $0x8] sm:$0xff]  ;;  %v2122_v43 = vpop.permute.xlu1 %2121 }
 0x7cc   :  { %v1936_v0 = vpop.f32.mrb[10].mxu1 }
 0x7cd   :  { %v1937_v28 = vadd.f32 %v11536_v40, %v1936_v0  ;;  %v12195_v2 = vpop.f32.mrb[11].mxu1 }
 0x7cf   :  { %v1951_v12 = vmul.f32 %v1943_v61, %v1937_v28  ;;  %v1952_v62 = vmul.f32 %v1944_v23, %v1937_v28  ;;  %v1953_v5 = vmul.f32 %v1945_v8, %v1937_v28  ;;  %v1954_v33 = vmul.f32 %v1946_v51, %v1937_v28  ;;  %v2143_v61 = vpop.permute.xlu0 %2142 }
 0x7d0   :  { %v1955_v48 = vmul.f32 %v1947_v3, %v1937_v28  ;;  %v1956_v45 = vmul.f32 %v1948_v47, %v1937_v28  ;;  %v1957_v37 = vmul.f32 %v1949_v32, %v1937_v28  ;;  %v1958_v20 = vmul.f32 %v1950_v14, %v1937_v28 }
 0x7d1   :  { %12204 = vmatprep.mubr.msk.f32.mxu0 %vm320_vm0, %v1951_v12 }
 0x7d2   :  { %12205 = vmatmul.mubr.msk.f32.vlgmr.msra.gmra.mrb[12].mxu0 %vm320_vm0, %v1952_v62 }
 0x7d3   :  { %12207 = vmatprep.mubr.msk.f32.mxu0 %vm320_vm0, %v1953_v5  ;;  %12991 = vmatpush3.bf16.msra.mxu0 %v15035_v11 }
 0x7d4   :  { %12992 = vmatprep.subr.bf16.mxu0 %v17329_v41 }
 0x7d6   :  { %12208 = vmatmul.mubr.msk.f32.gmra.mrb[14].mxu0 %vm320_vm0, %v1954_v33 }
 0x7d7   :  { %12210 = vmatprep.mubr.msk.f32.mxu0 %vm320_vm0, %v1955_v48  ;;  %12994 = vmatpush3.bf16.msra.mxu0 %v15049_v6  ;;  %v2136_v48 = vpop.permute.xlu1 %2135 }
 0x7d8   :  { %13001 = vmatprep.subr.bf16.mxu0 %v17329_v41 }
 0x7da   :  { %12211 = vmatmul.mubr.msk.f32.gmra.mrb[16].mxu0 %vm320_vm0, %v1956_v45 }
 0x7db   :  { %12213 = vmatprep.mubr.msk.f32.mxu0 %vm320_vm0, %v1957_v37 }
 0x7de   :  { %12214 = vmatmul.mubr.msk.f32.gmra.mrb[18].mxu0 %vm320_vm0, %v1958_v20 }
 0x7df   :  { %12246 = vmatprep.mubr.msk.f32.mxu0 %vm14329_vm1, %v17328_v13 }
 0x8a5   :  { %v12206_v49 = vpop.f32.mrb[12].mxu0 }
 0x8a6   :  { %v2049_v38 = vpop.f32.mrb[13].mxu0  ;;  %v2145_v57 = vadd.f32 %v12206_v49, %v2101_v55 }
 0x8a7   :  { %v2144_v44 = vadd.f32 %v2094_v63, %v2049_v38 }
 0x8a8   :  { %v2153_v23 = vsel %vm320_vm0, %v2145_v57, -inf }
 0x8a9   :  { %v12209_v34 = vpop.f32.mrb[14].mxu0  ;;  %v2152_v62 = vsel %vm320_vm0, %v2144_v44, -inf }
 0x8aa   :  { %v2059_v22 = vpop.f32.mrb[15].mxu0  ;;  %v2147_v8 = vadd.f32 %v12209_v34, %v2115_v42 }
 0x8ab   :  { %v2146_v5 = vadd.f32 %v2108_v35, %v2059_v22 }
 0x8ac   :  { %v2155_v14 = vsel %vm320_vm0, %v2147_v8, -inf }
 0x8ad   :  { %v12212_v40 = vpop.f32.mrb[16].mxu0  ;;  %v2154_v63 = vsel %vm320_vm0, %v2146_v5, -inf }
 0x8ae   :  { %v2149_v0 = vadd.f32 %v12212_v40, %v2129_v29  ;;  %v2069_v28 = vpop.f32.mrb[17].mxu0 }
 0x8af   :  { %v2148_v2 = vadd.f32 %v2122_v43, %v2069_v28 }
 0x8b0   :  { %v2158_v12 = vsel %vm320_vm0, %v2149_v0, -inf }
 0x8b1   :  { %v2159_v51 = vmax.f32 %v2153_v23, %v2158_v12  ;;  %v2156_v3 = vsel %vm320_vm0, %v2148_v2, -inf  ;;  %v12215_v33 = vpop.f32.mrb[18].mxu0 }
 0x8b2   :  { %v2157_v47 = vmax.f32 %v2152_v62, %v2156_v3  ;;  %v2151_v32 = vadd.f32 %v12215_v33, %v2143_v61  ;;  %v2079_v45 = vpop.f32.mrb[19].mxu0 }
 0x8b3   :  { %v2150_v37 = vadd.f32 %v2136_v48, %v2079_v45 }
 0x8b4   :  { %v2164_v20 = vmax.f32 %v2157_v47, %v2159_v51  ;;  %v2162_v55 = vsel %vm320_vm0, %v2151_v32, -inf }
 0x8b5   :  { %v2163_v42 = vmax.f32 %v2155_v14, %v2162_v55  ;;  %v2160_v49 = vsel %vm320_vm0, %v2150_v37, -inf }
 0x8b6   :  { %v2161_v35 = vmax.f32 %v2154_v63, %v2160_v49 }
 0x8b8   :  { %v2165_v38 = vmax.f32 %v2161_v35, %v2163_v42 }
 0x8ba   :  { %v2166_v34 = vmax.f32 %v2164_v20, %v2165_v38 }
 0x8bc   :  { %v2167_v29 = vsub.f32 %v2144_v44, %v2166_v34  ;;  %v2168_v22 = vsub.f32 %v2145_v57, %v2166_v34  ;;  %v2169_v43 = vsub.f32 %v2146_v5, %v2166_v34  ;;  %v2170_v40 = vsub.f32 %v2147_v8, %v2166_v34 }
 0x8bd   :  { %v2171_v28 = vsub.f32 %v2148_v2, %v2166_v34  ;;  %v2172_v61 = vsub.f32 %v2149_v0, %v2166_v34  ;;  %v2173_v23 = vsub.f32 %v2150_v37, %v2166_v34  ;;  %v2174_v12 = vsub.f32 %v2151_v32, %v2166_v34 }
 0x8be   :  { %v2175_v62 = vmul.f32 1.442695, %v2167_v29  ;;  %v2177_v51 = vmul.f32 1.442695, %v2168_v22  ;;  %v2179_v3 = vmul.f32 1.442695, %v2169_v43 }
 0x8bf   :  { %v2181_v33 = vmul.f32 1.442695, %v2170_v40  ;;  %v2183_v48 = vmul.f32 1.442695, %v2171_v28  ;;  %v2185_v47 = vmul.f32 1.442695, %v2172_v61 }
 0x8c0   :  { %13388 = vpow2.f32 %v2175_v62  ;;  %v2187_v45 = vmul.f32 1.442695, %v2173_v23  ;;  %v2189_v57 = vmul.f32 1.442695, %v2174_v12  ;;  %v2217_v62 = vld [vmem:[#allocation7 + $0x10] sm:$0xff] }
 0x8c1   :  { %13390 = vpow2.f32 %v2177_v51 }
 0x8c2   :  { %13392 = vpow2.f32 %v2179_v3 }
 0x8c3   :  { %13394 = vpow2.f32 %v2181_v33 }
 0x8c4   :  { %13396 = vpow2.f32 %v2183_v48 }
 0x8c5   :  { %13398 = vpow2.f32 %v2185_v47 }
 0x8c6   :  { %13400 = vpow2.f32 %v2187_v45 }
 0x8c7   :  { %13402 = vpow2.f32 %v2189_v57 }
 0x8ca   :  { %v13389_v44 = vpop.eup %13388 }
 0x8cb   :  { %v13391_v2 = vpop.eup %13390  ;;  %v2191_v0 = vsel %vm320_vm0, %v13389_v44, 0.0 }
 0x8cc   :  { %v13393_v8 = vpop.eup %13392  ;;  %v2192_v5 = vsel %vm320_vm0, %v13391_v2, 0.0 }
 0x8cd   :  { %v13395_v32 = vpop.eup %13394  ;;  %v2193_v37 = vadd.f32 %v2192_v5, %v2191_v0  ;;  %v2194_v14 = vsel %vm320_vm0, %v13393_v8, 0.0  ;;  %v2215_v5 = vld [vmem:[#allocation7] sm:$0xff] }
 0x8ce   :  { %v13397_v20 = vpop.eup %13396  ;;  %v2196_v63 = vsel %vm320_vm0, %v13395_v32, 0.0 }
 0x8cf   :  { %v2195_v55 = vadd.f32 %v2194_v14, %v2193_v37  ;;  %v13399_v42 = vpop.eup %13398  ;;  %v2198_v35 = vsel %vm320_vm0, %v13397_v20, 0.0  ;;  %v2216_v37 = vld [vmem:[#allocation7 + $0x8] sm:$0xff]  ;;  %v2218_v14 = vld [vmem:[#allocation7 + $0x18] sm:$0xff] }
 0x8d0   :  { %v13401_v38 = vpop.eup %13400  ;;  %v2200_v29 = vsel %vm320_vm0, %v13399_v42, 0.0 }
 0x8d1   :  { %v2197_v49 = vadd.f32 %v2196_v63, %v2195_v55  ;;  %v13403_v22 = vpop.eup %13402  ;;  %v2202_v40 = vsel %vm320_vm0, %v13401_v38, 0.0 }
 0x8d2   :  { %v2204_v61 = vsel %vm320_vm0, %v13403_v22, 0.0 }
 0x8d3   :  { %v2199_v34 = vadd.f32 %v2198_v35, %v2197_v49  ;;  %v2219_v35 = vld [vmem:[#allocation7 + $0x20] sm:$0xff] }
 0x8d5   :  { %v2201_v43 = vadd.f32 %v2200_v29, %v2199_v34 }
 0x8d7   :  { %v2203_v28 = vadd.f32 %v2202_v40, %v2201_v43  ;;  %v2222_v40 = vld [vmem:[#allocation7 + $0x38] sm:$0xff] }
 0x8d9   :  { %v2205_v23 = vadd.f32 %v2204_v61, %v2203_v28 }
 0x8db   :  { %13404 = vrcp.f32 %v2205_v23 }
 0x8e5   :  { %v13405_v12 = vpop.eup %13404 }
 0x8e6   :  { %v2207_v51 = vmul.f32 %v13405_v12, %v13389_v44  ;;  %v2208_v3 = vmul.f32 %v13405_v12, %v13391_v2  ;;  %v2209_v33 = vmul.f32 %v13405_v12, %v13393_v8  ;;  %v2210_v48 = vmul.f32 %v13405_v12, %v13395_v32  ;;  %v2220_v44 = vld [vmem:[#allocation7 + $0x28] sm:$0xff] }
 0x8e7   :  { %v2211_v47 = vmul.f32 %v13405_v12, %v13397_v20  ;;  %v2212_v45 = vmul.f32 %v13405_v12, %v13399_v42  ;;  %v2213_v57 = vmul.f32 %v13405_v12, %v13401_v38  ;;  %v2214_v0 = vmul.f32 %v13405_v12, %v13403_v22  ;;  %v2221_v20 = vld [vmem:[#allocation7 + $0x30] sm:$0xff] }
 0x8e8   :  { %v2223_v55 = vmul.f32 %v2215_v5, %v2207_v51  ;;  %v2224_v63 = vmul.f32 %v2216_v37, %v2208_v3  ;;  %v2225_v49 = vmul.f32 %v2217_v62, %v2209_v33  ;;  %v2226_v34 = vmul.f32 %v2218_v14, %v2210_v48 }
 0x8e9   :  { %v2227_v8 = vmul.f32 %v2219_v35, %v2211_v47  ;;  %v2228_v38 = vmul.f32 %v2220_v44, %v2212_v45  ;;  %v2229_v61 = vmul.f32 %v2221_v20, %v2213_v57  ;;  %v2230_v62 = vmul.f32 %v2222_v40, %v2214_v0  ;;  %v17334_v44 = vld [vmem:[#allocation49_spill] sm:$0xff] }
 0x8ea   :  { %v2231_v29 = vsel %vm320_vm0, %v2223_v55, 0.0  ;;  %v2232_v43 = vsel %vm320_vm0, %v2224_v63, 0.0  ;;  %v2234_v32 = vsel %vm320_vm0, %v2225_v49, 0.0  ;;  %v2236_v22 = vsel %vm320_vm0, %v2226_v34, 0.0  ;;  %v2247_v63 = vpop.permute.xlu1 %2246 }
 0x8eb   :  { %v2233_v2 = vadd.f32 %v2232_v43, %v2231_v29  ;;  %v2238_v23 = vsel %vm320_vm0, %v2227_v8, 0.0  ;;  %v2240_v51 = vsel %vm320_vm0, %v2228_v38, 0.0  ;;  %v2242_v33 = vsel %vm320_vm0, %v2229_v61, 0.0  ;;  %v17333_v43 = vld [vmem:[#allocation55_spill] sm:$0xff] }
 0x8ec   :  { %v2244_v47 = vsel %vm320_vm0, %v2230_v62, 0.0  ;;  %v15266_v45 = vadd.f32 %v15018_v18, %v15223_v15  ;;  %v17332_v15 = vld [vmem:[#allocation54_spill] sm:$0xff] }
 0x8ed   :  { %v2235_v42 = vadd.f32 %v2234_v32, %v2233_v2  ;;  %v17335_v2 = vld [vmem:[#allocation50_spill] sm:$0xff]  ;;  %v13710_v32 = vld [vmem:[#allocation28] ss:$0 sm:$0xff] }
 0x8ee   :  { %v11535_v57 = vmul.f32 -1.442695, %v15266_v45 }
 0x8ef   :  { %v2237_v28 = vadd.f32 %v2236_v22, %v2235_v42  ;;  %v17336_v22 = vld [vmem:[#allocation51_spill] sm:$0xff] }
 0x8f0   :  { %13406 = vpow2.f32 %v11535_v57 }
 0x8f1   :  { %v2239_v12 = vadd.f32 %v2238_v23, %v2237_v28 }
 0x8f3   :  { %v2241_v3 = vadd.f32 %v2240_v51, %v2239_v12 }
 0x8f5   :  { %v2243_v48 = vadd.f32 %v2242_v33, %v2241_v3 }
 0x8f7   :  { %v2245_v5 = vadd.f32 %v2244_v47, %v2243_v48 }
 0x8f9   :  { %2252 = vrot.lane.b32.xlu0 %v2245_v5, %s14333_s19 }
 0x8fa   :  { %v13407_v37 = vpop.eup %13406 }
 0x8fb   :  { %v1844_v0 = vadd.f32 1.0, %v13407_v37 }
 0x8fd   :  { %13408 = vrcp.f32 %v1844_v0 }
 0x907   :  { %v15269_v14 = vpop.eup %13408 }
 0x908   :  { %v2250_v55 = vsub.f32 1.0, %v15269_v14  ;;  %v2249_v35 = vmul.f32 %v15269_v14, %v2247_v63  ;;  %v15300_v63 = vld [vmem:[#allocation11] sm:$0xff] }
 0x96b   :  { %v2253_v49 = vpop.permute.xlu0 %2252 }
 0x96c   :  { %v2255_v34 = vmul.f32 %v2253_v49, %v2250_v55 }
 0x96e   :  { %v2256_v29 = vadd.f32 %v2255_v34, %v2249_v35 }
 0x970   :  { %2258 = vrot.lane.b32.xlu1 %v2256_v29, %s14332_s9 }
 0x9e2   :  { %v2259_v18 = vpop.permute.xlu1 %2258 }
 0x9e3   :  { %12225 = vmatmul.mubr.msk.f32.vlgmr.msra.gmra.mrb[12].mxu1 %vm320_vm0, %v2259_v18 }
 0x9e4   :  { %12985 = vmatpush3.bf16.msra.mxu1 %v17332_v15  ;;  %12235 = vmatprep.mubr.msk.f32.mxu1 %vm14329_vm1, %v17328_v13 }
 0x9e5   :  { %12986 = vmatprep.subr.bf16.mxu1 %v17329_v41 }
 0x9e8   :  { %12988 = vmatpush3.bf16.msra.mxu1 %v17333_v43 }
 0x9e9   :  { %12995 = vmatprep.subr.bf16.mxu1 %v17329_v41 }
 0x9eb   :  { %12236 = vmatmul.mubr.msk.f32.vlgmr.msra.gmra.mrb[14].mxu1 %vm320_vm0, %v2259_v18 }
 0x9ec   :  { %12997 = vmatpush3.bf16.msra.mxu1 %v17334_v44  ;;  %12257 = vmatprep.mubr.msk.f32.mxu1 %vm14329_vm1, %v17328_v13 }
 0x9ed   :  { %12998 = vmatprep.subr.bf16.mxu1 %v17329_v41 }
 0x9f0   :  { %13000 = vmatpush3.bf16.msra.mxu1 %v17335_v2 }
 0x9f1   :  { %13007 = vmatprep.subr.bf16.mxu1 %v17329_v41 }
 0xab6   :  { %v2328_v8 = vpop.f32.mrb[12].mxu1 }
 0xab7   :  { %v2329_v20 = vadd.f32 %v13710_v32, %v2328_v8  ;;  %v12226_v42 = vpop.f32.mrb[13].mxu1  ;;  %v15305_v8 = vld [vmem:[#allocation11 + $0x8] sm:$0xff] }
 0xab9   :  { %v2333_v38 = vcombine.high %v2329_v20, %v2329_v20  ;;  %v2340_v40 = vrot.slane %v2329_v20, %v17336_v22  ;;  %v15308_v20 = vld [vmem:[#allocation11 + $0x10] sm:$0xff] }
 0xabb   :  { %v2347_v28 = vrot.slane %v2333_v38, %v17336_v22  ;;  %v2348_v61 = vcombine.high %v2340_v40, %v2340_v40  ;;  %v2356_v23 = vrot.slane %v2340_v40, %v17336_v22  ;;  %v15312_v40 = vld [vmem:[#allocation11 + $0x20] sm:$0xff] }
 0xabd   :  { %v2349_v12 = vcombine.high %v2347_v28, %v2347_v28  ;;  %v2363_v62 = vrot.slane %v2347_v28, %v17336_v22  ;;  %v2370_v51 = vrot.slane %v2348_v61, %v17336_v22  ;;  %v2378_v3 = vcombine.high %v2356_v23, %v2356_v23  ;;  %v15315_v61 = vld [vmem:[#allocation11 + $0x28] sm:$0xff] }
 0xabe   :  { %v2385_v33 = vrot.slane %v2356_v23, %v14911_v39  ;;  %v15294_v48 = vpop.f32.mrb[14].mxu1 }
 0xabf   :  { %v2377_v47 = vrot.slane %v2349_v12, %v17336_v22  ;;  %v2380_v5 = vcombine.high %v2370_v51, %v2370_v51  ;;  %v2389_v57 = vrot.slane %v2370_v51, %v14911_v39  ;;  %v12237_v37 = vpop.f32.mrb[15].mxu1  ;;  %v2393_v0 = vrot.slane %v2378_v3, %v14911_v39  ;;  %v15318_v12 = vld [vmem:[#allocation11 + $0x18] sm:$0xff] }
 0xac0   :  { %v2401_v55 = vrot.slane %v2363_v62, %v14911_v39  ;;  %v2422_v49 = vadd.f32 %v15300_v63, %v2385_v33  ;;  %v2379_v18 = vcombine.high %v2363_v62, %v2363_v62  ;;  %v15322_v3 = vld [vmem:[#allocation11 + $0x38] sm:$0xff]  ;;  %v13719_v37 = vld [vmem:[#allocation29] ss:$0 sm:$0xff] }
 0xac1   :  { %v2381_v35 = vcombine.high %v2377_v47, %v2377_v47  ;;  %v2397_v34 = vrot.slane %v2380_v5, %v14911_v39  ;;  %v2405_v29 = vrot.slane %v2377_v47, %v14911_v39  ;;  %v2423_v32 = vadd.f32 %v15305_v8, %v2389_v57  ;;  %v15325_v47 = vld [vmem:[#allocation11 + $0x30] sm:$0xff] }
 0xac2   :  { %v2424_v42 = vadd.f32 %v15308_v20, %v2393_v0  ;;  %13410 = vtanh.f32 %v2422_v49  ;;  %v2426_v28 = vadd.f32 %v15312_v40, %v2401_v55  ;;  %v2409_v51 = vrot.slane %v2379_v18, %v14911_v39 }
 0xac3   :  { %v2413_v38 = vrot.slane %v2381_v35, %v14911_v39  ;;  %v2427_v23 = vadd.f32 %v15315_v61, %v2405_v29  ;;  %13412 = vtanh.f32 %v2423_v32  ;;  %v2425_v62 = vadd.f32 %v15318_v12, %v2397_v34 }
 0xac4   :  { %13414 = vtanh.f32 %v2424_v42  ;;  %v2428_v5 = vadd.f32 %v15325_v47, %v2409_v51 }
 0xac5   :  { %v2429_v33 = vadd.f32 %v15322_v3, %v2413_v38  ;;  %13416 = vtanh.f32 %v2426_v28 }
 0xac6   :  { %13418 = vtanh.f32 %v2427_v23 }
 0xac7   :  { %13420 = vtanh.f32 %v2425_v62 }
 0xac8   :  { %13422 = vtanh.f32 %v2429_v33 }
 0xac9   :  { %13424 = vtanh.f32 %v2428_v5 }
 0xacc   :  { %v13411_v57 = vpop.eup %13410 }
 0xacd   :  { %v2438_v0 = vmul.f32 %v13719_v37, %v13411_v57  ;;  %v13413_v55 = vpop.eup %13412 }
 0xace   :  { %v13415_v49 = vpop.eup %13414  ;;  %v2439_v34 = vmul.f32 %v13719_v37, %v13413_v55 }
 0xacf   :  { %v2446_v35 = vsel %vm320_vm0, %v2438_v0, 0.0  ;;  %v2440_v29 = vmul.f32 %v13719_v37, %v13415_v49  ;;  %v13417_v18 = vpop.eup %13416 }
 0xad0   :  { %2447 = vadd.xlane.f32.xlu0 %v2446_v35  ;;  %v2449_v32 = vsel %vm320_vm0, %v2439_v34, 0.0  ;;  %v13419_v42 = vpop.eup %13418  ;;  %v2442_v62 = vmul.f32 %v13719_v37, %v13417_v18 }
 0xad1   :  { %2450 = vadd.xlane.f32.xlu1 %v2449_v32  ;;  %v13421_v38 = vpop.eup %13420  ;;  %v2452_v28 = vsel %vm320_vm0, %v2440_v29, 0.0  ;;  %v2443_v23 = vmul.f32 %v13719_v37, %v13419_v42 }
 0xad2   :  { %v13423_v51 = vpop.eup %13422  ;;  %v2458_v57 = vsel %vm320_vm0, %v2442_v62, 0.0  ;;  %v2441_v0 = vmul.f32 %v13719_v37, %v13421_v38 }
 0xad3   :  { %v2461_v33 = vsel %vm320_vm0, %v2443_v23, 0.0  ;;  %v2445_v5 = vmul.f32 %v13719_v37, %v13423_v51  ;;  %v13425_v55 = vpop.eup %13424 }
 0xad4   :  { %2453 = vadd.xlane.f32.xlu0 %v2452_v28  ;;  %v2455_v35 = vsel %vm320_vm0, %v2441_v0, 0.0  ;;  %v2444_v34 = vmul.f32 %v13719_v37, %v13425_v55  ;;  %v17337_v28 = vld [vmem:[#allocation52_spill] sm:$0xff] }
 0xad5   :  { %2462 = vadd.xlane.f32.xlu1 %v2461_v33  ;;  %v2467_v49 = vsel %vm320_vm0, %v2445_v5, 0.0 }
 0xad6   :  { %v2464_v29 = vsel %vm320_vm0, %v2444_v34, 0.0 }
 0xad8   :  { %2459 = vadd.xlane.f32.xlu0 %v2458_v57 }
 0xad9   :  { %2468 = vadd.xlane.f32.xlu1 %v2467_v49 }
 0xadc   :  { %2456 = vadd.xlane.f32.xlu0 %v2455_v35 }
 0xae0   :  { %2465 = vadd.xlane.f32.xlu0 %v2464_v29 }
 0xb5d   :  { %v2448_v18 = vpop.xlane.xlu0 %2447 }
 0xb5e   :  { %v2451_v32 = vpop.xlane.xlu1 %2450  ;;  %v2481_v38 = vrot.slane %v2448_v18, %v17337_v28 }
 0xb5f   :  { %v2485_v23 = vrot.slane %v2451_v32, %v17337_v28 }
 0xb61   :  { %v2454_v42 = vpop.xlane.xlu0 %2453  ;;  %v2510_v5 = vsel %vm385_vm2, %v2485_v23, %v2481_v38 }
 0xb62   :  { %v2463_v62 = vpop.xlane.xlu1 %2462  ;;  %v2489_v33 = vrot.slane %v2454_v42, %v17337_v28 }
 0xb63   :  { %v2501_v49 = vrot.slane %v2463_v62, %v17337_v28 }
 0xb64   :  { %v2511_v0 = vsel %vm387_vm3, %v2489_v33, %v2510_v5 }
 0xb65   :  { %v2460_v51 = vpop.xlane.xlu0 %2459 }
 0xb66   :  { %v2497_v55 = vrot.slane %v2460_v51, %v17337_v28  ;;  %v2469_v35 = vpop.xlane.xlu1 %2468 }
 0xb67   :  { %v2509_v23 = vrot.slane %v2469_v35, %v17337_v28 }
 0xb69   :  { %v2457_v57 = vpop.xlane.xlu0 %2456 }
 0xb6a   :  { %v2493_v37 = vrot.slane %v2457_v57, %v17337_v28 }
 0xb6c   :  { %v2512_v34 = vsel %vm389_vm4, %v2493_v37, %v2511_v0 }
 0xb6d   :  { %v2513_v29 = vsel %vm391_vm5, %v2497_v55, %v2512_v34  ;;  %v2466_v18 = vpop.xlane.xlu0 %2465 }
 0xb6e   :  { %v2505_v32 = vrot.slane %v2466_v18, %v17337_v28  ;;  %v2514_v42 = vsel %vm393_vm6, %v2501_v49, %v2513_v29 }
 0xb70   :  { %v2515_v38 = vsel %vm395_vm7, %v2505_v32, %v2514_v42 }
 0xb71   :  { %v2516_v33 = vsel %vm397_vm8, %v2509_v23, %v2515_v38 }
 0xb72   :  { %v2518_v51 = vsel %vm475_vm9, %v2516_v33, -1e+30 }
 0xb73   :  { %v2519_v62 = vsel %vm411_vm10, %v2518_v51, -inf }
 0xb74   :  { %2520 = vmax.xlane.f32.xlu0 %v2519_v62  ;;  %v1534_v62 = vsub.f32 1.0, %v15106_v52 }
 0xc01   :  { %v2521_v57 = vpop.xlane.xlu0 %2520 }
 0xc02   :  { %v2522_v37 = vsub.f32 %v2518_v51, %v2521_v57  ;;  %v13720_v57 = vld [vmem:[#allocation5] sm:$0xff] }
 0xc04   :  { %v2523_v0 = vmul.f32 1.442695, %v2522_v37  ;;  %v15364_v37 = vmul.f32 %v13720_v57, %v1534_v62 }
 0xc06   :  { %13426 = vpow2.f32 %v2523_v0  ;;  %17339 = vst [vmem:[#allocation54_spill] sm:$0xff] %v15364_v37 }
 0xc10   :  { %v13427_v55 = vpop.eup %13426 }
 0xc11   :  { %v2525_v34 = vsel %vm411_vm10, %v13427_v55, 0.0 }
 0xc12   :  { %2526 = vadd.xlane.f32.xlu1 %v2525_v34 }
 0xc9f   :  { %v2527_v49 = vpop.xlane.xlu1 %2526 }
 0xca0   :  { %13428 = vrcp.f32 %v2527_v49 }
 0xca1   :  { %13430 = vtanh.f32 %v15266_v45 }
 0xcaa   :  { %v13429_v35 = vpop.eup %13428 }
 0xcab   :  { %v2529_v29 = vmul.f32 %v13429_v35, %v13427_v55  ;;  %v13431_v49 = vpop.eup %13430 }
 0xcad   :  { %2954 = vst.msk [vmem:[#allocation37 + $0x8] sm:$0xff] %vm411_vm10, %v2529_v29  ;;  %v2540_v18 = vrot.slane %v2529_v29, %v14989_v46  ;;  %v2533_v32 = vrot.slane %v2529_v29, %v14911_v39  ;;  %v2568_v42 = vrot.slane %v2529_v29, %v14995_v53  ;;  %v2547_v23 = vrot.slane %v2529_v29, %v14998_v54 }
 0xcae   :  { %v2554_v38 = vrot.slane %v2529_v29, %v15003_v59  ;;  %v2561_v33 = vrot.slane %v2529_v29, %v15007_v4  ;;  %v2575_v51 = vrot.slane %v2529_v29, %v15011_v7  ;;  %v2809_v0 = vmul.f32 %v2529_v29, %v15364_v37 }
 0xcaf   :  { %2542 = vbcast.lane.b32.xlu0 %v2540_v18, 256  ;;  %2535 = vbcast.lane.b32.xlu1 %v2533_v32, 256  ;;  %v2582_v34 = vrot.slane %v2529_v29, %v15023_v36 }
 0xcb0   :  { %v2810_v55 = vsel %vm411_vm10, %v2809_v0, -inf }
 0xcb3   :  { %2570 = vbcast.lane.b32.xlu0 %v2568_v42, 256  ;;  %2549 = vbcast.lane.b32.xlu1 %v2547_v23, 256 }
 0xcb7   :  { %2556 = vbcast.lane.b32.xlu1 %v2554_v38, 256 }
 0xcbb   :  { %2563 = vbcast.lane.b32.xlu1 %v2561_v33, 256 }
 0xcbf   :  { %2577 = vbcast.lane.b32.xlu1 %v2575_v51, 256 }
 0xcd2   :  { %2811 = vmax.xlane.f32.xlu0 %v2810_v55 }
 0xce8   :  { %2584 = vbcast.lane.b32.xlu0 %v2582_v34, 256 }
 0xcec   :  { %1850 = vrot.lane.b32.xlu0 %v13431_v49, %s14331_s29 }
 0xd21   :  { %v2536_v35 = vpop.permute.xlu1 %2535  ;;  %v2543_v52 = vpop.permute.xlu0 %2542 }
 0xd22   :  { %v2587_v23 = vmul.f32 %v15305_v8, %v2543_v52  ;;  %v2586_v38 = vmul.f32 %v15300_v63, %v2536_v35 }
 0xd24   :  { %v2601_v29 = vsel %vm320_vm0, %v2587_v23, 0.0  ;;  %v2594_v62 = vsel %vm320_vm0, %v2586_v38, 0.0 }
 0xd25   :  { %v2550_v18 = vpop.permute.xlu1 %2549  ;;  %v2571_v55 = vpop.permute.xlu0 %2570  ;;  %v2602_v10 = vrot.slane %v2601_v29, 4  ;;  %v2595_v8 = vrot.slane %v2594_v62, 4 }
 0xd26   :  { %v2588_v33 = vmul.f32 %v15308_v20, %v2550_v18 }
 0xd27   :  { %v2596_v52 = vadd.f32 %v2595_v8, %v2594_v62 }
 0xd28   :  { %v2608_v34 = vsel %vm320_vm0, %v2588_v33, 0.0 }
 0xd29   :  { %v2557_v32 = vpop.permute.xlu1 %2556  ;;  %v2609_v35 = vrot.slane %v2608_v34, 4  ;;  %v2597_v28 = vrot.slane %v2596_v52, 2 }
 0xd2a   :  { %v2589_v51 = vmul.f32 %v15318_v12, %v2557_v32  ;;  %v2591_v12 = vmul.f32 %v15315_v61, %v2571_v55  ;;  %v2603_v32 = vadd.f32 %v2602_v10, %v2601_v29 }
 0xd2b   :  { %v2610_v38 = vadd.f32 %v2609_v35, %v2608_v34  ;;  %v2598_v2 = vadd.f32 %v2597_v28, %v2596_v52 }
 0xd2c   :  { %v2615_v49 = vsel %vm320_vm0, %v2589_v51, 0.0  ;;  %v2629_v23 = vsel %vm320_vm0, %v2591_v12, 0.0  ;;  %v2604_v5 = vrot.slane %v2603_v32, 2 }
 0xd2d   :  { %v2564_v42 = vpop.permute.xlu1 %2563  ;;  %v2611_v22 = vrot.slane %v2610_v38, 2  ;;  %v2599_v12 = vrot.slane %v2598_v2, 1 }
 0xd2e   :  { %v2590_v45 = vmul.f32 %v15312_v40, %v2564_v42  ;;  %v2616_v40 = vrot.slane %v2615_v49, 4  ;;  %v2605_v55 = vadd.f32 %v2604_v5, %v2603_v32 }
 0xd2f   :  { %v2612_v29 = vadd.f32 %v2611_v22, %v2610_v38 }
 0xd30   :  { %v2622_v63 = vsel %vm320_vm0, %v2590_v45, 0.0  ;;  %v2617_v33 = vadd.f32 %v2616_v40, %v2615_v49  ;;  %v2630_v45 = vrot.slane %v2629_v23, 4 }
 0xd31   :  { %v2578_v57 = vpop.permute.xlu1 %2577  ;;  %v2623_v18 = vrot.slane %v2622_v63, 4  ;;  %v2613_v43 = vrot.slane %v2612_v29, 1 }
 0xd32   :  { %v2592_v20 = vmul.f32 %v15325_v47, %v2578_v57  ;;  %v2618_v47 = vrot.slane %v2617_v33, 2  ;;  %v2631_v44 = vadd.f32 %v2630_v45, %v2629_v23 }
 0xd33   :  { %v2624_v51 = vadd.f32 %v2623_v18, %v2622_v63 }
 0xd34   :  { %v2636_v42 = vsel %vm320_vm0, %v2592_v20, 0.0  ;;  %v2619_v62 = vadd.f32 %v2618_v47, %v2617_v33  ;;  %v2606_v20 = vrot.slane %v2605_v55, 1  ;;  %v2632_v35 = vrot.slane %v2631_v44, 2 }
 0xd35   :  { %v2637_v37 = vrot.slane %v2636_v42, 4  ;;  %v2625_v57 = vrot.slane %v2624_v51, 2  ;;  %v2614_v33 = vadd.f32 %v2613_v43, %v2612_v29 }
 0xd36   :  { %v2620_v28 = vrot.slane %v2619_v62, 1  ;;  %v2607_v52 = vadd.f32 %v2606_v20, %v2605_v55  ;;  %v2633_v23 = vadd.f32 %v2632_v35, %v2631_v44 }
 0xd37   :  { %v2638_v61 = vadd.f32 %v2637_v37, %v2636_v42  ;;  %v2626_v34 = vadd.f32 %v2625_v57, %v2624_v51  ;;  %v2600_v42 = vadd.f32 %v2599_v12, %v2598_v2 }
 0xd38   :  { %v2621_v51 = vadd.f32 %v2620_v28, %v2619_v62 }
 0xd39   :  { %v2639_v49 = vrot.slane %v2638_v61, 2  ;;  %v2627_v32 = vrot.slane %v2626_v34, 1 }
 0xd3b   :  { %v2640_v22 = vadd.f32 %v2639_v49, %v2638_v61  ;;  %v2628_v47 = vadd.f32 %v2627_v32, %v2626_v34 }
 0xd3d   :  { %v2641_v57 = vrot.slane %v2640_v22, 1 }
 0xd3f   :  { %v2642_v2 = vadd.f32 %v2641_v57, %v2640_v22 }
 0xd5f   :  { %v2812_v10 = vpop.xlane.xlu0 %2811 }
 0xd60   :  { %vm2813_vm14 = vcmp.eq.f32.partialorder %v2809_v0, %v2812_v10  ;;  %v2728_v10 = vsel %vm385_vm2, %v2607_v52, %v2600_v42 }
 0xd61   :  { %v2814_v8 = vsel %vm2813_vm14, %v14959_v30, 8  ;;  %vm3357_vm14 = vcmp.lt.s32.totalorder %v14904_v19, 2 }
 0xd62   :  { %v2815_v63 = vsel %vm411_vm10, %v2814_v8, 2147483647  ;;  %v2634_v8 = vrot.slane %v2633_v23, 1 }
 0xd63   :  { %v2585_v40 = vpop.permute.xlu0 %2584  ;;  %v2817_v18 = vshra.s32 %v2815_v63, 16  ;;  %v2816_v34 = vand.u32 65535, %v2815_v63 }
 0xd64   :  { %v2593_v5 = vmul.f32 %v15322_v3, %v2585_v40  ;;  %v2729_v40 = vsel %vm387_vm3, %v2614_v33, %v2728_v10  ;;  %v2635_v44 = vadd.f32 %v2634_v8, %v2633_v23  ;;  %v17340_v8 = vmov -1e+30  }
 0xd65   :  { %v2819_v37 = vcvt.s32.f32 %v2817_v18  ;;  %v2730_v61 = vsel %vm389_vm4, %v2621_v51, %v2729_v40  ;;  %v2818_v18 = vcvt.s32.f32 %v2816_v34  ;;  %v13721_v34 = vld [vmem:[#allocation8] sm:$0xff] }
 0xd66   :  { %v2643_v0 = vsel %vm320_vm0, %v2593_v5, 0.0  ;;  %v2731_v55 = vsel %vm391_vm5, %v2628_v47, %v2730_v61 }
 0xd67   :  { %v2644_v38 = vrot.slane %v2643_v0, 4  ;;  %2820 = vmin.xlane.f32.xlu1 %v2819_v37  ;;  %v2732_v43 = vsel %vm393_vm6, %v2635_v44, %v2731_v55  ;;  %v1851_v28 = vpop.permute.xlu0 %1850  ;;  %v1848_v44 = vmul.f32 %v15269_v14, %v15124_v1  ;;  %v13722_v1 = vld [vmem:[#allocation8 + $0x18] sm:$0xff] }
 0xd68   :  { %v2733_v29 = vsel %vm395_vm7, %v2642_v2, %v2732_v43  ;;  %v1853_v32 = vmul.f32 %v15269_v14, %v1851_v28 }
 0xd69   :  { %v2645_v45 = vadd.f32 %v2644_v38, %v2643_v0 }
 0xd6b   :  { %v2646_v3 = vrot.slane %v2645_v45, 2 }
 0xd6d   :  { %v2647_v49 = vadd.f32 %v2646_v3, %v2645_v45 }
 0xd6f   :  { %v2648_v20 = vrot.slane %v2647_v49, 1 }
 0xd71   :  { %v2649_v12 = vadd.f32 %v2648_v20, %v2647_v49 }
 0xd73   :  { %v2734_v62 = vsel %vm397_vm8, %v2649_v12, %v2733_v29 }
 0xd74   :  { %12247 = vmatmul.mubr.msk.f32.vlgmr.msra.gmra.mrb[20].mxu0 %vm320_vm0, %v2734_v62 }
 0xd75   :  { %13003 = vmatpush3.bf16.msra.mxu0 %v14786_v9  ;;  %12268 = vmatprep.mubr.msk.f32.mxu0 %vm14329_vm1, %v17328_v13 }
 0xd76   :  { %13004 = vmatprep.subr.bf16.mxu0 %v17329_v41 }
 0xd79   :  { %13006 = vmatpush3.bf16.msra.mxu0 %v14794_v17 }
 0xd7a   :  { %13013 = vmatprep.subr.bf16.mxu0 %v17329_v41 }
 0xdf4   :  { %v2821_v35 = vpop.xlane.xlu1 %2820 }
 0xdf5   :  { %vm2822_vm11 = vcmp.eq.f32.partialorder %v2819_v37, %v2821_v35  ;;  %v2827_v42 = vcvt.f32.s32 %v2821_v35 }
 0xdf6   :  { %v2823_v5 = vsel %vm2822_vm11, %v2818_v18, inf  ;;  %vm3358_vm11 = vmand %vm3357_vm14, %vm473_vm15 }
 0xdf7   :  { %2824 = vmin.xlane.f32.xlu0 %v2823_v5  ;;  %v2828_v38 = vshll.u32 %v2827_v42, 16  ;;  %v15432_v3 = vsel %vm3358_vm11, 0.0, %v17340_v8  ;;  %v13723_v42 = vld [vmem:[#allocation8 + $0x8] sm:$0xff] }
 0xdf8   :  { %v3508_v40 = vrot.slane %v15432_v3, %v14911_v39  ;;  %v3522_v49 = vrot.slane %v15432_v3, %v14998_v54  ;;  %v3536_v20 = vrot.slane %v15432_v3, %v15007_v4  ;;  %v3550_v43 = vrot.slane %v15432_v3, %v15011_v7 }
 0xe0d   :  { %1855 = vrot.lane.b32.xlu0 %v1853_v32, %s14332_s9 }
 0xe47   :  { %v2803_v22 = vpop.f32.mrb[20].mxu0 }
 0xe48   :  { %v15406_v0 = vadd.f32 %v2803_v22, %v15294_v48  ;;  %v12248_v52 = vpop.f32.mrb[21].mxu0 }
 0xe84   :  { %v2825_v23 = vpop.xlane.xlu0 %2824 }
 0xe85   :  { %v2826_v33 = vcvt.f32.s32 %v2825_v23 }
 0xe87   :  { %v2829_v63 = vadd.s32 %v2828_v38, %v2826_v33  ;;  %v13724_v38 = vld [vmem:[#allocation8 + $0x28] sm:$0xff] }
 0xe88   :  { %v1856_v2 = vpop.permute.xlu0 %1855 }
 0xe89   :  { %vm2830_vm12 = vcmp.eq.s32.totalorder %v14959_v30, %v2829_v63  ;;  %11550 = vst.msk [vmem:[%s17330_s13 + $0x8] sm:$0xff] %vm1532_vm13, %v2829_v63  ;;  %v15446_v12 = vadd.f32 %v1856_v2, %v1848_v44 }
 0xe8a   :  { %v15414_v37 = vsel %vm2830_vm12, 1.0, %v17328_v13 }
 0xe8b   :  { %v2857_v48 = vrot.slane %v15414_v37, %v15003_v59  ;;  %v2836_v51 = vrot.slane %v15414_v37, %v14911_v39  ;;  %v2871_v45 = vrot.slane %v15414_v37, %v14995_v53  ;;  %v2843_v47 = vrot.slane %v15414_v37, %v14989_v46 }
 0xe8c   :  { %v2885_v57 = vrot.slane %v15414_v37, %v15023_v36  ;;  %v2850_v10 = vrot.slane %v15414_v37, %v14998_v54  ;;  %v2864_v61 = vrot.slane %v15414_v37, %v15007_v4  ;;  %v2878_v55 = vrot.slane %v15414_v37, %v15011_v7 }
 0xe8d   :  { %2859 = vbcast.lane.b32.xlu0 %v2857_v48, 256  ;;  %2838 = vbcast.lane.b32.xlu1 %v2836_v51, 256 }
 0xe91   :  { %2873 = vbcast.lane.b32.xlu0 %v2871_v45, 256  ;;  %2845 = vbcast.lane.b32.xlu1 %v2843_v47, 256 }
 0xe95   :  { %2887 = vbcast.lane.b32.xlu0 %v2885_v57, 256  ;;  %2852 = vbcast.lane.b32.xlu1 %v2850_v10, 256 }
 0xe99   :  { %2866 = vbcast.lane.b32.xlu1 %v2864_v61, 256  ;;  %3510 = vbcast.lane.b32.xlu0 %v3508_v40, 256  ;;  %v13725_v61 = vld [vmem:[#allocation8 + $0x10] sm:$0xff] }
 0xe9d   :  { %2880 = vbcast.lane.b32.xlu1 %v2878_v55, 256  ;;  %3524 = vbcast.lane.b32.xlu0 %v3522_v49, 256  ;;  %v13726_v55 = vld [vmem:[#allocation8 + $0x38] sm:$0xff] }
 0xea1   :  { %3283 = vrot.lane.b32.xlu1 %v15446_v12, %s14333_s19  ;;  %3538 = vbcast.lane.b32.xlu0 %v3536_v20, 256 }
 0xea5   :  { %3552 = vbcast.lane.b32.xlu0 %v3550_v43, 256 }
 0xeff   :  { %v2839_v29 = vpop.permute.xlu1 %2838  ;;  %v2860_v62 = vpop.permute.xlu0 %2859 }
 0xf00   :  { %v2889_v35 = vmul.f32 %v13721_v34, %v2839_v29  ;;  %v2892_v14 = vmul.f32 %v13722_v1, %v2860_v62 }
 0xf02   :  { %v2897_v18 = vsel %vm320_vm0, %v2889_v35, 0.0  ;;  %v2918_v5 = vsel %vm320_vm0, %v2892_v14, 0.0 }
 0xf03   :  { %v2898_v28 = vrot.slane %v2897_v18, 4  ;;  %v2919_v32 = vrot.slane %v2918_v5, 4  ;;  %v2846_v22 = vpop.permute.xlu1 %2845  ;;  %v2874_v52 = vpop.permute.xlu0 %2873 }
 0xf04   :  { %v2890_v23 = vmul.f32 %v13723_v42, %v2846_v22  ;;  %v2894_v33 = vmul.f32 %v13724_v38, %v2874_v52 }
 0xf05   :  { %v2899_v63 = vadd.f32 %v2898_v28, %v2897_v18  ;;  %v2920_v45 = vadd.f32 %v2919_v32, %v2918_v5  ;;  %v13727_v5 = vld [vmem:[#allocation8 + $0x20] sm:$0xff] }
 0xf06   :  { %v2904_v48 = vsel %vm320_vm0, %v2890_v23, 0.0  ;;  %v2932_v51 = vsel %vm320_vm0, %v2894_v33, 0.0 }
 0xf07   :  { %v2905_v47 = vrot.slane %v2904_v48, 4  ;;  %v2853_v57 = vpop.permute.xlu1 %2852  ;;  %v2888_v10 = vpop.permute.xlu0 %2887  ;;  %v2933_v40 = vrot.slane %v2932_v51, 4  ;;  %v2900_v44 = vrot.slane %v2899_v63, 2  ;;  %v2921_v62 = vrot.slane %v2920_v45, 2 }
 0xf08   :  { %v2891_v49 = vmul.f32 %v13725_v61, %v2853_v57  ;;  %v2896_v2 = vmul.f32 %v13726_v55, %v2888_v10  ;;  %v13728_v61 = vld [vmem:[#allocation8 + $0x30] sm:$0xff] }
 0xf09   :  { %v2906_v20 = vadd.f32 %v2905_v47, %v2904_v48  ;;  %v2934_v1 = vadd.f32 %v2933_v40, %v2932_v51  ;;  %v2901_v32 = vadd.f32 %v2900_v44, %v2899_v63  ;;  %v2922_v47 = vadd.f32 %v2921_v62, %v2920_v45 }
 0xf0a   :  { %v2911_v43 = vsel %vm320_vm0, %v2891_v49, 0.0  ;;  %v2946_v29 = vsel %vm320_vm0, %v2896_v2, 0.0 }
 0xf0b   :  { %v2907_v34 = vrot.slane %v2906_v20, 2  ;;  %v2867_v35 = vpop.permute.xlu1 %2866  ;;  %v2912_v14 = vrot.slane %v2911_v43, 4  ;;  %v2947_v18 = vrot.slane %v2946_v29, 4  ;;  %v2935_v57 = vrot.slane %v2934_v1, 2 }
 0xf0c   :  { %v2893_v28 = vmul.f32 %v13727_v5, %v2867_v35  ;;  %v2902_v55 = vrot.slane %v2901_v32, 1 }
 0xf0d   :  { %v2908_v22 = vadd.f32 %v2907_v34, %v2906_v20  ;;  %v2913_v52 = vadd.f32 %v2912_v14, %v2911_v43  ;;  %v2948_v42 = vadd.f32 %v2947_v18, %v2946_v29  ;;  %v2923_v43 = vrot.slane %v2922_v47, 1 }
 0xf0e   :  { %v2925_v23 = vsel %vm320_vm0, %v2893_v28, 0.0  ;;  %v2936_v29 = vadd.f32 %v2935_v57, %v2934_v1  ;;  %v2903_v14 = vadd.f32 %v2902_v55, %v2901_v32 }
 0xf0f   :  { %v2909_v38 = vrot.slane %v2908_v22, 1  ;;  %v2926_v33 = vrot.slane %v2925_v23, 4  ;;  %v2881_v48 = vpop.permute.xlu1 %2880  ;;  %v2914_v10 = vrot.slane %v2913_v52, 2  ;;  %v2949_v2 = vrot.slane %v2948_v42, 2 }
 0xf10   :  { %v2895_v49 = vmul.f32 %v13728_v61, %v2881_v48 }
 0xf11   :  { %v2927_v51 = vadd.f32 %v2926_v33, %v2925_v23  ;;  %v2915_v40 = vadd.f32 %v2914_v10, %v2913_v52  ;;  %v2910_v63 = vadd.f32 %v2909_v38, %v2908_v22  ;;  %v2950_v62 = vadd.f32 %v2949_v2, %v2948_v42  ;;  %v13729_v38 = vld [vmem:[#allocation25] ss:$0 sm:$0xff] }
 0xf12   :  { %v2939_v35 = vsel %vm320_vm0, %v2895_v49, 0.0  ;;  %v2924_v23 = vadd.f32 %v2923_v43, %v2922_v47  ;;  %v2937_v52 = vrot.slane %v2936_v29, 1  ;;  %v2807_v49 = vadd.f32 %v13729_v38, %v15406_v0 }
 0xf13   :  { %v2928_v44 = vrot.slane %v2927_v51, 2  ;;  %v2940_v20 = vrot.slane %v2939_v35, 4  ;;  %v2916_v34 = vrot.slane %v2915_v40, 1  ;;  %v2967_v28 = vsel %vm385_vm2, %v2910_v63, %v2903_v14  ;;  %v3284_v63 = vpop.permute.xlu1 %3283  ;;  %v13730_v14 = vld [vmem:[%s17236_s18] ss:$0 sm:$0xff] }
 0xf14   :  { %v2951_v1 = vrot.slane %v2950_v62, 1  ;;  %v2938_v42 = vadd.f32 %v2937_v52, %v2936_v29  ;;  %13432 = vtanh.f32 %v2807_v49  ;;  %v3543_v43 = vrot.slane %v15432_v3, %v14995_v53 }
 0xf15   :  { %v2929_v18 = vadd.f32 %v2928_v44, %v2927_v51  ;;  %v2941_v5 = vadd.f32 %v2940_v20, %v2939_v35  ;;  %v2917_v45 = vadd.f32 %v2916_v34, %v2915_v40  ;;  %v3515_v44 = vrot.slane %v15432_v3, %v14989_v46 }
 0xf16   :  { %v2952_v40 = vadd.f32 %v2951_v1, %v2950_v62  ;;  %v3529_v20 = vrot.slane %v15432_v3, %v15003_v59  ;;  %v3557_v29 = vrot.slane %v15432_v3, %v15023_v36  ;;  %v13731_v62 = vld [vmem:[%s17238_s20] ss:$0 sm:$0xff] }
 0xf17   :  { %v2930_v48 = vrot.slane %v2929_v18, 1  ;;  %v2942_v61 = vrot.slane %v2941_v5, 2  ;;  %v2968_v33 = vsel %vm387_vm3, %v2917_v45, %v2967_v28  ;;  %3517 = vbcast.lane.b32.xlu1 %v3515_v44, 256  ;;  %v3360_v1 = vld [vmem:[#allocation6] sm:$0xff] }
 0xf18   :  { %v2969_v32 = vsel %vm389_vm4, %v2924_v23, %v2968_v33 }
 0xf19   :  { %v2931_v10 = vadd.f32 %v2930_v48, %v2929_v18  ;;  %v2943_v22 = vadd.f32 %v2942_v61, %v2941_v5 }
 0xf1b   :  { %v2944_v57 = vrot.slane %v2943_v22, 1  ;;  %v2970_v55 = vsel %vm391_vm5, %v2931_v10, %v2969_v32  ;;  %3531 = vbcast.lane.b32.xlu1 %v3529_v20, 256  ;;  %v3361_v32 = vld [vmem:[#allocation6 + $0x8] sm:$0xff] }
 0xf1c   :  { %v2971_v47 = vsel %vm393_vm6, %v2938_v42, %v2970_v55 }
 0xf1d   :  { %v2945_v51 = vadd.f32 %v2944_v57, %v2943_v22  ;;  %v13732_v22 = vld [vmem:[#allocation32] ss:$0 sm:$0xff] }
 0xf1e   :  { %v13433_v0 = vpop.eup %13432 }
 0xf1f   :  { %v2972_v2 = vsel %vm395_vm7, %v2945_v51, %v2971_v47  ;;  %3545 = vbcast.lane.b32.xlu1 %v3543_v43, 256  ;;  %v3364_v47 = vld [vmem:[#allocation6 + $0x20] sm:$0xff]  ;;  %v3367_v43 = vld [vmem:[#allocation6 + $0x38] sm:$0xff] }
 0xf20   :  { %v2973_v35 = vsel %vm397_vm8, %v2952_v40, %v2972_v2  ;;  %v3363_v40 = vld [vmem:[#allocation6 + $0x18] sm:$0xff] }
 0xf21   :  { %3663 = vrot.lane.b32.xlu0 %v2973_v35, %s14333_s19  ;;  %12258 = vmatmul.mubr.msk.f32.vlgmr.msra.gmra.mrb[16].mxu1 %vm320_vm0, %v2973_v35 }
 0xf22   :  { %12269 = vmatmul.mubr.msk.f32.vlgmr.msra.gmra.mrb[22].mxu0 %vm320_vm0, %v2973_v35  ;;  %13009 = vmatpush3.bf16.msra.mxu1 %v14799_v24 }
 0xf23   :  { %13015 = vmatpush3.bf16.msra.mxu0 %v14801_v25  ;;  %13010 = vmatprep.subr.bf16.mxu1 %v17329_v41 }
 0xf24   :  { %13016 = vmatprep.subr.bf16.mxu0 %v17329_v41  ;;  %12279 = vmatprep.mubr.msk.f32.mxu1 %vm14329_vm1, %v17328_v13 }
 0xf25   :  { %12290 = vmatprep.mubr.msk.f32.mxu0 %vm14329_vm1, %v17328_v13  ;;  %3559 = vbcast.lane.b32.xlu1 %v3557_v29, 256 }
 0xf26   :  { %13012 = vmatpush3.bf16.msra.mxu1 %v14803_v26 }
 0xf27   :  { %13018 = vmatpush3.bf16.msra.mxu0 %v14814_v31  ;;  %13019 = vmatprep.subr.bf16.mxu1 %v17329_v41 }
 0xf28   :  { %13026 = vmatprep.subr.bf16.mxu0 %v15202_v27 }
 0xf29   :  { %12280 = vmatmul.mubr.msk.f32.vlgmr.msra.gmra.mrb[18].mxu1 %vm320_vm0, %v13433_v0  ;;  %v3365_v0 = vld [vmem:[#allocation6 + $0x28] sm:$0xff] }
 0xf2a   :  { %12291 = vmatmul.mubr.msk.f32.vlgmr.msra.gmra.mrb[24].mxu0 %vm320_vm0, %v2973_v35  ;;  %13021 = vmatpush3.bf16.msra.mxu1 %v15181_v50 }
 0xf2b   :  { %13022 = vmatprep.subr.bf16.mxu1 %v17329_v41  ;;  %12301 = vmatprep.mubr.msk.f32.mxu1 %vm14329_vm1, %v17328_v13 }
 0xf2c   :  { %13028 = vmatpush3.bf16.msra.mxu0 %v15202_v27 }
 0xf2d   :  { %13030 = vmatprep.subr.bf16.mxu0 %v15206_v16 }
 0xf2e   :  { %13024 = vmatpush3.bf16.msra.mxu1 %v15188_v21 }
 0xf2f   :  { %13033 = vmatprep.subr.bf16.mxu1 %v17329_v41 }
 0xf30   :  { %13032 = vmatpush3.bf16.msra.mxu0 %v15206_v16 }
 0xf31   :  { %12302 = vmatmul.mubr.msk.f32.vlgmr.msra.gmra.mrb[20].mxu1 %vm320_vm0, %v3284_v63  ;;  %13045 = vmatprep.subr.bf16.mxu0 %v17329_v41  ;;  %v3366_v63 = vld [vmem:[#allocation6 + $0x30] sm:$0xff] }
 0xf32   :  { %13035 = vmatpush3.bf16.msra.mxu1 %v14872_v56  ;;  %12332 = vmatprep.mubr.msk.f32.mxu1 %vm14329_vm1, %v17328_v13 }
 0xf33   :  { %13036 = vmatprep.subr.bf16.mxu1 %v17329_v41 }
 0xf36   :  { %13038 = vmatpush3.bf16.msra.mxu1 %v14876_v60 }
 0xf37   :  { %13039 = vmatprep.subr.bf16.mxu1 %v17329_v41 }
 0xff4   :  { %v3042_v34 = vpop.f32.mrb[16].mxu1 }
 0xff5   :  { %v3043_v18 = vadd.f32 %v13730_v14, %v3042_v34  ;;  %v3114_v5 = vpop.f32.mrb[22].mxu0  ;;  %v12259_v45 = vpop.f32.mrb[17].mxu1 }
 0xff6   :  { %v3115_v28 = vadd.f32 %v13731_v62, %v3114_v5  ;;  %v12270_v48 = vpop.f32.mrb[23].mxu0  ;;  %v3518_v34 = vpop.permute.xlu1 %3517 }
 0xff7   :  { %3047 = vst.msk [vmem:[#allocation6 + $0x10] sm:$0xff] %vm320_vm0, %v3043_v18  ;;  %v3511_v14 = vpop.permute.xlu0 %3510 }
 0xff8   :  { %3119 = vst.msk [vmem:[#allocation7 + $0x10] sm:$0xff] %vm320_vm0, %v3115_v28 }
 0xffa   :  { %v3532_v18 = vpop.permute.xlu1 %3531 }
 0xffb   :  { %v3525_v45 = vpop.permute.xlu0 %3524 }
 0xffc   :  { %v3189_v3 = vpop.f32.mrb[18].mxu1 }
 0xffd   :  { %v3259_v61 = vpop.f32.mrb[24].mxu0  ;;  %v12281_v23 = vpop.f32.mrb[19].mxu1 }
 0xffe   :  { %v15518_v52 = vadd.f32 %v3259_v61, %v3189_v3  ;;  %v12292_v33 = vpop.f32.mrb[25].mxu0  ;;  %v3362_v42 = vld [vmem:[#allocation6 + $0x10] sm:$0xff]  ;;  %v3546_v48 = vpop.permute.xlu1 %3545 }
 0xfff   :  { %v3539_v61 = vpop.permute.xlu0 %3538 }
0x1004   :  { %v3353_v10 = vpop.f32.mrb[20].mxu1 }
0x1005   :  { %v3354_v38 = vadd.f32 %v13732_v22, %v3353_v10  ;;  %v12303_v49 = vpop.f32.mrb[21].mxu1 }
0x1007   :  { %v3368_v57 = vmul.f32 %v3360_v1, %v3354_v38  ;;  %v3369_v55 = vmul.f32 %v3361_v32, %v3354_v38  ;;  %v3370_v51 = vmul.f32 %v3362_v42, %v3354_v38  ;;  %v3371_v2 = vmul.f32 %v3363_v40, %v3354_v38  ;;  %v3560_v1 = vpop.permute.xlu1 %3559 }
0x1008   :  { %v3372_v35 = vmul.f32 %v3364_v47, %v3354_v38  ;;  %v3373_v44 = vmul.f32 %v3365_v0, %v3354_v38  ;;  %v3374_v20 = vmul.f32 %v3366_v63, %v3354_v38  ;;  %v3375_v29 = vmul.f32 %v3367_v43, %v3354_v38 }
0x1009   :  { %12312 = vmatprep.mubr.msk.f32.mxu0 %vm320_vm0, %v3368_v57 }
0x100a   :  { %12313 = vmatmul.mubr.msk.f32.vlgmr.msra.gmra.mrb[26].mxu0 %vm320_vm0, %v3369_v55 }
0x100b   :  { %12315 = vmatprep.mubr.msk.f32.mxu0 %vm320_vm0, %v3370_v51  ;;  %13047 = vmatpush3.bf16.msra.mxu0 %v15035_v11 }
0x100c   :  { %13048 = vmatprep.subr.bf16.mxu0 %v17329_v41 }
0x100e   :  { %12316 = vmatmul.mubr.msk.f32.gmra.mrb[28].mxu0 %vm320_vm0, %v3371_v2 }
0x100f   :  { %12318 = vmatprep.mubr.msk.f32.mxu0 %vm320_vm0, %v3372_v35  ;;  %13050 = vmatpush3.bf16.msra.mxu0 %v15049_v6  ;;  %v3553_v35 = vpop.permute.xlu0 %3552 }
0x1010   :  { %13057 = vmatprep.subr.bf16.mxu0 %v17329_v41 }
0x1012   :  { %12319 = vmatmul.mubr.msk.f32.gmra.mrb[30].mxu0 %vm320_vm0, %v3373_v44 }
0x1013   :  { %12321 = vmatprep.mubr.msk.f32.mxu0 %vm320_vm0, %v3374_v20 }
0x1016   :  { %12322 = vmatmul.mubr.msk.f32.gmra.mrb[32].mxu0 %vm320_vm0, %v3375_v29 }
0x1017   :  { %12354 = vmatprep.mubr.msk.f32.mxu0 %vm14329_vm1, %v17328_v13 }
0x10dd   :  { %v12314_v5 = vpop.f32.mrb[26].mxu0 }
0x10de   :  { %v3466_v62 = vpop.f32.mrb[27].mxu0  ;;  %v3562_v23 = vadd.f32 %v12314_v5, %v3518_v34 }
0x10df   :  { %v3561_v33 = vadd.f32 %v3511_v14, %v3466_v62 }
0x10e0   :  { %v3570_v32 = vsel %vm320_vm0, %v3562_v23, -inf }
0x10e1   :  { %v12317_v28 = vpop.f32.mrb[28].mxu0  ;;  %v3569_v42 = vsel %vm320_vm0, %v3561_v33, -inf }
0x10e2   :  { %v3476_v3 = vpop.f32.mrb[29].mxu0  ;;  %v3564_v57 = vadd.f32 %v12317_v28, %v3532_v18 }
0x10e3   :  { %v3563_v51 = vadd.f32 %v3525_v45, %v3476_v3 }
0x10e4   :  { %v3572_v43 = vsel %vm320_vm0, %v3564_v57, -inf }
0x10e5   :  { %v12320_v10 = vpop.f32.mrb[30].mxu0  ;;  %v3571_v14 = vsel %vm320_vm0, %v3563_v51, -inf }
0x10e6   :  { %v3566_v22 = vadd.f32 %v12320_v10, %v3546_v48  ;;  %v3486_v38 = vpop.f32.mrb[31].mxu0 }
0x10e7   :  { %v3565_v49 = vadd.f32 %v3539_v61, %v3486_v38 }
0x10e8   :  { %v3575_v55 = vsel %vm320_vm0, %v3566_v22, -inf }
0x10e9   :  { %v3576_v40 = vmax.f32 %v3570_v32, %v3575_v55  ;;  %v3573_v47 = vsel %vm320_vm0, %v3565_v49, -inf  ;;  %v12323_v2 = vpop.f32.mrb[32].mxu0 }
0x10ea   :  { %v3574_v0 = vmax.f32 %v3569_v42, %v3573_v47  ;;  %v3568_v63 = vadd.f32 %v12323_v2, %v3560_v1  ;;  %v3496_v44 = vpop.f32.mrb[33].mxu0 }
0x10eb   :  { %v3567_v20 = vadd.f32 %v3553_v35, %v3496_v44 }
0x10ec   :  { %v3581_v29 = vmax.f32 %v3574_v0, %v3576_v40  ;;  %v3579_v34 = vsel %vm320_vm0, %v3568_v63, -inf }
0x10ed   :  { %v3580_v18 = vmax.f32 %v3572_v43, %v3579_v34  ;;  %v3577_v5 = vsel %vm320_vm0, %v3567_v20, -inf }
0x10ee   :  { %v3578_v45 = vmax.f32 %v3571_v14, %v3577_v5 }
0x10f0   :  { %v3582_v62 = vmax.f32 %v3578_v45, %v3580_v18 }
0x10f2   :  { %v3583_v28 = vmax.f32 %v3581_v29, %v3582_v62 }
0x10f4   :  { %v3584_v48 = vsub.f32 %v3561_v33, %v3583_v28  ;;  %v3585_v3 = vsub.f32 %v3562_v23, %v3583_v28  ;;  %v3586_v61 = vsub.f32 %v3563_v51, %v3583_v28  ;;  %v3587_v10 = vsub.f32 %v3564_v57, %v3583_v28 }
0x10f5   :  { %v3588_v38 = vsub.f32 %v3565_v49, %v3583_v28  ;;  %v3589_v1 = vsub.f32 %v3566_v22, %v3583_v28  ;;  %v3590_v32 = vsub.f32 %v3567_v20, %v3583_v28  ;;  %v3591_v55 = vsub.f32 %v3568_v63, %v3583_v28 }
0x10f6   :  { %v3592_v42 = vmul.f32 1.442695, %v3584_v48  ;;  %v3594_v40 = vmul.f32 1.442695, %v3585_v3  ;;  %v3596_v47 = vmul.f32 1.442695, %v3586_v61 }
0x10f7   :  { %v3598_v2 = vmul.f32 1.442695, %v3587_v10  ;;  %v3600_v35 = vmul.f32 1.442695, %v3588_v38  ;;  %v3602_v0 = vmul.f32 1.442695, %v3589_v1 }
0x10f8   :  { %13434 = vpow2.f32 %v3592_v42  ;;  %v3604_v44 = vmul.f32 1.442695, %v3590_v32  ;;  %v3606_v23 = vmul.f32 1.442695, %v3591_v55 }
0x10f9   :  { %13436 = vpow2.f32 %v3594_v40 }
0x10fa   :  { %13438 = vpow2.f32 %v3596_v47 }
0x10fb   :  { %13440 = vpow2.f32 %v3598_v2 }
0x10fc   :  { %13442 = vpow2.f32 %v3600_v35  ;;  %v3632_v35 = vld [vmem:[#allocation7] sm:$0xff] }
0x10fd   :  { %13444 = vpow2.f32 %v3602_v0 }
0x10fe   :  { %13446 = vpow2.f32 %v3604_v44 }
0x10ff   :  { %13448 = vpow2.f32 %v3606_v23 }
0x1102   :  { %v13435_v33 = vpop.eup %13434 }
0x1103   :  { %v13437_v49 = vpop.eup %13436  ;;  %v3608_v22 = vsel %vm320_vm0, %v13435_v33, 0.0 }
0x1104   :  { %v13439_v57 = vpop.eup %13438  ;;  %v3609_v51 = vsel %vm320_vm0, %v13437_v49, 0.0 }
0x1105   :  { %v13441_v63 = vpop.eup %13440  ;;  %v3610_v20 = vadd.f32 %v3609_v51, %v3608_v22  ;;  %v3611_v43 = vsel %vm320_vm0, %v13439_v57, 0.0  ;;  %v3633_v51 = vld [vmem:[#allocation7 + $0x8] sm:$0xff] }
0x1106   :  { %v13443_v29 = vpop.eup %13442  ;;  %v3613_v14 = vsel %vm320_vm0, %v13441_v63, 0.0 }
0x1107   :  { %v3612_v34 = vadd.f32 %v3611_v43, %v3610_v20  ;;  %v13445_v18 = vpop.eup %13444  ;;  %v3615_v45 = vsel %vm320_vm0, %v13443_v29, 0.0  ;;  %v3634_v20 = vld [vmem:[#allocation7 + $0x10] sm:$0xff]  ;;  %v3635_v43 = vld [vmem:[#allocation7 + $0x18] sm:$0xff] }
0x1108   :  { %v13447_v62 = vpop.eup %13446  ;;  %v3617_v48 = vsel %vm320_vm0, %v13445_v18, 0.0 }
0x1109   :  { %v3614_v5 = vadd.f32 %v3613_v14, %v3612_v34  ;;  %v13449_v3 = vpop.eup %13448  ;;  %v3619_v10 = vsel %vm320_vm0, %v13447_v62, 0.0 }
0x110a   :  { %v3621_v1 = vsel %vm320_vm0, %v13449_v3, 0.0 }
0x110b   :  { %v3616_v28 = vadd.f32 %v3615_v45, %v3614_v5  ;;  %v3636_v45 = vld [vmem:[#allocation7 + $0x20] sm:$0xff] }
0x110d   :  { %v3618_v61 = vadd.f32 %v3617_v48, %v3616_v28 }
0x110f   :  { %v3620_v38 = vadd.f32 %v3619_v10, %v3618_v61  ;;  %v3639_v10 = vld [vmem:[#allocation7 + $0x38] sm:$0xff] }
0x1111   :  { %v3622_v32 = vadd.f32 %v3621_v1, %v3620_v38 }
0x1113   :  { %13450 = vrcp.f32 %v3622_v32 }
0x111d   :  { %v13451_v55 = vpop.eup %13450 }
0x111e   :  { %v3624_v42 = vmul.f32 %v13451_v55, %v13435_v33  ;;  %v3625_v40 = vmul.f32 %v13451_v55, %v13437_v49  ;;  %v3626_v47 = vmul.f32 %v13451_v55, %v13439_v57  ;;  %v3627_v2 = vmul.f32 %v13451_v55, %v13441_v63  ;;  %v3637_v49 = vld [vmem:[#allocation7 + $0x28] sm:$0xff] }
0x111f   :  { %v3628_v0 = vmul.f32 %v13451_v55, %v13443_v29  ;;  %v3629_v44 = vmul.f32 %v13451_v55, %v13445_v18  ;;  %v3630_v23 = vmul.f32 %v13451_v55, %v13447_v62  ;;  %v3631_v22 = vmul.f32 %v13451_v55, %v13449_v3  ;;  %v3638_v18 = vld [vmem:[#allocation7 + $0x30] sm:$0xff] }
0x1120   :  { %v3640_v34 = vmul.f32 %v3632_v35, %v3624_v42  ;;  %v3641_v14 = vmul.f32 %v3633_v51, %v3625_v40  ;;  %v3642_v5 = vmul.f32 %v3634_v20, %v3626_v47  ;;  %v3643_v28 = vmul.f32 %v3635_v43, %v3627_v2 }
0x1121   :  { %v3644_v63 = vmul.f32 %v3636_v45, %v3628_v0  ;;  %v3645_v3 = vmul.f32 %v3637_v49, %v3629_v44  ;;  %v3646_v1 = vmul.f32 %v3638_v18, %v3630_v23  ;;  %v3647_v42 = vmul.f32 %v3639_v10, %v3631_v22  ;;  %v13733_v44 = vld [vmem:[#allocation22] ss:$0 sm:$0xff]  ;;  %v13734_v18 = vld [vmem:[#allocation28] ss:$0 sm:$0xff] }
0x1122   :  { %v3648_v48 = vsel %vm320_vm0, %v3640_v34, 0.0  ;;  %v3649_v33 = vsel %vm320_vm0, %v3641_v14, 0.0  ;;  %v3651_v29 = vsel %vm320_vm0, %v3642_v5, 0.0  ;;  %v3653_v61 = vsel %vm320_vm0, %v3643_v28, 0.0  ;;  %v3664_v5 = vpop.permute.xlu0 %3663  ;;  %v17341_v49 = vld [vmem:[#allocation55_spill] sm:$0xff] }
0x1123   :  { %v3650_v57 = vadd.f32 %v3649_v33, %v3648_v48  ;;  %v3655_v32 = vsel %vm320_vm0, %v3644_v63, 0.0  ;;  %v3657_v40 = vsel %vm320_vm0, %v3645_v3, 0.0  ;;  %v3659_v2 = vsel %vm320_vm0, %v3646_v1, 0.0  ;;  %v17343_v63 = vld [vmem:[#allocation50_spill] sm:$0xff]  ;;  %v17344_v10 = vld [vmem:[#allocation51_spill] sm:$0xff] }
0x1124   :  { %v3661_v0 = vsel %vm320_vm0, %v3647_v42, 0.0  ;;  %v15560_v20 = vadd.f32 %v13733_v44, %v15518_v52 }
0x1125   :  { %v3652_v62 = vadd.f32 %v3651_v29, %v3650_v57  ;;  %v17342_v57 = vld [vmem:[#allocation49_spill] sm:$0xff] }
0x1126   :  { %v11555_v23 = vmul.f32 -1.442695, %v15560_v20 }
0x1127   :  { %v3654_v38 = vadd.f32 %v3653_v61, %v3652_v62 }
0x1128   :  { %13452 = vpow2.f32 %v11555_v23 }
0x1129   :  { %v3656_v55 = vadd.f32 %v3655_v32, %v3654_v38 }
0x112b   :  { %v3658_v47 = vadd.f32 %v3657_v40, %v3656_v55 }
0x112d   :  { %v3660_v35 = vadd.f32 %v3659_v2, %v3658_v47 }
0x112f   :  { %v3662_v51 = vadd.f32 %v3661_v0, %v3660_v35 }
0x1131   :  { %3669 = vrot.lane.b32.xlu1 %v3662_v51, %s14333_s19 }
0x1132   :  { %v13453_v43 = vpop.eup %13452 }
0x1133   :  { %v3267_v22 = vadd.f32 1.0, %v13453_v43 }
0x1135   :  { %13454 = vrcp.f32 %v3267_v22 }
0x113f   :  { %v15563_v34 = vpop.eup %13454 }
0x1140   :  { %v3667_v14 = vsub.f32 1.0, %v15563_v34  ;;  %v3666_v28 = vmul.f32 %v15563_v34, %v3664_v5 }
0x11a3   :  { %v3670_v45 = vpop.permute.xlu1 %3669 }
0x11a4   :  { %v3672_v48 = vmul.f32 %v3670_v45, %v3667_v14  ;;  %v15594_v45 = vld [vmem:[#allocation11] sm:$0xff] }
0x11a6   :  { %v3673_v33 = vadd.f32 %v3672_v48, %v3666_v28 }
0x11a8   :  { %3675 = vrot.lane.b32.xlu0 %v3673_v33, %s14332_s9 }
0x121a   :  { %v3676_v52 = vpop.permute.xlu0 %3675 }
0x121b   :  { %12333 = vmatmul.mubr.msk.f32.vlgmr.msra.gmra.mrb[22].mxu1 %vm320_vm0, %v3676_v52 }
0x121c   :  { %13041 = vmatpush3.bf16.msra.mxu1 %v17332_v15  ;;  %12343 = vmatprep.mubr.msk.f32.mxu1 %vm14329_vm1, %v17328_v13 }
0x121d   :  { %13042 = vmatprep.subr.bf16.mxu1 %v17329_v41 }
0x1220   :  { %13044 = vmatpush3.bf16.msra.mxu1 %v17341_v49 }
0x1221   :  { %13051 = vmatprep.subr.bf16.mxu1 %v17329_v41 }
0x1223   :  { %12344 = vmatmul.mubr.msk.f32.vlgmr.msra.gmra.mrb[24].mxu1 %vm320_vm0, %v3676_v52  ;;  %v15599_v52 = vld [vmem:[#allocation11 + $0x8] sm:$0xff] }
0x1224   :  { %13053 = vmatpush3.bf16.msra.mxu1 %v17342_v57  ;;  %12365 = vmatprep.mubr.msk.f32.mxu1 %vm14329_vm1, %v17328_v13 }
0x1225   :  { %13054 = vmatprep.subr.bf16.mxu1 %v17329_v41 }
0x1228   :  { %13056 = vmatpush3.bf16.msra.mxu1 %v17343_v63 }
0x1229   :  { %13063 = vmatprep.subr.bf16.mxu1 %v17329_v41 }
0x12ee   :  { %v3745_v29 = vpop.f32.mrb[22].mxu1 }
0x12ef   :  { %v3746_v62 = vadd.f32 %v13734_v18, %v3745_v29  ;;  %v12334_v3 = vpop.f32.mrb[23].mxu1  ;;  %v15602_v18 = vld [vmem:[#allocation11 + $0x10] sm:$0xff] }
0x12f0   :  { %v15605_v3 = vld [vmem:[#allocation11 + $0x20] sm:$0xff] }
0x12f1   :  { %v3750_v61 = vcombine.high %v3746_v62, %v3746_v62  ;;  %v3757_v38 = vrot.slane %v3746_v62, %v17344_v10 }
0x12f3   :  { %v3764_v1 = vrot.slane %v3750_v61, %v17344_v10  ;;  %v3765_v32 = vcombine.high %v3757_v38, %v3757_v38  ;;  %v3773_v55 = vrot.slane %v3757_v38, %v17344_v10 }
0x12f5   :  { %v3766_v42 = vcombine.high %v3764_v1, %v3764_v1  ;;  %v3780_v40 = vrot.slane %v3764_v1, %v17344_v10  ;;  %v3787_v47 = vrot.slane %v3765_v32, %v17344_v10  ;;  %v3795_v2 = vcombine.high %v3773_v55, %v3773_v55  ;;  %v15609_v32 = vld [vmem:[#allocation11 + $0x18] sm:$0xff] }
0x12f6   :  { %v3802_v35 = vrot.slane %v3773_v55, %v14911_v39  ;;  %v15588_v0 = vpop.f32.mrb[24].mxu1 }
0x12f7   :  { %v3796_v51 = vcombine.high %v3780_v40, %v3780_v40  ;;  %v3797_v44 = vcombine.high %v3787_v47, %v3787_v47  ;;  %v3806_v23 = vrot.slane %v3787_v47, %v14911_v39  ;;  %v12345_v43 = vpop.f32.mrb[25].mxu1  ;;  %v3794_v22 = vrot.slane %v3766_v42, %v17344_v10  ;;  %v15612_v42 = vld [vmem:[#allocation11 + $0x30] sm:$0xff] }
0x12f8   :  { %v3810_v14 = vrot.slane %v3795_v2, %v14911_v39  ;;  %v3818_v5 = vrot.slane %v3780_v40, %v14911_v39  ;;  %v3839_v28 = vadd.f32 %v15594_v45, %v3802_v35  ;;  %v15616_v2 = vld [vmem:[#allocation11 + $0x28] sm:$0xff]  ;;  %v13743_v43 = vld [vmem:[#allocation29] ss:$0 sm:$0xff] }
0x12f9   :  { %v3814_v48 = vrot.slane %v3797_v44, %v14911_v39  ;;  %v3826_v33 = vrot.slane %v3796_v51, %v14911_v39  ;;  %v3840_v29 = vadd.f32 %v15599_v52, %v3806_v23  ;;  %v3798_v38 = vcombine.high %v3794_v22, %v3794_v22  ;;  %v15619_v44 = vld [vmem:[#allocation11 + $0x38] sm:$0xff] }
0x12fa   :  { %v3841_v62 = vadd.f32 %v15602_v18, %v3810_v14  ;;  %13456 = vtanh.f32 %v3839_v28  ;;  %v3843_v61 = vadd.f32 %v15605_v3, %v3818_v5  ;;  %v3822_v1 = vrot.slane %v3794_v22, %v14911_v39 }
0x12fb   :  { %v3842_v55 = vadd.f32 %v15609_v32, %v3814_v48  ;;  %13458 = vtanh.f32 %v3840_v29  ;;  %v3845_v40 = vadd.f32 %v15612_v42, %v3826_v33  ;;  %v3830_v47 = vrot.slane %v3798_v38, %v14911_v39 }
0x12fc   :  { %13460 = vtanh.f32 %v3841_v62  ;;  %v3844_v35 = vadd.f32 %v15616_v2, %v3822_v1 }
0x12fd   :  { %13462 = vtanh.f32 %v3843_v61  ;;  %v3846_v23 = vadd.f32 %v15619_v44, %v3830_v47 }
0x12fe   :  { %13464 = vtanh.f32 %v3842_v55 }
0x12ff   :  { %13466 = vtanh.f32 %v3845_v40 }
0x1300   :  { %13468 = vtanh.f32 %v3844_v35 }
0x1301   :  { %13470 = vtanh.f32 %v3846_v23 }
0x1304   :  { %v13457_v51 = vpop.eup %13456 }
0x1305   :  { %v3855_v22 = vmul.f32 %v13743_v43, %v13457_v51  ;;  %v13459_v14 = vpop.eup %13458 }
0x1306   :  { %v13461_v5 = vpop.eup %13460  ;;  %v3856_v48 = vmul.f32 %v13743_v43, %v13459_v14 }
0x1307   :  { %v3863_v28 = vsel %vm320_vm0, %v3855_v22, 0.0  ;;  %v13463_v33 = vpop.eup %13462  ;;  %v3857_v62 = vmul.f32 %v13743_v43, %v13461_v5 }
0x1308   :  { %3864 = vadd.xlane.f32.xlu1 %v3863_v28  ;;  %v3866_v29 = vsel %vm320_vm0, %v3856_v48, 0.0  ;;  %v13465_v61 = vpop.eup %13464  ;;  %v3859_v38 = vmul.f32 %v13743_v43, %v13463_v33 }
0x1309   :  { %3867 = vadd.xlane.f32.xlu0 %v3866_v29  ;;  %v13467_v1 = vpop.eup %13466  ;;  %v3869_v47 = vsel %vm320_vm0, %v3857_v62, 0.0  ;;  %v3858_v35 = vmul.f32 %v13743_v43, %v13465_v61 }
0x130a   :  { %v3875_v55 = vsel %vm320_vm0, %v3859_v38, 0.0  ;;  %v3861_v40 = vmul.f32 %v13743_v43, %v13467_v1  ;;  %v13469_v51 = vpop.eup %13468  ;;  %v17345_v38 = vld [vmem:[#allocation52_spill] sm:$0xff] }
0x130b   :  { %v3872_v23 = vsel %vm320_vm0, %v3858_v35, 0.0  ;;  %v3860_v14 = vmul.f32 %v13743_v43, %v13469_v51  ;;  %v13471_v5 = vpop.eup %13470 }
0x130c   :  { %3876 = vadd.xlane.f32.xlu1 %v3875_v55  ;;  %v3881_v22 = vsel %vm320_vm0, %v3861_v40, 0.0  ;;  %v3862_v48 = vmul.f32 %v13743_v43, %v13471_v5 }
0x130d   :  { %3870 = vadd.xlane.f32.xlu0 %v3869_v47  ;;  %v3878_v28 = vsel %vm320_vm0, %v3860_v14, 0.0 }
0x130e   :  { %v3884_v33 = vsel %vm320_vm0, %v3862_v48, 0.0 }
0x1310   :  { %3882 = vadd.xlane.f32.xlu1 %v3881_v22 }
0x1311   :  { %3873 = vadd.xlane.f32.xlu0 %v3872_v23 }
0x1315   :  { %3879 = vadd.xlane.f32.xlu0 %v3878_v28 }
0x1319   :  { %3885 = vadd.xlane.f32.xlu0 %v3884_v33 }
0x1395   :  { %v3865_v62 = vpop.xlane.xlu1 %3864 }
0x1396   :  { %v3868_v29 = vpop.xlane.xlu0 %3867  ;;  %v3898_v40 = vrot.slane %v3865_v62, %v17345_v38 }
0x1397   :  { %v3902_v1 = vrot.slane %v3868_v29, %v17345_v38 }
0x1399   :  { %v3877_v47 = vpop.xlane.xlu1 %3876  ;;  %v3927_v51 = vsel %vm385_vm2, %v3902_v1, %v3898_v40 }
0x139a   :  { %v3871_v61 = vpop.xlane.xlu0 %3870  ;;  %v3914_v14 = vrot.slane %v3877_v47, %v17345_v38 }
0x139b   :  { %v3906_v55 = vrot.slane %v3871_v61, %v17345_v38 }
0x139d   :  { %v3928_v43 = vsel %vm387_vm3, %v3906_v55, %v3927_v51  ;;  %v3883_v28 = vpop.xlane.xlu1 %3882 }
0x139e   :  { %v3874_v35 = vpop.xlane.xlu0 %3873  ;;  %v3922_v62 = vrot.slane %v3883_v28, %v17345_v38 }
0x139f   :  { %v3910_v22 = vrot.slane %v3874_v35, %v17345_v38 }
0x13a1   :  { %v3929_v23 = vsel %vm389_vm4, %v3910_v22, %v3928_v43 }
0x13a2   :  { %v3880_v5 = vpop.xlane.xlu0 %3879  ;;  %v3930_v33 = vsel %vm391_vm5, %v3914_v14, %v3929_v23 }
0x13a3   :  { %v3918_v48 = vrot.slane %v3880_v5, %v17345_v38 }
0x13a5   :  { %v3931_v29 = vsel %vm393_vm6, %v3918_v48, %v3930_v33 }
0x13a6   :  { %v3886_v61 = vpop.xlane.xlu0 %3885  ;;  %v3932_v40 = vsel %vm395_vm7, %v3922_v62, %v3931_v29 }
0x13a7   :  { %v3926_v1 = vrot.slane %v3886_v61, %v17345_v38 }
0x13a9   :  { %v3933_v55 = vsel %vm397_vm8, %v3926_v1, %v3932_v40 }
0x13aa   :  { %v3935_v47 = vsel %vm475_vm9, %v3933_v55, -1e+30 }
0x13ab   :  { %v3936_v51 = vsel %vm411_vm10, %v3935_v47, -inf }
0x13ac   :  { %3937 = vmax.xlane.f32.xlu1 %v3936_v51  ;;  %v2957_v51 = vsub.f32 1.0, %v15414_v37 }
0x1439   :  { %v3938_v22 = vpop.xlane.xlu1 %3937 }
0x143a   :  { %v3939_v43 = vsub.f32 %v3935_v47, %v3938_v22  ;;  %v17347_v22 = vld [vmem:[#allocation54_spill] sm:$0xff] }
0x143c   :  { %v3940_v23 = vmul.f32 1.442695, %v3939_v43  ;;  %v15659_v43 = vmul.f32 %v2957_v51, %v17347_v22 }
0x143e   :  { %13472 = vpow2.f32 %v3940_v23  ;;  %17348 = vst [vmem:[#allocation54_spill] sm:$0xff] %v15659_v43 }
0x1448   :  { %v13473_v14 = vpop.eup %13472 }
0x1449   :  { %v3942_v5 = vsel %vm411_vm10, %v13473_v14, 0.0 }
0x144a   :  { %3943 = vadd.xlane.f32.xlu0 %v3942_v5 }
0x14d7   :  { %v3944_v28 = vpop.xlane.xlu0 %3943 }
0x14d8   :  { %13474 = vrcp.f32 %v3944_v28 }
0x14d9   :  { %13476 = vtanh.f32 %v15560_v20 }
0x14e2   :  { %v13475_v48 = vpop.eup %13474 }
0x14e3   :  { %v3946_v33 = vmul.f32 %v13475_v48, %v13473_v14  ;;  %v13477_v28 = vpop.eup %13476 }
0x14e5   :  { %4371 = vst.msk [vmem:[#allocation37 + $0x10] sm:$0xff] %vm411_vm10, %v3946_v33  ;;  %v3957_v29 = vrot.slane %v3946_v33, %v14989_v46  ;;  %v3950_v62 = vrot.slane %v3946_v33, %v14911_v39  ;;  %v3964_v61 = vrot.slane %v3946_v33, %v14998_v54  ;;  %v3978_v1 = vrot.slane %v3946_v33, %v15007_v4 }
0x14e6   :  { %v3971_v40 = vrot.slane %v3946_v33, %v15003_v59  ;;  %v3992_v55 = vrot.slane %v3946_v33, %v15011_v7  ;;  %v3985_v47 = vrot.slane %v3946_v33, %v14995_v53  ;;  %v4226_v23 = vmul.f32 %v3946_v33, %v15659_v43 }
0x14e7   :  { %3959 = vbcast.lane.b32.xlu1 %v3957_v29, 256  ;;  %3952 = vbcast.lane.b32.xlu0 %v3950_v62, 256  ;;  %v3999_v5 = vrot.slane %v3946_v33, %v15023_v36 }
0x14e8   :  { %v4227_v14 = vsel %vm411_vm10, %v4226_v23, -inf }
0x14eb   :  { %3966 = vbcast.lane.b32.xlu1 %v3964_v61, 256  ;;  %3980 = vbcast.lane.b32.xlu0 %v3978_v1, 256 }
0x14ef   :  { %3973 = vbcast.lane.b32.xlu1 %v3971_v40, 256  ;;  %3994 = vbcast.lane.b32.xlu0 %v3992_v55, 256 }
0x14f3   :  { %3987 = vbcast.lane.b32.xlu1 %v3985_v47, 256 }
0x1517   :  { %4228 = vmax.xlane.f32.xlu1 %v4227_v14 }
0x1528   :  { %4001 = vbcast.lane.b32.xlu1 %v3999_v5, 256 }
0x152c   :  { %3273 = vrot.lane.b32.xlu1 %v13477_v28, %s14331_s29 }
0x1559   :  { %v3960_v48 = vpop.permute.xlu1 %3959  ;;  %v3953_v62 = vpop.permute.xlu0 %3952 }
0x155a   :  { %v4004_v61 = vmul.f32 %v15599_v52, %v3960_v48  ;;  %v4003_v1 = vmul.f32 %v15594_v45, %v3953_v62 }
0x155c   :  { %v4018_v33 = vsel %vm320_vm0, %v4004_v61, 0.0  ;;  %v4011_v51 = vsel %vm320_vm0, %v4003_v1, 0.0 }
0x155d   :  { %v3967_v29 = vpop.permute.xlu1 %3966  ;;  %v3981_v55 = vpop.permute.xlu0 %3980  ;;  %v4019_v28 = vrot.slane %v4018_v33, 4  ;;  %v4012_v52 = vrot.slane %v4011_v51, 4 }
0x155e   :  { %v4005_v40 = vmul.f32 %v15602_v18, %v3967_v29  ;;  %v4007_v45 = vmul.f32 %v15605_v3, %v3981_v55 }
0x155f   :  { %v4020_v62 = vadd.f32 %v4019_v28, %v4018_v33 }
0x1560   :  { %v4025_v22 = vsel %vm320_vm0, %v4005_v40, 0.0  ;;  %v4039_v61 = vsel %vm320_vm0, %v4007_v45, 0.0 }
0x1561   :  { %v3974_v37 = vpop.permute.xlu1 %3973  ;;  %v4026_v48 = vrot.slane %v4025_v22, 4  ;;  %v3995_v18 = vpop.permute.xlu0 %3994  ;;  %v4040_v35 = vrot.slane %v4039_v61, 4 }
0x1562   :  { %v4006_v47 = vmul.f32 %v15609_v32, %v3974_v37  ;;  %v4013_v37 = vadd.f32 %v4012_v52, %v4011_v51  ;;  %v4009_v1 = vmul.f32 %v15612_v42, %v3995_v18 }
0x1563   :  { %v4027_v40 = vadd.f32 %v4026_v48, %v4025_v22  ;;  %v4041_v63 = vadd.f32 %v4040_v35, %v4039_v61 }
0x1564   :  { %v4032_v14 = vsel %vm320_vm0, %v4006_v47, 0.0  ;;  %v4053_v38 = vsel %vm320_vm0, %v4009_v1, 0.0 }
0x1565   :  { %v3988_v20 = vpop.permute.xlu1 %3987  ;;  %v4033_v29 = vrot.slane %v4032_v14, 4  ;;  %v4028_v3 = vrot.slane %v4027_v40, 2  ;;  %v4054_v57 = vrot.slane %v4053_v38, 4  ;;  %v4042_v42 = vrot.slane %v4041_v63, 2 }
0x1566   :  { %v4008_v5 = vmul.f32 %v15616_v2, %v3988_v20  ;;  %v4021_v2 = vrot.slane %v4020_v62, 2  ;;  %v4014_v20 = vrot.slane %v4013_v37, 2 }
0x1567   :  { %v4034_v43 = vadd.f32 %v4033_v29, %v4032_v14  ;;  %v4029_v51 = vadd.f32 %v4028_v3, %v4027_v40  ;;  %v4055_v22 = vadd.f32 %v4054_v57, %v4053_v38 }
0x1568   :  { %v4046_v32 = vsel %vm320_vm0, %v4008_v5, 0.0  ;;  %v4022_v5 = vadd.f32 %v4021_v2, %v4020_v62  ;;  %v4015_v33 = vadd.f32 %v4014_v20, %v4013_v37  ;;  %v4043_v62 = vadd.f32 %v4042_v42, %v4041_v63 }
0x1569   :  { %v4047_v47 = vrot.slane %v4046_v32, 4  ;;  %v4035_v55 = vrot.slane %v4034_v43, 2  ;;  %v4030_v29 = vrot.slane %v4029_v51, 1  ;;  %v4056_v37 = vrot.slane %v4055_v22, 2 }
0x156a   :  { %v4023_v14 = vrot.slane %v4022_v5, 1  ;;  %v4016_v48 = vrot.slane %v4015_v33, 1 }
0x156b   :  { %v4048_v10 = vadd.f32 %v4047_v47, %v4046_v32  ;;  %v4036_v28 = vadd.f32 %v4035_v55, %v4034_v43  ;;  %v4031_v57 = vadd.f32 %v4030_v29, %v4029_v51  ;;  %v4044_v55 = vrot.slane %v4043_v62, 1 }
0x156c   :  { %v4024_v40 = vadd.f32 %v4023_v14, %v4022_v5  ;;  %v4017_v47 = vadd.f32 %v4016_v48, %v4015_v33 }
0x156d   :  { %v4049_v52 = vrot.slane %v4048_v10, 2  ;;  %v4037_v49 = vrot.slane %v4036_v28, 1  ;;  %v4045_v33 = vadd.f32 %v4044_v55, %v4043_v62 }
0x156f   :  { %v4050_v32 = vadd.f32 %v4049_v52, %v4048_v10  ;;  %v4145_v10 = vsel %vm385_vm2, %v4024_v40, %v4017_v47 }
0x1570   :  { %v4146_v63 = vsel %vm387_vm3, %v4031_v57, %v4145_v10 }
0x1571   :  { %v4051_v20 = vrot.slane %v4050_v32, 1 }
0x15a4   :  { %v4229_v45 = vpop.xlane.xlu1 %4228 }
0x15a5   :  { %vm4230_vm12 = vcmp.eq.f32.partialorder %v4226_v23, %v4229_v45  ;;  %v4038_v23 = vadd.f32 %v4037_v49, %v4036_v28  ;;  %v4057_v45 = vadd.f32 %v4056_v37, %v4055_v22 }
0x15a6   :  { %v4231_v18 = vsel %vm4230_vm12, %v14959_v30, 8  ;;  %vm4774_vm12 = vcmp.lt.s32.totalorder %v14904_v19, 3 }
0x15a7   :  { %v4232_v1 = vsel %vm411_vm10, %v4231_v18, 2147483647  ;;  %v4147_v42 = vsel %vm389_vm4, %v4038_v23, %v4146_v63  ;;  %v4058_v14 = vrot.slane %v4057_v45, 1 }
0x15a8   :  { %v4002_v35 = vpop.permute.xlu1 %4001  ;;  %v4234_v61 = vshra.s32 %v4232_v1, 16  ;;  %v4148_v48 = vsel %vm391_vm5, %v4045_v33, %v4147_v42  ;;  %v4233_v62 = vand.u32 65535, %v4232_v1 }
0x15a9   :  { %v4010_v43 = vmul.f32 %v15619_v44, %v4002_v35  ;;  %v4052_v44 = vadd.f32 %v4051_v20, %v4050_v32  ;;  %v4059_v18 = vadd.f32 %v4058_v14, %v4057_v45 }
0x15aa   :  { %v4236_v2 = vcvt.s32.f32 %v4234_v61 }
0x15ab   :  { %v4060_v38 = vsel %vm320_vm0, %v4010_v43, 0.0  ;;  %v4149_v28 = vsel %vm393_vm6, %v4052_v44, %v4148_v48  ;;  %v4235_v43 = vcvt.s32.f32 %v4233_v62 }
0x15ac   :  { %v4061_v3 = vrot.slane %v4060_v38, 4  ;;  %4237 = vmin.xlane.f32.xlu0 %v4236_v2  ;;  %v4150_v22 = vsel %vm395_vm7, %v4059_v18, %v4149_v28  ;;  %v3274_v32 = vpop.permute.xlu1 %3273 }
0x15ad   :  { %v3276_v61 = vmul.f32 %v15563_v34, %v3274_v32  ;;  %v13745_v32 = vld [vmem:[#allocation8 + $0x8] sm:$0xff] }
0x15ae   :  { %v4062_v52 = vadd.f32 %v4061_v3, %v4060_v38 }
0x15b0   :  { %v4063_v5 = vrot.slane %v4062_v52, 2 }
0x15b2   :  { %v4064_v51 = vadd.f32 %v4063_v5, %v4062_v52 }
0x15b4   :  { %v4065_v49 = vrot.slane %v4064_v51, 1 }
0x15b6   :  { %v4066_v29 = vadd.f32 %v4065_v49, %v4064_v51  ;;  %v3271_v51 = vmul.f32 %v15563_v34, %v15446_v12 }
0x15b8   :  { %v4151_v35 = vsel %vm397_vm8, %v4066_v29, %v4150_v22  ;;  %v13744_v22 = vld [vmem:[#allocation8] sm:$0xff] }
0x15b9   :  { %12355 = vmatmul.mubr.msk.f32.vlgmr.msra.gmra.mrb[34].mxu0 %vm320_vm0, %v4151_v35 }
0x15ba   :  { %13059 = vmatpush3.bf16.msra.mxu0 %v14786_v9  ;;  %12376 = vmatprep.mubr.msk.f32.mxu0 %vm14329_vm1, %v17328_v13 }
0x15bb   :  { %13060 = vmatprep.subr.bf16.mxu0 %v17329_v41 }
0x15be   :  { %13062 = vmatpush3.bf16.msra.mxu0 %v14794_v17 }
0x15bf   :  { %13069 = vmatprep.subr.bf16.mxu0 %v17329_v41 }
0x15c2   :  { %3278 = vrot.lane.b32.xlu0 %v3276_v61, %s14332_s9 }
0x1639   :  { %v4238_v37 = vpop.xlane.xlu0 %4237 }
0x163a   :  { %vm4239_vm14 = vcmp.eq.f32.partialorder %v4236_v2, %v4238_v37  ;;  %v4244_v23 = vcvt.f32.s32 %v4238_v37 }
0x163b   :  { %v4240_v40 = vsel %vm4239_vm14, %v4235_v43, inf  ;;  %vm4775_vm14 = vmand %vm4774_vm12, %vm473_vm15 }
0x163c   :  { %4241 = vmin.xlane.f32.xlu1 %v4240_v40  ;;  %v4245_v3 = vshll.u32 %v4244_v23, 16  ;;  %v15727_v44 = vsel %vm4775_vm14, 0.0, %v17340_v8  ;;  %v13746_v23 = vld [vmem:[#allocation8 + $0x18] sm:$0xff] }
0x163d   :  { %v3279_v14 = vpop.permute.xlu0 %3278  ;;  %v4925_v48 = vrot.slane %v15727_v44, %v14911_v39  ;;  %v4939_v28 = vrot.slane %v15727_v44, %v14998_v54  ;;  %v4953_v18 = vrot.slane %v15727_v44, %v15007_v4  ;;  %v4967_v12 = vrot.slane %v15727_v44, %v15011_v7 }
0x163e   :  { %v15737_v49 = vadd.f32 %v3279_v14, %v3271_v51  ;;  %v13748_v51 = vld [vmem:[#allocation8 + $0x28] sm:$0xff] }
0x1640   :  { %17349 = vst [vmem:[#allocation57_spill] sm:$0xff] %v15737_v49 }
0x168c   :  { %v4220_v47 = vpop.f32.mrb[34].mxu0 }
0x168d   :  { %v15701_v57 = vadd.f32 %v4220_v47, %v15588_v0  ;;  %v12356_v38 = vpop.f32.mrb[35].mxu0 }
0x16c9   :  { %v4242_v20 = vpop.xlane.xlu1 %4241 }
0x16ca   :  { %v4243_v55 = vcvt.f32.s32 %v4242_v20 }
0x16cc   :  { %v4246_v45 = vadd.s32 %v4245_v3, %v4243_v55  ;;  %v13747_v3 = vld [vmem:[#allocation8 + $0x10] sm:$0xff] }
0x16ce   :  { %vm4247_vm11 = vcmp.eq.s32.totalorder %v14959_v30, %v4246_v45  ;;  %11569 = vst.msk [vmem:[%s17330_s13 + $0x10] sm:$0xff] %vm1532_vm13, %v4246_v45 }
0x16cf   :  { %v15709_v1 = vsel %vm4247_vm11, 1.0, %v17328_v13 }
0x16d0   :  { %v4260_v0 = vrot.slane %v15709_v1, %v14989_v46  ;;  %v4253_v2 = vrot.slane %v15709_v1, %v14911_v39  ;;  %v4267_v10 = vrot.slane %v15709_v1, %v14998_v54  ;;  %v4274_v52 = vrot.slane %v15709_v1, %v15003_v59 }
0x16d1   :  { %v4281_v63 = vrot.slane %v15709_v1, %v15007_v4  ;;  %v4288_v42 = vrot.slane %v15709_v1, %v14995_v53  ;;  %v4295_v5 = vrot.slane %v15709_v1, %v15011_v7  ;;  %v4302_v33 = vrot.slane %v15709_v1, %v15023_v36 }
0x16d2   :  { %4262 = vbcast.lane.b32.xlu0 %v4260_v0, 256  ;;  %4255 = vbcast.lane.b32.xlu1 %v4253_v2, 256 }
0x16d6   :  { %4269 = vbcast.lane.b32.xlu0 %v4267_v10, 256  ;;  %4276 = vbcast.lane.b32.xlu1 %v4274_v52, 256 }
0x16da   :  { %4283 = vbcast.lane.b32.xlu0 %v4281_v63, 256  ;;  %4290 = vbcast.lane.b32.xlu1 %v4288_v42, 256 }
0x16de   :  { %4297 = vbcast.lane.b32.xlu0 %v4295_v5, 256  ;;  %4304 = vbcast.lane.b32.xlu1 %v4302_v33, 256 }
0x16e2   :  { %4700 = vrot.lane.b32.xlu0 %v15737_v49, %s14333_s19  ;;  %4927 = vbcast.lane.b32.xlu1 %v4925_v48, 256 }
0x16e6   :  { %4941 = vbcast.lane.b32.xlu1 %v4939_v28, 256  ;;  %v13749_v28 = vld [vmem:[#allocation8 + $0x20] sm:$0xff] }
0x16ea   :  { %4955 = vbcast.lane.b32.xlu1 %v4953_v18, 256 }
0x16ee   :  { %4969 = vbcast.lane.b32.xlu1 %v4967_v12, 256 }
0x1744   :  { %v4256_v34 = vpop.permute.xlu1 %4255  ;;  %v4263_v29 = vpop.permute.xlu0 %4262 }
0x1745   :  { %v4306_v35 = vmul.f32 %v13744_v22, %v4256_v34  ;;  %v4307_v61 = vmul.f32 %v13745_v32, %v4263_v29 }
0x1747   :  { %v4314_v62 = vsel %vm320_vm0, %v4306_v35, 0.0  ;;  %v4321_v37 = vsel %vm320_vm0, %v4307_v61, 0.0 }
0x1748   :  { %v4315_v43 = vrot.slane %v4314_v62, 4  ;;  %v4322_v40 = vrot.slane %v4321_v37, 4  ;;  %v4277_v47 = vpop.permute.xlu1 %4276  ;;  %v4270_v38 = vpop.permute.xlu0 %4269 }
0x1749   :  { %v4309_v20 = vmul.f32 %v13746_v23, %v4277_v47  ;;  %v4308_v55 = vmul.f32 %v13747_v3, %v4270_v38 }
0x174a   :  { %v4316_v45 = vadd.f32 %v4315_v43, %v4314_v62  ;;  %v4323_v0 = vadd.f32 %v4322_v40, %v4321_v37 }
0x174b   :  { %v4335_v2 = vsel %vm320_vm0, %v4309_v20, 0.0  ;;  %v4328_v10 = vsel %vm320_vm0, %v4308_v55, 0.0  ;;  %v13750_v20 = vld [vmem:[#allocation8 + $0x38] sm:$0xff]  ;;  %v13751_v55 = vld [vmem:[#allocation8 + $0x30] sm:$0xff] }
0x174c   :  { %v4317_v52 = vrot.slane %v4316_v45, 2  ;;  %v4324_v63 = vrot.slane %v4323_v0, 2  ;;  %v4336_v42 = vrot.slane %v4335_v2, 4  ;;  %v4329_v5 = vrot.slane %v4328_v10, 4  ;;  %v4291_v33 = vpop.permute.xlu1 %4290  ;;  %v4284_v14 = vpop.permute.xlu0 %4283 }
0x174d   :  { %v4311_v48 = vmul.f32 %v13748_v51, %v4291_v33  ;;  %v4310_v18 = vmul.f32 %v13749_v28, %v4284_v14 }
0x174e   :  { %v4318_v12 = vadd.f32 %v4317_v52, %v4316_v45  ;;  %v4325_v34 = vadd.f32 %v4324_v63, %v4323_v0  ;;  %v4337_v29 = vadd.f32 %v4336_v42, %v4335_v2  ;;  %v4330_v22 = vadd.f32 %v4329_v5, %v4328_v10 }
0x174f   :  { %v4349_v35 = vsel %vm320_vm0, %v4311_v48, 0.0  ;;  %v4342_v32 = vsel %vm320_vm0, %v4310_v18, 0.0 }
0x1750   :  { %v4319_v61 = vrot.slane %v4318_v12, 1  ;;  %v4326_v62 = vrot.slane %v4325_v34, 1  ;;  %v4338_v37 = vrot.slane %v4337_v29, 2  ;;  %v4331_v43 = vrot.slane %v4330_v22, 2  ;;  %v4305_v40 = vpop.permute.xlu1 %4304  ;;  %v4298_v47 = vpop.permute.xlu0 %4297 }
0x1751   :  { %v4350_v38 = vrot.slane %v4349_v35, 4  ;;  %v4343_v23 = vrot.slane %v4342_v32, 4  ;;  %v4313_v3 = vmul.f32 %v13750_v20, %v4305_v40  ;;  %v4312_v33 = vmul.f32 %v13751_v55, %v4298_v47 }
0x1752   :  { %v4320_v45 = vadd.f32 %v4319_v61, %v4318_v12  ;;  %v4339_v0 = vadd.f32 %v4338_v37, %v4337_v29  ;;  %v4332_v2 = vadd.f32 %v4331_v43, %v4330_v22  ;;  %v4327_v5 = vadd.f32 %v4326_v62, %v4325_v34 }
0x1753   :  { %v4351_v10 = vadd.f32 %v4350_v38, %v4349_v35  ;;  %v4344_v52 = vadd.f32 %v4343_v23, %v4342_v32  ;;  %v4363_v63 = vsel %vm320_vm0, %v4313_v3, 0.0  ;;  %v4356_v42 = vsel %vm320_vm0, %v4312_v33, 0.0  ;;  %v13752_v23 = vld [vmem:[#allocation25] ss:$0 sm:$0xff] }
0x1754   :  { %v4340_v14 = vrot.slane %v4339_v0, 1  ;;  %v4333_v51 = vrot.slane %v4332_v2, 1  ;;  %v4364_v48 = vrot.slane %v4363_v63, 4  ;;  %v4357_v49 = vrot.slane %v4356_v42, 4 }
0x1755   :  { %v4352_v28 = vrot.slane %v4351_v10, 2  ;;  %v4345_v18 = vrot.slane %v4344_v52, 2  ;;  %v4384_v29 = vsel %vm385_vm2, %v4327_v5, %v4320_v45  ;;  %v4224_v3 = vadd.f32 %v13752_v23, %v15701_v57  ;;  %v4777_v23 = vld [vmem:[#allocation6] sm:$0xff] }
0x1756   :  { %v4334_v8 = vadd.f32 %v4333_v51, %v4332_v2  ;;  %v4365_v40 = vadd.f32 %v4364_v48, %v4363_v63  ;;  %v4358_v12 = vadd.f32 %v4357_v49, %v4356_v42  ;;  %v4341_v22 = vadd.f32 %v4340_v14, %v4339_v0  ;;  %v4701_v42 = vpop.permute.xlu0 %4700 }
0x1757   :  { %v4353_v20 = vadd.f32 %v4352_v28, %v4351_v10  ;;  %v4346_v47 = vadd.f32 %v4345_v18, %v4344_v52  ;;  %13478 = vtanh.f32 %v4224_v3  ;;  %v4932_v5 = vrot.slane %v15727_v44, %v14989_v46  ;;  %v13753_v18 = vld [vmem:[%s17236_s18] ss:$0 sm:$0xff]  ;;  %v4778_v3 = vld [vmem:[#allocation6 + $0x8] sm:$0xff] }
0x1758   :  { %v4366_v35 = vrot.slane %v4365_v40, 2  ;;  %v4385_v32 = vsel %vm387_vm3, %v4334_v8, %v4384_v29  ;;  %v4359_v34 = vrot.slane %v4358_v12, 2  ;;  %v4946_v14 = vrot.slane %v15727_v44, %v15003_v59 }
0x1759   :  { %v4354_v61 = vrot.slane %v4353_v20, 1  ;;  %v4347_v37 = vrot.slane %v4346_v47, 1  ;;  %v4386_v2 = vsel %vm389_vm4, %v4341_v22, %v4385_v32  ;;  %4934 = vbcast.lane.b32.xlu0 %v4932_v5, 256  ;;  %v4960_v51 = vrot.slane %v15727_v44, %v14995_v53  ;;  %v4784_v5 = vld [vmem:[#allocation6 + $0x38] sm:$0xff] }
0x175a   :  { %v4367_v62 = vadd.f32 %v4366_v35, %v4365_v40  ;;  %v4360_v38 = vadd.f32 %v4359_v34, %v4358_v12  ;;  %v4974_v48 = vrot.slane %v15727_v44, %v15023_v36  ;;  %v13754_v12 = vld [vmem:[%s17238_s20] ss:$0 sm:$0xff] }
0x175b   :  { %v4348_v43 = vadd.f32 %v4347_v37, %v4346_v47  ;;  %v4355_v55 = vadd.f32 %v4354_v61, %v4353_v20 }
0x175c   :  { %v4368_v33 = vrot.slane %v4367_v62, 1  ;;  %v4361_v49 = vrot.slane %v4360_v38, 1 }
0x175d   :  { %v4387_v45 = vsel %vm391_vm5, %v4348_v43, %v4386_v2  ;;  %4948 = vbcast.lane.b32.xlu0 %v4946_v14, 256  ;;  %v4779_v2 = vld [vmem:[#allocation6 + $0x10] sm:$0xff] }
0x175e   :  { %v4369_v0 = vadd.f32 %v4368_v33, %v4367_v62  ;;  %v4362_v10 = vadd.f32 %v4361_v49, %v4360_v38  ;;  %v4388_v8 = vsel %vm393_vm6, %v4355_v55, %v4387_v45  ;;  %v13755_v62 = vld [vmem:[#allocation32] ss:$0 sm:$0xff] }
0x175f   :  { %v4781_v45 = vld [vmem:[#allocation6 + $0x20] sm:$0xff] }
0x1760   :  { %v4389_v52 = vsel %vm395_vm7, %v4362_v10, %v4388_v8 }
0x1761   :  { %v4390_v63 = vsel %vm397_vm8, %v4369_v0, %v4389_v52  ;;  %v13479_v57 = vpop.eup %13478  ;;  %4962 = vbcast.lane.b32.xlu0 %v4960_v51, 256  ;;  %v4782_v52 = vld [vmem:[#allocation6 + $0x28] sm:$0xff] }
0x1762   :  { %5080 = vrot.lane.b32.xlu1 %v4390_v63, %s14333_s19  ;;  %12366 = vmatmul.mubr.msk.f32.vlgmr.msra.gmra.mrb[26].mxu1 %vm320_vm0, %v4390_v63 }
0x1763   :  { %12377 = vmatmul.mubr.msk.f32.vlgmr.msra.gmra.mrb[36].mxu0 %vm320_vm0, %v4390_v63  ;;  %13065 = vmatpush3.bf16.msra.mxu1 %v14799_v24 }
0x1764   :  { %13071 = vmatpush3.bf16.msra.mxu0 %v14801_v25  ;;  %13066 = vmatprep.subr.bf16.mxu1 %v17329_v41 }
0x1765   :  { %13072 = vmatprep.subr.bf16.mxu0 %v17329_v41  ;;  %12387 = vmatprep.mubr.msk.f32.mxu1 %vm14329_vm1, %v17328_v13 }
0x1766   :  { %12398 = vmatprep.mubr.msk.f32.mxu0 %vm14329_vm1, %v17328_v13  ;;  %4976 = vbcast.lane.b32.xlu0 %v4974_v48, 256  ;;  %v4928_v48 = vpop.permute.xlu1 %4927 }
0x1767   :  { %13068 = vmatpush3.bf16.msra.mxu1 %v14803_v26 }
0x1768   :  { %13074 = vmatpush3.bf16.msra.mxu0 %v14814_v31  ;;  %13075 = vmatprep.subr.bf16.mxu1 %v17329_v41 }
0x1769   :  { %13082 = vmatprep.subr.bf16.mxu0 %v15202_v27 }
0x176a   :  { %12388 = vmatmul.mubr.msk.f32.vlgmr.msra.gmra.mrb[28].mxu1 %vm320_vm0, %v13479_v57 }
0x176b   :  { %12399 = vmatmul.mubr.msk.f32.vlgmr.msra.gmra.mrb[38].mxu0 %vm320_vm0, %v4390_v63  ;;  %13077 = vmatpush3.bf16.msra.mxu1 %v15181_v50  ;;  %v4783_v63 = vld [vmem:[#allocation6 + $0x30] sm:$0xff] }
0x176c   :  { %13078 = vmatprep.subr.bf16.mxu1 %v17329_v41  ;;  %12409 = vmatprep.mubr.msk.f32.mxu1 %vm14329_vm1, %v17328_v13 }
0x176d   :  { %13084 = vmatpush3.bf16.msra.mxu0 %v15202_v27 }
0x176e   :  { %13086 = vmatprep.subr.bf16.mxu0 %v15206_v16 }
0x176f   :  { %13080 = vmatpush3.bf16.msra.mxu1 %v15188_v21 }
0x1770   :  { %13089 = vmatprep.subr.bf16.mxu1 %v17329_v41 }
0x1771   :  { %13088 = vmatpush3.bf16.msra.mxu0 %v15206_v16 }
0x1772   :  { %12410 = vmatmul.mubr.msk.f32.vlgmr.msra.gmra.mrb[30].mxu1 %vm320_vm0, %v4701_v42  ;;  %13101 = vmatprep.subr.bf16.mxu0 %v17329_v41 }
0x1773   :  { %13091 = vmatpush3.bf16.msra.mxu1 %v14872_v56  ;;  %12440 = vmatprep.mubr.msk.f32.mxu1 %vm14329_vm1, %v17328_v13 }
0x1774   :  { %13092 = vmatprep.subr.bf16.mxu1 %v17329_v41 }
0x1777   :  { %13094 = vmatpush3.bf16.msra.mxu1 %v14876_v60 }
0x1778   :  { %13095 = vmatprep.subr.bf16.mxu1 %v17329_v41 }
0x17cb   :  { %v4935_v51 = vpop.permute.xlu0 %4934 }
0x1835   :  { %v4459_v28 = vpop.f32.mrb[26].mxu1 }
0x1836   :  { %v4460_v40 = vadd.f32 %v13753_v18, %v4459_v28  ;;  %v4531_v20 = vpop.f32.mrb[36].mxu0  ;;  %v12367_v47 = vpop.f32.mrb[27].mxu1 }
0x1837   :  { %v4532_v29 = vadd.f32 %v13754_v12, %v4531_v20  ;;  %v12378_v22 = vpop.f32.mrb[37].mxu0  ;;  %v4949_v28 = vpop.permute.xlu0 %4948 }
0x1838   :  { %4464 = vst.msk [vmem:[#allocation6 + $0x18] sm:$0xff] %vm320_vm0, %v4460_v40  ;;  %v4942_v40 = vpop.permute.xlu1 %4941 }
0x1839   :  { %4536 = vst.msk [vmem:[#allocation7 + $0x18] sm:$0xff] %vm320_vm0, %v4532_v29 }
0x183b   :  { %v4963_v12 = vpop.permute.xlu0 %4962 }
0x183c   :  { %v4956_v22 = vpop.permute.xlu1 %4955 }
0x183d   :  { %v4606_v44 = vpop.f32.mrb[28].mxu1 }
0x183e   :  { %v4676_v35 = vpop.f32.mrb[38].mxu0  ;;  %v12389_v32 = vpop.f32.mrb[29].mxu1 }
0x183f   :  { %v15813_v61 = vadd.f32 %v4676_v35, %v4606_v44  ;;  %v12400_v37 = vpop.f32.mrb[39].mxu0  ;;  %v4780_v0 = vld [vmem:[#allocation6 + $0x18] sm:$0xff] }
0x1845   :  { %v4770_v34 = vpop.f32.mrb[30].mxu1 }
0x1846   :  { %v4771_v43 = vadd.f32 %v13755_v62, %v4770_v34  ;;  %v12411_v38 = vpop.f32.mrb[31].mxu1 }
0x1848   :  { %v4785_v55 = vmul.f32 %v4777_v23, %v4771_v43  ;;  %v4786_v33 = vmul.f32 %v4778_v3, %v4771_v43  ;;  %v4787_v49 = vmul.f32 %v4779_v2, %v4771_v43  ;;  %v4788_v10 = vmul.f32 %v4780_v0, %v4771_v43  ;;  %v4970_v0 = vpop.permute.xlu1 %4969 }
0x1849   :  { %v4789_v8 = vmul.f32 %v4781_v45, %v4771_v43  ;;  %v4790_v57 = vmul.f32 %v4782_v52, %v4771_v43  ;;  %v4791_v42 = vmul.f32 %v4783_v63, %v4771_v43  ;;  %v4792_v14 = vmul.f32 %v4784_v5, %v4771_v43  ;;  %v4977_v43 = vpop.permute.xlu0 %4976 }
0x184a   :  { %12420 = vmatprep.mubr.msk.f32.mxu0 %vm320_vm0, %v4785_v55 }
0x184b   :  { %12421 = vmatmul.mubr.msk.f32.vlgmr.msra.gmra.mrb[40].mxu0 %vm320_vm0, %v4786_v33 }
0x184c   :  { %12423 = vmatprep.mubr.msk.f32.mxu0 %vm320_vm0, %v4787_v49  ;;  %13103 = vmatpush3.bf16.msra.mxu0 %v15035_v11 }
0x184d   :  { %13104 = vmatprep.subr.bf16.mxu0 %v17329_v41 }
0x184f   :  { %12424 = vmatmul.mubr.msk.f32.gmra.mrb[42].mxu0 %vm320_vm0, %v4788_v10 }
0x1850   :  { %12426 = vmatprep.mubr.msk.f32.mxu0 %vm320_vm0, %v4789_v8  ;;  %13106 = vmatpush3.bf16.msra.mxu0 %v15049_v6 }
0x1851   :  { %13113 = vmatprep.subr.bf16.mxu0 %v17329_v41 }
0x1853   :  { %12427 = vmatmul.mubr.msk.f32.gmra.mrb[44].mxu0 %vm320_vm0, %v4790_v57 }
0x1854   :  { %12429 = vmatprep.mubr.msk.f32.mxu0 %vm320_vm0, %v4791_v42 }
0x1857   :  { %12430 = vmatmul.mubr.msk.f32.gmra.mrb[46].mxu0 %vm320_vm0, %v4792_v14 }
0x1858   :  { %12462 = vmatprep.mubr.msk.f32.mxu0 %vm14329_vm1, %v17328_v13 }
0x191e   :  { %v12422_v18 = vpop.f32.mrb[40].mxu0 }
0x191f   :  { %v4883_v20 = vpop.f32.mrb[41].mxu0  ;;  %v4979_v44 = vadd.f32 %v12422_v18, %v4935_v51 }
0x1920   :  { %v4978_v35 = vadd.f32 %v4928_v48, %v4883_v20 }
0x1921   :  { %v4987_v38 = vsel %vm320_vm0, %v4979_v44, -inf }
0x1922   :  { %v12425_v47 = vpop.f32.mrb[42].mxu0  ;;  %v4986_v55 = vsel %vm320_vm0, %v4978_v35, -inf }
0x1923   :  { %v4893_v29 = vpop.f32.mrb[43].mxu0  ;;  %v4981_v23 = vadd.f32 %v12425_v47, %v4949_v28 }
0x1924   :  { %v4980_v33 = vadd.f32 %v4942_v40, %v4893_v29 }
0x1925   :  { %v4989_v57 = vsel %vm320_vm0, %v4981_v23, -inf }
0x1926   :  { %v12428_v32 = vpop.f32.mrb[44].mxu0  ;;  %v4988_v14 = vsel %vm320_vm0, %v4980_v33, -inf }
0x1927   :  { %v4983_v37 = vadd.f32 %v12428_v32, %v4963_v12  ;;  %v4903_v34 = vpop.f32.mrb[45].mxu0 }
0x1928   :  { %v4982_v62 = vadd.f32 %v4956_v22, %v4903_v34 }
0x1929   :  { %v4992_v3 = vsel %vm320_vm0, %v4983_v37, -inf }
0x192a   :  { %v4993_v2 = vmax.f32 %v4987_v38, %v4992_v3  ;;  %v4990_v49 = vsel %vm320_vm0, %v4982_v62, -inf  ;;  %v12431_v45 = vpop.f32.mrb[46].mxu0 }
0x192b   :  { %v4991_v10 = vmax.f32 %v4986_v55, %v4990_v49  ;;  %v4985_v8 = vadd.f32 %v12431_v45, %v4977_v43  ;;  %v4913_v52 = vpop.f32.mrb[47].mxu0 }
0x192c   :  { %v4984_v63 = vadd.f32 %v4970_v0, %v4913_v52 }
0x192d   :  { %v4998_v42 = vmax.f32 %v4991_v10, %v4993_v2  ;;  %v4996_v5 = vsel %vm320_vm0, %v4985_v8, -inf }
0x192e   :  { %v4997_v51 = vmax.f32 %v4989_v57, %v4996_v5  ;;  %v4994_v48 = vsel %vm320_vm0, %v4984_v63, -inf }
0x192f   :  { %v4995_v28 = vmax.f32 %v4988_v14, %v4994_v48 }
0x1931   :  { %v4999_v18 = vmax.f32 %v4995_v28, %v4997_v51 }
0x1933   :  { %v5000_v40 = vmax.f32 %v4998_v42, %v4999_v18 }
0x1935   :  { %v5001_v20 = vsub.f32 %v4978_v35, %v5000_v40  ;;  %v5002_v47 = vsub.f32 %v4979_v44, %v5000_v40  ;;  %v5003_v12 = vsub.f32 %v4980_v33, %v5000_v40  ;;  %v5004_v29 = vsub.f32 %v4981_v23, %v5000_v40 }
0x1936   :  { %v5005_v22 = vsub.f32 %v4982_v62, %v5000_v40  ;;  %v5006_v32 = vsub.f32 %v4983_v37, %v5000_v40  ;;  %v5007_v34 = vsub.f32 %v4984_v63, %v5000_v40  ;;  %v5008_v43 = vsub.f32 %v4985_v8, %v5000_v40 }
0x1937   :  { %v5009_v38 = vmul.f32 1.442695, %v5001_v20  ;;  %v5011_v3 = vmul.f32 1.442695, %v5002_v47  ;;  %v5013_v55 = vmul.f32 1.442695, %v5003_v12 }
0x1938   :  { %v5015_v2 = vmul.f32 1.442695, %v5004_v29  ;;  %v5017_v49 = vmul.f32 1.442695, %v5005_v22  ;;  %v5019_v45 = vmul.f32 1.442695, %v5006_v32 }
0x1939   :  { %13480 = vpow2.f32 %v5009_v38  ;;  %v5021_v0 = vmul.f32 1.442695, %v5007_v34  ;;  %v5023_v44 = vmul.f32 1.442695, %v5008_v43 }
0x193a   :  { %13482 = vpow2.f32 %v5011_v3 }
0x193b   :  { %13484 = vpow2.f32 %v5013_v55 }
0x193c   :  { %13486 = vpow2.f32 %v5015_v2 }
0x193d   :  { %13488 = vpow2.f32 %v5017_v49 }
0x193e   :  { %13490 = vpow2.f32 %v5019_v45 }
0x193f   :  { %13492 = vpow2.f32 %v5021_v0  ;;  %v5049_v0 = vld [vmem:[#allocation7] sm:$0xff] }
0x1940   :  { %13494 = vpow2.f32 %v5023_v44  ;;  %v5050_v44 = vld [vmem:[#allocation7 + $0x8] sm:$0xff] }
0x1943   :  { %v13481_v35 = vpop.eup %13480 }
0x1944   :  { %v13483_v62 = vpop.eup %13482  ;;  %v5025_v37 = vsel %vm320_vm0, %v13481_v35, 0.0 }
0x1945   :  { %v13485_v23 = vpop.eup %13484  ;;  %v5026_v33 = vsel %vm320_vm0, %v13483_v62, 0.0 }
0x1946   :  { %v13487_v10 = vpop.eup %13486  ;;  %v5027_v8 = vadd.f32 %v5026_v33, %v5025_v37  ;;  %v5028_v52 = vsel %vm320_vm0, %v13485_v23, 0.0  ;;  %v5051_v37 = vld [vmem:[#allocation7 + $0x10] sm:$0xff] }
0x1947   :  { %v13489_v63 = vpop.eup %13488  ;;  %v5030_v42 = vsel %vm320_vm0, %v13487_v10, 0.0 }
0x1948   :  { %v5029_v57 = vadd.f32 %v5028_v52, %v5027_v8  ;;  %v13491_v5 = vpop.eup %13490  ;;  %v5032_v51 = vsel %vm320_vm0, %v13489_v63, 0.0 }
0x1949   :  { %v13493_v48 = vpop.eup %13492  ;;  %v5034_v18 = vsel %vm320_vm0, %v13491_v5, 0.0 }
0x194a   :  { %v5031_v14 = vadd.f32 %v5030_v42, %v5029_v57  ;;  %v13495_v40 = vpop.eup %13494  ;;  %v5036_v47 = vsel %vm320_vm0, %v13493_v48, 0.0  ;;  %v5052_v57 = vld [vmem:[#allocation7 + $0x18] sm:$0xff]  ;;  %v5053_v42 = vld [vmem:[#allocation7 + $0x20] sm:$0xff] }
0x194b   :  { %v5038_v29 = vsel %vm320_vm0, %v13495_v40, 0.0 }
0x194c   :  { %v5033_v28 = vadd.f32 %v5032_v51, %v5031_v14 }
0x194e   :  { %v5035_v20 = vadd.f32 %v5034_v18, %v5033_v28 }
0x1950   :  { %v5037_v12 = vadd.f32 %v5036_v47, %v5035_v20 }
0x1952   :  { %v5039_v22 = vadd.f32 %v5038_v29, %v5037_v12 }
0x1954   :  { %13496 = vrcp.f32 %v5039_v22 }
0x195e   :  { %v13497_v32 = vpop.eup %13496 }
0x195f   :  { %v5041_v34 = vmul.f32 %v13497_v32, %v13481_v35  ;;  %v5042_v43 = vmul.f32 %v13497_v32, %v13483_v62  ;;  %v5043_v38 = vmul.f32 %v13497_v32, %v13485_v23  ;;  %v5044_v3 = vmul.f32 %v13497_v32, %v13487_v10  ;;  %v5054_v62 = vld [vmem:[#allocation7 + $0x28] sm:$0xff] }
0x1960   :  { %v5045_v55 = vmul.f32 %v13497_v32, %v13489_v63  ;;  %v5046_v2 = vmul.f32 %v13497_v32, %v13491_v5  ;;  %v5047_v49 = vmul.f32 %v13497_v32, %v13493_v48  ;;  %v5048_v45 = vmul.f32 %v13497_v32, %v13495_v40  ;;  %v5055_v5 = vld [vmem:[#allocation7 + $0x30] sm:$0xff]  ;;  %v5056_v40 = vld [vmem:[#allocation7 + $0x38] sm:$0xff] }
0x1961   :  { %v5057_v33 = vmul.f32 %v5049_v0, %v5041_v34  ;;  %v5058_v8 = vmul.f32 %v5050_v44, %v5042_v43  ;;  %v5059_v52 = vmul.f32 %v5051_v37, %v5043_v38  ;;  %v5060_v14 = vmul.f32 %v5052_v57, %v5044_v3 }
0x1962   :  { %v5061_v10 = vmul.f32 %v5053_v42, %v5045_v55  ;;  %v5062_v28 = vmul.f32 %v5054_v62, %v5046_v2  ;;  %v5063_v47 = vmul.f32 %v5055_v5, %v5047_v49  ;;  %v5064_v22 = vmul.f32 %v5056_v40, %v5048_v45  ;;  %v13756_v2 = vld [vmem:[#allocation22] ss:$0 sm:$0xff]  ;;  %v17352_v62 = vld [vmem:[#allocation50_spill] sm:$0xff] }
0x1963   :  { %v5065_v51 = vsel %vm320_vm0, %v5057_v33, 0.0  ;;  %v5066_v35 = vsel %vm320_vm0, %v5058_v8, 0.0  ;;  %v5068_v63 = vsel %vm320_vm0, %v5059_v52, 0.0  ;;  %v5070_v18 = vsel %vm320_vm0, %v5060_v14, 0.0  ;;  %v5081_v8 = vpop.permute.xlu1 %5080 }
0x1964   :  { %v5067_v23 = vadd.f32 %v5066_v35, %v5065_v51  ;;  %v5072_v12 = vsel %vm320_vm0, %v5061_v10, 0.0  ;;  %v5074_v32 = vsel %vm320_vm0, %v5062_v28, 0.0  ;;  %v5076_v43 = vsel %vm320_vm0, %v5063_v47, 0.0  ;;  %v17350_v51 = vld [vmem:[#allocation55_spill] sm:$0xff]  ;;  %v17351_v35 = vld [vmem:[#allocation49_spill] sm:$0xff] }
0x1965   :  { %v5078_v3 = vsel %vm320_vm0, %v5064_v22, 0.0  ;;  %v15855_v0 = vadd.f32 %v13756_v2, %v15813_v61  ;;  %v13757_v10 = vld [vmem:[#allocation28] ss:$0 sm:$0xff]  ;;  %v17353_v28 = vld [vmem:[#allocation51_spill] sm:$0xff] }
0x1966   :  { %v5069_v48 = vadd.f32 %v5068_v63, %v5067_v23 }
0x1967   :  { %v11574_v49 = vmul.f32 -1.442695, %v15855_v0 }
0x1968   :  { %v5071_v20 = vadd.f32 %v5070_v18, %v5069_v48 }
0x1969   :  { %13498 = vpow2.f32 %v11574_v49 }
0x196a   :  { %v5073_v29 = vadd.f32 %v5072_v12, %v5071_v20 }
0x196c   :  { %v5075_v34 = vadd.f32 %v5074_v32, %v5073_v29 }
0x196e   :  { %v5077_v38 = vadd.f32 %v5076_v43, %v5075_v34 }
0x1970   :  { %v5079_v55 = vadd.f32 %v5078_v3, %v5077_v38 }
0x1972   :  { %5086 = vrot.lane.b32.xlu0 %v5079_v55, %s14333_s19 }
0x1973   :  { %v13499_v44 = vpop.eup %13498 }
0x1974   :  { %v4684_v45 = vadd.f32 1.0, %v13499_v44 }
0x1976   :  { %13500 = vrcp.f32 %v4684_v45  ;;  %v15889_v45 = vld [vmem:[#allocation11] sm:$0xff] }
0x1980   :  { %v15858_v37 = vpop.eup %13500 }
0x1981   :  { %v5084_v33 = vsub.f32 1.0, %v15858_v37  ;;  %v5083_v57 = vmul.f32 %v15858_v37, %v5081_v8 }
0x19e4   :  { %v5087_v52 = vpop.permute.xlu0 %5086 }
0x19e5   :  { %v5089_v42 = vmul.f32 %v5087_v52, %v5084_v33 }
0x19e7   :  { %v5090_v14 = vadd.f32 %v5089_v42, %v5083_v57 }
0x19e9   :  { %5092 = vrot.lane.b32.xlu1 %v5090_v14, %s14332_s9  ;;  %v15894_v14 = vld [vmem:[#allocation11 + $0x8] sm:$0xff] }
0x1a5b   :  { %v5093_v61 = vpop.permute.xlu1 %5092 }
0x1a5c   :  { %12441 = vmatmul.mubr.msk.f32.vlgmr.msra.gmra.mrb[32].mxu1 %vm320_vm0, %v5093_v61 }
0x1a5d   :  { %13097 = vmatpush3.bf16.msra.mxu1 %v17332_v15  ;;  %12451 = vmatprep.mubr.msk.f32.mxu1 %vm14329_vm1, %v17328_v13 }
0x1a5e   :  { %13098 = vmatprep.subr.bf16.mxu1 %v17329_v41 }
0x1a61   :  { %13100 = vmatpush3.bf16.msra.mxu1 %v17350_v51 }
0x1a62   :  { %13107 = vmatprep.subr.bf16.mxu1 %v17329_v41 }
0x1a64   :  { %12452 = vmatmul.mubr.msk.f32.vlgmr.msra.gmra.mrb[34].mxu1 %vm320_vm0, %v5093_v61 }
0x1a65   :  { %13109 = vmatpush3.bf16.msra.mxu1 %v17351_v35  ;;  %12473 = vmatprep.mubr.msk.f32.mxu1 %vm14329_vm1, %v17328_v13 }
0x1a66   :  { %13110 = vmatprep.subr.bf16.mxu1 %v17329_v41 }
0x1a69   :  { %13112 = vmatpush3.bf16.msra.mxu1 %v17352_v62 }
0x1a6a   :  { %13119 = vmatprep.subr.bf16.mxu1 %v17329_v41 }
0x1b2f   :  { %v5162_v23 = vpop.f32.mrb[32].mxu1 }
0x1b30   :  { %v5163_v63 = vadd.f32 %v13757_v10, %v5162_v23  ;;  %v12442_v5 = vpop.f32.mrb[33].mxu1  ;;  %v15897_v23 = vld [vmem:[#allocation11 + $0x10] sm:$0xff] }
0x1b31   :  { %v15901_v5 = vld [vmem:[#allocation11 + $0x20] sm:$0xff] }
0x1b32   :  { %v5167_v48 = vcombine.high %v5163_v63, %v5163_v63  ;;  %v5174_v18 = vrot.slane %v5163_v63, %v17353_v28 }
0x1b34   :  { %v5181_v40 = vrot.slane %v5167_v48, %v17353_v28  ;;  %v5182_v20 = vcombine.high %v5174_v18, %v5174_v18  ;;  %v5190_v47 = vrot.slane %v5174_v18, %v17353_v28  ;;  %v15904_v18 = vld [vmem:[#allocation11 + $0x28] sm:$0xff] }
0x1b36   :  { %v5183_v12 = vcombine.high %v5181_v40, %v5181_v40  ;;  %v5197_v29 = vrot.slane %v5181_v40, %v17353_v28  ;;  %v5204_v22 = vrot.slane %v5182_v20, %v17353_v28  ;;  %v5212_v32 = vcombine.high %v5190_v47, %v5190_v47  ;;  %v15907_v20 = vld [vmem:[#allocation11 + $0x18] sm:$0xff] }
0x1b37   :  { %v5219_v34 = vrot.slane %v5190_v47, %v14911_v39  ;;  %v15883_v43 = vpop.f32.mrb[34].mxu1 }
0x1b38   :  { %v5211_v38 = vrot.slane %v5183_v12, %v17353_v28  ;;  %v5214_v3 = vcombine.high %v5204_v22, %v5204_v22  ;;  %v5223_v55 = vrot.slane %v5204_v22, %v14911_v39  ;;  %v12453_v2 = vpop.f32.mrb[35].mxu1  ;;  %v5227_v49 = vrot.slane %v5212_v32, %v14911_v39  ;;  %v15914_v32 = vld [vmem:[#allocation11 + $0x30] sm:$0xff] }
0x1b39   :  { %v5235_v44 = vrot.slane %v5197_v29, %v14911_v39  ;;  %v5256_v33 = vadd.f32 %v15889_v45, %v5219_v34  ;;  %v5213_v42 = vcombine.high %v5197_v29, %v5197_v29  ;;  %v15911_v29 = vld [vmem:[#allocation11 + $0x38] sm:$0xff] }
0x1b3a   :  { %v5215_v8 = vcombine.high %v5211_v38, %v5211_v38  ;;  %v5231_v52 = vrot.slane %v5214_v3, %v14911_v39  ;;  %v5239_v57 = vrot.slane %v5211_v38, %v14911_v39  ;;  %v5257_v61 = vadd.f32 %v15894_v14, %v5223_v55  ;;  %v13766_v3 = vld [vmem:[#allocation29] ss:$0 sm:$0xff] }
0x1b3b   :  { %v5258_v10 = vadd.f32 %v15897_v23, %v5227_v49  ;;  %13502 = vtanh.f32 %v5256_v33  ;;  %v5260_v48 = vadd.f32 %v15901_v5, %v5235_v44  ;;  %v5243_v12 = vrot.slane %v5213_v42, %v14911_v39 }
0x1b3c   :  { %v5247_v63 = vrot.slane %v5215_v8, %v14911_v39  ;;  %v5261_v40 = vadd.f32 %v15904_v18, %v5239_v57  ;;  %13504 = vtanh.f32 %v5257_v61  ;;  %v5259_v47 = vadd.f32 %v15907_v20, %v5231_v52 }
0x1b3d   :  { %13506 = vtanh.f32 %v5258_v10  ;;  %v5262_v34 = vadd.f32 %v15914_v32, %v5243_v12 }
0x1b3e   :  { %v5263_v22 = vadd.f32 %v15911_v29, %v5247_v63  ;;  %13508 = vtanh.f32 %v5260_v48 }
0x1b3f   :  { %13510 = vtanh.f32 %v5261_v40 }
0x1b40   :  { %13512 = vtanh.f32 %v5259_v47 }
0x1b41   :  { %13514 = vtanh.f32 %v5263_v22 }
0x1b42   :  { %13516 = vtanh.f32 %v5262_v34 }
0x1b45   :  { %v13503_v38 = vpop.eup %13502 }
0x1b46   :  { %v5272_v55 = vmul.f32 %v13766_v3, %v13503_v38  ;;  %v13505_v2 = vpop.eup %13504 }
0x1b47   :  { %v13507_v49 = vpop.eup %13506  ;;  %v5273_v33 = vmul.f32 %v13766_v3, %v13505_v2 }
0x1b48   :  { %v5280_v44 = vsel %vm320_vm0, %v5272_v55, 0.0  ;;  %v5274_v8 = vmul.f32 %v13766_v3, %v13507_v49  ;;  %v13509_v52 = vpop.eup %13508 }
0x1b49   :  { %5281 = vadd.xlane.f32.xlu0 %v5280_v44  ;;  %v5283_v57 = vsel %vm320_vm0, %v5273_v33, 0.0  ;;  %v13511_v42 = vpop.eup %13510  ;;  %v5276_v48 = vmul.f32 %v13766_v3, %v13509_v52 }
0x1b4a   :  { %5284 = vadd.xlane.f32.xlu1 %v5283_v57  ;;  %v13513_v61 = vpop.eup %13512  ;;  %v5286_v10 = vsel %vm320_vm0, %v5274_v8, 0.0  ;;  %v5277_v63 = vmul.f32 %v13766_v3, %v13511_v42  ;;  %v17354_v57 = vld [vmem:[#allocation52_spill] sm:$0xff] }
0x1b4b   :  { %v13515_v40 = vpop.eup %13514  ;;  %v5292_v22 = vsel %vm320_vm0, %v5276_v48, 0.0  ;;  %v5275_v34 = vmul.f32 %v13766_v3, %v13513_v61 }
0x1b4c   :  { %v5295_v47 = vsel %vm320_vm0, %v5277_v63, 0.0  ;;  %v5279_v12 = vmul.f32 %v13766_v3, %v13515_v40  ;;  %v13517_v38 = vpop.eup %13516 }
0x1b4d   :  { %5287 = vadd.xlane.f32.xlu0 %v5286_v10  ;;  %v5289_v2 = vsel %vm320_vm0, %v5275_v34, 0.0  ;;  %v5278_v49 = vmul.f32 %v13766_v3, %v13517_v38 }
0x1b4e   :  { %5296 = vadd.xlane.f32.xlu1 %v5295_v47  ;;  %v5301_v55 = vsel %vm320_vm0, %v5279_v12, 0.0 }
0x1b4f   :  { %v5298_v44 = vsel %vm320_vm0, %v5278_v49, 0.0 }
0x1b51   :  { %5293 = vadd.xlane.f32.xlu0 %v5292_v22 }
0x1b52   :  { %5302 = vadd.xlane.f32.xlu1 %v5301_v55 }
0x1b55   :  { %5290 = vadd.xlane.f32.xlu0 %v5289_v2 }
0x1b59   :  { %5299 = vadd.xlane.f32.xlu0 %v5298_v44 }
0x1bd6   :  { %v5282_v33 = vpop.xlane.xlu0 %5281 }
0x1bd7   :  { %v5285_v8 = vpop.xlane.xlu1 %5284  ;;  %v5315_v61 = vrot.slane %v5282_v33, %v17354_v57 }
0x1bd8   :  { %v5319_v42 = vrot.slane %v5285_v8, %v17354_v57 }
0x1bda   :  { %v5288_v52 = vpop.xlane.xlu0 %5287  ;;  %v5344_v40 = vsel %vm385_vm2, %v5319_v42, %v5315_v61 }
0x1bdb   :  { %v5297_v63 = vpop.xlane.xlu1 %5296  ;;  %v5323_v48 = vrot.slane %v5288_v52, %v17354_v57 }
0x1bdc   :  { %v5335_v34 = vrot.slane %v5297_v63, %v17354_v57 }
0x1bdd   :  { %v5345_v12 = vsel %vm387_vm3, %v5323_v48, %v5344_v40 }
0x1bde   :  { %v5294_v10 = vpop.xlane.xlu0 %5293 }
0x1bdf   :  { %v5331_v22 = vrot.slane %v5294_v10, %v17354_v57  ;;  %v5303_v38 = vpop.xlane.xlu1 %5302 }
0x1be0   :  { %v5343_v8 = vrot.slane %v5303_v38, %v17354_v57 }
0x1be2   :  { %v5291_v47 = vpop.xlane.xlu0 %5290 }
0x1be3   :  { %v5327_v3 = vrot.slane %v5291_v47, %v17354_v57 }
0x1be5   :  { %v5346_v55 = vsel %vm389_vm4, %v5327_v3, %v5345_v12 }
0x1be6   :  { %v5347_v2 = vsel %vm391_vm5, %v5331_v22, %v5346_v55  ;;  %v5300_v49 = vpop.xlane.xlu0 %5299 }
0x1be7   :  { %v5339_v44 = vrot.slane %v5300_v49, %v17354_v57  ;;  %v5348_v33 = vsel %vm393_vm6, %v5335_v34, %v5347_v2 }
0x1be9   :  { %v5349_v52 = vsel %vm395_vm7, %v5339_v44, %v5348_v33 }
0x1bea   :  { %v5350_v42 = vsel %vm397_vm8, %v5343_v8, %v5349_v52 }
0x1beb   :  { %v5352_v10 = vsel %vm475_vm9, %v5350_v42, -1e+30  ;;  %v4374_v42 = vsub.f32 1.0, %v15709_v1 }
0x1bec   :  { %v5353_v63 = vsel %vm411_vm10, %v5352_v10, -inf }
0x1bed   :  { %5354 = vmax.xlane.f32.xlu0 %v5353_v63 }
0x1c7a   :  { %v5355_v48 = vpop.xlane.xlu0 %5354 }
0x1c7b   :  { %v5356_v40 = vsub.f32 %v5352_v10, %v5355_v48  ;;  %v17356_v10 = vld [vmem:[#allocation54_spill] sm:$0xff] }
0x1c7c   :  { %v15954_v63 = vmul.f32 %v4374_v42, %v17356_v10 }
0x1c7d   :  { %v5357_v47 = vmul.f32 1.442695, %v5356_v40 }
0x1c7e   :  { %17357 = vst [vmem:[#allocation55_spill] sm:$0xff] %v15954_v63 }
0x1c7f   :  { %13518 = vpow2.f32 %v5357_v47 }
0x1c89   :  { %v13519_v3 = vpop.eup %13518 }
0x1c8a   :  { %v5359_v12 = vsel %vm411_vm10, %v13519_v3, 0.0 }
0x1c8b   :  { %5360 = vadd.xlane.f32.xlu1 %v5359_v12 }
0x1d18   :  { %v5361_v22 = vpop.xlane.xlu1 %5360 }
0x1d19   :  { %13520 = vrcp.f32 %v5361_v22 }
0x1d1a   :  { %13522 = vtanh.f32 %v15855_v0 }
0x1d23   :  { %v13521_v34 = vpop.eup %13520 }
0x1d24   :  { %v5363_v38 = vmul.f32 %v13521_v34, %v13519_v3  ;;  %v13523_v3 = vpop.eup %13522 }
0x1d26   :  { %5788 = vst.msk [vmem:[#allocation37 + $0x18] sm:$0xff] %vm411_vm10, %v5363_v38  ;;  %v5374_v55 = vrot.slane %v5363_v38, %v14989_v46  ;;  %v5367_v2 = vrot.slane %v5363_v38, %v14911_v39  ;;  %v5402_v49 = vrot.slane %v5363_v38, %v14995_v53  ;;  %v5381_v44 = vrot.slane %v5363_v38, %v14998_v54 }
0x1d27   :  { %v5388_v33 = vrot.slane %v5363_v38, %v15003_v59  ;;  %v5395_v8 = vrot.slane %v5363_v38, %v15007_v4  ;;  %v5409_v52 = vrot.slane %v5363_v38, %v15011_v7  ;;  %v5643_v48 = vmul.f32 %v5363_v38, %v15954_v63 }
0x1d28   :  { %5376 = vbcast.lane.b32.xlu0 %v5374_v55, 256  ;;  %5369 = vbcast.lane.b32.xlu1 %v5367_v2, 256  ;;  %v5416_v47 = vrot.slane %v5363_v38, %v15023_v36 }
0x1d29   :  { %v5644_v40 = vsel %vm411_vm10, %v5643_v48, -inf }
0x1d2c   :  { %5404 = vbcast.lane.b32.xlu0 %v5402_v49, 256  ;;  %5383 = vbcast.lane.b32.xlu1 %v5381_v44, 256 }
0x1d30   :  { %5390 = vbcast.lane.b32.xlu1 %v5388_v33, 256 }
0x1d34   :  { %5397 = vbcast.lane.b32.xlu1 %v5395_v8, 256 }
0x1d38   :  { %5411 = vbcast.lane.b32.xlu1 %v5409_v52, 256 }
0x1d4b   :  { %5645 = vmax.xlane.f32.xlu0 %v5644_v40 }
0x1d61   :  { %5418 = vbcast.lane.b32.xlu0 %v5416_v47, 256 }
0x1d65   :  { %4690 = vrot.lane.b32.xlu0 %v13523_v3, %s14331_s29 }
0x1d9a   :  { %v5370_v12 = vpop.permute.xlu1 %5369  ;;  %v5377_v1 = vpop.permute.xlu0 %5376 }
0x1d9b   :  { %v5421_v2 = vmul.f32 %v15894_v14, %v5377_v1  ;;  %v5420_v49 = vmul.f32 %v15889_v45, %v5370_v12 }
0x1d9d   :  { %v5435_v38 = vsel %vm320_vm0, %v5421_v2, 0.0  ;;  %v5428_v8 = vsel %vm320_vm0, %v5420_v49, 0.0 }
0x1d9e   :  { %v5384_v22 = vpop.permute.xlu1 %5383  ;;  %v5405_v42 = vpop.permute.xlu0 %5404  ;;  %v5436_v47 = vrot.slane %v5435_v38, 4  ;;  %v5429_v14 = vrot.slane %v5428_v8, 4 }
0x1d9f   :  { %v5422_v44 = vmul.f32 %v15897_v23, %v5384_v22 }
0x1da0   :  { %v5437_v22 = vadd.f32 %v5436_v47, %v5435_v38 }
0x1da1   :  { %v5442_v10 = vsel %vm320_vm0, %v5422_v44, 0.0 }
0x1da2   :  { %v5391_v34 = vpop.permute.xlu1 %5390  ;;  %v5443_v3 = vrot.slane %v5442_v10, 4  ;;  %v5438_v63 = vrot.slane %v5437_v22, 2 }
0x1da3   :  { %v5423_v33 = vmul.f32 %v15907_v20, %v5391_v34  ;;  %v5425_v20 = vmul.f32 %v15904_v18, %v5405_v42  ;;  %v5430_v34 = vadd.f32 %v5429_v14, %v5428_v8 }
0x1da4   :  { %v5444_v2 = vadd.f32 %v5443_v3, %v5442_v10  ;;  %v5439_v42 = vadd.f32 %v5438_v63, %v5437_v22 }
0x1da5   :  { %v5449_v40 = vsel %vm320_vm0, %v5423_v33, 0.0  ;;  %v5431_v61 = vrot.slane %v5430_v34, 2 }
0x1da6   :  { %v5398_v55 = vpop.permute.xlu1 %5397  ;;  %v5445_v57 = vrot.slane %v5444_v2, 2 }
0x1da7   :  { %v5424_v0 = vmul.f32 %v15901_v5, %v5398_v55  ;;  %v5450_v5 = vrot.slane %v5449_v40, 4  ;;  %v5463_v55 = vsel %vm320_vm0, %v5425_v20, 0.0  ;;  %v5432_v28 = vadd.f32 %v5431_v61, %v5430_v34 }
0x1da8   :  { %v5446_v8 = vadd.f32 %v5445_v57, %v5444_v2 }
0x1da9   :  { %v5456_v45 = vsel %vm320_vm0, %v5424_v0, 0.0  ;;  %v5451_v49 = vadd.f32 %v5450_v5, %v5449_v40  ;;  %v5464_v0 = vrot.slane %v5463_v55, 4  ;;  %v5433_v20 = vrot.slane %v5432_v28, 1 }
0x1daa   :  { %v5412_v52 = vpop.permute.xlu1 %5411  ;;  %v5457_v12 = vrot.slane %v5456_v45, 4  ;;  %v5447_v35 = vrot.slane %v5446_v8, 1 }
0x1dab   :  { %v5426_v23 = vmul.f32 %v15914_v32, %v5412_v52  ;;  %v5452_v32 = vrot.slane %v5451_v49, 2  ;;  %v5465_v62 = vadd.f32 %v5464_v0, %v5463_v55  ;;  %v5434_v55 = vadd.f32 %v5433_v20, %v5432_v28 }
0x1dac   :  { %v5458_v44 = vadd.f32 %v5457_v12, %v5456_v45 }
0x1dad   :  { %v5470_v1 = vsel %vm320_vm0, %v5426_v23, 0.0  ;;  %v5453_v47 = vadd.f32 %v5452_v32, %v5451_v49  ;;  %v5440_v23 = vrot.slane %v5439_v42, 1  ;;  %v5466_v3 = vrot.slane %v5465_v62, 2 }
0x1dae   :  { %v5471_v33 = vrot.slane %v5470_v1, 4  ;;  %v5459_v52 = vrot.slane %v5458_v44, 2 }
0x1daf   :  { %v5454_v61 = vrot.slane %v5453_v47, 1  ;;  %v5467_v2 = vadd.f32 %v5466_v3, %v5465_v62 }
0x1db0   :  { %v5472_v18 = vadd.f32 %v5471_v33, %v5470_v1  ;;  %v5460_v10 = vadd.f32 %v5459_v52, %v5458_v44  ;;  %v5441_v1 = vadd.f32 %v5440_v23, %v5439_v42  ;;  %v5448_v44 = vadd.f32 %v5447_v35, %v5446_v8 }
0x1db1   :  { %v5455_v33 = vadd.f32 %v5454_v61, %v5453_v47 }
0x1db2   :  { %v5473_v40 = vrot.slane %v5472_v18, 2  ;;  %v5461_v34 = vrot.slane %v5460_v10, 1 }
0x1db4   :  { %v5474_v57 = vadd.f32 %v5473_v40, %v5472_v18  ;;  %v5462_v32 = vadd.f32 %v5461_v34, %v5460_v10 }
0x1db6   :  { %v5475_v52 = vrot.slane %v5474_v57, 1 }
0x1db8   :  { %v5476_v28 = vadd.f32 %v5475_v52, %v5474_v57 }
0x1dd8   :  { %v5646_v38 = vpop.xlane.xlu0 %5645 }
0x1dd9   :  { %vm5647_vm11 = vcmp.eq.f32.partialorder %v5643_v48, %v5646_v38  ;;  %v5562_v38 = vsel %vm385_vm2, %v5441_v1, %v5434_v55 }
0x1dda   :  { %v5648_v14 = vsel %vm5647_vm11, %v14959_v30, 8  ;;  %vm6191_vm11 = vcmp.lt.s32.totalorder %v14904_v19, 4 }
0x1ddb   :  { %v5649_v45 = vsel %vm411_vm10, %v5648_v14, 2147483647  ;;  %v5468_v14 = vrot.slane %v5467_v2, 1 }
0x1ddc   :  { %v5419_v5 = vpop.permute.xlu0 %5418  ;;  %v5651_v12 = vshra.s32 %v5649_v45, 16  ;;  %v5650_v10 = vand.u32 65535, %v5649_v45 }
0x1ddd   :  { %v5427_v63 = vmul.f32 %v15911_v29, %v5419_v5  ;;  %v5563_v5 = vsel %vm387_vm3, %v5448_v44, %v5562_v38  ;;  %v5469_v62 = vadd.f32 %v5468_v14, %v5467_v2  ;;  %v17358_v14 = vmov -1e+30  }
0x1dde   :  { %v5653_v22 = vcvt.s32.f32 %v5651_v12  ;;  %v5564_v18 = vsel %vm389_vm4, %v5455_v33, %v5563_v5  ;;  %v5652_v12 = vcvt.s32.f32 %v5650_v10 }
0x1ddf   :  { %v5477_v48 = vsel %vm320_vm0, %v5427_v63, 0.0  ;;  %v5565_v42 = vsel %vm391_vm5, %v5462_v32, %v5564_v18 }
0x1de0   :  { %v5478_v49 = vrot.slane %v5477_v48, 4  ;;  %5654 = vmin.xlane.f32.xlu1 %v5653_v22  ;;  %v5566_v35 = vsel %vm393_vm6, %v5469_v62, %v5565_v42  ;;  %v4691_v61 = vpop.permute.xlu0 %4690  ;;  %v17359_v62 = vld [vmem:[#allocation57_spill] sm:$0xff] }
0x1de1   :  { %v5567_v8 = vsel %vm395_vm7, %v5476_v28, %v5566_v35  ;;  %v4693_v34 = vmul.f32 %v15858_v37, %v4691_v61 }
0x1de2   :  { %v5479_v0 = vadd.f32 %v5478_v49, %v5477_v48 }
0x1de4   :  { %v5480_v29 = vrot.slane %v5479_v0, 2 }
0x1de6   :  { %v5481_v40 = vadd.f32 %v5480_v29, %v5479_v0 }
0x1de8   :  { %v5482_v23 = vrot.slane %v5481_v40, 1 }
0x1dea   :  { %v5483_v20 = vadd.f32 %v5482_v23, %v5481_v40  ;;  %v4688_v23 = vmul.f32 %v15858_v37, %v17359_v62  ;;  %v13768_v37 = vld [vmem:[#allocation8 + $0x18] sm:$0xff] }
0x1deb   :  { %v13772_v62 = vld [vmem:[#allocation8 + $0x38] sm:$0xff] }
0x1dec   :  { %v5568_v47 = vsel %vm397_vm8, %v5483_v20, %v5567_v8 }
0x1ded   :  { %12463 = vmatmul.mubr.msk.f32.vlgmr.msra.gmra.mrb[48].mxu0 %vm320_vm0, %v5568_v47 }
0x1dee   :  { %13115 = vmatpush3.bf16.msra.mxu0 %v14786_v9  ;;  %12484 = vmatprep.mubr.msk.f32.mxu0 %vm14329_vm1, %v17328_v13 }
0x1def   :  { %13116 = vmatprep.subr.bf16.mxu0 %v17329_v41 }
0x1df2   :  { %13118 = vmatpush3.bf16.msra.mxu0 %v14794_v17 }
0x1df3   :  { %13125 = vmatprep.subr.bf16.mxu0 %v17329_v41 }
0x1e6d   :  { %v5655_v3 = vpop.xlane.xlu1 %5654 }
0x1e6e   :  { %vm5656_vm12 = vcmp.eq.f32.partialorder %v5653_v22, %v5655_v3  ;;  %v5661_v55 = vcvt.f32.s32 %v5655_v3  ;;  %v13767_v3 = vld [vmem:[#allocation8] sm:$0xff] }
0x1e6f   :  { %v5657_v63 = vsel %vm5656_vm12, %v5652_v12, inf  ;;  %vm6192_vm12 = vmand %vm6191_vm11, %vm473_vm15 }
0x1e70   :  { %5658 = vmin.xlane.f32.xlu0 %v5657_v63  ;;  %v5662_v49 = vshll.u32 %v5661_v55, 16  ;;  %v16022_v29 = vsel %vm6192_vm12, 0.0, %v17358_v14 }
0x1e71   :  { %v6342_v5 = vrot.slane %v16022_v29, %v14911_v39  ;;  %v6356_v40 = vrot.slane %v16022_v29, %v14998_v54  ;;  %v6370_v20 = vrot.slane %v16022_v29, %v15007_v4  ;;  %v6384_v8 = vrot.slane %v16022_v29, %v15011_v7 }
0x1e86   :  { %4695 = vrot.lane.b32.xlu0 %v4693_v34, %s14332_s9 }
0x1ec0   :  { %v5637_v57 = vpop.f32.mrb[48].mxu0 }
0x1ec1   :  { %v15996_v48 = vadd.f32 %v5637_v57, %v15883_v43  ;;  %v12464_v1 = vpop.f32.mrb[49].mxu0 }
0x1efd   :  { %v5659_v2 = vpop.xlane.xlu0 %5658 }
0x1efe   :  { %v5660_v44 = vcvt.f32.s32 %v5659_v2 }
0x1f00   :  { %v5663_v45 = vadd.s32 %v5662_v49, %v5660_v44  ;;  %v13769_v49 = vld [vmem:[#allocation8 + $0x8] sm:$0xff] }
0x1f01   :  { %v4696_v28 = vpop.permute.xlu0 %4695 }
0x1f02   :  { %vm5664_vm14 = vcmp.eq.s32.totalorder %v14959_v30, %v5663_v45  ;;  %11588 = vst.msk [vmem:[%s17330_s13 + $0x18] sm:$0xff] %vm1532_vm13, %v5663_v45  ;;  %v16036_v35 = vadd.f32 %v4696_v28, %v4688_v23  ;;  %v13770_v45 = vld [vmem:[#allocation8 + $0x28] sm:$0xff] }
0x1f03   :  { %v16004_v22 = vsel %vm5664_vm14, 1.0, %v17328_v13 }
0x1f04   :  { %v5691_v43 = vrot.slane %v16004_v22, %v15003_v59  ;;  %v5670_v33 = vrot.slane %v16004_v22, %v14911_v39  ;;  %v5705_v0 = vrot.slane %v16004_v22, %v14995_v53  ;;  %v5677_v32 = vrot.slane %v16004_v22, %v14989_v46  ;;  %17360 = vst [vmem:[#allocation54_spill] sm:$0xff] %v16036_v35 }
0x1f05   :  { %v5719_v52 = vrot.slane %v16004_v22, %v15023_v36  ;;  %v5684_v38 = vrot.slane %v16004_v22, %v14998_v54  ;;  %v5698_v18 = vrot.slane %v16004_v22, %v15007_v4  ;;  %v5712_v42 = vrot.slane %v16004_v22, %v15011_v7 }
0x1f06   :  { %5693 = vbcast.lane.b32.xlu0 %v5691_v43, 256  ;;  %5672 = vbcast.lane.b32.xlu1 %v5670_v33, 256 }
0x1f0a   :  { %5707 = vbcast.lane.b32.xlu0 %v5705_v0, 256  ;;  %5679 = vbcast.lane.b32.xlu1 %v5677_v32, 256 }
0x1f0e   :  { %5721 = vbcast.lane.b32.xlu0 %v5719_v52, 256  ;;  %5686 = vbcast.lane.b32.xlu1 %v5684_v38, 256 }
0x1f12   :  { %5700 = vbcast.lane.b32.xlu1 %v5698_v18, 256  ;;  %6344 = vbcast.lane.b32.xlu0 %v6342_v5, 256 }
0x1f16   :  { %5714 = vbcast.lane.b32.xlu1 %v5712_v42, 256  ;;  %6358 = vbcast.lane.b32.xlu0 %v6356_v40, 256  ;;  %v13771_v42 = vld [vmem:[#allocation8 + $0x10] sm:$0xff] }
0x1f1a   :  { %6117 = vrot.lane.b32.xlu1 %v16036_v35, %s14333_s19  ;;  %6372 = vbcast.lane.b32.xlu0 %v6370_v20, 256 }
0x1f1e   :  { %6386 = vbcast.lane.b32.xlu0 %v6384_v8, 256 }
0x1f78   :  { %v5673_v47 = vpop.permute.xlu1 %5672  ;;  %v5694_v10 = vpop.permute.xlu0 %5693 }
0x1f79   :  { %v5723_v12 = vmul.f32 %v13767_v3, %v5673_v47  ;;  %v5726_v63 = vmul.f32 %v13768_v37, %v5694_v10 }
0x1f7b   :  { %v5731_v61 = vsel %vm320_vm0, %v5723_v12, 0.0  ;;  %v5752_v34 = vsel %vm320_vm0, %v5726_v63, 0.0 }
0x1f7c   :  { %v5732_v57 = vrot.slane %v5731_v61, 4  ;;  %v5753_v1 = vrot.slane %v5752_v34, 4  ;;  %v5680_v55 = vpop.permute.xlu1 %5679  ;;  %v5708_v2 = vpop.permute.xlu0 %5707 }
0x1f7d   :  { %v5724_v44 = vmul.f32 %v13769_v49, %v5680_v55  ;;  %v5728_v43 = vmul.f32 %v13770_v45, %v5708_v2 }
0x1f7e   :  { %v5733_v33 = vadd.f32 %v5732_v57, %v5731_v61  ;;  %v5754_v52 = vadd.f32 %v5753_v1, %v5752_v34  ;;  %v13773_v57 = vld [vmem:[#allocation8 + $0x20] sm:$0xff] }
0x1f7f   :  { %v5738_v0 = vsel %vm320_vm0, %v5724_v44, 0.0  ;;  %v5766_v32 = vsel %vm320_vm0, %v5728_v43, 0.0 }
0x1f80   :  { %v5739_v38 = vrot.slane %v5738_v0, 4  ;;  %v5687_v5 = vpop.permute.xlu1 %5686  ;;  %v5722_v18 = vpop.permute.xlu0 %5721  ;;  %v5767_v40 = vrot.slane %v5766_v32, 4  ;;  %v5734_v20 = vrot.slane %v5733_v33, 2  ;;  %v5755_v3 = vrot.slane %v5754_v52, 2 }
0x1f81   :  { %v5725_v28 = vmul.f32 %v13771_v42, %v5687_v5  ;;  %v5730_v23 = vmul.f32 %v13772_v62, %v5722_v18 }
0x1f82   :  { %v5740_v8 = vadd.f32 %v5739_v38, %v5738_v0  ;;  %v5768_v63 = vadd.f32 %v5767_v40, %v5766_v32  ;;  %v5735_v55 = vadd.f32 %v5734_v20, %v5733_v33  ;;  %v5756_v5 = vadd.f32 %v5755_v3, %v5754_v52 }
0x1f83   :  { %v5745_v47 = vsel %vm320_vm0, %v5725_v28, 0.0  ;;  %v5780_v10 = vsel %vm320_vm0, %v5730_v23, 0.0  ;;  %v13774_v28 = vld [vmem:[#allocation8 + $0x30] sm:$0xff] }
0x1f84   :  { %v5741_v12 = vrot.slane %v5740_v8, 2  ;;  %v5701_v37 = vpop.permute.xlu1 %5700  ;;  %v5746_v61 = vrot.slane %v5745_v47, 4  ;;  %v5781_v34 = vrot.slane %v5780_v10, 4  ;;  %v5769_v18 = vrot.slane %v5768_v63, 2 }
0x1f85   :  { %v5727_v1 = vmul.f32 %v13773_v57, %v5701_v37  ;;  %v5736_v23 = vrot.slane %v5735_v55, 1 }
0x1f86   :  { %v5742_v2 = vadd.f32 %v5741_v12, %v5740_v8  ;;  %v5747_v49 = vadd.f32 %v5746_v61, %v5745_v47  ;;  %v5782_v44 = vadd.f32 %v5781_v34, %v5780_v10  ;;  %v5757_v47 = vrot.slane %v5756_v5, 1 }
0x1f87   :  { %v5759_v45 = vsel %vm320_vm0, %v5727_v1, 0.0  ;;  %v5770_v10 = vadd.f32 %v5769_v18, %v5768_v63  ;;  %v5737_v61 = vadd.f32 %v5736_v23, %v5735_v55 }
0x1f88   :  { %v5743_v43 = vrot.slane %v5742_v2, 1  ;;  %v5760_v0 = vrot.slane %v5759_v45, 4  ;;  %v5715_v38 = vpop.permute.xlu1 %5714  ;;  %v5748_v42 = vrot.slane %v5747_v49, 2  ;;  %v5783_v35 = vrot.slane %v5782_v44, 2 }
0x1f89   :  { %v5729_v62 = vmul.f32 %v13774_v28, %v5715_v38 }
0x1f8a   :  { %v5761_v32 = vadd.f32 %v5760_v0, %v5759_v45  ;;  %v5749_v40 = vadd.f32 %v5748_v42, %v5747_v49  ;;  %v5744_v33 = vadd.f32 %v5743_v43, %v5742_v2  ;;  %v5784_v3 = vadd.f32 %v5783_v35, %v5782_v44  ;;  %v13775_v43 = vld [vmem:[#allocation25] ss:$0 sm:$0xff] }
0x1f8b   :  { %v5773_v37 = vsel %vm320_vm0, %v5729_v62, 0.0  ;;  %v5758_v45 = vadd.f32 %v5757_v47, %v5756_v5  ;;  %v5771_v49 = vrot.slane %v5770_v10, 1  ;;  %v5641_v62 = vadd.f32 %v13775_v43, %v15996_v48 }
0x1f8c   :  { %v5762_v20 = vrot.slane %v5761_v32, 2  ;;  %v5774_v8 = vrot.slane %v5773_v37, 4  ;;  %v5750_v12 = vrot.slane %v5749_v40, 1  ;;  %v5801_v1 = vsel %vm385_vm2, %v5744_v33, %v5737_v61  ;;  %v6118_v33 = vpop.permute.xlu1 %6117  ;;  %v13776_v61 = vld [vmem:[%s17236_s18] ss:$0 sm:$0xff] }
0x1f8d   :  { %v5785_v63 = vrot.slane %v5784_v3, 1  ;;  %v5772_v35 = vadd.f32 %v5771_v49, %v5770_v10  ;;  %13524 = vtanh.f32 %v5641_v62  ;;  %v6377_v47 = vrot.slane %v16022_v29, %v14995_v53 }
0x1f8e   :  { %v5763_v34 = vadd.f32 %v5762_v20, %v5761_v32  ;;  %v5775_v57 = vadd.f32 %v5774_v8, %v5773_v37  ;;  %v5751_v52 = vadd.f32 %v5750_v12, %v5749_v40  ;;  %v6349_v20 = vrot.slane %v16022_v29, %v14989_v46 }
0x1f8f   :  { %v5786_v32 = vadd.f32 %v5785_v63, %v5784_v3  ;;  %v6363_v8 = vrot.slane %v16022_v29, %v15003_v59  ;;  %v6391_v10 = vrot.slane %v16022_v29, %v15023_v36  ;;  %v13777_v3 = vld [vmem:[%s17238_s20] ss:$0 sm:$0xff] }
0x1f90   :  { %v5764_v38 = vrot.slane %v5763_v34, 1  ;;  %v5776_v28 = vrot.slane %v5775_v57, 2  ;;  %v5802_v0 = vsel %vm387_vm3, %v5751_v52, %v5801_v1  ;;  %6351 = vbcast.lane.b32.xlu1 %v6349_v20, 256  ;;  %v6194_v63 = vld [vmem:[#allocation6] sm:$0xff] }
0x1f91   :  { %v5803_v55 = vsel %vm389_vm4, %v5758_v45, %v5802_v0 }
0x1f92   :  { %v5765_v42 = vadd.f32 %v5764_v38, %v5763_v34  ;;  %v5777_v2 = vadd.f32 %v5776_v28, %v5775_v57 }
0x1f94   :  { %v5778_v18 = vrot.slane %v5777_v2, 1  ;;  %v5804_v23 = vsel %vm391_vm5, %v5765_v42, %v5803_v55  ;;  %6365 = vbcast.lane.b32.xlu1 %v6363_v8, 256  ;;  %v6195_v55 = vld [vmem:[#allocation6 + $0x8] sm:$0xff] }
0x1f95   :  { %v5805_v5 = vsel %vm393_vm6, %v5772_v35, %v5804_v23  ;;  %v6196_v35 = vld [vmem:[#allocation6 + $0x10] sm:$0xff] }
0x1f96   :  { %v5779_v44 = vadd.f32 %v5778_v18, %v5777_v2  ;;  %v13778_v2 = vld [vmem:[#allocation32] ss:$0 sm:$0xff] }
0x1f97   :  { %v13525_v48 = vpop.eup %13524 }
0x1f98   :  { %v5806_v40 = vsel %vm395_vm7, %v5779_v44, %v5805_v5  ;;  %6379 = vbcast.lane.b32.xlu1 %v6377_v47, 256  ;;  %v6201_v47 = vld [vmem:[#allocation6 + $0x38] sm:$0xff] }
0x1f99   :  { %v5807_v37 = vsel %vm397_vm8, %v5786_v32, %v5806_v40  ;;  %v6197_v32 = vld [vmem:[#allocation6 + $0x18] sm:$0xff] }
0x1f9a   :  { %6497 = vrot.lane.b32.xlu0 %v5807_v37, %s14333_s19  ;;  %12474 = vmatmul.mubr.msk.f32.vlgmr.msra.gmra.mrb[36].mxu1 %vm320_vm0, %v5807_v37 }
0x1f9b   :  { %12485 = vmatmul.mubr.msk.f32.vlgmr.msra.gmra.mrb[50].mxu0 %vm320_vm0, %v5807_v37  ;;  %13121 = vmatpush3.bf16.msra.mxu1 %v14799_v24 }
0x1f9c   :  { %13127 = vmatpush3.bf16.msra.mxu0 %v14801_v25  ;;  %13122 = vmatprep.subr.bf16.mxu1 %v17329_v41 }
0x1f9d   :  { %13128 = vmatprep.subr.bf16.mxu0 %v17329_v41  ;;  %12495 = vmatprep.mubr.msk.f32.mxu1 %vm14329_vm1, %v17328_v13 }
0x1f9e   :  { %12506 = vmatprep.mubr.msk.f32.mxu0 %vm14329_vm1, %v17328_v13  ;;  %6393 = vbcast.lane.b32.xlu1 %v6391_v10, 256 }
0x1f9f   :  { %13124 = vmatpush3.bf16.msra.mxu1 %v14803_v26 }
0x1fa0   :  { %13130 = vmatpush3.bf16.msra.mxu0 %v14814_v31  ;;  %13131 = vmatprep.subr.bf16.mxu1 %v17329_v41 }
0x1fa1   :  { %13138 = vmatprep.subr.bf16.mxu0 %v15202_v27 }
0x1fa2   :  { %12496 = vmatmul.mubr.msk.f32.vlgmr.msra.gmra.mrb[38].mxu1 %vm320_vm0, %v13525_v48  ;;  %v6199_v48 = vld [vmem:[#allocation6 + $0x28] sm:$0xff] }
0x1fa3   :  { %12507 = vmatmul.mubr.msk.f32.vlgmr.msra.gmra.mrb[52].mxu0 %vm320_vm0, %v5807_v37  ;;  %13133 = vmatpush3.bf16.msra.mxu1 %v15181_v50 }
0x1fa4   :  { %13134 = vmatprep.subr.bf16.mxu1 %v17329_v41  ;;  %12517 = vmatprep.mubr.msk.f32.mxu1 %vm14329_vm1, %v17328_v13 }
0x1fa5   :  { %13140 = vmatpush3.bf16.msra.mxu0 %v15202_v27 }
0x1fa6   :  { %13142 = vmatprep.subr.bf16.mxu0 %v15206_v16 }
0x1fa7   :  { %13136 = vmatpush3.bf16.msra.mxu1 %v15188_v21 }
0x1fa8   :  { %13145 = vmatprep.subr.bf16.mxu1 %v17329_v41 }
0x1fa9   :  { %13144 = vmatpush3.bf16.msra.mxu0 %v15206_v16 }
0x1faa   :  { %12518 = vmatmul.mubr.msk.f32.vlgmr.msra.gmra.mrb[40].mxu1 %vm320_vm0, %v6118_v33  ;;  %13157 = vmatprep.subr.bf16.mxu0 %v17329_v41  ;;  %v6200_v33 = vld [vmem:[#allocation6 + $0x30] sm:$0xff] }
0x1fab   :  { %13147 = vmatpush3.bf16.msra.mxu1 %v14872_v56  ;;  %12548 = vmatprep.mubr.msk.f32.mxu1 %vm14329_vm1, %v17328_v13 }
0x1fac   :  { %13148 = vmatprep.subr.bf16.mxu1 %v17329_v41 }
0x1faf   :  { %13150 = vmatpush3.bf16.msra.mxu1 %v14876_v60 }
0x1fb0   :  { %13151 = vmatprep.subr.bf16.mxu1 %v17329_v41 }
0x206d   :  { %v5876_v12 = vpop.f32.mrb[36].mxu1 }
0x206e   :  { %v5877_v34 = vadd.f32 %v13776_v61, %v5876_v12  ;;  %v5948_v57 = vpop.f32.mrb[50].mxu0  ;;  %v12475_v52 = vpop.f32.mrb[37].mxu1 }
0x206f   :  { %v5949_v1 = vadd.f32 %v13777_v3, %v5948_v57  ;;  %v12486_v38 = vpop.f32.mrb[51].mxu0  ;;  %v6352_v12 = vpop.permute.xlu1 %6351 }
0x2070   :  { %5881 = vst.msk [vmem:[#allocation6 + $0x20] sm:$0xff] %vm320_vm0, %v5877_v34  ;;  %v6345_v61 = vpop.permute.xlu0 %6344 }
0x2071   :  { %5953 = vst.msk [vmem:[#allocation7 + $0x20] sm:$0xff] %vm320_vm0, %v5949_v1 }
0x2073   :  { %v6366_v34 = vpop.permute.xlu1 %6365 }
0x2074   :  { %v6359_v52 = vpop.permute.xlu0 %6358 }
0x2075   :  { %v6023_v29 = vpop.f32.mrb[38].mxu1 }
0x2076   :  { %v6093_v28 = vpop.f32.mrb[52].mxu0  ;;  %v12497_v45 = vpop.f32.mrb[39].mxu1 }
0x2077   :  { %v16108_v49 = vadd.f32 %v6093_v28, %v6023_v29  ;;  %v12508_v0 = vpop.f32.mrb[53].mxu0  ;;  %v6198_v40 = vld [vmem:[#allocation6 + $0x20] sm:$0xff]  ;;  %v6380_v38 = vpop.permute.xlu1 %6379 }
0x2078   :  { %v6373_v28 = vpop.permute.xlu0 %6372 }
0x207d   :  { %v6187_v42 = vpop.f32.mrb[40].mxu1 }
0x207e   :  { %v6188_v43 = vadd.f32 %v13778_v2, %v6187_v42  ;;  %v12519_v62 = vpop.f32.mrb[41].mxu1 }
0x2080   :  { %v6202_v18 = vmul.f32 %v6194_v63, %v6188_v43  ;;  %v6203_v23 = vmul.f32 %v6195_v55, %v6188_v43  ;;  %v6204_v44 = vmul.f32 %v6196_v35, %v6188_v43  ;;  %v6205_v5 = vmul.f32 %v6197_v32, %v6188_v43  ;;  %v6394_v63 = vpop.permute.xlu1 %6393 }
0x2081   :  { %v6206_v37 = vmul.f32 %v6198_v40, %v6188_v43  ;;  %v6207_v20 = vmul.f32 %v6199_v48, %v6188_v43  ;;  %v6208_v8 = vmul.f32 %v6200_v33, %v6188_v43  ;;  %v6209_v10 = vmul.f32 %v6201_v47, %v6188_v43 }
0x2082   :  { %12528 = vmatprep.mubr.msk.f32.mxu0 %vm320_vm0, %v6202_v18 }
0x2083   :  { %12529 = vmatmul.mubr.msk.f32.vlgmr.msra.gmra.mrb[54].mxu0 %vm320_vm0, %v6203_v23 }
0x2084   :  { %12531 = vmatprep.mubr.msk.f32.mxu0 %vm320_vm0, %v6204_v44  ;;  %13159 = vmatpush3.bf16.msra.mxu0 %v15035_v11 }
0x2085   :  { %13160 = vmatprep.subr.bf16.mxu0 %v17329_v41 }
0x2087   :  { %12532 = vmatmul.mubr.msk.f32.gmra.mrb[56].mxu0 %vm320_vm0, %v6205_v5 }
0x2088   :  { %12534 = vmatprep.mubr.msk.f32.mxu0 %vm320_vm0, %v6206_v37  ;;  %13162 = vmatpush3.bf16.msra.mxu0 %v15049_v6  ;;  %v6387_v37 = vpop.permute.xlu0 %6386 }
0x2089   :  { %13169 = vmatprep.subr.bf16.mxu0 %v17329_v41 }
0x208b   :  { %12535 = vmatmul.mubr.msk.f32.gmra.mrb[58].mxu0 %vm320_vm0, %v6207_v20 }
0x208c   :  { %12537 = vmatprep.mubr.msk.f32.mxu0 %vm320_vm0, %v6208_v8 }
0x208f   :  { %12538 = vmatmul.mubr.msk.f32.gmra.mrb[60].mxu0 %vm320_vm0, %v6209_v10 }
0x2090   :  { %12570 = vmatprep.mubr.msk.f32.mxu0 %vm14329_vm1, %v17328_v13 }
0x2156   :  { %v12530_v57 = vpop.f32.mrb[54].mxu0 }
0x2157   :  { %v6300_v3 = vpop.f32.mrb[55].mxu0  ;;  %v6396_v45 = vadd.f32 %v12530_v57, %v6352_v12 }
0x2158   :  { %v6395_v0 = vadd.f32 %v6345_v61, %v6300_v3 }
0x2159   :  { %v6404_v55 = vsel %vm320_vm0, %v6396_v45, -inf }
0x215a   :  { %v12533_v1 = vpop.f32.mrb[56].mxu0  ;;  %v6403_v35 = vsel %vm320_vm0, %v6395_v0, -inf }
0x215b   :  { %v6310_v29 = vpop.f32.mrb[57].mxu0  ;;  %v6398_v18 = vadd.f32 %v12533_v1, %v6366_v34 }
0x215c   :  { %v6397_v44 = vadd.f32 %v6359_v52, %v6310_v29 }
0x215d   :  { %v6406_v47 = vsel %vm320_vm0, %v6398_v18, -inf }
0x215e   :  { %v12536_v42 = vpop.f32.mrb[58].mxu0  ;;  %v6405_v61 = vsel %vm320_vm0, %v6397_v44, -inf }
0x215f   :  { %v6400_v2 = vadd.f32 %v12536_v42, %v6380_v38  ;;  %v6320_v43 = vpop.f32.mrb[59].mxu0 }
0x2160   :  { %v6399_v62 = vadd.f32 %v6373_v28, %v6320_v43 }
0x2161   :  { %v6409_v23 = vsel %vm320_vm0, %v6400_v2, -inf }
0x2162   :  { %v6410_v32 = vmax.f32 %v6404_v55, %v6409_v23  ;;  %v6407_v5 = vsel %vm320_vm0, %v6399_v62, -inf  ;;  %v12539_v40 = vpop.f32.mrb[60].mxu0 }
0x2163   :  { %v6408_v48 = vmax.f32 %v6403_v35, %v6407_v5  ;;  %v6402_v33 = vadd.f32 %v12539_v40, %v6394_v63  ;;  %v6330_v20 = vpop.f32.mrb[61].mxu0 }
0x2164   :  { %v6401_v8 = vadd.f32 %v6387_v37, %v6330_v20 }
0x2165   :  { %v6415_v10 = vmax.f32 %v6408_v48, %v6410_v32  ;;  %v6413_v12 = vsel %vm320_vm0, %v6402_v33, -inf }
0x2166   :  { %v6414_v34 = vmax.f32 %v6406_v47, %v6413_v12  ;;  %v6411_v57 = vsel %vm320_vm0, %v6401_v8, -inf }
0x2167   :  { %v6412_v52 = vmax.f32 %v6405_v61, %v6411_v57 }
0x2169   :  { %v6416_v3 = vmax.f32 %v6412_v52, %v6414_v34 }
0x216b   :  { %v6417_v1 = vmax.f32 %v6415_v10, %v6416_v3 }
0x216d   :  { %v6418_v38 = vsub.f32 %v6395_v0, %v6417_v1  ;;  %v6419_v29 = vsub.f32 %v6396_v45, %v6417_v1  ;;  %v6420_v28 = vsub.f32 %v6397_v44, %v6417_v1  ;;  %v6421_v42 = vsub.f32 %v6398_v18, %v6417_v1 }
0x216e   :  { %v6422_v43 = vsub.f32 %v6399_v62, %v6417_v1  ;;  %v6423_v63 = vsub.f32 %v6400_v2, %v6417_v1  ;;  %v6424_v55 = vsub.f32 %v6401_v8, %v6417_v1  ;;  %v6425_v23 = vsub.f32 %v6402_v33, %v6417_v1 }
0x216f   :  { %v6426_v35 = vmul.f32 1.442695, %v6418_v38  ;;  %v6428_v32 = vmul.f32 1.442695, %v6419_v29  ;;  %v6430_v5 = vmul.f32 1.442695, %v6420_v28 }
0x2170   :  { %v6432_v40 = vmul.f32 1.442695, %v6421_v42  ;;  %v6434_v37 = vmul.f32 1.442695, %v6422_v43  ;;  %v6436_v48 = vmul.f32 1.442695, %v6423_v63 }
0x2171   :  { %13526 = vpow2.f32 %v6426_v35  ;;  %v6438_v20 = vmul.f32 1.442695, %v6424_v55  ;;  %v6440_v45 = vmul.f32 1.442695, %v6425_v23 }
0x2172   :  { %13528 = vpow2.f32 %v6428_v32 }
0x2173   :  { %13530 = vpow2.f32 %v6430_v5 }
0x2174   :  { %13532 = vpow2.f32 %v6432_v40 }
0x2175   :  { %13534 = vpow2.f32 %v6434_v37 }
0x2176   :  { %13536 = vpow2.f32 %v6436_v48 }
0x2177   :  { %13538 = vpow2.f32 %v6438_v20 }
0x2178   :  { %13540 = vpow2.f32 %v6440_v45 }
0x217b   :  { %v13527_v0 = vpop.eup %13526 }
0x217c   :  { %v13529_v62 = vpop.eup %13528  ;;  %v6442_v2 = vsel %vm320_vm0, %v13527_v0, 0.0 }
0x217d   :  { %v13531_v18 = vpop.eup %13530  ;;  %v6443_v44 = vsel %vm320_vm0, %v13529_v62, 0.0 }
0x217e   :  { %v13533_v33 = vpop.eup %13532  ;;  %v6444_v8 = vadd.f32 %v6443_v44, %v6442_v2  ;;  %v6445_v47 = vsel %vm320_vm0, %v13531_v18, 0.0  ;;  %v6466_v2 = vld [vmem:[#allocation7] sm:$0xff]  ;;  %v6467_v44 = vld [vmem:[#allocation7 + $0x8] sm:$0xff] }
0x217f   :  { %v13535_v10 = vpop.eup %13534  ;;  %v6447_v61 = vsel %vm320_vm0, %v13533_v33, 0.0 }
0x2180   :  { %v6446_v12 = vadd.f32 %v6445_v47, %v6444_v8  ;;  %v13537_v34 = vpop.eup %13536  ;;  %v6449_v52 = vsel %vm320_vm0, %v13535_v10, 0.0  ;;  %v6468_v8 = vld [vmem:[#allocation7 + $0x10] sm:$0xff] }
0x2181   :  { %v13539_v3 = vpop.eup %13538  ;;  %v6451_v38 = vsel %vm320_vm0, %v13537_v34, 0.0 }
0x2182   :  { %v6448_v57 = vadd.f32 %v6447_v61, %v6446_v12  ;;  %v13541_v29 = vpop.eup %13540  ;;  %v6453_v42 = vsel %vm320_vm0, %v13539_v3, 0.0 }
0x2183   :  { %v6455_v63 = vsel %vm320_vm0, %v13541_v29, 0.0 }
0x2184   :  { %v6450_v1 = vadd.f32 %v6449_v52, %v6448_v57  ;;  %v6469_v57 = vld [vmem:[#allocation7 + $0x18] sm:$0xff] }
0x2186   :  { %v6452_v28 = vadd.f32 %v6451_v38, %v6450_v1 }
0x2188   :  { %v6454_v43 = vadd.f32 %v6453_v42, %v6452_v28  ;;  %v6473_v42 = vld [vmem:[#allocation7 + $0x38] sm:$0xff] }
0x218a   :  { %v6456_v55 = vadd.f32 %v6455_v63, %v6454_v43 }
0x218c   :  { %13542 = vrcp.f32 %v6456_v55 }
0x2196   :  { %v13543_v23 = vpop.eup %13542 }
0x2197   :  { %v6458_v35 = vmul.f32 %v13543_v23, %v13527_v0  ;;  %v6459_v32 = vmul.f32 %v13543_v23, %v13529_v62  ;;  %v6460_v5 = vmul.f32 %v13543_v23, %v13531_v18  ;;  %v6461_v40 = vmul.f32 %v13543_v23, %v13533_v33  ;;  %v6470_v0 = vld [vmem:[#allocation7 + $0x20] sm:$0xff]  ;;  %v6471_v62 = vld [vmem:[#allocation7 + $0x28] sm:$0xff] }
0x2198   :  { %v6462_v37 = vmul.f32 %v13543_v23, %v13535_v10  ;;  %v6463_v48 = vmul.f32 %v13543_v23, %v13537_v34  ;;  %v6464_v20 = vmul.f32 %v13543_v23, %v13539_v3  ;;  %v6465_v45 = vmul.f32 %v13543_v23, %v13541_v29  ;;  %v6472_v34 = vld [vmem:[#allocation7 + $0x30] sm:$0xff] }
0x2199   :  { %v6474_v47 = vmul.f32 %v6466_v2, %v6458_v35  ;;  %v6475_v12 = vmul.f32 %v6467_v44, %v6459_v32  ;;  %v6476_v61 = vmul.f32 %v6468_v8, %v6460_v5  ;;  %v6477_v52 = vmul.f32 %v6469_v57, %v6461_v40  ;;  %v6498_v57 = vpop.permute.xlu0 %6497 }
0x219a   :  { %v6478_v33 = vmul.f32 %v6470_v0, %v6462_v37  ;;  %v6479_v29 = vmul.f32 %v6471_v62, %v6463_v48  ;;  %v6480_v63 = vmul.f32 %v6472_v34, %v6464_v20  ;;  %v6481_v35 = vmul.f32 %v6473_v42, %v6465_v45  ;;  %v13779_v48 = vld [vmem:[#allocation22] ss:$0 sm:$0xff]  ;;  %v17361_v62 = vld [vmem:[#allocation49_spill] sm:$0xff] }
0x219b   :  { %v6482_v1 = vsel %vm320_vm0, %v6474_v47, 0.0  ;;  %v6483_v38 = vsel %vm320_vm0, %v6475_v12, 0.0  ;;  %v6485_v10 = vsel %vm320_vm0, %v6476_v61, 0.0  ;;  %v6487_v28 = vsel %vm320_vm0, %v6477_v52, 0.0 }
0x219c   :  { %v6484_v18 = vadd.f32 %v6483_v38, %v6482_v1  ;;  %v6489_v55 = vsel %vm320_vm0, %v6478_v33, 0.0  ;;  %v6491_v32 = vsel %vm320_vm0, %v6479_v29, 0.0  ;;  %v6493_v40 = vsel %vm320_vm0, %v6480_v63, 0.0 }
0x219d   :  { %v6495_v2 = vsel %vm320_vm0, %v6481_v35, 0.0  ;;  %v16150_v8 = vadd.f32 %v13779_v48, %v16108_v49 }
0x219e   :  { %v6486_v3 = vadd.f32 %v6485_v10, %v6484_v18  ;;  %v17362_v18 = vld [vmem:[#allocation50_spill] sm:$0xff]  ;;  %v13780_v10 = vld [vmem:[#allocation28] ss:$0 sm:$0xff] }
0x219f   :  { %v11593_v20 = vmul.f32 -1.442695, %v16150_v8 }
0x21a0   :  { %v6488_v43 = vadd.f32 %v6487_v28, %v6486_v3  ;;  %v17363_v28 = vld [vmem:[#allocation51_spill] sm:$0xff] }
0x21a1   :  { %13544 = vpow2.f32 %v11593_v20 }
0x21a2   :  { %v6490_v23 = vadd.f32 %v6489_v55, %v6488_v43 }
0x21a4   :  { %v6492_v5 = vadd.f32 %v6491_v32, %v6490_v23 }
0x21a6   :  { %v6494_v37 = vadd.f32 %v6493_v40, %v6492_v5 }
0x21a8   :  { %v6496_v44 = vadd.f32 %v6495_v2, %v6494_v37 }
0x21aa   :  { %6503 = vrot.lane.b32.xlu1 %v6496_v44, %s14333_s19 }
0x21ab   :  { %v13545_v47 = vpop.eup %13544 }
0x21ac   :  { %v6101_v45 = vadd.f32 1.0, %v13545_v47 }
0x21ae   :  { %13546 = vrcp.f32 %v6101_v45 }
0x21b8   :  { %v16153_v12 = vpop.eup %13546 }
0x21b9   :  { %v6501_v61 = vsub.f32 1.0, %v16153_v12  ;;  %v6500_v1 = vmul.f32 %v16153_v12, %v6498_v57  ;;  %v16184_v57 = vld [vmem:[#allocation11] sm:$0xff] }
0x221c   :  { %v6504_v52 = vpop.permute.xlu1 %6503 }
0x221d   :  { %v6506_v38 = vmul.f32 %v6504_v52, %v6501_v61 }
0x221f   :  { %v6507_v0 = vadd.f32 %v6506_v38, %v6500_v1 }
0x2221   :  { %6509 = vrot.lane.b32.xlu0 %v6507_v0, %s14332_s9  ;;  %v16189_v0 = vld [vmem:[#allocation11 + $0x8] sm:$0xff] }
0x2293   :  { %v6510_v49 = vpop.permute.xlu0 %6509 }
0x2294   :  { %12549 = vmatmul.mubr.msk.f32.vlgmr.msra.gmra.mrb[42].mxu1 %vm320_vm0, %v6510_v49 }
0x2295   :  { %13153 = vmatpush3.bf16.msra.mxu1 %v17332_v15  ;;  %12559 = vmatprep.mubr.msk.f32.mxu1 %vm14329_vm1, %v17328_v13 }
0x2296   :  { %13154 = vmatprep.subr.bf16.mxu1 %v17329_v41 }
0x2299   :  { %13156 = vmatpush3.bf16.msra.mxu1 %v17350_v51 }
0x229a   :  { %13163 = vmatprep.subr.bf16.mxu1 %v17329_v41 }
0x229c   :  { %12560 = vmatmul.mubr.msk.f32.vlgmr.msra.gmra.mrb[44].mxu1 %vm320_vm0, %v6510_v49 }
0x229d   :  { %13165 = vmatpush3.bf16.msra.mxu1 %v17361_v62  ;;  %12581 = vmatprep.mubr.msk.f32.mxu1 %vm14329_vm1, %v17328_v13 }
0x229e   :  { %13166 = vmatprep.subr.bf16.mxu1 %v17329_v41 }
0x22a1   :  { %13168 = vmatpush3.bf16.msra.mxu1 %v17362_v18 }
0x22a2   :  { %13175 = vmatprep.subr.bf16.mxu1 %v17329_v41 }
0x2367   :  { %v6579_v33 = vpop.f32.mrb[42].mxu1 }
0x2368   :  { %v6580_v34 = vadd.f32 %v13780_v10, %v6579_v33  ;;  %v12550_v3 = vpop.f32.mrb[43].mxu1  ;;  %v16192_v33 = vld [vmem:[#allocation11 + $0x10] sm:$0xff] }
0x236a   :  { %v6584_v29 = vcombine.high %v6580_v34, %v6580_v34  ;;  %v6591_v42 = vrot.slane %v6580_v34, %v17363_v28  ;;  %v16195_v34 = vld [vmem:[#allocation11 + $0x20] sm:$0xff] }
0x236c   :  { %v6598_v43 = vrot.slane %v6584_v29, %v17363_v28  ;;  %v6599_v63 = vcombine.high %v6591_v42, %v6591_v42  ;;  %v6607_v55 = vrot.slane %v6591_v42, %v17363_v28 }
0x236e   :  { %v6600_v23 = vcombine.high %v6598_v43, %v6598_v43  ;;  %v6614_v35 = vrot.slane %v6598_v43, %v17363_v28  ;;  %v6621_v32 = vrot.slane %v6599_v63, %v17363_v28  ;;  %v6629_v5 = vcombine.high %v6607_v55, %v6607_v55  ;;  %v16199_v43 = vld [vmem:[#allocation11 + $0x18] sm:$0xff] }
0x236f   :  { %v6636_v40 = vrot.slane %v6607_v55, %v14911_v39  ;;  %v16178_v37 = vpop.f32.mrb[44].mxu1  ;;  %v16202_v55 = vld [vmem:[#allocation11 + $0x30] sm:$0xff] }
0x2370   :  { %v6630_v2 = vcombine.high %v6614_v35, %v6614_v35  ;;  %v6631_v44 = vcombine.high %v6621_v32, %v6621_v32  ;;  %v6640_v48 = vrot.slane %v6621_v32, %v14911_v39  ;;  %v12561_v20 = vpop.f32.mrb[45].mxu1  ;;  %v6628_v47 = vrot.slane %v6600_v23, %v17363_v28  ;;  %v16206_v32 = vld [vmem:[#allocation11 + $0x28] sm:$0xff] }
0x2371   :  { %v6644_v45 = vrot.slane %v6629_v5, %v14911_v39  ;;  %v6652_v61 = vrot.slane %v6614_v35, %v14911_v39  ;;  %v6673_v52 = vadd.f32 %v16184_v57, %v6636_v40 }
0x2372   :  { %v6648_v1 = vrot.slane %v6631_v44, %v14911_v39  ;;  %v6660_v38 = vrot.slane %v6630_v2, %v14911_v39  ;;  %v6674_v49 = vadd.f32 %v16189_v0, %v6640_v48  ;;  %v6632_v29 = vcombine.high %v6628_v47, %v6628_v47  ;;  %v16209_v2 = vld [vmem:[#allocation11 + $0x38] sm:$0xff]  ;;  %v13789_v48 = vld [vmem:[#allocation29] ss:$0 sm:$0xff] }
0x2373   :  { %v6675_v10 = vadd.f32 %v16192_v33, %v6644_v45  ;;  %13548 = vtanh.f32 %v6673_v52  ;;  %v6677_v3 = vadd.f32 %v16195_v34, %v6652_v61  ;;  %v6656_v42 = vrot.slane %v6628_v47, %v14911_v39 }
0x2374   :  { %v6676_v63 = vadd.f32 %v16199_v43, %v6648_v1  ;;  %13550 = vtanh.f32 %v6674_v49  ;;  %v6679_v23 = vadd.f32 %v16202_v55, %v6660_v38  ;;  %v6664_v35 = vrot.slane %v6632_v29, %v14911_v39 }
0x2375   :  { %13552 = vtanh.f32 %v6675_v10  ;;  %v6678_v5 = vadd.f32 %v16206_v32, %v6656_v42 }
0x2376   :  { %13554 = vtanh.f32 %v6677_v3  ;;  %v6680_v44 = vadd.f32 %v16209_v2, %v6664_v35 }
0x2377   :  { %13556 = vtanh.f32 %v6676_v63 }
0x2378   :  { %13558 = vtanh.f32 %v6679_v23 }
0x2379   :  { %13560 = vtanh.f32 %v6678_v5 }
0x237a   :  { %13562 = vtanh.f32 %v6680_v44 }
0x237d   :  { %v13549_v40 = vpop.eup %13548 }
0x237e   :  { %v6689_v20 = vmul.f32 %v13789_v48, %v13549_v40  ;;  %v13551_v47 = vpop.eup %13550 }
0x237f   :  { %v13553_v45 = vpop.eup %13552  ;;  %v6690_v52 = vmul.f32 %v13789_v48, %v13551_v47 }
0x2380   :  { %v6697_v61 = vsel %vm320_vm0, %v6689_v20, 0.0  ;;  %v13555_v1 = vpop.eup %13554  ;;  %v6691_v49 = vmul.f32 %v13789_v48, %v13553_v45 }
0x2381   :  { %6698 = vadd.xlane.f32.xlu1 %v6697_v61  ;;  %v6700_v38 = vsel %vm320_vm0, %v6690_v52, 0.0  ;;  %v13557_v10 = vpop.eup %13556  ;;  %v6693_v3 = vmul.f32 %v13789_v48, %v13555_v1 }
0x2382   :  { %6701 = vadd.xlane.f32.xlu0 %v6700_v38  ;;  %v13559_v29 = vpop.eup %13558  ;;  %v6703_v23 = vsel %vm320_vm0, %v6691_v49, 0.0  ;;  %v6692_v35 = vmul.f32 %v13789_v48, %v13557_v10  ;;  %v17364_v10 = vld [vmem:[#allocation52_spill] sm:$0xff] }
0x2383   :  { %v6709_v42 = vsel %vm320_vm0, %v6693_v3, 0.0  ;;  %v6695_v63 = vmul.f32 %v13789_v48, %v13559_v29  ;;  %v13561_v5 = vpop.eup %13560 }
0x2384   :  { %v6706_v44 = vsel %vm320_vm0, %v6692_v35, 0.0  ;;  %v6694_v20 = vmul.f32 %v13789_v48, %v13561_v5  ;;  %v13563_v47 = vpop.eup %13562 }
0x2385   :  { %6710 = vadd.xlane.f32.xlu1 %v6709_v42  ;;  %v6715_v40 = vsel %vm320_vm0, %v6695_v63, 0.0  ;;  %v6696_v61 = vmul.f32 %v13789_v48, %v13563_v47 }
0x2386   :  { %6704 = vadd.xlane.f32.xlu0 %v6703_v23  ;;  %v6712_v45 = vsel %vm320_vm0, %v6694_v20, 0.0 }
0x2387   :  { %v6718_v52 = vsel %vm320_vm0, %v6696_v61, 0.0 }
0x2389   :  { %6716 = vadd.xlane.f32.xlu1 %v6715_v40 }
0x238a   :  { %6707 = vadd.xlane.f32.xlu0 %v6706_v44 }
0x238e   :  { %6713 = vadd.xlane.f32.xlu0 %v6712_v45 }
0x2392   :  { %6719 = vadd.xlane.f32.xlu0 %v6718_v52 }
0x240e   :  { %v6699_v38 = vpop.xlane.xlu1 %6698 }
0x240f   :  { %v6702_v1 = vpop.xlane.xlu0 %6701  ;;  %v6732_v42 = vrot.slane %v6699_v38, %v17364_v10 }
0x2410   :  { %v6736_v3 = vrot.slane %v6702_v1, %v17364_v10 }
0x2412   :  { %v6711_v63 = vpop.xlane.xlu1 %6710  ;;  %v6761_v35 = vsel %vm385_vm2, %v6736_v3, %v6732_v42 }
0x2413   :  { %v6705_v49 = vpop.xlane.xlu0 %6704  ;;  %v6748_v44 = vrot.slane %v6711_v63, %v17364_v10 }
0x2414   :  { %v6740_v29 = vrot.slane %v6705_v49, %v17364_v10 }
0x2416   :  { %v6762_v48 = vsel %vm387_vm3, %v6740_v29, %v6761_v35  ;;  %v6717_v47 = vpop.xlane.xlu1 %6716 }
0x2417   :  { %v6708_v23 = vpop.xlane.xlu0 %6707  ;;  %v6756_v1 = vrot.slane %v6717_v47, %v17364_v10 }
0x2418   :  { %v6744_v5 = vrot.slane %v6708_v23, %v17364_v10 }
0x241a   :  { %v6763_v40 = vsel %vm389_vm4, %v6744_v5, %v6762_v48 }
0x241b   :  { %v6714_v20 = vpop.xlane.xlu0 %6713  ;;  %v6764_v61 = vsel %vm391_vm5, %v6748_v44, %v6763_v40 }
0x241c   :  { %v6752_v45 = vrot.slane %v6714_v20, %v17364_v10 }
0x241e   :  { %v6765_v52 = vsel %vm393_vm6, %v6752_v45, %v6764_v61 }
0x241f   :  { %v6720_v38 = vpop.xlane.xlu0 %6719  ;;  %v6766_v3 = vsel %vm395_vm7, %v6756_v1, %v6765_v52 }
0x2420   :  { %v6760_v49 = vrot.slane %v6720_v38, %v17364_v10 }
0x2422   :  { %v6767_v29 = vsel %vm397_vm8, %v6760_v49, %v6766_v3 }
0x2423   :  { %v6769_v63 = vsel %vm475_vm9, %v6767_v29, -1e+30 }
0x2424   :  { %v6770_v23 = vsel %vm411_vm10, %v6769_v63, -inf }
0x2425   :  { %6771 = vmax.xlane.f32.xlu1 %v6770_v23  ;;  %v17366_v23 = vld [vmem:[#allocation55_spill] sm:$0xff] }
0x24b2   :  { %v6772_v35 = vpop.xlane.xlu1 %6771 }
0x24b3   :  { %v6773_v5 = vsub.f32 %v6769_v63, %v6772_v35  ;;  %v5791_v63 = vsub.f32 1.0, %v16004_v22 }
0x24b5   :  { %v6774_v48 = vmul.f32 1.442695, %v6773_v5  ;;  %v16249_v35 = vmul.f32 %v5791_v63, %v17366_v23 }
0x24b7   :  { %13564 = vpow2.f32 %v6774_v48  ;;  %17367 = vst [vmem:[#allocation57_spill] sm:$0xff] %v16249_v35 }
0x24c1   :  { %v13565_v40 = vpop.eup %13564 }
0x24c2   :  { %v6776_v44 = vsel %vm411_vm10, %v13565_v40, 0.0 }
0x24c3   :  { %6777 = vadd.xlane.f32.xlu0 %v6776_v44 }
0x2550   :  { %v6778_v20 = vpop.xlane.xlu0 %6777 }
0x2551   :  { %13566 = vrcp.f32 %v6778_v20 }
0x2552   :  { %13568 = vtanh.f32 %v16150_v8 }
0x255b   :  { %v13567_v47 = vpop.eup %13566 }
0x255c   :  { %v6780_v45 = vmul.f32 %v13567_v47, %v13565_v40  ;;  %v13569_v44 = vpop.eup %13568 }
0x255e   :  { %7205 = vst.msk [vmem:[#allocation37 + $0x20] sm:$0xff] %vm411_vm10, %v6780_v45  ;;  %v6791_v61 = vrot.slane %v6780_v45, %v14989_v46  ;;  %v6784_v52 = vrot.slane %v6780_v45, %v14911_v39  ;;  %v6798_v1 = vrot.slane %v6780_v45, %v14998_v54  ;;  %v6812_v38 = vrot.slane %v6780_v45, %v15007_v4 }
0x255f   :  { %v6805_v49 = vrot.slane %v6780_v45, %v15003_v59  ;;  %v6826_v3 = vrot.slane %v6780_v45, %v15011_v7  ;;  %v6819_v29 = vrot.slane %v6780_v45, %v14995_v53  ;;  %v7060_v5 = vmul.f32 %v6780_v45, %v16249_v35 }
0x2560   :  { %6793 = vbcast.lane.b32.xlu1 %v6791_v61, 256  ;;  %6786 = vbcast.lane.b32.xlu0 %v6784_v52, 256  ;;  %v6833_v40 = vrot.slane %v6780_v45, %v15023_v36 }
0x2561   :  { %v7061_v48 = vsel %vm411_vm10, %v7060_v5, -inf }
0x2564   :  { %6800 = vbcast.lane.b32.xlu1 %v6798_v1, 256  ;;  %6814 = vbcast.lane.b32.xlu0 %v6812_v38, 256 }
0x2568   :  { %6807 = vbcast.lane.b32.xlu1 %v6805_v49, 256  ;;  %6828 = vbcast.lane.b32.xlu0 %v6826_v3, 256 }
0x256c   :  { %6821 = vbcast.lane.b32.xlu1 %v6819_v29, 256 }
0x2590   :  { %7062 = vmax.xlane.f32.xlu1 %v7061_v48 }
0x25a1   :  { %6835 = vbcast.lane.b32.xlu1 %v6833_v40, 256 }
0x25a5   :  { %6107 = vrot.lane.b32.xlu1 %v13569_v44, %s14331_s29 }
0x25d2   :  { %v6794_v20 = vpop.permute.xlu1 %6793  ;;  %v6787_v61 = vpop.permute.xlu0 %6786 }
0x25d3   :  { %v6838_v52 = vmul.f32 %v16189_v0, %v6794_v20  ;;  %v6837_v1 = vmul.f32 %v16184_v57, %v6787_v61 }
0x25d5   :  { %v6852_v45 = vsel %vm320_vm0, %v6838_v52, 0.0  ;;  %v6845_v29 = vsel %vm320_vm0, %v6837_v1, 0.0 }
0x25d6   :  { %v6801_v47 = vpop.permute.xlu1 %6800  ;;  %v6815_v49 = vpop.permute.xlu0 %6814  ;;  %v6853_v40 = vrot.slane %v6852_v45, 4  ;;  %v6846_v0 = vrot.slane %v6845_v29, 4 }
0x25d7   :  { %v6839_v38 = vmul.f32 %v16192_v33, %v6801_v47  ;;  %v6841_v57 = vmul.f32 %v16195_v34, %v6815_v49 }
0x25d8   :  { %v6854_v47 = vadd.f32 %v6853_v40, %v6852_v45  ;;  %v6847_v61 = vadd.f32 %v6846_v0, %v6845_v29 }
0x25d9   :  { %v6859_v63 = vsel %vm320_vm0, %v6839_v38, 0.0 }
0x25da   :  { %v6808_v22 = vpop.permute.xlu1 %6807  ;;  %v6860_v44 = vrot.slane %v6859_v63, 4  ;;  %v6829_v33 = vpop.permute.xlu0 %6828 }
0x25db   :  { %v6840_v3 = vmul.f32 %v16199_v43, %v6808_v22  ;;  %v6873_v22 = vsel %vm320_vm0, %v6841_v57, 0.0  ;;  %v6843_v52 = vmul.f32 %v16202_v55, %v6829_v33 }
0x25dc   :  { %v6861_v1 = vadd.f32 %v6860_v44, %v6859_v63  ;;  %v6874_v35 = vrot.slane %v6873_v22, 4 }
0x25dd   :  { %v6866_v23 = vsel %vm320_vm0, %v6840_v3, 0.0  ;;  %v6887_v42 = vsel %vm320_vm0, %v6843_v52, 0.0 }
0x25de   :  { %v6822_v8 = vpop.permute.xlu1 %6821  ;;  %v6867_v20 = vrot.slane %v6866_v23, 4  ;;  %v6862_v34 = vrot.slane %v6861_v1, 2  ;;  %v6875_v28 = vadd.f32 %v6874_v35, %v6873_v22  ;;  %v6888_v18 = vrot.slane %v6887_v42, 4 }
0x25df   :  { %v6842_v48 = vmul.f32 %v16206_v32, %v6822_v8  ;;  %v6855_v32 = vrot.slane %v6854_v47, 2  ;;  %v6848_v8 = vrot.slane %v6847_v61, 2 }
0x25e0   :  { %v6868_v38 = vadd.f32 %v6867_v20, %v6866_v23  ;;  %v6863_v29 = vadd.f32 %v6862_v34, %v6861_v1  ;;  %v6876_v55 = vrot.slane %v6875_v28, 2  ;;  %v6889_v63 = vadd.f32 %v6888_v18, %v6887_v42 }
0x25e1   :  { %v6880_v43 = vsel %vm320_vm0, %v6842_v48, 0.0  ;;  %v6856_v48 = vadd.f32 %v6855_v32, %v6854_v47  ;;  %v6849_v45 = vadd.f32 %v6848_v8, %v6847_v61 }
0x25e2   :  { %v6881_v3 = vrot.slane %v6880_v43, 4  ;;  %v6869_v49 = vrot.slane %v6868_v38, 2  ;;  %v6864_v20 = vrot.slane %v6863_v29, 1  ;;  %v6877_v47 = vadd.f32 %v6876_v55, %v6875_v28 }
0x25e3   :  { %v6857_v23 = vrot.slane %v6856_v48, 1  ;;  %v6850_v44 = vrot.slane %v6849_v45, 1  ;;  %v6890_v61 = vrot.slane %v6889_v63, 2 }
0x25e4   :  { %v6882_v10 = vadd.f32 %v6881_v3, %v6880_v43  ;;  %v6870_v40 = vadd.f32 %v6869_v49, %v6868_v38  ;;  %v6865_v18 = vadd.f32 %v6864_v20, %v6863_v29  ;;  %v6878_v49 = vrot.slane %v6877_v47, 1 }
0x25e5   :  { %v6858_v38 = vadd.f32 %v6857_v23, %v6856_v48  ;;  %v6851_v3 = vadd.f32 %v6850_v44, %v6849_v45 }
0x25e6   :  { %v6883_v0 = vrot.slane %v6882_v10, 2  ;;  %v6871_v62 = vrot.slane %v6870_v40, 1  ;;  %v6879_v45 = vadd.f32 %v6878_v49, %v6877_v47 }
0x25e8   :  { %v6884_v43 = vadd.f32 %v6883_v0, %v6882_v10  ;;  %v6979_v10 = vsel %vm385_vm2, %v6858_v38, %v6851_v3 }
0x25e9   :  { %v6980_v28 = vsel %vm387_vm3, %v6865_v18, %v6979_v10 }
0x25ea   :  { %v6885_v8 = vrot.slane %v6884_v43, 1 }
0x261d   :  { %v7063_v57 = vpop.xlane.xlu1 %7062 }
0x261e   :  { %vm7064_vm14 = vcmp.eq.f32.partialorder %v7060_v5, %v7063_v57  ;;  %v6872_v5 = vadd.f32 %v6871_v62, %v6870_v40  ;;  %v6891_v57 = vadd.f32 %v6890_v61, %v6889_v63 }
0x261f   :  { %v7065_v33 = vsel %vm7064_vm14, %v14959_v30, 8  ;;  %vm7608_vm14 = vcmp.lt.s32.totalorder %v14904_v19, 5 }
0x2620   :  { %v7066_v52 = vsel %vm411_vm10, %v7065_v33, 2147483647  ;;  %v6981_v55 = vsel %vm389_vm4, %v6872_v5, %v6980_v28  ;;  %v6892_v23 = vrot.slane %v6891_v57, 1 }
0x2621   :  { %v6836_v35 = vpop.permute.xlu1 %6835  ;;  %v7068_v22 = vshra.s32 %v7066_v52, 16  ;;  %v6982_v44 = vsel %vm391_vm5, %v6879_v45, %v6981_v55  ;;  %v7067_v47 = vand.u32 65535, %v7066_v52 }
0x2622   :  { %v6844_v1 = vmul.f32 %v16209_v2, %v6836_v35  ;;  %v6886_v2 = vadd.f32 %v6885_v8, %v6884_v43  ;;  %v6893_v33 = vadd.f32 %v6892_v23, %v6891_v57 }
0x2623   :  { %v7070_v32 = vcvt.s32.f32 %v7068_v22 }
0x2624   :  { %v6894_v42 = vsel %vm320_vm0, %v6844_v1, 0.0  ;;  %v6983_v40 = vsel %vm393_vm6, %v6886_v2, %v6982_v44  ;;  %v7069_v1 = vcvt.s32.f32 %v7067_v47  ;;  %v13791_v47 = vld [vmem:[#allocation8 + $0x8] sm:$0xff] }
0x2625   :  { %v6895_v34 = vrot.slane %v6894_v42, 4  ;;  %7071 = vmin.xlane.f32.xlu0 %v7070_v32  ;;  %v6984_v63 = vsel %vm395_vm7, %v6893_v33, %v6983_v40  ;;  %v6108_v43 = vpop.permute.xlu1 %6107 }
0x2626   :  { %v6110_v22 = vmul.f32 %v16153_v12, %v6108_v43  ;;  %v13790_v43 = vld [vmem:[#allocation8] sm:$0xff] }
0x2627   :  { %v6896_v0 = vadd.f32 %v6895_v34, %v6894_v42 }
0x2629   :  { %v6897_v48 = vrot.slane %v6896_v0, 2 }
0x262b   :  { %v6898_v29 = vadd.f32 %v6897_v48, %v6896_v0 }
0x262d   :  { %v6899_v62 = vrot.slane %v6898_v29, 1 }
0x262f   :  { %v6900_v20 = vadd.f32 %v6899_v62, %v6898_v29  ;;  %v17368_v29 = vld [vmem:[#allocation54_spill] sm:$0xff] }
0x2630   :  { %v6105_v44 = vmul.f32 %v16153_v12, %v17368_v29 }
0x2631   :  { %v6985_v35 = vsel %vm397_vm8, %v6900_v20, %v6984_v63 }
0x2632   :  { %12571 = vmatmul.mubr.msk.f32.vlgmr.msra.gmra.mrb[62].mxu0 %vm320_vm0, %v6985_v35 }
0x2633   :  { %13171 = vmatpush3.bf16.msra.mxu0 %v14786_v9  ;;  %12592 = vmatprep.mubr.msk.f32.mxu0 %vm14329_vm1, %v17328_v13 }
0x2634   :  { %13172 = vmatprep.subr.bf16.mxu0 %v17329_v41 }
0x2637   :  { %13174 = vmatpush3.bf16.msra.mxu0 %v14794_v17 }
0x2638   :  { %13181 = vmatprep.subr.bf16.mxu0 %v17329_v41 }
0x263b   :  { %6112 = vrot.lane.b32.xlu0 %v6110_v22, %s14332_s9 }
0x26b2   :  { %v7072_v61 = vpop.xlane.xlu0 %7071 }
0x26b3   :  { %vm7073_vm11 = vcmp.eq.f32.partialorder %v7070_v32, %v7072_v61  ;;  %v7078_v5 = vcvt.f32.s32 %v7072_v61 }
0x26b4   :  { %v7074_v38 = vsel %vm7073_vm11, %v7069_v1, inf  ;;  %vm7609_vm11 = vmand %vm7608_vm14, %vm473_vm15 }
0x26b5   :  { %7075 = vmin.xlane.f32.xlu1 %v7074_v38  ;;  %v7079_v34 = vshll.u32 %v7078_v5, 16  ;;  %v16317_v2 = vsel %vm7609_vm11, 0.0, %v17358_v14 }
0x26b6   :  { %v6113_v23 = vpop.permute.xlu0 %6112  ;;  %v7759_v62 = vrot.slane %v16317_v2, %v14911_v39  ;;  %v7773_v33 = vrot.slane %v16317_v2, %v14998_v54  ;;  %v7787_v20 = vrot.slane %v16317_v2, %v15007_v4  ;;  %v7801_v12 = vrot.slane %v16317_v2, %v15011_v7 }
0x26b7   :  { %v16327_v40 = vadd.f32 %v6113_v23, %v6105_v44 }
0x26b9   :  { %17369 = vst [vmem:[#allocation55_spill] sm:$0xff] %v16327_v40 }
0x2705   :  { %v7054_v3 = vpop.f32.mrb[62].mxu0 }
0x2706   :  { %v16291_v18 = vadd.f32 %v7054_v3, %v16178_v37  ;;  %v12572_v42 = vpop.f32.mrb[63].mxu0 }
0x2742   :  { %v7076_v8 = vpop.xlane.xlu1 %7075 }
0x2743   :  { %v7077_v49 = vcvt.f32.s32 %v7076_v8 }
0x2745   :  { %v7080_v57 = vadd.s32 %v7079_v34, %v7077_v49  ;;  %v13792_v34 = vld [vmem:[#allocation8 + $0x18] sm:$0xff] }
0x2747   :  { %vm7081_vm12 = vcmp.eq.s32.totalorder %v14959_v30, %v7080_v57  ;;  %11607 = vst.msk [vmem:[%s17330_s13 + $0x20] sm:$0xff] %vm1532_vm13, %v7080_v57  ;;  %v13793_v57 = vld [vmem:[#allocation8 + $0x10] sm:$0xff] }
0x2748   :  { %v16299_v52 = vsel %vm7081_vm12, 1.0, %v17328_v13 }
0x2749   :  { %v7094_v37 = vrot.slane %v16299_v52, %v14989_v46  ;;  %v7087_v32 = vrot.slane %v16299_v52, %v14911_v39  ;;  %v7101_v10 = vrot.slane %v16299_v52, %v14998_v54  ;;  %v7108_v0 = vrot.slane %v16299_v52, %v15003_v59 }
0x274a   :  { %v7115_v28 = vrot.slane %v16299_v52, %v15007_v4  ;;  %v7122_v55 = vrot.slane %v16299_v52, %v14995_v53  ;;  %v7129_v48 = vrot.slane %v16299_v52, %v15011_v7  ;;  %v7136_v45 = vrot.slane %v16299_v52, %v15023_v36 }
0x274b   :  { %7096 = vbcast.lane.b32.xlu0 %v7094_v37, 256  ;;  %7089 = vbcast.lane.b32.xlu1 %v7087_v32, 256 }
0x274f   :  { %7103 = vbcast.lane.b32.xlu0 %v7101_v10, 256  ;;  %7110 = vbcast.lane.b32.xlu1 %v7108_v0, 256 }
0x2753   :  { %7117 = vbcast.lane.b32.xlu0 %v7115_v28, 256  ;;  %7124 = vbcast.lane.b32.xlu1 %v7122_v55, 256 }
0x2757   :  { %7131 = vbcast.lane.b32.xlu0 %v7129_v48, 256  ;;  %7138 = vbcast.lane.b32.xlu1 %v7136_v45, 256 }
0x275b   :  { %7534 = vrot.lane.b32.xlu0 %v16327_v40, %s14333_s19  ;;  %7761 = vbcast.lane.b32.xlu1 %v7759_v62, 256  ;;  %v13794_v62 = vld [vmem:[#allocation8 + $0x28] sm:$0xff] }
0x275f   :  { %7775 = vbcast.lane.b32.xlu1 %v7773_v33, 256 }
0x2763   :  { %7789 = vbcast.lane.b32.xlu1 %v7787_v20, 256  ;;  %v13795_v20 = vld [vmem:[#allocation8 + $0x20] sm:$0xff] }
0x2767   :  { %7803 = vbcast.lane.b32.xlu1 %v7801_v12, 256 }
0x27bd   :  { %v7090_v63 = vpop.permute.xlu1 %7089  ;;  %v7097_v35 = vpop.permute.xlu0 %7096 }
0x27be   :  { %v7140_v22 = vmul.f32 %v13790_v43, %v7090_v63  ;;  %v7141_v61 = vmul.f32 %v13791_v47, %v7097_v35 }
0x27c0   :  { %v7148_v1 = vsel %vm320_vm0, %v7140_v22, 0.0  ;;  %v7155_v38 = vsel %vm320_vm0, %v7141_v61, 0.0 }
0x27c1   :  { %v7149_v3 = vrot.slane %v7148_v1, 4  ;;  %v7156_v42 = vrot.slane %v7155_v38, 4  ;;  %v7111_v5 = vpop.permute.xlu1 %7110  ;;  %v7104_v8 = vpop.permute.xlu0 %7103 }
0x27c2   :  { %v7143_v49 = vmul.f32 %v13792_v34, %v7111_v5  ;;  %v7142_v37 = vmul.f32 %v13793_v57, %v7104_v8  ;;  %v13796_v57 = vld [vmem:[#allocation8 + $0x38] sm:$0xff] }
0x27c3   :  { %v7150_v32 = vadd.f32 %v7149_v3, %v7148_v1  ;;  %v7157_v10 = vadd.f32 %v7156_v42, %v7155_v38 }
0x27c4   :  { %v7169_v0 = vsel %vm320_vm0, %v7143_v49, 0.0  ;;  %v7162_v28 = vsel %vm320_vm0, %v7142_v37, 0.0 }
0x27c5   :  { %v7151_v55 = vrot.slane %v7150_v32, 2  ;;  %v7158_v48 = vrot.slane %v7157_v10, 2  ;;  %v7170_v45 = vrot.slane %v7169_v0, 4  ;;  %v7163_v23 = vrot.slane %v7162_v28, 4  ;;  %v7125_v29 = vpop.permute.xlu1 %7124  ;;  %v7118_v44 = vpop.permute.xlu0 %7117 }
0x27c6   :  { %v7145_v33 = vmul.f32 %v13794_v62, %v7125_v29  ;;  %v7144_v12 = vmul.f32 %v13795_v20, %v7118_v44  ;;  %v13797_v29 = vld [vmem:[#allocation8 + $0x30] sm:$0xff] }
0x27c7   :  { %v7152_v63 = vadd.f32 %v7151_v55, %v7150_v32  ;;  %v7159_v35 = vadd.f32 %v7158_v48, %v7157_v10  ;;  %v7171_v43 = vadd.f32 %v7170_v45, %v7169_v0  ;;  %v7164_v22 = vadd.f32 %v7163_v23, %v7162_v28 }
0x27c8   :  { %v7183_v47 = vsel %vm320_vm0, %v7145_v33, 0.0  ;;  %v7176_v61 = vsel %vm320_vm0, %v7144_v12, 0.0 }
0x27c9   :  { %v7153_v1 = vrot.slane %v7152_v63, 1  ;;  %v7160_v38 = vrot.slane %v7159_v35, 1  ;;  %v7172_v3 = vrot.slane %v7171_v43, 2  ;;  %v7165_v42 = vrot.slane %v7164_v22, 2  ;;  %v7139_v5 = vpop.permute.xlu1 %7138  ;;  %v7132_v8 = vpop.permute.xlu0 %7131 }
0x27ca   :  { %v7184_v34 = vrot.slane %v7183_v47, 4  ;;  %v7177_v49 = vrot.slane %v7176_v61, 4  ;;  %v7147_v37 = vmul.f32 %v13796_v57, %v7139_v5  ;;  %v7146_v44 = vmul.f32 %v13797_v29, %v7132_v8 }
0x27cb   :  { %v7154_v32 = vadd.f32 %v7153_v1, %v7152_v63  ;;  %v7173_v10 = vadd.f32 %v7172_v3, %v7171_v43  ;;  %v7166_v0 = vadd.f32 %v7165_v42, %v7164_v22  ;;  %v7161_v23 = vadd.f32 %v7160_v38, %v7159_v35 }
0x27cc   :  { %v7185_v28 = vadd.f32 %v7184_v34, %v7183_v47  ;;  %v7178_v55 = vadd.f32 %v7177_v49, %v7176_v61  ;;  %v7197_v48 = vsel %vm320_vm0, %v7147_v37, 0.0  ;;  %v7190_v45 = vsel %vm320_vm0, %v7146_v44, 0.0  ;;  %v13798_v49 = vld [vmem:[#allocation25] ss:$0 sm:$0xff] }
0x27cd   :  { %v7174_v62 = vrot.slane %v7173_v10, 1  ;;  %v7167_v33 = vrot.slane %v7166_v0, 1  ;;  %v7198_v20 = vrot.slane %v7197_v48, 4  ;;  %v7191_v14 = vrot.slane %v7190_v45, 4 }
0x27ce   :  { %v7186_v12 = vrot.slane %v7185_v28, 2  ;;  %v7179_v40 = vrot.slane %v7178_v55, 2  ;;  %v7218_v43 = vsel %vm385_vm2, %v7161_v23, %v7154_v32  ;;  %v7058_v37 = vadd.f32 %v13798_v49, %v16291_v18  ;;  %v7611_v49 = vld [vmem:[#allocation6] sm:$0xff] }
0x27cf   :  { %v7168_v58 = vadd.f32 %v7167_v33, %v7166_v0  ;;  %v7199_v5 = vadd.f32 %v7198_v20, %v7197_v48  ;;  %v7192_v63 = vadd.f32 %v7191_v14, %v7190_v45  ;;  %v7175_v22 = vadd.f32 %v7174_v62, %v7173_v10  ;;  %v7535_v48 = vpop.permute.xlu0 %7534 }
0x27d0   :  { %v7187_v57 = vadd.f32 %v7186_v12, %v7185_v28  ;;  %v7180_v8 = vadd.f32 %v7179_v40, %v7178_v55  ;;  %13570 = vtanh.f32 %v7058_v37  ;;  %v7766_v45 = vrot.slane %v16317_v2, %v14989_v46  ;;  %v13799_v12 = vld [vmem:[%s17236_s18] ss:$0 sm:$0xff]  ;;  %v7612_v37 = vld [vmem:[#allocation6 + $0x8] sm:$0xff] }
0x27d1   :  { %v7200_v47 = vrot.slane %v7199_v5, 2  ;;  %v7219_v61 = vsel %vm387_vm3, %v7168_v58, %v7218_v43  ;;  %v7193_v35 = vrot.slane %v7192_v63, 2  ;;  %v7780_v23 = vrot.slane %v16317_v2, %v15003_v59 }
0x27d2   :  { %v7188_v1 = vrot.slane %v7187_v57, 1  ;;  %v7181_v3 = vrot.slane %v7180_v8, 1  ;;  %v7220_v40 = vsel %vm389_vm4, %v7175_v22, %v7219_v61  ;;  %7768 = vbcast.lane.b32.xlu0 %v7766_v45, 256  ;;  %v7794_v62 = vrot.slane %v16317_v2, %v14995_v53  ;;  %v7618_v45 = vld [vmem:[#allocation6 + $0x38] sm:$0xff] }
0x27d3   :  { %v7201_v38 = vadd.f32 %v7200_v47, %v7199_v5  ;;  %v7194_v34 = vadd.f32 %v7193_v35, %v7192_v63  ;;  %v7808_v33 = vrot.slane %v16317_v2, %v15023_v36  ;;  %v13800_v63 = vld [vmem:[%s17238_s20] ss:$0 sm:$0xff] }
0x27d4   :  { %v7182_v42 = vadd.f32 %v7181_v3, %v7180_v8  ;;  %v7189_v29 = vadd.f32 %v7188_v1, %v7187_v57 }
0x27d5   :  { %v7202_v44 = vrot.slane %v7201_v38, 1  ;;  %v7195_v14 = vrot.slane %v7194_v34, 1 }
0x27d6   :  { %v7221_v32 = vsel %vm391_vm5, %v7182_v42, %v7220_v40  ;;  %7782 = vbcast.lane.b32.xlu0 %v7780_v23, 256  ;;  %v7613_v40 = vld [vmem:[#allocation6 + $0x10] sm:$0xff] }
0x27d7   :  { %v7203_v10 = vadd.f32 %v7202_v44, %v7201_v38  ;;  %v7196_v0 = vadd.f32 %v7195_v14, %v7194_v34  ;;  %v7222_v58 = vsel %vm393_vm6, %v7189_v29, %v7221_v32  ;;  %v13801_v38 = vld [vmem:[#allocation32] ss:$0 sm:$0xff]  ;;  %v7614_v32 = vld [vmem:[#allocation6 + $0x18] sm:$0xff] }
0x27d9   :  { %v7223_v28 = vsel %vm395_vm7, %v7196_v0, %v7222_v58  ;;  %v7615_v0 = vld [vmem:[#allocation6 + $0x20] sm:$0xff] }
0x27da   :  { %v7224_v55 = vsel %vm397_vm8, %v7203_v10, %v7223_v28  ;;  %v13571_v18 = vpop.eup %13570  ;;  %7796 = vbcast.lane.b32.xlu0 %v7794_v62, 256  ;;  %v7617_v28 = vld [vmem:[#allocation6 + $0x30] sm:$0xff] }
0x27db   :  { %7914 = vrot.lane.b32.xlu1 %v7224_v55, %s14333_s19  ;;  %12582 = vmatmul.mubr.msk.f32.vlgmr.msra.gmra.mrb[46].mxu1 %vm320_vm0, %v7224_v55 }
0x27dc   :  { %12593 = vmatmul.mubr.msk.f32.vlgmr.msra.gmra.mrb[64].mxu0 %vm320_vm0, %v7224_v55  ;;  %13177 = vmatpush3.bf16.msra.mxu1 %v14799_v24 }
0x27dd   :  { %13183 = vmatpush3.bf16.msra.mxu0 %v14801_v25  ;;  %13178 = vmatprep.subr.bf16.mxu1 %v17329_v41 }
0x27de   :  { %13184 = vmatprep.subr.bf16.mxu0 %v17329_v41  ;;  %12603 = vmatprep.mubr.msk.f32.mxu1 %vm14329_vm1, %v17328_v13 }
0x27df   :  { %12614 = vmatprep.mubr.msk.f32.mxu0 %vm14329_vm1, %v17328_v13  ;;  %7810 = vbcast.lane.b32.xlu0 %v7808_v33, 256  ;;  %v7762_v33 = vpop.permute.xlu1 %7761 }
0x27e0   :  { %13180 = vmatpush3.bf16.msra.mxu1 %v14803_v26 }
0x27e1   :  { %13186 = vmatpush3.bf16.msra.mxu0 %v14814_v31  ;;  %13187 = vmatprep.subr.bf16.mxu1 %v17329_v41 }
0x27e2   :  { %13194 = vmatprep.subr.bf16.mxu0 %v15202_v27 }
0x27e3   :  { %12604 = vmatmul.mubr.msk.f32.vlgmr.msra.gmra.mrb[48].mxu1 %vm320_vm0, %v13571_v18 }
0x27e4   :  { %12615 = vmatmul.mubr.msk.f32.vlgmr.msra.gmra.mrb[66].mxu0 %vm320_vm0, %v7224_v55  ;;  %13189 = vmatpush3.bf16.msra.mxu1 %v15181_v50 }
0x27e5   :  { %13190 = vmatprep.subr.bf16.mxu1 %v17329_v41  ;;  %12625 = vmatprep.mubr.msk.f32.mxu1 %vm14329_vm1, %v17328_v13 }
0x27e6   :  { %13196 = vmatpush3.bf16.msra.mxu0 %v15202_v27 }
0x27e7   :  { %13198 = vmatprep.subr.bf16.mxu0 %v15206_v16 }
0x27e8   :  { %13192 = vmatpush3.bf16.msra.mxu1 %v15188_v21 }
0x27e9   :  { %13201 = vmatprep.subr.bf16.mxu1 %v17329_v41 }
0x27ea   :  { %13200 = vmatpush3.bf16.msra.mxu0 %v15206_v16 }
0x27eb   :  { %12626 = vmatmul.mubr.msk.f32.vlgmr.msra.gmra.mrb[50].mxu1 %vm320_vm0, %v7535_v48  ;;  %13213 = vmatprep.subr.bf16.mxu0 %v17329_v41 }
0x27ec   :  { %13203 = vmatpush3.bf16.msra.mxu1 %v14872_v56  ;;  %12656 = vmatprep.mubr.msk.f32.mxu1 %vm14329_vm1, %v17328_v13 }
0x27ed   :  { %13204 = vmatprep.subr.bf16.mxu1 %v17329_v41 }
0x27f0   :  { %13206 = vmatpush3.bf16.msra.mxu1 %v14876_v60 }
0x27f1   :  { %13207 = vmatprep.subr.bf16.mxu1 %v17329_v41 }
0x2844   :  { %v7769_v62 = vpop.permute.xlu0 %7768 }
0x28ae   :  { %v7293_v20 = vpop.f32.mrb[46].mxu1 }
0x28af   :  { %v7294_v5 = vadd.f32 %v13799_v12, %v7293_v20  ;;  %v7365_v57 = vpop.f32.mrb[64].mxu0  ;;  %v12583_v8 = vpop.f32.mrb[47].mxu1 }
0x28b0   :  { %v7366_v43 = vadd.f32 %v13800_v63, %v7365_v57  ;;  %v12594_v22 = vpop.f32.mrb[65].mxu0  ;;  %v7783_v20 = vpop.permute.xlu0 %7782 }
0x28b1   :  { %7298 = vst.msk [vmem:[#allocation6 + $0x28] sm:$0xff] %vm320_vm0, %v7294_v5  ;;  %v7776_v5 = vpop.permute.xlu1 %7775 }
0x28b2   :  { %7370 = vst.msk [vmem:[#allocation7 + $0x28] sm:$0xff] %vm320_vm0, %v7366_v43 }
0x28b4   :  { %v7797_v63 = vpop.permute.xlu0 %7796 }
0x28b5   :  { %v7790_v22 = vpop.permute.xlu1 %7789 }
0x28b6   :  { %v7440_v2 = vpop.f32.mrb[48].mxu1 }
0x28b7   :  { %v7510_v47 = vpop.f32.mrb[66].mxu0  ;;  %v12605_v61 = vpop.f32.mrb[49].mxu1 }
0x28b8   :  { %v16403_v1 = vadd.f32 %v7510_v47, %v7440_v2  ;;  %v12616_v3 = vpop.f32.mrb[67].mxu0  ;;  %v7616_v55 = vld [vmem:[#allocation6 + $0x28] sm:$0xff] }
0x28be   :  { %v7604_v35 = vpop.f32.mrb[50].mxu1 }
0x28bf   :  { %v7605_v42 = vadd.f32 %v13801_v38, %v7604_v35  ;;  %v12627_v34 = vpop.f32.mrb[51].mxu1 }
0x28c1   :  { %v7619_v29 = vmul.f32 %v7611_v49, %v7605_v42  ;;  %v7620_v44 = vmul.f32 %v7612_v37, %v7605_v42  ;;  %v7621_v14 = vmul.f32 %v7613_v40, %v7605_v42  ;;  %v7622_v10 = vmul.f32 %v7614_v32, %v7605_v42 }
0x28c2   :  { %v7623_v58 = vmul.f32 %v7615_v0, %v7605_v42  ;;  %v7624_v18 = vmul.f32 %v7616_v55, %v7605_v42  ;;  %v7625_v48 = vmul.f32 %v7617_v28, %v7605_v42  ;;  %v7626_v23 = vmul.f32 %v7618_v45, %v7605_v42  ;;  %v7811_v42 = vpop.permute.xlu0 %7810 }
0x28c3   :  { %12636 = vmatprep.mubr.msk.f32.mxu0 %vm320_vm0, %v7619_v29 }
0x28c4   :  { %12637 = vmatmul.mubr.msk.f32.vlgmr.msra.gmra.mrb[68].mxu0 %vm320_vm0, %v7620_v44 }
0x28c5   :  { %12639 = vmatprep.mubr.msk.f32.mxu0 %vm320_vm0, %v7621_v14  ;;  %13215 = vmatpush3.bf16.msra.mxu0 %v15035_v11 }
0x28c6   :  { %13216 = vmatprep.subr.bf16.mxu0 %v17329_v41 }
0x28c8   :  { %12640 = vmatmul.mubr.msk.f32.gmra.mrb[70].mxu0 %vm320_vm0, %v7622_v10  ;;  %v7804_v10 = vpop.permute.xlu1 %7803 }
0x28c9   :  { %12642 = vmatprep.mubr.msk.f32.mxu0 %vm320_vm0, %v7623_v58  ;;  %13218 = vmatpush3.bf16.msra.mxu0 %v15049_v6 }
0x28ca   :  { %13225 = vmatprep.subr.bf16.mxu0 %v17329_v41 }
0x28cc   :  { %12643 = vmatmul.mubr.msk.f32.gmra.mrb[72].mxu0 %vm320_vm0, %v7624_v18 }
0x28cd   :  { %12645 = vmatprep.mubr.msk.f32.mxu0 %vm320_vm0, %v7625_v48 }
0x28d0   :  { %12646 = vmatmul.mubr.msk.f32.gmra.mrb[74].mxu0 %vm320_vm0, %v7626_v23 }
0x28d1   :  { %12678 = vmatprep.mubr.msk.f32.mxu0 %vm14329_vm1, %v17328_v13 }
0x2997   :  { %v12638_v12 = vpop.f32.mrb[68].mxu0 }
0x2998   :  { %v7717_v57 = vpop.f32.mrb[69].mxu0  ;;  %v7813_v2 = vadd.f32 %v12638_v12, %v7769_v62 }
0x2999   :  { %v7812_v47 = vadd.f32 %v7762_v33, %v7717_v57 }
0x299a   :  { %v7821_v34 = vsel %vm320_vm0, %v7813_v2, -inf }
0x299b   :  { %v12641_v8 = vpop.f32.mrb[70].mxu0  ;;  %v7820_v29 = vsel %vm320_vm0, %v7812_v47, -inf }
0x299c   :  { %v7727_v43 = vpop.f32.mrb[71].mxu0  ;;  %v7815_v49 = vadd.f32 %v12641_v8, %v7783_v20 }
0x299d   :  { %v7814_v44 = vadd.f32 %v7776_v5, %v7727_v43 }
0x299e   :  { %v7823_v18 = vsel %vm320_vm0, %v7815_v49, -inf }
0x299f   :  { %v12644_v61 = vpop.f32.mrb[72].mxu0  ;;  %v7822_v23 = vsel %vm320_vm0, %v7814_v44, -inf }
0x29a0   :  { %v7817_v3 = vadd.f32 %v12644_v61, %v7797_v63  ;;  %v7737_v35 = vpop.f32.mrb[73].mxu0 }
0x29a1   :  { %v7816_v38 = vadd.f32 %v7790_v22, %v7737_v35 }
0x29a2   :  { %v7826_v37 = vsel %vm320_vm0, %v7817_v3, -inf }
0x29a3   :  { %v7827_v40 = vmax.f32 %v7821_v34, %v7826_v37  ;;  %v7824_v14 = vsel %vm320_vm0, %v7816_v38, -inf  ;;  %v12647_v32 = vpop.f32.mrb[74].mxu0 }
0x29a4   :  { %v7825_v0 = vmax.f32 %v7820_v29, %v7824_v14  ;;  %v7819_v58 = vadd.f32 %v12647_v32, %v7811_v42  ;;  %v7747_v28 = vpop.f32.mrb[75].mxu0 }
0x29a5   :  { %v7818_v55 = vadd.f32 %v7804_v10, %v7747_v28 }
0x29a6   :  { %v7832_v48 = vmax.f32 %v7825_v0, %v7827_v40  ;;  %v7830_v45 = vsel %vm320_vm0, %v7819_v58, -inf }
0x29a7   :  { %v7831_v62 = vmax.f32 %v7823_v18, %v7830_v45  ;;  %v7828_v33 = vsel %vm320_vm0, %v7818_v55, -inf }
0x29a8   :  { %v7829_v20 = vmax.f32 %v7822_v23, %v7828_v33 }
0x29aa   :  { %v7833_v12 = vmax.f32 %v7829_v20, %v7831_v62 }
0x29ac   :  { %v7834_v5 = vmax.f32 %v7832_v48, %v7833_v12 }
0x29ae   :  { %v7835_v57 = vsub.f32 %v7812_v47, %v7834_v5  ;;  %v7836_v8 = vsub.f32 %v7813_v2, %v7834_v5  ;;  %v7837_v63 = vsub.f32 %v7814_v44, %v7834_v5  ;;  %v7838_v43 = vsub.f32 %v7815_v49, %v7834_v5 }
0x29af   :  { %v7839_v22 = vsub.f32 %v7816_v38, %v7834_v5  ;;  %v7840_v61 = vsub.f32 %v7817_v3, %v7834_v5  ;;  %v7841_v35 = vsub.f32 %v7818_v55, %v7834_v5  ;;  %v7842_v42 = vsub.f32 %v7819_v58, %v7834_v5 }
0x29b0   :  { %v7843_v34 = vmul.f32 1.442695, %v7835_v57  ;;  %v7845_v37 = vmul.f32 1.442695, %v7836_v8  ;;  %v7847_v29 = vmul.f32 1.442695, %v7837_v63 }
0x29b1   :  { %v7849_v40 = vmul.f32 1.442695, %v7838_v43  ;;  %v7851_v14 = vmul.f32 1.442695, %v7839_v22  ;;  %v7853_v32 = vmul.f32 1.442695, %v7840_v61 }
0x29b2   :  { %13572 = vpow2.f32 %v7843_v34  ;;  %v7855_v10 = vmul.f32 1.442695, %v7841_v35  ;;  %v7857_v2 = vmul.f32 1.442695, %v7842_v42 }
0x29b3   :  { %13574 = vpow2.f32 %v7845_v37 }
0x29b4   :  { %13576 = vpow2.f32 %v7847_v29 }
0x29b5   :  { %13578 = vpow2.f32 %v7849_v40 }
0x29b6   :  { %13580 = vpow2.f32 %v7851_v14 }
0x29b7   :  { %13582 = vpow2.f32 %v7853_v32 }
0x29b8   :  { %13584 = vpow2.f32 %v7855_v10  ;;  %v7883_v10 = vld [vmem:[#allocation7] sm:$0xff] }
0x29b9   :  { %13586 = vpow2.f32 %v7857_v2  ;;  %v7884_v2 = vld [vmem:[#allocation7 + $0x8] sm:$0xff] }
0x29bc   :  { %v13573_v47 = vpop.eup %13572 }
0x29bd   :  { %v13575_v38 = vpop.eup %13574  ;;  %v7859_v3 = vsel %vm320_vm0, %v13573_v47, 0.0 }
0x29be   :  { %v13577_v49 = vpop.eup %13576  ;;  %v7860_v44 = vsel %vm320_vm0, %v13575_v38, 0.0 }
0x29bf   :  { %v13579_v0 = vpop.eup %13578  ;;  %v7861_v58 = vadd.f32 %v7860_v44, %v7859_v3  ;;  %v7862_v28 = vsel %vm320_vm0, %v13577_v49, 0.0  ;;  %v7885_v3 = vld [vmem:[#allocation7 + $0x10] sm:$0xff] }
0x29c0   :  { %v13581_v55 = vpop.eup %13580  ;;  %v7864_v48 = vsel %vm320_vm0, %v13579_v0, 0.0 }
0x29c1   :  { %v7863_v18 = vadd.f32 %v7862_v28, %v7861_v58  ;;  %v13583_v45 = vpop.eup %13582  ;;  %v7866_v62 = vsel %vm320_vm0, %v13581_v55, 0.0 }
0x29c2   :  { %v13585_v33 = vpop.eup %13584  ;;  %v7868_v12 = vsel %vm320_vm0, %v13583_v45, 0.0 }
0x29c3   :  { %v7865_v23 = vadd.f32 %v7864_v48, %v7863_v18  ;;  %v13587_v5 = vpop.eup %13586  ;;  %v7870_v8 = vsel %vm320_vm0, %v13585_v33, 0.0  ;;  %v7886_v18 = vld [vmem:[#allocation7 + $0x18] sm:$0xff] }
0x29c4   :  { %v7872_v43 = vsel %vm320_vm0, %v13587_v5, 0.0 }
0x29c5   :  { %v7867_v20 = vadd.f32 %v7866_v62, %v7865_v23 }
0x29c7   :  { %v7869_v57 = vadd.f32 %v7868_v12, %v7867_v20 }
0x29c9   :  { %v7871_v63 = vadd.f32 %v7870_v8, %v7869_v57 }
0x29cb   :  { %v7873_v22 = vadd.f32 %v7872_v43, %v7871_v63 }
0x29cd   :  { %13588 = vrcp.f32 %v7873_v22 }
0x29d7   :  { %v13589_v61 = vpop.eup %13588 }
0x29d8   :  { %v7875_v35 = vmul.f32 %v13589_v61, %v13573_v47  ;;  %v7876_v42 = vmul.f32 %v13589_v61, %v13575_v38  ;;  %v7877_v34 = vmul.f32 %v13589_v61, %v13577_v49  ;;  %v7878_v37 = vmul.f32 %v13589_v61, %v13579_v0  ;;  %v7887_v47 = vld [vmem:[#allocation7 + $0x20] sm:$0xff] }
0x29d9   :  { %v7879_v29 = vmul.f32 %v13589_v61, %v13581_v55  ;;  %v7880_v40 = vmul.f32 %v13589_v61, %v13583_v45  ;;  %v7881_v14 = vmul.f32 %v13589_v61, %v13585_v33  ;;  %v7882_v32 = vmul.f32 %v13589_v61, %v13587_v5  ;;  %v7888_v55 = vld [vmem:[#allocation7 + $0x28] sm:$0xff]  ;;  %v7889_v45 = vld [vmem:[#allocation7 + $0x30] sm:$0xff]  ;;  %v7890_v5 = vld [vmem:[#allocation7 + $0x38] sm:$0xff] }
0x29da   :  { %v7891_v44 = vmul.f32 %v7883_v10, %v7875_v35  ;;  %v7892_v58 = vmul.f32 %v7884_v2, %v7876_v42  ;;  %v7893_v28 = vmul.f32 %v7885_v3, %v7877_v34  ;;  %v7894_v48 = vmul.f32 %v7886_v18, %v7878_v37 }
0x29db   :  { %v7895_v49 = vmul.f32 %v7887_v47, %v7879_v29  ;;  %v7896_v20 = vmul.f32 %v7888_v55, %v7880_v40  ;;  %v7897_v8 = vmul.f32 %v7889_v45, %v7881_v14  ;;  %v7898_v22 = vmul.f32 %v7890_v5, %v7882_v32  ;;  %v13802_v40 = vld [vmem:[#allocation22] ss:$0 sm:$0xff]  ;;  %v17371_v47 = vld [vmem:[#allocation50_spill] sm:$0xff] }
0x29dc   :  { %v7899_v23 = vsel %vm320_vm0, %v7891_v44, 0.0  ;;  %v7900_v62 = vsel %vm320_vm0, %v7892_v58, 0.0  ;;  %v7902_v0 = vsel %vm320_vm0, %v7893_v28, 0.0  ;;  %v7904_v12 = vsel %vm320_vm0, %v7894_v48, 0.0  ;;  %v7915_v58 = vpop.permute.xlu1 %7914 }
0x29dd   :  { %v7901_v38 = vadd.f32 %v7900_v62, %v7899_v23  ;;  %v7906_v63 = vsel %vm320_vm0, %v7895_v49, 0.0  ;;  %v7908_v61 = vsel %vm320_vm0, %v7896_v20, 0.0  ;;  %v7910_v42 = vsel %vm320_vm0, %v7897_v8, 0.0  ;;  %v17370_v62 = vld [vmem:[#allocation49_spill] sm:$0xff]  ;;  %v13803_v49 = vld [vmem:[#allocation28] ss:$0 sm:$0xff] }
0x29de   :  { %v7912_v37 = vsel %vm320_vm0, %v7898_v22, 0.0  ;;  %v16445_v10 = vadd.f32 %v13802_v40, %v16403_v1 }
0x29df   :  { %v7903_v33 = vadd.f32 %v7902_v0, %v7901_v38 }
0x29e0   :  { %v11612_v14 = vmul.f32 -1.442695, %v16445_v10 }
0x29e1   :  { %v7905_v57 = vadd.f32 %v7904_v12, %v7903_v33  ;;  %v17372_v33 = vld [vmem:[#allocation51_spill] sm:$0xff] }
0x29e2   :  { %13590 = vpow2.f32 %v11612_v14 }
0x29e3   :  { %v7907_v43 = vadd.f32 %v7906_v63, %v7905_v57 }
0x29e5   :  { %v7909_v35 = vadd.f32 %v7908_v61, %v7907_v43 }
0x29e7   :  { %v7911_v34 = vadd.f32 %v7910_v42, %v7909_v35 }
0x29e9   :  { %v7913_v29 = vadd.f32 %v7912_v37, %v7911_v34 }
0x29eb   :  { %7920 = vrot.lane.b32.xlu0 %v7913_v29, %s14333_s19 }
0x29ec   :  { %v13591_v2 = vpop.eup %13590 }
0x29ed   :  { %v7518_v32 = vadd.f32 1.0, %v13591_v2  ;;  %v16479_v2 = vld [vmem:[#allocation11] sm:$0xff] }
0x29ef   :  { %13592 = vrcp.f32 %v7518_v32 }
0x29f9   :  { %v16448_v3 = vpop.eup %13592 }
0x29fa   :  { %v7918_v44 = vsub.f32 1.0, %v16448_v3  ;;  %v7917_v18 = vmul.f32 %v16448_v3, %v7915_v58 }
0x2a5d   :  { %v7921_v28 = vpop.permute.xlu0 %7920 }
0x2a5e   :  { %v7923_v48 = vmul.f32 %v7921_v28, %v7918_v44 }
0x2a60   :  { %v7924_v23 = vadd.f32 %v7923_v48, %v7917_v18  ;;  %v16484_v48 = vld [vmem:[#allocation11 + $0x8] sm:$0xff] }
0x2a62   :  { %7926 = vrot.lane.b32.xlu1 %v7924_v23, %s14332_s9 }
0x2ad4   :  { %v7927_v1 = vpop.permute.xlu1 %7926 }
0x2ad5   :  { %12657 = vmatmul.mubr.msk.f32.vlgmr.msra.gmra.mrb[52].mxu1 %vm320_vm0, %v7927_v1 }
0x2ad6   :  { %13209 = vmatpush3.bf16.msra.mxu1 %v17332_v15  ;;  %12667 = vmatprep.mubr.msk.f32.mxu1 %vm14329_vm1, %v17328_v13 }
0x2ad7   :  { %13210 = vmatprep.subr.bf16.mxu1 %v17329_v41 }
0x2ada   :  { %13212 = vmatpush3.bf16.msra.mxu1 %v17350_v51 }
0x2adb   :  { %13219 = vmatprep.subr.bf16.mxu1 %v17329_v41 }
0x2add   :  { %12668 = vmatmul.mubr.msk.f32.vlgmr.msra.gmra.mrb[54].mxu1 %vm320_vm0, %v7927_v1  ;;  %v16487_v1 = vld [vmem:[#allocation11 + $0x10] sm:$0xff] }
0x2ade   :  { %13221 = vmatpush3.bf16.msra.mxu1 %v17370_v62  ;;  %12689 = vmatprep.mubr.msk.f32.mxu1 %vm14329_vm1, %v17328_v13 }
0x2adf   :  { %13222 = vmatprep.subr.bf16.mxu1 %v17329_v41 }
0x2ae2   :  { %13224 = vmatpush3.bf16.msra.mxu1 %v17371_v47 }
0x2ae3   :  { %13231 = vmatprep.subr.bf16.mxu1 %v17329_v41 }
0x2ba8   :  { %v7996_v38 = vpop.f32.mrb[52].mxu1 }
0x2ba9   :  { %v7997_v0 = vadd.f32 %v13803_v49, %v7996_v38  ;;  %v12658_v55 = vpop.f32.mrb[53].mxu1 }
0x2bab   :  { %v8001_v45 = vcombine.high %v7997_v0, %v7997_v0  ;;  %v8008_v20 = vrot.slane %v7997_v0, %v17372_v33  ;;  %v16491_v0 = vld [vmem:[#allocation11 + $0x20] sm:$0xff] }
0x2bad   :  { %v8015_v12 = vrot.slane %v8001_v45, %v17372_v33  ;;  %v8016_v5 = vcombine.high %v8008_v20, %v8008_v20  ;;  %v8024_v57 = vrot.slane %v8008_v20, %v17372_v33  ;;  %v16494_v45 = vld [vmem:[#allocation11 + $0x28] sm:$0xff] }
0x2baf   :  { %v8017_v8 = vcombine.high %v8015_v12, %v8015_v12  ;;  %v8031_v63 = vrot.slane %v8015_v12, %v17372_v33  ;;  %v8038_v43 = vrot.slane %v8016_v5, %v17372_v33  ;;  %v8046_v22 = vcombine.high %v8024_v57, %v8024_v57  ;;  %v16497_v12 = vld [vmem:[#allocation11 + $0x18] sm:$0xff] }
0x2bb0   :  { %v8053_v61 = vrot.slane %v8024_v57, %v14911_v39  ;;  %v16473_v35 = vpop.f32.mrb[54].mxu1 }
0x2bb1   :  { %v8045_v42 = vrot.slane %v8017_v8, %v17372_v33  ;;  %v8048_v34 = vcombine.high %v8038_v43, %v8038_v43  ;;  %v8057_v37 = vrot.slane %v8038_v43, %v14911_v39  ;;  %v12669_v29 = vpop.f32.mrb[55].mxu1  ;;  %v8061_v40 = vrot.slane %v8046_v22, %v14911_v39  ;;  %v16501_v8 = vld [vmem:[#allocation11 + $0x38] sm:$0xff]  ;;  %v16504_v43 = vld [vmem:[#allocation11 + $0x30] sm:$0xff] }
0x2bb2   :  { %v8069_v14 = vrot.slane %v8031_v63, %v14911_v39  ;;  %v8090_v32 = vadd.f32 %v16479_v2, %v8053_v61  ;;  %v8047_v18 = vcombine.high %v8031_v63, %v8031_v63 }
0x2bb3   :  { %v8049_v44 = vcombine.high %v8045_v42, %v8045_v42  ;;  %v8065_v58 = vrot.slane %v8048_v34, %v14911_v39  ;;  %v8073_v28 = vrot.slane %v8045_v42, %v14911_v39  ;;  %v8091_v23 = vadd.f32 %v16484_v48, %v8057_v37  ;;  %v13812_v42 = vld [vmem:[#allocation29] ss:$0 sm:$0xff] }
0x2bb4   :  { %v8092_v38 = vadd.f32 %v16487_v1, %v8061_v40  ;;  %13594 = vtanh.f32 %v8090_v32  ;;  %v8094_v55 = vadd.f32 %v16491_v0, %v8069_v14  ;;  %v8077_v57 = vrot.slane %v8047_v18, %v14911_v39 }
0x2bb5   :  { %v8081_v49 = vrot.slane %v8049_v44, %v14911_v39  ;;  %v8095_v20 = vadd.f32 %v16494_v45, %v8073_v28  ;;  %13596 = vtanh.f32 %v8091_v23  ;;  %v8093_v5 = vadd.f32 %v16497_v12, %v8065_v58 }
0x2bb6   :  { %13598 = vtanh.f32 %v8092_v38  ;;  %v8096_v22 = vadd.f32 %v16504_v43, %v8077_v57 }
0x2bb7   :  { %v8097_v63 = vadd.f32 %v16501_v8, %v8081_v49  ;;  %13600 = vtanh.f32 %v8094_v55 }
0x2bb8   :  { %13602 = vtanh.f32 %v8095_v20 }
0x2bb9   :  { %13604 = vtanh.f32 %v8093_v5 }
0x2bba   :  { %13606 = vtanh.f32 %v8097_v63 }
0x2bbb   :  { %13608 = vtanh.f32 %v8096_v22 }
0x2bbe   :  { %v13595_v61 = vpop.eup %13594 }
0x2bbf   :  { %v8106_v34 = vmul.f32 %v13812_v42, %v13595_v61  ;;  %v13597_v37 = vpop.eup %13596 }
0x2bc0   :  { %v13599_v29 = vpop.eup %13598  ;;  %v8107_v14 = vmul.f32 %v13812_v42, %v13597_v37 }
0x2bc1   :  { %v8114_v40 = vsel %vm320_vm0, %v8106_v34, 0.0  ;;  %v8108_v32 = vmul.f32 %v13812_v42, %v13599_v29  ;;  %v13601_v44 = vpop.eup %13600 }
0x2bc2   :  { %8115 = vadd.xlane.f32.xlu0 %v8114_v40  ;;  %v8117_v58 = vsel %vm320_vm0, %v8107_v14, 0.0  ;;  %v13603_v28 = vpop.eup %13602  ;;  %v8110_v49 = vmul.f32 %v13812_v42, %v13601_v44  ;;  %v17373_v44 = vld [vmem:[#allocation52_spill] sm:$0xff] }
0x2bc3   :  { %8118 = vadd.xlane.f32.xlu1 %v8117_v58  ;;  %v13605_v18 = vpop.eup %13604  ;;  %v8120_v23 = vsel %vm320_vm0, %v8108_v32, 0.0  ;;  %v8111_v38 = vmul.f32 %v13812_v42, %v13603_v28 }
0x2bc4   :  { %v13607_v55 = vpop.eup %13606  ;;  %v8126_v57 = vsel %vm320_vm0, %v8110_v49, 0.0  ;;  %v8109_v63 = vmul.f32 %v13812_v42, %v13605_v18 }
0x2bc5   :  { %v8129_v20 = vsel %vm320_vm0, %v8111_v38, 0.0  ;;  %v8113_v5 = vmul.f32 %v13812_v42, %v13607_v55  ;;  %v13609_v22 = vpop.eup %13608 }
0x2bc6   :  { %8121 = vadd.xlane.f32.xlu0 %v8120_v23  ;;  %v8123_v34 = vsel %vm320_vm0, %v8109_v63, 0.0  ;;  %v8112_v37 = vmul.f32 %v13812_v42, %v13609_v22 }
0x2bc7   :  { %8130 = vadd.xlane.f32.xlu1 %v8129_v20  ;;  %v8135_v61 = vsel %vm320_vm0, %v8113_v5, 0.0 }
0x2bc8   :  { %v8132_v29 = vsel %vm320_vm0, %v8112_v37, 0.0 }
0x2bca   :  { %8127 = vadd.xlane.f32.xlu0 %v8126_v57 }
0x2bcb   :  { %8136 = vadd.xlane.f32.xlu1 %v8135_v61 }
0x2bce   :  { %8124 = vadd.xlane.f32.xlu0 %v8123_v34 }
0x2bd2   :  { %8133 = vadd.xlane.f32.xlu0 %v8132_v29 }
0x2c4f   :  { %v8116_v40 = vpop.xlane.xlu0 %8115 }
0x2c50   :  { %v8119_v14 = vpop.xlane.xlu1 %8118  ;;  %v8149_v18 = vrot.slane %v8116_v40, %v17373_v44 }
0x2c51   :  { %v8153_v58 = vrot.slane %v8119_v14, %v17373_v44 }
0x2c53   :  { %v8122_v32 = vpop.xlane.xlu0 %8121  ;;  %v8178_v49 = vsel %vm385_vm2, %v8153_v58, %v8149_v18 }
0x2c54   :  { %v8131_v23 = vpop.xlane.xlu1 %8130  ;;  %v8157_v38 = vrot.slane %v8122_v32, %v17373_v44 }
0x2c55   :  { %v8169_v57 = vrot.slane %v8131_v23, %v17373_v44 }
0x2c56   :  { %v8179_v20 = vsel %vm387_vm3, %v8157_v38, %v8178_v49 }
0x2c57   :  { %v8128_v28 = vpop.xlane.xlu0 %8127 }
0x2c58   :  { %v8165_v5 = vrot.slane %v8128_v28, %v17373_v44  ;;  %v8137_v63 = vpop.xlane.xlu1 %8136 }
0x2c59   :  { %v8177_v40 = vrot.slane %v8137_v63, %v17373_v44 }
0x2c5b   :  { %v8125_v55 = vpop.xlane.xlu0 %8124 }
0x2c5c   :  { %v8161_v42 = vrot.slane %v8125_v55, %v17373_v44 }
0x2c5e   :  { %v8180_v22 = vsel %vm389_vm4, %v8161_v42, %v8179_v20 }
0x2c5f   :  { %v8181_v61 = vsel %vm391_vm5, %v8165_v5, %v8180_v22  ;;  %v8134_v34 = vpop.xlane.xlu0 %8133 }
0x2c60   :  { %v8173_v37 = vrot.slane %v8134_v34, %v17373_v44  ;;  %v8182_v29 = vsel %vm393_vm6, %v8169_v57, %v8181_v61 }
0x2c62   :  { %v8183_v14 = vsel %vm395_vm7, %v8173_v37, %v8182_v29 }
0x2c63   :  { %v8184_v32 = vsel %vm397_vm8, %v8177_v40, %v8183_v14  ;;  %v7208_v14 = vsub.f32 1.0, %v16299_v52 }
0x2c64   :  { %v8186_v28 = vsel %vm475_vm9, %v8184_v32, -1e+30  ;;  %v17375_v32 = vld [vmem:[#allocation57_spill] sm:$0xff] }
0x2c65   :  { %v8187_v18 = vsel %vm411_vm10, %v8186_v28, -inf }
0x2c66   :  { %8188 = vmax.xlane.f32.xlu0 %v8187_v18 }
0x2cf3   :  { %v8189_v23 = vpop.xlane.xlu0 %8188 }
0x2cf4   :  { %v8190_v38 = vsub.f32 %v8186_v28, %v8189_v23  ;;  %v16544_v28 = vmul.f32 %v7208_v14, %v17375_v32 }
0x2cf6   :  { %v8191_v49 = vmul.f32 1.442695, %v8190_v38  ;;  %17376 = vst [vmem:[#allocation54_spill] sm:$0xff] %v16544_v28 }
0x2cf8   :  { %13610 = vpow2.f32 %v8191_v49 }
0x2d02   :  { %v13611_v55 = vpop.eup %13610 }
0x2d03   :  { %v8193_v42 = vsel %vm411_vm10, %v13611_v55, 0.0 }
0x2d04   :  { %8194 = vadd.xlane.f32.xlu1 %v8193_v42 }
0x2d91   :  { %v8195_v20 = vpop.xlane.xlu1 %8194 }
0x2d92   :  { %13612 = vrcp.f32 %v8195_v20 }
0x2d93   :  { %13614 = vtanh.f32 %v16445_v10 }
0x2d9c   :  { %v13613_v5 = vpop.eup %13612 }
0x2d9d   :  { %v8197_v57 = vmul.f32 %v13613_v5, %v13611_v55  ;;  %v13615_v49 = vpop.eup %13614 }
0x2d9f   :  { %8622 = vst.msk [vmem:[#allocation37 + $0x28] sm:$0xff] %vm411_vm10, %v8197_v57  ;;  %v8208_v63 = vrot.slane %v8197_v57, %v14989_v46  ;;  %v8201_v22 = vrot.slane %v8197_v57, %v14911_v39  ;;  %v8236_v61 = vrot.slane %v8197_v57, %v14995_v53  ;;  %v8215_v34 = vrot.slane %v8197_v57, %v14998_v54 }
0x2da0   :  { %v8222_v37 = vrot.slane %v8197_v57, %v15003_v59  ;;  %v8229_v29 = vrot.slane %v8197_v57, %v15007_v4  ;;  %v8243_v40 = vrot.slane %v8197_v57, %v15011_v7  ;;  %v8477_v18 = vmul.f32 %v8197_v57, %v16544_v28 }
0x2da1   :  { %8210 = vbcast.lane.b32.xlu0 %v8208_v63, 256  ;;  %8203 = vbcast.lane.b32.xlu1 %v8201_v22, 256  ;;  %v8250_v38 = vrot.slane %v8197_v57, %v15023_v36 }
0x2da2   :  { %v8478_v23 = vsel %vm411_vm10, %v8477_v18, -inf }
0x2da5   :  { %8238 = vbcast.lane.b32.xlu0 %v8236_v61, 256  ;;  %8217 = vbcast.lane.b32.xlu1 %v8215_v34, 256 }
0x2da9   :  { %8224 = vbcast.lane.b32.xlu1 %v8222_v37, 256 }
0x2dad   :  { %8231 = vbcast.lane.b32.xlu1 %v8229_v29, 256 }
0x2db1   :  { %8245 = vbcast.lane.b32.xlu1 %v8243_v40, 256 }
0x2dc4   :  { %8479 = vmax.xlane.f32.xlu0 %v8478_v23 }
0x2dda   :  { %8252 = vbcast.lane.b32.xlu0 %v8250_v38, 256 }
0x2dde   :  { %7524 = vrot.lane.b32.xlu0 %v13615_v49, %s14331_s29 }
0x2e13   :  { %v8204_v55 = vpop.permute.xlu1 %8203  ;;  %v8211_v52 = vpop.permute.xlu0 %8210 }
0x2e14   :  { %v8255_v63 = vmul.f32 %v16484_v48, %v8211_v52  ;;  %v8254_v22 = vmul.f32 %v16479_v2, %v8204_v55 }
0x2e16   :  { %v8269_v57 = vsel %vm320_vm0, %v8255_v63, 0.0  ;;  %v8262_v37 = vsel %vm320_vm0, %v8254_v22, 0.0 }
0x2e17   :  { %v8218_v42 = vpop.permute.xlu1 %8217  ;;  %v8239_v40 = vpop.permute.xlu0 %8238  ;;  %v8270_v23 = vrot.slane %v8269_v57, 4  ;;  %v8263_v48 = vrot.slane %v8262_v37, 4 }
0x2e18   :  { %v8256_v61 = vmul.f32 %v16487_v1, %v8218_v42 }
0x2e19   :  { %v8271_v55 = vadd.f32 %v8270_v23, %v8269_v57  ;;  %v8264_v42 = vadd.f32 %v8263_v48, %v8262_v37 }
0x2e1a   :  { %v8276_v14 = vsel %vm320_vm0, %v8256_v61, 0.0 }
0x2e1b   :  { %v8225_v20 = vpop.permute.xlu1 %8224  ;;  %v8277_v38 = vrot.slane %v8276_v14, 4  ;;  %v8265_v28 = vrot.slane %v8264_v42, 2 }
0x2e1c   :  { %v8257_v34 = vmul.f32 %v16497_v12, %v8225_v20  ;;  %v8259_v12 = vmul.f32 %v16494_v45, %v8239_v40 }
0x2e1d   :  { %v8266_v44 = vadd.f32 %v8265_v28, %v8264_v42 }
0x2e1e   :  { %v8283_v32 = vsel %vm320_vm0, %v8257_v34, 0.0  ;;  %v8297_v52 = vsel %vm320_vm0, %v8259_v12, 0.0  ;;  %v8272_v34 = vrot.slane %v8271_v55, 2 }
0x2e1f   :  { %v8232_v5 = vpop.permute.xlu1 %8231  ;;  %v8267_v12 = vrot.slane %v8266_v44, 1 }
0x2e20   :  { %v8258_v10 = vmul.f32 %v16491_v0, %v8232_v5  ;;  %v8284_v0 = vrot.slane %v8283_v32, 4  ;;  %v8278_v5 = vadd.f32 %v8277_v38, %v8276_v14  ;;  %v8273_v40 = vadd.f32 %v8272_v34, %v8271_v55 }
0x2e22   :  { %v8290_v2 = vsel %vm320_vm0, %v8258_v10, 0.0  ;;  %v8285_v63 = vadd.f32 %v8284_v0, %v8283_v32  ;;  %v8298_v10 = vrot.slane %v8297_v52, 4  ;;  %v8279_v58 = vrot.slane %v8278_v5, 2 }
0x2e23   :  { %v8246_v29 = vpop.permute.xlu1 %8245  ;;  %v8291_v49 = vrot.slane %v8290_v2, 4 }
0x2e24   :  { %v8260_v1 = vmul.f32 %v16504_v43, %v8246_v29  ;;  %v8286_v43 = vrot.slane %v8285_v63, 2  ;;  %v8299_v33 = vadd.f32 %v8298_v10, %v8297_v52  ;;  %v8280_v37 = vadd.f32 %v8279_v58, %v8278_v5 }
0x2e25   :  { %v8292_v22 = vadd.f32 %v8291_v49, %v8290_v2  ;;  %v8268_v5 = vadd.f32 %v8267_v12, %v8266_v44 }
0x2e26   :  { %v8304_v20 = vsel %vm320_vm0, %v8260_v1, 0.0  ;;  %v8287_v23 = vadd.f32 %v8286_v43, %v8285_v63  ;;  %v8274_v1 = vrot.slane %v8273_v40, 1  ;;  %v8300_v38 = vrot.slane %v8299_v33, 2 }
0x2e27   :  { %v8305_v61 = vrot.slane %v8304_v20, 4  ;;  %v8293_v29 = vrot.slane %v8292_v22, 2  ;;  %v8281_v47 = vrot.slane %v8280_v37, 1 }
0x2e28   :  { %v8288_v28 = vrot.slane %v8287_v23, 1  ;;  %v8275_v52 = vadd.f32 %v8274_v1, %v8273_v40  ;;  %v8301_v63 = vadd.f32 %v8300_v38, %v8299_v33 }
0x2e29   :  { %v8306_v45 = vadd.f32 %v8305_v61, %v8304_v20  ;;  %v8294_v14 = vadd.f32 %v8293_v29, %v8292_v22  ;;  %v8282_v61 = vadd.f32 %v8281_v47, %v8280_v37 }
0x2e2a   :  { %v8289_v34 = vadd.f32 %v8288_v28, %v8287_v23 }
0x2e2b   :  { %v8307_v32 = vrot.slane %v8306_v45, 2  ;;  %v8295_v20 = vrot.slane %v8294_v14, 1 }
0x2e2d   :  { %v8308_v58 = vadd.f32 %v8307_v32, %v8306_v45  ;;  %v8296_v43 = vadd.f32 %v8295_v20, %v8294_v14 }
0x2e2f   :  { %v8309_v29 = vrot.slane %v8308_v58, 1 }
0x2e31   :  { %v8310_v44 = vadd.f32 %v8309_v29, %v8308_v58 }
0x2e51   :  { %v8480_v57 = vpop.xlane.xlu0 %8479 }
0x2e52   :  { %vm8481_vm12 = vcmp.eq.f32.partialorder %v8477_v18, %v8480_v57  ;;  %v8396_v57 = vsel %vm385_vm2, %v8275_v52, %v8268_v5 }
0x2e53   :  { %v8482_v48 = vsel %vm8481_vm12, %v14959_v30, 8  ;;  %vm9025_vm12 = vcmp.lt.s32.totalorder %v14904_v19, 6 }
0x2e54   :  { %v8483_v2 = vsel %vm411_vm10, %v8482_v48, 2147483647  ;;  %v8302_v48 = vrot.slane %v8301_v63, 1 }
0x2e55   :  { %v8253_v0 = vpop.permute.xlu0 %8252  ;;  %v8485_v49 = vshra.s32 %v8483_v2, 16  ;;  %v8484_v14 = vand.u32 65535, %v8483_v2 }
0x2e56   :  { %v8261_v55 = vmul.f32 %v16501_v8, %v8253_v0  ;;  %v8397_v0 = vsel %vm387_vm3, %v8282_v61, %v8396_v57  ;;  %v8303_v33 = vadd.f32 %v8302_v48, %v8301_v63 }
0x2e57   :  { %v8487_v42 = vcvt.s32.f32 %v8485_v49  ;;  %v8398_v45 = vsel %vm389_vm4, %v8289_v34, %v8397_v0  ;;  %v8486_v49 = vcvt.s32.f32 %v8484_v14 }
0x2e58   :  { %v8311_v18 = vsel %vm320_vm0, %v8261_v55, 0.0  ;;  %v8399_v40 = vsel %vm391_vm5, %v8296_v43, %v8398_v45 }
0x2e59   :  { %v8312_v22 = vrot.slane %v8311_v18, 4  ;;  %8488 = vmin.xlane.f32.xlu1 %v8487_v42  ;;  %v8400_v47 = vsel %vm393_vm6, %v8303_v33, %v8399_v40  ;;  %v7525_v28 = vpop.permute.xlu0 %7524 }
0x2e5a   :  { %v8401_v37 = vsel %vm395_vm7, %v8310_v44, %v8400_v47  ;;  %v7527_v20 = vmul.f32 %v16448_v3, %v7525_v28 }
0x2e5b   :  { %v8313_v10 = vadd.f32 %v8312_v22, %v8311_v18 }
0x2e5d   :  { %v8314_v8 = vrot.slane %v8313_v10, 2 }
0x2e5f   :  { %v8315_v32 = vadd.f32 %v8314_v8, %v8313_v10  ;;  %v17378_v8 = vmov -1e+30  }
0x2e61   :  { %v8316_v1 = vrot.slane %v8315_v32, 1 }
0x2e63   :  { %v8317_v12 = vadd.f32 %v8316_v1, %v8315_v32  ;;  %v17379_v1 = vld [vmem:[#allocation55_spill] sm:$0xff] }
0x2e65   :  { %v8402_v23 = vsel %vm397_vm8, %v8317_v12, %v8401_v37  ;;  %v7522_v12 = vmul.f32 %v16448_v3, %v17379_v1  ;;  %v13814_v3 = vld [vmem:[#allocation8 + $0x18] sm:$0xff] }
0x2e66   :  { %12679 = vmatmul.mubr.msk.f32.vlgmr.msra.gmra.mrb[76].mxu0 %vm320_vm0, %v8402_v23 }
0x2e67   :  { %13227 = vmatpush3.bf16.msra.mxu0 %v14786_v9  ;;  %12700 = vmatprep.mubr.msk.f32.mxu0 %vm14329_vm1, %v17328_v13 }
0x2e68   :  { %13228 = vmatprep.subr.bf16.mxu0 %v17329_v41 }
0x2e6b   :  { %13230 = vmatpush3.bf16.msra.mxu0 %v14794_v17 }
0x2e6c   :  { %13237 = vmatprep.subr.bf16.mxu0 %v17329_v41 }
0x2ee6   :  { %v8489_v38 = vpop.xlane.xlu1 %8488 }
0x2ee7   :  { %vm8490_vm14 = vcmp.eq.f32.partialorder %v8487_v42, %v8489_v38  ;;  %v8495_v5 = vcvt.f32.s32 %v8489_v38 }
0x2ee8   :  { %v8491_v55 = vsel %vm8490_vm14, %v8486_v49, inf  ;;  %vm9026_vm14 = vmand %vm9025_vm12, %vm473_vm15  ;;  %v13813_v49 = vld [vmem:[#allocation8] sm:$0xff] }
0x2ee9   :  { %8492 = vmin.xlane.f32.xlu0 %v8491_v55  ;;  %v8496_v22 = vshll.u32 %v8495_v5, 16  ;;  %v16612_v0 = vsel %vm9026_vm14, 0.0, %v17378_v8 }
0x2eea   :  { %v9176_v45 = vrot.slane %v16612_v0, %v14911_v39  ;;  %v9190_v40 = vrot.slane %v16612_v0, %v14998_v54  ;;  %v9204_v47 = vrot.slane %v16612_v0, %v15007_v4  ;;  %v9218_v23 = vrot.slane %v16612_v0, %v15011_v7 }
0x2eff   :  { %7529 = vrot.lane.b32.xlu0 %v7527_v20, %s14332_s9 }
0x2f39   :  { %v8471_v58 = vpop.f32.mrb[76].mxu0 }
0x2f3a   :  { %v16586_v18 = vadd.f32 %v8471_v58, %v16473_v35  ;;  %v12680_v52 = vpop.f32.mrb[77].mxu0 }
0x2f76   :  { %v8493_v63 = vpop.xlane.xlu0 %8492 }
0x2f77   :  { %v8494_v61 = vcvt.f32.s32 %v8493_v63 }
0x2f79   :  { %v8497_v2 = vadd.s32 %v8496_v22, %v8494_v61  ;;  %v13815_v61 = vld [vmem:[#allocation8 + $0x8] sm:$0xff] }
0x2f7a   :  { %v7530_v33 = vpop.permute.xlu0 %7529 }
0x2f7b   :  { %vm8498_vm11 = vcmp.eq.s32.totalorder %v14959_v30, %v8497_v2  ;;  %11626 = vst.msk [vmem:[%s17330_s13 + $0x28] sm:$0xff] %vm1532_vm13, %v8497_v2  ;;  %v16626_v37 = vadd.f32 %v7530_v33, %v7522_v12  ;;  %v13817_v33 = vld [vmem:[#allocation8 + $0x10] sm:$0xff]  ;;  %v13818_v12 = vld [vmem:[#allocation8 + $0x38] sm:$0xff] }
0x2f7c   :  { %v16594_v42 = vsel %vm8498_vm11, 1.0, %v17328_v13 }
0x2f7d   :  { %v8525_v35 = vrot.slane %v16594_v42, %v15003_v59  ;;  %v8504_v34 = vrot.slane %v16594_v42, %v14911_v39  ;;  %v8539_v10 = vrot.slane %v16594_v42, %v14995_v53  ;;  %v8511_v43 = vrot.slane %v16594_v42, %v14989_v46  ;;  %17380 = vst [vmem:[#allocation49_spill] sm:$0xff] %v16626_v37 }
0x2f7e   :  { %v8553_v57 = vrot.slane %v16594_v42, %v15023_v36  ;;  %v8518_v48 = vrot.slane %v16594_v42, %v14998_v54  ;;  %v8532_v32 = vrot.slane %v16594_v42, %v15007_v4  ;;  %v8546_v44 = vrot.slane %v16594_v42, %v15011_v7 }
0x2f7f   :  { %8527 = vbcast.lane.b32.xlu0 %v8525_v35, 256  ;;  %8506 = vbcast.lane.b32.xlu1 %v8504_v34, 256  ;;  %v13816_v35 = vld [vmem:[#allocation8 + $0x28] sm:$0xff] }
0x2f83   :  { %8541 = vbcast.lane.b32.xlu0 %v8539_v10, 256  ;;  %8513 = vbcast.lane.b32.xlu1 %v8511_v43, 256 }
0x2f87   :  { %8555 = vbcast.lane.b32.xlu0 %v8553_v57, 256  ;;  %8520 = vbcast.lane.b32.xlu1 %v8518_v48, 256 }
0x2f8b   :  { %8534 = vbcast.lane.b32.xlu1 %v8532_v32, 256  ;;  %9178 = vbcast.lane.b32.xlu0 %v9176_v45, 256 }
0x2f8f   :  { %8548 = vbcast.lane.b32.xlu1 %v8546_v44, 256  ;;  %9192 = vbcast.lane.b32.xlu0 %v9190_v40, 256 }
0x2f93   :  { %8951 = vrot.lane.b32.xlu1 %v16626_v37, %s14333_s19  ;;  %9206 = vbcast.lane.b32.xlu0 %v9204_v47, 256 }
0x2f97   :  { %9220 = vbcast.lane.b32.xlu0 %v9218_v23, 256 }
0x2ff1   :  { %v8507_v14 = vpop.permute.xlu1 %8506  ;;  %v8528_v38 = vpop.permute.xlu0 %8527 }
0x2ff2   :  { %v8557_v55 = vmul.f32 %v13813_v49, %v8507_v14  ;;  %v8560_v28 = vmul.f32 %v13814_v3, %v8528_v38 }
0x2ff4   :  { %v8565_v20 = vsel %vm320_vm0, %v8557_v55, 0.0  ;;  %v8586_v58 = vsel %vm320_vm0, %v8560_v28, 0.0 }
0x2ff5   :  { %v8566_v52 = vrot.slane %v8565_v20, 4  ;;  %v8587_v5 = vrot.slane %v8586_v58, 4  ;;  %v8514_v63 = vpop.permute.xlu1 %8513  ;;  %v8542_v22 = vpop.permute.xlu0 %8541 }
0x2ff6   :  { %v8558_v2 = vmul.f32 %v13815_v61, %v8514_v63  ;;  %v8562_v34 = vmul.f32 %v13816_v35, %v8542_v22 }
0x2ff7   :  { %v8567_v10 = vadd.f32 %v8566_v52, %v8565_v20  ;;  %v8588_v48 = vadd.f32 %v8587_v5, %v8586_v58  ;;  %v13819_v5 = vld [vmem:[#allocation8 + $0x20] sm:$0xff] }
0x2ff8   :  { %v8572_v43 = vsel %vm320_vm0, %v8558_v2, 0.0  ;;  %v8600_v57 = vsel %vm320_vm0, %v8562_v34, 0.0 }
0x2ff9   :  { %v8573_v45 = vrot.slane %v8572_v43, 4  ;;  %v8521_v32 = vpop.permute.xlu1 %8520  ;;  %v8556_v40 = vpop.permute.xlu0 %8555  ;;  %v8601_v44 = vrot.slane %v8600_v57, 4  ;;  %v8568_v23 = vrot.slane %v8567_v10, 2  ;;  %v8589_v55 = vrot.slane %v8588_v48, 2 }
0x2ffa   :  { %v8559_v1 = vmul.f32 %v13817_v33, %v8521_v32  ;;  %v8564_v47 = vmul.f32 %v13818_v12, %v8556_v40  ;;  %v13820_v12 = vld [vmem:[#allocation8 + $0x30] sm:$0xff] }
0x2ffb   :  { %v8574_v14 = vadd.f32 %v8573_v45, %v8572_v43  ;;  %v8602_v20 = vadd.f32 %v8601_v44, %v8600_v57  ;;  %v8569_v22 = vadd.f32 %v8568_v23, %v8567_v10  ;;  %v8590_v40 = vadd.f32 %v8589_v55, %v8588_v48 }
0x2ffc   :  { %v8579_v38 = vsel %vm320_vm0, %v8559_v1, 0.0  ;;  %v8614_v49 = vsel %vm320_vm0, %v8564_v47, 0.0 }
0x2ffd   :  { %v8575_v3 = vrot.slane %v8574_v14, 2  ;;  %v8535_v28 = vpop.permute.xlu1 %8534  ;;  %v8580_v52 = vrot.slane %v8579_v38, 4  ;;  %v8615_v58 = vrot.slane %v8614_v49, 4  ;;  %v8603_v33 = vrot.slane %v8602_v20, 2 }
0x2ffe   :  { %v8561_v63 = vmul.f32 %v13819_v5, %v8535_v28  ;;  %v8570_v37 = vrot.slane %v8569_v22, 1 }
0x2fff   :  { %v8576_v61 = vadd.f32 %v8575_v3, %v8574_v14  ;;  %v8581_v2 = vadd.f32 %v8580_v52, %v8579_v38  ;;  %v8616_v35 = vadd.f32 %v8615_v58, %v8614_v49  ;;  %v8591_v38 = vrot.slane %v8590_v40, 1 }
0x3000   :  { %v8593_v34 = vsel %vm320_vm0, %v8561_v63, 0.0  ;;  %v8604_v49 = vadd.f32 %v8603_v33, %v8602_v20  ;;  %v8571_v52 = vadd.f32 %v8570_v37, %v8569_v22 }
0x3001   :  { %v8577_v32 = vrot.slane %v8576_v61, 1  ;;  %v8594_v43 = vrot.slane %v8593_v34, 4  ;;  %v8549_v45 = vpop.permute.xlu1 %8548  ;;  %v8582_v1 = vrot.slane %v8581_v2, 2  ;;  %v8617_v8 = vrot.slane %v8616_v35, 2 }
0x3002   :  { %v8563_v47 = vmul.f32 %v13820_v12, %v8549_v45 }
0x3003   :  { %v8595_v57 = vadd.f32 %v8594_v43, %v8593_v34  ;;  %v8583_v44 = vadd.f32 %v8582_v1, %v8581_v2  ;;  %v8578_v10 = vadd.f32 %v8577_v32, %v8576_v61  ;;  %v8618_v55 = vadd.f32 %v8617_v8, %v8616_v35  ;;  %v13821_v32 = vld [vmem:[#allocation25] ss:$0 sm:$0xff] }
0x3004   :  { %v8607_v28 = vsel %vm320_vm0, %v8563_v47, 0.0  ;;  %v8592_v34 = vadd.f32 %v8591_v38, %v8590_v40  ;;  %v8605_v2 = vrot.slane %v8604_v49, 1  ;;  %v8475_v47 = vadd.f32 %v13821_v32, %v16586_v18 }
0x3005   :  { %v8596_v23 = vrot.slane %v8595_v57, 2  ;;  %v8608_v14 = vrot.slane %v8607_v28, 4  ;;  %v8584_v3 = vrot.slane %v8583_v44, 1  ;;  %v8635_v63 = vsel %vm385_vm2, %v8578_v10, %v8571_v52  ;;  %v8952_v10 = vpop.permute.xlu1 %8951  ;;  %v13822_v52 = vld [vmem:[%s17236_s18] ss:$0 sm:$0xff] }
0x3006   :  { %v8619_v20 = vrot.slane %v8618_v55, 1  ;;  %v8606_v8 = vadd.f32 %v8605_v2, %v8604_v49  ;;  %13616 = vtanh.f32 %v8475_v47  ;;  %v9211_v38 = vrot.slane %v16612_v0, %v14995_v53 }
0x3007   :  { %v8597_v58 = vadd.f32 %v8596_v23, %v8595_v57  ;;  %v8609_v5 = vadd.f32 %v8608_v14, %v8607_v28  ;;  %v8585_v48 = vadd.f32 %v8584_v3, %v8583_v44  ;;  %v9183_v23 = vrot.slane %v16612_v0, %v14989_v46 }
0x3008   :  { %v8620_v57 = vadd.f32 %v8619_v20, %v8618_v55  ;;  %v9197_v14 = vrot.slane %v16612_v0, %v15003_v59  ;;  %v9225_v49 = vrot.slane %v16612_v0, %v15023_v36  ;;  %v13823_v55 = vld [vmem:[%s17238_s20] ss:$0 sm:$0xff] }
0x3009   :  { %v8598_v45 = vrot.slane %v8597_v58, 1  ;;  %v8610_v12 = vrot.slane %v8609_v5, 2  ;;  %v8636_v43 = vsel %vm387_vm3, %v8585_v48, %v8635_v63  ;;  %9185 = vbcast.lane.b32.xlu1 %v9183_v23, 256  ;;  %v9028_v20 = vld [vmem:[#allocation6] sm:$0xff] }
0x300a   :  { %v8637_v37 = vsel %vm389_vm4, %v8592_v34, %v8636_v43 }
0x300b   :  { %v8599_v1 = vadd.f32 %v8598_v45, %v8597_v58  ;;  %v8611_v61 = vadd.f32 %v8610_v12, %v8609_v5 }
0x300d   :  { %v8612_v22 = vrot.slane %v8611_v61, 1  ;;  %v8638_v33 = vsel %vm391_vm5, %v8599_v1, %v8637_v37  ;;  %9199 = vbcast.lane.b32.xlu1 %v9197_v14, 256  ;;  %v9029_v37 = vld [vmem:[#allocation6 + $0x8] sm:$0xff] }
0x300e   :  { %v8639_v40 = vsel %vm393_vm6, %v8606_v8, %v8638_v33  ;;  %v9030_v8 = vld [vmem:[#allocation6 + $0x10] sm:$0xff] }
0x300f   :  { %v8613_v35 = vadd.f32 %v8612_v22, %v8611_v61  ;;  %v13824_v61 = vld [vmem:[#allocation32] ss:$0 sm:$0xff] }
0x3010   :  { %v13617_v18 = vpop.eup %13616 }
0x3011   :  { %v8640_v44 = vsel %vm395_vm7, %v8613_v35, %v8639_v40  ;;  %9213 = vbcast.lane.b32.xlu1 %v9211_v38, 256  ;;  %v9035_v38 = vld [vmem:[#allocation6 + $0x38] sm:$0xff] }
0x3012   :  { %v8641_v28 = vsel %vm397_vm8, %v8620_v57, %v8640_v44  ;;  %v9031_v57 = vld [vmem:[#allocation6 + $0x18] sm:$0xff]  ;;  %v9032_v44 = vld [vmem:[#allocation6 + $0x20] sm:$0xff] }
0x3013   :  { %9331 = vrot.lane.b32.xlu0 %v8641_v28, %s14333_s19  ;;  %12690 = vmatmul.mubr.msk.f32.vlgmr.msra.gmra.mrb[56].mxu1 %vm320_vm0, %v8641_v28 }
0x3014   :  { %12701 = vmatmul.mubr.msk.f32.vlgmr.msra.gmra.mrb[78].mxu0 %vm320_vm0, %v8641_v28  ;;  %13233 = vmatpush3.bf16.msra.mxu1 %v14799_v24 }
0x3015   :  { %13239 = vmatpush3.bf16.msra.mxu0 %v14801_v25  ;;  %13234 = vmatprep.subr.bf16.mxu1 %v17329_v41 }
0x3016   :  { %13240 = vmatprep.subr.bf16.mxu0 %v17329_v41  ;;  %12711 = vmatprep.mubr.msk.f32.mxu1 %vm14329_vm1, %v17328_v13 }
0x3017   :  { %12722 = vmatprep.mubr.msk.f32.mxu0 %vm14329_vm1, %v17328_v13  ;;  %9227 = vbcast.lane.b32.xlu1 %v9225_v49, 256 }
0x3018   :  { %13236 = vmatpush3.bf16.msra.mxu1 %v14803_v26 }
0x3019   :  { %13242 = vmatpush3.bf16.msra.mxu0 %v14814_v31  ;;  %13243 = vmatprep.subr.bf16.mxu1 %v17329_v41 }
0x301a   :  { %13250 = vmatprep.subr.bf16.mxu0 %v15202_v27 }
0x301b   :  { %12712 = vmatmul.mubr.msk.f32.vlgmr.msra.gmra.mrb[58].mxu1 %vm320_vm0, %v13617_v18  ;;  %v9033_v18 = vld [vmem:[#allocation6 + $0x28] sm:$0xff] }
0x301c   :  { %12723 = vmatmul.mubr.msk.f32.vlgmr.msra.gmra.mrb[80].mxu0 %vm320_vm0, %v8641_v28  ;;  %13245 = vmatpush3.bf16.msra.mxu1 %v15181_v50 }
0x301d   :  { %13246 = vmatprep.subr.bf16.mxu1 %v17329_v41  ;;  %12733 = vmatprep.mubr.msk.f32.mxu1 %vm14329_vm1, %v17328_v13 }
0x301e   :  { %13252 = vmatpush3.bf16.msra.mxu0 %v15202_v27 }
0x301f   :  { %13254 = vmatprep.subr.bf16.mxu0 %v15206_v16 }
0x3020   :  { %13248 = vmatpush3.bf16.msra.mxu1 %v15188_v21 }
0x3021   :  { %13257 = vmatprep.subr.bf16.mxu1 %v17329_v41 }
0x3022   :  { %13256 = vmatpush3.bf16.msra.mxu0 %v15206_v16 }
0x3023   :  { %12734 = vmatmul.mubr.msk.f32.vlgmr.msra.gmra.mrb[60].mxu1 %vm320_vm0, %v8952_v10  ;;  %13269 = vmatprep.subr.bf16.mxu0 %v17329_v41 }
0x3024   :  { %13259 = vmatpush3.bf16.msra.mxu1 %v14872_v56  ;;  %12764 = vmatprep.mubr.msk.f32.mxu1 %vm14329_vm1, %v17328_v13 }
0x3025   :  { %13260 = vmatprep.subr.bf16.mxu1 %v17329_v41 }
0x3028   :  { %13262 = vmatpush3.bf16.msra.mxu1 %v14876_v60 }
0x3029   :  { %13263 = vmatprep.subr.bf16.mxu1 %v17329_v41 }
0x30e6   :  { %v8710_v3 = vpop.f32.mrb[56].mxu1 }
0x30e7   :  { %v8711_v58 = vadd.f32 %v13822_v52, %v8710_v3  ;;  %v8782_v5 = vpop.f32.mrb[78].mxu0  ;;  %v12691_v48 = vpop.f32.mrb[57].mxu1 }
0x30e8   :  { %v8783_v63 = vadd.f32 %v13823_v55, %v8782_v5  ;;  %v12702_v45 = vpop.f32.mrb[79].mxu0  ;;  %v9186_v3 = vpop.permute.xlu1 %9185 }
0x30e9   :  { %8715 = vst.msk [vmem:[#allocation6 + $0x30] sm:$0xff] %vm320_vm0, %v8711_v58  ;;  %v9179_v52 = vpop.permute.xlu0 %9178 }
0x30ea   :  { %8787 = vst.msk [vmem:[#allocation7 + $0x30] sm:$0xff] %vm320_vm0, %v8783_v63 }
0x30ec   :  { %v9200_v58 = vpop.permute.xlu1 %9199 }
0x30ed   :  { %v9193_v48 = vpop.permute.xlu0 %9192 }
0x30ee   :  { %v8857_v0 = vpop.f32.mrb[58].mxu1 }
0x30ef   :  { %v8927_v12 = vpop.f32.mrb[80].mxu0  ;;  %v12713_v34 = vpop.f32.mrb[59].mxu1 }
0x30f0   :  { %v16698_v2 = vadd.f32 %v8927_v12, %v8857_v0  ;;  %v12724_v43 = vpop.f32.mrb[81].mxu0  ;;  %v9034_v23 = vld [vmem:[#allocation6 + $0x30] sm:$0xff]  ;;  %v9214_v45 = vpop.permute.xlu1 %9213 }
0x30f1   :  { %v9207_v12 = vpop.permute.xlu0 %9206 }
0x30f6   :  { %v9021_v1 = vpop.f32.mrb[60].mxu1 }
0x30f7   :  { %v9022_v32 = vadd.f32 %v13824_v61, %v9021_v1  ;;  %v12735_v47 = vpop.f32.mrb[61].mxu1 }
0x30f9   :  { %v9036_v22 = vmul.f32 %v9028_v20, %v9022_v32  ;;  %v9037_v33 = vmul.f32 %v9029_v37, %v9022_v32  ;;  %v9038_v35 = vmul.f32 %v9030_v8, %v9022_v32  ;;  %v9039_v40 = vmul.f32 %v9031_v57, %v9022_v32  ;;  %v9228_v20 = vpop.permute.xlu1 %9227 }
0x30fa   :  { %v9040_v28 = vmul.f32 %v9032_v44, %v9022_v32  ;;  %v9041_v10 = vmul.f32 %v9033_v18, %v9022_v32  ;;  %v9042_v14 = vmul.f32 %v9034_v23, %v9022_v32  ;;  %v9043_v49 = vmul.f32 %v9035_v38, %v9022_v32 }
0x30fb   :  { %12744 = vmatprep.mubr.msk.f32.mxu0 %vm320_vm0, %v9036_v22 }
0x30fc   :  { %12745 = vmatmul.mubr.msk.f32.vlgmr.msra.gmra.mrb[82].mxu0 %vm320_vm0, %v9037_v33 }
0x30fd   :  { %12747 = vmatprep.mubr.msk.f32.mxu0 %vm320_vm0, %v9038_v35  ;;  %13271 = vmatpush3.bf16.msra.mxu0 %v15035_v11 }
0x30fe   :  { %13272 = vmatprep.subr.bf16.mxu0 %v17329_v41 }
0x3100   :  { %12748 = vmatmul.mubr.msk.f32.gmra.mrb[84].mxu0 %vm320_vm0, %v9039_v40 }
0x3101   :  { %12750 = vmatprep.mubr.msk.f32.mxu0 %vm320_vm0, %v9040_v28  ;;  %13274 = vmatpush3.bf16.msra.mxu0 %v15049_v6  ;;  %v9221_v28 = vpop.permute.xlu0 %9220 }
0x3102   :  { %13281 = vmatprep.subr.bf16.mxu0 %v17329_v41 }
0x3104   :  { %12751 = vmatmul.mubr.msk.f32.gmra.mrb[86].mxu0 %vm320_vm0, %v9041_v10 }
0x3105   :  { %12753 = vmatprep.mubr.msk.f32.mxu0 %vm320_vm0, %v9042_v14 }
0x3108   :  { %12754 = vmatmul.mubr.msk.f32.gmra.mrb[88].mxu0 %vm320_vm0, %v9043_v49 }
0x3109   :  { %12786 = vmatprep.mubr.msk.f32.mxu0 %vm14329_vm1, %v17328_v13 }
0x31cf   :  { %v12746_v5 = vpop.f32.mrb[82].mxu0 }
0x31d0   :  { %v9134_v55 = vpop.f32.mrb[83].mxu0  ;;  %v9230_v34 = vadd.f32 %v12746_v5, %v9186_v3 }
0x31d1   :  { %v9229_v43 = vadd.f32 %v9179_v52, %v9134_v55 }
0x31d2   :  { %v9238_v37 = vsel %vm320_vm0, %v9230_v34, -inf }
0x31d3   :  { %v12749_v63 = vpop.f32.mrb[84].mxu0  ;;  %v9237_v8 = vsel %vm320_vm0, %v9229_v43, -inf }
0x31d4   :  { %v9144_v0 = vpop.f32.mrb[85].mxu0  ;;  %v9232_v22 = vadd.f32 %v12749_v63, %v9200_v58 }
0x31d5   :  { %v9231_v35 = vadd.f32 %v9193_v48, %v9144_v0 }
0x31d6   :  { %v9240_v38 = vsel %vm320_vm0, %v9232_v22, -inf }
0x31d7   :  { %v12752_v1 = vpop.f32.mrb[86].mxu0  ;;  %v9239_v52 = vsel %vm320_vm0, %v9231_v35, -inf }
0x31d8   :  { %v9234_v61 = vadd.f32 %v12752_v1, %v9214_v45  ;;  %v9154_v32 = vpop.f32.mrb[87].mxu0 }
0x31d9   :  { %v9233_v47 = vadd.f32 %v9207_v12, %v9154_v32 }
0x31da   :  { %v9243_v33 = vsel %vm320_vm0, %v9234_v61, -inf }
0x31db   :  { %v9244_v57 = vmax.f32 %v9238_v37, %v9243_v33  ;;  %v9241_v40 = vsel %vm320_vm0, %v9233_v47, -inf  ;;  %v12755_v44 = vpop.f32.mrb[88].mxu0 }
0x31dc   :  { %v9242_v18 = vmax.f32 %v9237_v8, %v9241_v40  ;;  %v9236_v10 = vadd.f32 %v12755_v44, %v9228_v20  ;;  %v9164_v23 = vpop.f32.mrb[89].mxu0 }
0x31dd   :  { %v9235_v14 = vadd.f32 %v9221_v28, %v9164_v23 }
0x31de   :  { %v9249_v49 = vmax.f32 %v9242_v18, %v9244_v57  ;;  %v9247_v3 = vsel %vm320_vm0, %v9236_v10, -inf }
0x31df   :  { %v9248_v58 = vmax.f32 %v9240_v38, %v9247_v3  ;;  %v9245_v5 = vsel %vm320_vm0, %v9235_v14, -inf }
0x31e0   :  { %v9246_v48 = vmax.f32 %v9239_v52, %v9245_v5 }
0x31e2   :  { %v9250_v55 = vmax.f32 %v9246_v48, %v9248_v58 }
0x31e4   :  { %v9251_v63 = vmax.f32 %v9249_v49, %v9250_v55 }
0x31e6   :  { %v9252_v45 = vsub.f32 %v9229_v43, %v9251_v63  ;;  %v9253_v0 = vsub.f32 %v9230_v34, %v9251_v63  ;;  %v9254_v12 = vsub.f32 %v9231_v35, %v9251_v63  ;;  %v9255_v1 = vsub.f32 %v9232_v22, %v9251_v63 }
0x31e7   :  { %v9256_v32 = vsub.f32 %v9233_v47, %v9251_v63  ;;  %v9257_v20 = vsub.f32 %v9234_v61, %v9251_v63  ;;  %v9258_v37 = vsub.f32 %v9235_v14, %v9251_v63  ;;  %v9259_v33 = vsub.f32 %v9236_v10, %v9251_v63 }
0x31e8   :  { %v9260_v8 = vmul.f32 1.442695, %v9252_v45  ;;  %v9262_v57 = vmul.f32 1.442695, %v9253_v0  ;;  %v9264_v40 = vmul.f32 1.442695, %v9254_v12 }
0x31e9   :  { %v9266_v44 = vmul.f32 1.442695, %v9255_v1  ;;  %v9268_v28 = vmul.f32 1.442695, %v9256_v32  ;;  %v9270_v18 = vmul.f32 1.442695, %v9257_v20 }
0x31ea   :  { %13618 = vpow2.f32 %v9260_v8  ;;  %v9272_v23 = vmul.f32 1.442695, %v9258_v37  ;;  %v9274_v34 = vmul.f32 1.442695, %v9259_v33 }
0x31eb   :  { %13620 = vpow2.f32 %v9262_v57 }
0x31ec   :  { %13622 = vpow2.f32 %v9264_v40 }
0x31ed   :  { %13624 = vpow2.f32 %v9266_v44 }
0x31ee   :  { %13626 = vpow2.f32 %v9268_v28 }
0x31ef   :  { %13628 = vpow2.f32 %v9270_v18 }
0x31f0   :  { %13630 = vpow2.f32 %v9272_v23 }
0x31f1   :  { %13632 = vpow2.f32 %v9274_v34 }
0x31f4   :  { %v13619_v43 = vpop.eup %13618 }
0x31f5   :  { %v13621_v47 = vpop.eup %13620  ;;  %v9276_v61 = vsel %vm320_vm0, %v13619_v43, 0.0 }
0x31f6   :  { %v13623_v22 = vpop.eup %13622  ;;  %v9277_v35 = vsel %vm320_vm0, %v13621_v47, 0.0 }
0x31f7   :  { %v13625_v10 = vpop.eup %13624  ;;  %v9278_v14 = vadd.f32 %v9277_v35, %v9276_v61  ;;  %v9279_v38 = vsel %vm320_vm0, %v13623_v22, 0.0  ;;  %v9300_v61 = vld [vmem:[#allocation7] sm:$0xff]  ;;  %v9301_v35 = vld [vmem:[#allocation7 + $0x8] sm:$0xff] }
0x31f8   :  { %v13627_v49 = vpop.eup %13626  ;;  %v9281_v52 = vsel %vm320_vm0, %v13625_v10, 0.0 }
0x31f9   :  { %v9280_v3 = vadd.f32 %v9279_v38, %v9278_v14  ;;  %v13629_v58 = vpop.eup %13628  ;;  %v9283_v48 = vsel %vm320_vm0, %v13627_v49, 0.0  ;;  %v9302_v14 = vld [vmem:[#allocation7 + $0x10] sm:$0xff] }
0x31fa   :  { %v13631_v55 = vpop.eup %13630  ;;  %v9285_v45 = vsel %vm320_vm0, %v13629_v58, 0.0 }
0x31fb   :  { %v9282_v5 = vadd.f32 %v9281_v52, %v9280_v3  ;;  %v13633_v0 = vpop.eup %13632  ;;  %v9287_v1 = vsel %vm320_vm0, %v13631_v55, 0.0 }
0x31fc   :  { %v9289_v20 = vsel %vm320_vm0, %v13633_v0, 0.0 }
0x31fd   :  { %v9284_v63 = vadd.f32 %v9283_v48, %v9282_v5  ;;  %v9303_v5 = vld [vmem:[#allocation7 + $0x18] sm:$0xff] }
0x31ff   :  { %v9286_v12 = vadd.f32 %v9285_v45, %v9284_v63 }
0x3201   :  { %v9288_v32 = vadd.f32 %v9287_v1, %v9286_v12  ;;  %v9306_v12 = vld [vmem:[#allocation7 + $0x30] sm:$0xff]  ;;  %v9307_v1 = vld [vmem:[#allocation7 + $0x38] sm:$0xff] }
0x3203   :  { %v9290_v37 = vadd.f32 %v9289_v20, %v9288_v32 }
0x3205   :  { %13634 = vrcp.f32 %v9290_v37 }
0x320f   :  { %v13635_v33 = vpop.eup %13634 }
0x3210   :  { %v9292_v8 = vmul.f32 %v13635_v33, %v13619_v43  ;;  %v9293_v57 = vmul.f32 %v13635_v33, %v13621_v47  ;;  %v9294_v40 = vmul.f32 %v13635_v33, %v13623_v22  ;;  %v9295_v44 = vmul.f32 %v13635_v33, %v13625_v10  ;;  %v9304_v43 = vld [vmem:[#allocation7 + $0x20] sm:$0xff] }
0x3211   :  { %v9296_v28 = vmul.f32 %v13635_v33, %v13627_v49  ;;  %v9297_v18 = vmul.f32 %v13635_v33, %v13629_v58  ;;  %v9298_v23 = vmul.f32 %v13635_v33, %v13631_v55  ;;  %v9299_v34 = vmul.f32 %v13635_v33, %v13633_v0  ;;  %v9305_v49 = vld [vmem:[#allocation7 + $0x28] sm:$0xff] }
0x3212   :  { %v9308_v38 = vmul.f32 %v9300_v61, %v9292_v8  ;;  %v9309_v3 = vmul.f32 %v9301_v35, %v9293_v57  ;;  %v9310_v52 = vmul.f32 %v9302_v14, %v9294_v40  ;;  %v9311_v48 = vmul.f32 %v9303_v5, %v9295_v44  ;;  %v9332_v5 = vpop.permute.xlu0 %9331 }
0x3213   :  { %v9312_v22 = vmul.f32 %v9304_v43, %v9296_v28  ;;  %v9313_v55 = vmul.f32 %v9305_v49, %v9297_v18  ;;  %v9314_v20 = vmul.f32 %v9306_v12, %v9298_v23  ;;  %v9315_v8 = vmul.f32 %v9307_v1, %v9299_v34  ;;  %v13825_v18 = vld [vmem:[#allocation22] ss:$0 sm:$0xff] }
0x3214   :  { %v9316_v63 = vsel %vm320_vm0, %v9308_v38, 0.0  ;;  %v9317_v45 = vsel %vm320_vm0, %v9309_v3, 0.0  ;;  %v9319_v10 = vsel %vm320_vm0, %v9310_v52, 0.0  ;;  %v9321_v0 = vsel %vm320_vm0, %v9311_v48, 0.0 }
0x3215   :  { %v9318_v47 = vadd.f32 %v9317_v45, %v9316_v63  ;;  %v9323_v37 = vsel %vm320_vm0, %v9312_v22, 0.0  ;;  %v9325_v57 = vsel %vm320_vm0, %v9313_v55, 0.0  ;;  %v9327_v44 = vsel %vm320_vm0, %v9314_v20, 0.0 }
0x3216   :  { %v9329_v61 = vsel %vm320_vm0, %v9315_v8, 0.0  ;;  %v16740_v14 = vadd.f32 %v13825_v18, %v16698_v2 }
0x3217   :  { %v9320_v58 = vadd.f32 %v9319_v10, %v9318_v47  ;;  %v17381_v47 = vld [vmem:[#allocation50_spill] sm:$0xff]  ;;  %v13826_v10 = vld [vmem:[#allocation28] ss:$0 sm:$0xff] }
0x3218   :  { %v11631_v23 = vmul.f32 -1.442695, %v16740_v14 }
0x3219   :  { %v9322_v32 = vadd.f32 %v9321_v0, %v9320_v58  ;;  %v17382_v0 = vld [vmem:[#allocation51_spill] sm:$0xff] }
0x321a   :  { %13636 = vpow2.f32 %v11631_v23 }
0x321b   :  { %v9324_v33 = vadd.f32 %v9323_v37, %v9322_v32 }
0x321d   :  { %v9326_v40 = vadd.f32 %v9325_v57, %v9324_v33 }
0x321f   :  { %v9328_v28 = vadd.f32 %v9327_v44, %v9326_v40 }
0x3221   :  { %v9330_v35 = vadd.f32 %v9329_v61, %v9328_v28 }
0x3223   :  { %9337 = vrot.lane.b32.xlu1 %v9330_v35, %s14333_s19 }
0x3224   :  { %v13637_v38 = vpop.eup %13636 }
0x3225   :  { %v8935_v34 = vadd.f32 1.0, %v13637_v38 }
0x3227   :  { %13638 = vrcp.f32 %v8935_v34  ;;  %v16774_v34 = vld [vmem:[#allocation11] sm:$0xff] }
0x3231   :  { %v16743_v3 = vpop.eup %13638 }
0x3232   :  { %v9335_v52 = vsub.f32 1.0, %v16743_v3  ;;  %v9334_v63 = vmul.f32 %v16743_v3, %v9332_v5 }
0x3295   :  { %v9338_v48 = vpop.permute.xlu1 %9337 }
0x3296   :  { %v9340_v45 = vmul.f32 %v9338_v48, %v9335_v52 }
0x3298   :  { %v9341_v43 = vadd.f32 %v9340_v45, %v9334_v63  ;;  %v16779_v63 = vld [vmem:[#allocation11 + $0x8] sm:$0xff] }
0x329a   :  { %9343 = vrot.lane.b32.xlu0 %v9341_v43, %s14332_s9  ;;  %v16782_v43 = vld [vmem:[#allocation11 + $0x10] sm:$0xff] }
0x330c   :  { %v9344_v2 = vpop.permute.xlu0 %9343 }
0x330d   :  { %12765 = vmatmul.mubr.msk.f32.vlgmr.msra.gmra.mrb[62].mxu1 %vm320_vm0, %v9344_v2 }
0x330e   :  { %13265 = vmatpush3.bf16.msra.mxu1 %v17332_v15  ;;  %12775 = vmatprep.mubr.msk.f32.mxu1 %vm14329_vm1, %v17328_v13 }
0x330f   :  { %13266 = vmatprep.subr.bf16.mxu1 %v17329_v41 }
0x3312   :  { %13268 = vmatpush3.bf16.msra.mxu1 %v17350_v51 }
0x3313   :  { %13275 = vmatprep.subr.bf16.mxu1 %v17329_v41 }
0x3315   :  { %12776 = vmatmul.mubr.msk.f32.vlgmr.msra.gmra.mrb[64].mxu1 %vm320_vm0, %v9344_v2 }
0x3316   :  { %13277 = vmatpush3.bf16.msra.mxu1 %v17370_v62  ;;  %12797 = vmatprep.mubr.msk.f32.mxu1 %vm14329_vm1, %v17328_v13 }
0x3317   :  { %13278 = vmatprep.subr.bf16.mxu1 %v17329_v41 }
0x331a   :  { %13280 = vmatpush3.bf16.msra.mxu1 %v17381_v47  ;;  %v16785_v47 = vld [vmem:[#allocation11 + $0x20] sm:$0xff] }
0x331b   :  { %13287 = vmatprep.subr.bf16.mxu1 %v17329_v41 }
0x33e0   :  { %v9413_v22 = vpop.f32.mrb[62].mxu1 }
0x33e1   :  { %v9414_v49 = vadd.f32 %v13826_v10, %v9413_v22  ;;  %v12766_v58 = vpop.f32.mrb[63].mxu1 }
0x33e2   :  { %v16789_v58 = vld [vmem:[#allocation11 + $0x18] sm:$0xff] }
0x33e3   :  { %v9418_v55 = vcombine.high %v9414_v49, %v9414_v49  ;;  %v9425_v12 = vrot.slane %v9414_v49, %v17382_v0 }
0x33e5   :  { %v9432_v1 = vrot.slane %v9418_v55, %v17382_v0  ;;  %v9433_v32 = vcombine.high %v9425_v12, %v9425_v12  ;;  %v9441_v62 = vrot.slane %v9425_v12, %v17382_v0  ;;  %v16792_v12 = vld [vmem:[#allocation11 + $0x30] sm:$0xff] }
0x33e7   :  { %v9434_v20 = vcombine.high %v9432_v1, %v9432_v1  ;;  %v9448_v37 = vrot.slane %v9432_v1, %v17382_v0  ;;  %v9455_v33 = vrot.slane %v9433_v32, %v17382_v0  ;;  %v9463_v8 = vcombine.high %v9441_v62, %v9441_v62 }
0x33e8   :  { %v9470_v57 = vrot.slane %v9441_v62, %v14911_v39  ;;  %v16768_v40 = vpop.f32.mrb[64].mxu1  ;;  %v16796_v62 = vld [vmem:[#allocation11 + $0x28] sm:$0xff] }
0x33e9   :  { %v9464_v44 = vcombine.high %v9448_v37, %v9448_v37  ;;  %v9465_v28 = vcombine.high %v9455_v33, %v9455_v33  ;;  %v9474_v61 = vrot.slane %v9455_v33, %v14911_v39  ;;  %v12777_v35 = vpop.f32.mrb[65].mxu1  ;;  %v9462_v18 = vrot.slane %v9434_v20, %v17382_v0  ;;  %v16799_v33 = vld [vmem:[#allocation11 + $0x38] sm:$0xff] }
0x33ea   :  { %v9478_v23 = vrot.slane %v9463_v8, %v14911_v39  ;;  %v9486_v38 = vrot.slane %v9448_v37, %v14911_v39  ;;  %v9507_v52 = vadd.f32 %v16774_v34, %v9470_v57  ;;  %v13835_v57 = vld [vmem:[#allocation29] ss:$0 sm:$0xff] }
0x33eb   :  { %v9482_v5 = vrot.slane %v9465_v28, %v14911_v39  ;;  %v9494_v48 = vrot.slane %v9464_v44, %v14911_v39  ;;  %v9508_v45 = vadd.f32 %v16779_v63, %v9474_v61  ;;  %v9466_v10 = vcombine.high %v9462_v18, %v9462_v18 }
0x33ec   :  { %v9509_v2 = vadd.f32 %v16782_v43, %v9478_v23  ;;  %13640 = vtanh.f32 %v9507_v52  ;;  %v9511_v22 = vadd.f32 %v16785_v47, %v9486_v38  ;;  %v9490_v49 = vrot.slane %v9462_v18, %v14911_v39 }
0x33ed   :  { %v9510_v55 = vadd.f32 %v16789_v58, %v9482_v5  ;;  %13642 = vtanh.f32 %v9508_v45  ;;  %v9513_v1 = vadd.f32 %v16792_v12, %v9494_v48  ;;  %v9498_v32 = vrot.slane %v9466_v10, %v14911_v39 }
0x33ee   :  { %13644 = vtanh.f32 %v9509_v2  ;;  %v9512_v20 = vadd.f32 %v16796_v62, %v9490_v49 }
0x33ef   :  { %13646 = vtanh.f32 %v9511_v22  ;;  %v9514_v8 = vadd.f32 %v16799_v33, %v9498_v32 }
0x33f0   :  { %13648 = vtanh.f32 %v9510_v55 }
0x33f1   :  { %13650 = vtanh.f32 %v9513_v1 }
0x33f2   :  { %13652 = vtanh.f32 %v9512_v20 }
0x33f3   :  { %13654 = vtanh.f32 %v9514_v8 }
0x33f6   :  { %v13641_v37 = vpop.eup %13640 }
0x33f7   :  { %v9523_v44 = vmul.f32 %v13835_v57, %v13641_v37  ;;  %v13643_v28 = vpop.eup %13642 }
0x33f8   :  { %v13645_v61 = vpop.eup %13644  ;;  %v9524_v18 = vmul.f32 %v13835_v57, %v13643_v28 }
0x33f9   :  { %v9531_v35 = vsel %vm320_vm0, %v9523_v44, 0.0  ;;  %v13647_v23 = vpop.eup %13646  ;;  %v9525_v52 = vmul.f32 %v13835_v57, %v13645_v61 }
0x33fa   :  { %9532 = vadd.xlane.f32.xlu1 %v9531_v35  ;;  %v9534_v38 = vsel %vm320_vm0, %v9524_v18, 0.0  ;;  %v13649_v5 = vpop.eup %13648  ;;  %v9527_v48 = vmul.f32 %v13835_v57, %v13647_v23  ;;  %v17383_v23 = vld [vmem:[#allocation52_spill] sm:$0xff] }
0x33fb   :  { %9535 = vadd.xlane.f32.xlu0 %v9534_v38  ;;  %v13651_v45 = vpop.eup %13650  ;;  %v9537_v10 = vsel %vm320_vm0, %v9525_v52, 0.0  ;;  %v9526_v49 = vmul.f32 %v13835_v57, %v13649_v5 }
0x33fc   :  { %v9543_v2 = vsel %vm320_vm0, %v9527_v48, 0.0  ;;  %v9529_v22 = vmul.f32 %v13835_v57, %v13651_v45  ;;  %v13653_v55 = vpop.eup %13652 }
0x33fd   :  { %v9540_v32 = vsel %vm320_vm0, %v9526_v49, 0.0  ;;  %v9528_v20 = vmul.f32 %v13835_v57, %v13653_v55  ;;  %v13655_v37 = vpop.eup %13654 }
0x33fe   :  { %9544 = vadd.xlane.f32.xlu1 %v9543_v2  ;;  %v9549_v1 = vsel %vm320_vm0, %v9529_v22, 0.0  ;;  %v9530_v44 = vmul.f32 %v13835_v57, %v13655_v37 }
0x33ff   :  { %9538 = vadd.xlane.f32.xlu0 %v9537_v10  ;;  %v9546_v8 = vsel %vm320_vm0, %v9528_v20, 0.0 }
0x3400   :  { %v9552_v28 = vsel %vm320_vm0, %v9530_v44, 0.0 }
0x3402   :  { %9550 = vadd.xlane.f32.xlu1 %v9549_v1 }
0x3403   :  { %9541 = vadd.xlane.f32.xlu0 %v9540_v32 }
0x3407   :  { %9547 = vadd.xlane.f32.xlu0 %v9546_v8 }
0x340b   :  { %9553 = vadd.xlane.f32.xlu0 %v9552_v28 }
0x3487   :  { %v9533_v35 = vpop.xlane.xlu1 %9532 }
0x3488   :  { %v9536_v61 = vpop.xlane.xlu0 %9535  ;;  %v9566_v5 = vrot.slane %v9533_v35, %v17383_v23 }
0x3489   :  { %v9570_v38 = vrot.slane %v9536_v61, %v17383_v23 }
0x348b   :  { %v9545_v48 = vpop.xlane.xlu1 %9544  ;;  %v9595_v2 = vsel %vm385_vm2, %v9570_v38, %v9566_v5 }
0x348c   :  { %v9539_v18 = vpop.xlane.xlu0 %9538  ;;  %v9582_v49 = vrot.slane %v9545_v48, %v17383_v23 }
0x348d   :  { %v9574_v52 = vrot.slane %v9539_v18, %v17383_v23 }
0x348f   :  { %v9596_v57 = vsel %vm387_vm3, %v9574_v52, %v9595_v2  ;;  %v9551_v1 = vpop.xlane.xlu1 %9550 }
0x3490   :  { %v9542_v45 = vpop.xlane.xlu0 %9541  ;;  %v9590_v8 = vrot.slane %v9551_v1, %v17383_v23 }
0x3491   :  { %v9578_v22 = vrot.slane %v9542_v45, %v17383_v23 }
0x3493   :  { %v9597_v10 = vsel %vm389_vm4, %v9578_v22, %v9596_v57 }
0x3494   :  { %v9548_v55 = vpop.xlane.xlu0 %9547  ;;  %v9598_v20 = vsel %vm391_vm5, %v9582_v49, %v9597_v10 }
0x3495   :  { %v9586_v32 = vrot.slane %v9548_v55, %v17383_v23 }
0x3497   :  { %v9599_v37 = vsel %vm393_vm6, %v9586_v32, %v9598_v20 }
0x3498   :  { %v9554_v44 = vpop.xlane.xlu0 %9553  ;;  %v9600_v61 = vsel %vm395_vm7, %v9590_v8, %v9599_v37 }
0x3499   :  { %v9594_v28 = vrot.slane %v9554_v44, %v17383_v23 }
0x349b   :  { %v9601_v35 = vsel %vm397_vm8, %v9594_v28, %v9600_v61  ;;  %v8625_v28 = vsub.f32 1.0, %v16594_v42  ;;  %v17385_v61 = vld [vmem:[#allocation54_spill] sm:$0xff] }
0x349c   :  { %v9603_v38 = vsel %vm475_vm9, %v9601_v35, -1e+30 }
0x349d   :  { %v9604_v52 = vsel %vm411_vm10, %v9603_v38, -inf  ;;  %v16839_v35 = vmul.f32 %v8625_v28, %v17385_v61 }
0x349e   :  { %9605 = vmax.xlane.f32.xlu1 %v9604_v52 }
0x349f   :  { %17386 = vst [vmem:[#allocation57_spill] sm:$0xff] %v16839_v35 }
0x352b   :  { %v9606_v5 = vpop.xlane.xlu1 %9605 }
0x352c   :  { %v9607_v48 = vsub.f32 %v9603_v38, %v9606_v5 }
0x352e   :  { %v9608_v45 = vmul.f32 1.442695, %v9607_v48 }
0x3530   :  { %13656 = vpow2.f32 %v9608_v45 }
0x353a   :  { %v13657_v2 = vpop.eup %13656 }
0x353b   :  { %v9610_v22 = vsel %vm411_vm10, %v13657_v2, 0.0 }
0x353c   :  { %9611 = vadd.xlane.f32.xlu0 %v9610_v22 }
0x35c9   :  { %v9612_v57 = vpop.xlane.xlu0 %9611 }
0x35ca   :  { %13658 = vrcp.f32 %v9612_v57 }
0x35cb   :  { %13660 = vtanh.f32 %v16740_v14 }
0x35d4   :  { %v13659_v10 = vpop.eup %13658 }
0x35d5   :  { %v9614_v49 = vmul.f32 %v13659_v10, %v13657_v2  ;;  %v13661_v48 = vpop.eup %13660 }
0x35d7   :  { %10039 = vst.msk [vmem:[#allocation37 + $0x30] sm:$0xff] %vm411_vm10, %v9614_v49  ;;  %v9625_v55 = vrot.slane %v9614_v49, %v14989_v46  ;;  %v9618_v1 = vrot.slane %v9614_v49, %v14911_v39  ;;  %v9632_v32 = vrot.slane %v9614_v49, %v14998_v54  ;;  %v9646_v20 = vrot.slane %v9614_v49, %v15007_v4 }
0x35d8   :  { %v9639_v37 = vrot.slane %v9614_v49, %v15003_v59  ;;  %v9660_v8 = vrot.slane %v9614_v49, %v15011_v7  ;;  %v9653_v44 = vrot.slane %v9614_v49, %v14995_v53  ;;  %v9894_v38 = vmul.f32 %v9614_v49, %v16839_v35 }
0x35d9   :  { %9627 = vbcast.lane.b32.xlu1 %v9625_v55, 256  ;;  %9620 = vbcast.lane.b32.xlu0 %v9618_v1, 256  ;;  %v9667_v5 = vrot.slane %v9614_v49, %v15023_v36 }
0x35da   :  { %v9895_v52 = vsel %vm411_vm10, %v9894_v38, -inf }
0x35dd   :  { %9634 = vbcast.lane.b32.xlu1 %v9632_v32, 256  ;;  %9648 = vbcast.lane.b32.xlu0 %v9646_v20, 256 }
0x35e1   :  { %9641 = vbcast.lane.b32.xlu1 %v9639_v37, 256  ;;  %9662 = vbcast.lane.b32.xlu0 %v9660_v8, 256 }
0x35e5   :  { %9655 = vbcast.lane.b32.xlu1 %v9653_v44, 256 }
0x3609   :  { %9896 = vmax.xlane.f32.xlu1 %v9895_v52 }
0x361a   :  { %9669 = vbcast.lane.b32.xlu1 %v9667_v5, 256 }
0x361e   :  { %8941 = vrot.lane.b32.xlu1 %v13661_v48, %s14331_s29 }
0x364b   :  { %v9628_v45 = vpop.permute.xlu1 %9627  ;;  %v9621_v22 = vpop.permute.xlu0 %9620 }
0x364c   :  { %v9672_v57 = vmul.f32 %v16779_v63, %v9628_v45  ;;  %v9671_v10 = vmul.f32 %v16774_v34, %v9621_v22 }
0x364e   :  { %v9686_v49 = vsel %vm320_vm0, %v9672_v57, 0.0  ;;  %v9679_v20 = vsel %vm320_vm0, %v9671_v10, 0.0 }
0x364f   :  { %v9635_v2 = vpop.permute.xlu1 %9634  ;;  %v9649_v1 = vpop.permute.xlu0 %9648  ;;  %v9687_v28 = vrot.slane %v9686_v49, 4  ;;  %v9680_v63 = vrot.slane %v9679_v20, 4 }
0x3650   :  { %v9673_v55 = vmul.f32 %v16782_v43, %v9635_v2  ;;  %v9675_v34 = vmul.f32 %v16785_v47, %v9649_v1 }
0x3651   :  { %v9688_v5 = vadd.f32 %v9687_v28, %v9686_v49  ;;  %v9681_v48 = vadd.f32 %v9680_v63, %v9679_v20 }
0x3652   :  { %v9693_v37 = vsel %vm320_vm0, %v9673_v55, 0.0  ;;  %v9707_v45 = vsel %vm320_vm0, %v9675_v34, 0.0 }
0x3653   :  { %v9642_v42 = vpop.permute.xlu1 %9641  ;;  %v9694_v61 = vrot.slane %v9693_v37, 4  ;;  %v9663_v43 = vpop.permute.xlu0 %9662  ;;  %v9708_v10 = vrot.slane %v9707_v45, 4  ;;  %v9682_v55 = vrot.slane %v9681_v48, 2 }
0x3654   :  { %v9674_v32 = vmul.f32 %v16789_v58, %v9642_v42  ;;  %v9677_v2 = vmul.f32 %v16792_v12, %v9663_v43 }
0x3655   :  { %v9695_v22 = vadd.f32 %v9694_v61, %v9693_v37  ;;  %v9709_v35 = vadd.f32 %v9708_v10, %v9707_v45  ;;  %v9683_v49 = vadd.f32 %v9682_v55, %v9681_v48 }
0x3656   :  { %v9700_v8 = vsel %vm320_vm0, %v9674_v32, 0.0  ;;  %v9721_v32 = vsel %vm320_vm0, %v9677_v2, 0.0 }
0x3657   :  { %v9656_v14 = vpop.permute.xlu1 %9655  ;;  %v9701_v52 = vrot.slane %v9700_v8, 4  ;;  %v9696_v47 = vrot.slane %v9695_v22, 2  ;;  %v9722_v18 = vrot.slane %v9721_v32, 4  ;;  %v9710_v12 = vrot.slane %v9709_v35, 2 }
0x3658   :  { %v9676_v44 = vmul.f32 %v16796_v62, %v9656_v14  ;;  %v9689_v62 = vrot.slane %v9688_v5, 2  ;;  %v9684_v61 = vrot.slane %v9683_v49, 1 }
0x3659   :  { %v9702_v42 = vadd.f32 %v9701_v52, %v9700_v8  ;;  %v9697_v20 = vadd.f32 %v9696_v47, %v9695_v22  ;;  %v9723_v37 = vadd.f32 %v9722_v18, %v9721_v32 }
0x365a   :  { %v9714_v58 = vsel %vm320_vm0, %v9676_v44, 0.0  ;;  %v9690_v44 = vadd.f32 %v9689_v62, %v9688_v5  ;;  %v9711_v5 = vadd.f32 %v9710_v12, %v9709_v35  ;;  %v9685_v10 = vadd.f32 %v9684_v61, %v9683_v49 }
0x365b   :  { %v9715_v57 = vrot.slane %v9714_v58, 4  ;;  %v9703_v1 = vrot.slane %v9702_v42, 2  ;;  %v9698_v52 = vrot.slane %v9697_v20, 1  ;;  %v9724_v48 = vrot.slane %v9723_v37, 2 }
0x365c   :  { %v9691_v8 = vrot.slane %v9690_v44, 1 }
0x365d   :  { %v9716_v14 = vadd.f32 %v9715_v57, %v9714_v58  ;;  %v9704_v28 = vadd.f32 %v9703_v1, %v9702_v42  ;;  %v9699_v18 = vadd.f32 %v9698_v52, %v9697_v20  ;;  %v9712_v1 = vrot.slane %v9711_v5, 1 }
0x365e   :  { %v9692_v42 = vadd.f32 %v9691_v8, %v9690_v44 }
0x365f   :  { %v9717_v63 = vrot.slane %v9716_v14, 2  ;;  %v9705_v23 = vrot.slane %v9704_v28, 1  ;;  %v9713_v49 = vadd.f32 %v9712_v1, %v9711_v5 }
0x3661   :  { %v9718_v58 = vadd.f32 %v9717_v63, %v9716_v14  ;;  %v9706_v55 = vadd.f32 %v9705_v23, %v9704_v28  ;;  %v9813_v14 = vsel %vm385_vm2, %v9692_v42, %v9685_v10 }
0x3662   :  { %v9814_v35 = vsel %vm387_vm3, %v9699_v18, %v9813_v14 }
0x3663   :  { %v9719_v32 = vrot.slane %v9718_v58, 1  ;;  %v9815_v12 = vsel %vm389_vm4, %v9706_v55, %v9814_v35  ;;  %v17387_v35 = vmov -1e+30  }
0x3664   :  { %v9816_v61 = vsel %vm391_vm5, %v9713_v49, %v9815_v12  ;;  %v17388_v49 = vld [vmem:[#allocation49_spill] sm:$0xff] }
0x3696   :  { %v9897_v34 = vpop.xlane.xlu1 %9896 }
0x3697   :  { %vm9898_vm11 = vcmp.eq.f32.partialorder %v9894_v38, %v9897_v34  ;;  %v9725_v34 = vadd.f32 %v9724_v48, %v9723_v37 }
0x3698   :  { %v9899_v43 = vsel %vm9898_vm11, %v14959_v30, 8  ;;  %vm10442_vm11 = vcmp.lt.s32.totalorder %v14904_v19, 7 }
0x3699   :  { %v9900_v2 = vsel %vm411_vm10, %v9899_v43, 2147483647  ;;  %v9726_v8 = vrot.slane %v9725_v34, 1 }
0x369a   :  { %v9902_v45 = vshra.s32 %v9900_v2, 16  ;;  %v9670_v57 = vpop.permute.xlu1 %9669  ;;  %v9901_v5 = vand.u32 65535, %v9900_v2 }
0x369b   :  { %v9678_v22 = vmul.f32 %v16799_v33, %v9670_v57  ;;  %v9720_v33 = vadd.f32 %v9719_v32, %v9718_v58  ;;  %v9727_v43 = vadd.f32 %v9726_v8, %v9725_v34  ;;  %v8939_v8 = vmul.f32 %v16743_v3, %v17388_v49  ;;  %v13841_v49 = vld [vmem:[#allocation8 + $0x20] sm:$0xff] }
0x369c   :  { %v9904_v62 = vcvt.s32.f32 %v9902_v45 }
0x369d   :  { %v9728_v38 = vsel %vm320_vm0, %v9678_v22, 0.0  ;;  %v9817_v23 = vsel %vm393_vm6, %v9720_v33, %v9816_v61  ;;  %v9903_v22 = vcvt.s32.f32 %v9901_v5 }
0x369e   :  { %v9729_v47 = vrot.slane %v9728_v38, 4  ;;  %9905 = vmin.xlane.f32.xlu0 %v9904_v62  ;;  %v9818_v37 = vsel %vm395_vm7, %v9727_v43, %v9817_v23  ;;  %v8942_v58 = vpop.permute.xlu1 %8941 }
0x369f   :  { %v8944_v57 = vmul.f32 %v16743_v3, %v8942_v58 }
0x36a0   :  { %v9730_v63 = vadd.f32 %v9729_v47, %v9728_v38 }
0x36a2   :  { %v9731_v44 = vrot.slane %v9730_v63, 2 }
0x36a4   :  { %v9732_v20 = vadd.f32 %v9731_v44, %v9730_v63 }
0x36a6   :  { %v9733_v28 = vrot.slane %v9732_v20, 1 }
0x36a8   :  { %v9734_v52 = vadd.f32 %v9733_v28, %v9732_v20 }
0x36aa   :  { %v9819_v45 = vsel %vm397_vm8, %v9734_v52, %v9818_v37  ;;  %v13836_v52 = vld [vmem:[#allocation8] sm:$0xff] }
0x36ab   :  { %12787 = vmatmul.mubr.msk.f32.vlgmr.msra.gmra.mrb[90].mxu0 %vm320_vm0, %v9819_v45  ;;  %v13837_v45 = vld [vmem:[#allocation8 + $0x8] sm:$0xff] }
0x36ac   :  { %13283 = vmatpush3.bf16.msra.mxu0 %v14786_v9  ;;  %12808 = vmatprep.mubr.msk.f32.mxu0 %vm14329_vm1, %v17328_v13 }
0x36ad   :  { %13284 = vmatprep.subr.bf16.mxu0 %v17329_v41 }
0x36b0   :  { %13286 = vmatpush3.bf16.msra.mxu0 %v14794_v17 }
0x36b1   :  { %13293 = vmatprep.subr.bf16.mxu0 %v17329_v41 }
0x36b4   :  { %8946 = vrot.lane.b32.xlu0 %v8944_v57, %s14332_s9 }
0x372b   :  { %v9906_v48 = vpop.xlane.xlu0 %9905 }
0x372c   :  { %vm9907_vm12 = vcmp.eq.f32.partialorder %v9904_v62, %v9906_v48  ;;  %v9912_v38 = vcvt.f32.s32 %v9906_v48 }
0x372d   :  { %v9908_v42 = vsel %vm9907_vm12, %v9903_v22, inf  ;;  %vm10443_vm12 = vmand %vm10442_vm11, %vm473_vm15 }
0x372e   :  { %9909 = vmin.xlane.f32.xlu1 %v9908_v42  ;;  %v9913_v17 = vshll.u32 %v9912_v38, 16  ;;  %v16907_v12 = vsel %vm10443_vm12, 0.0, %v17387_v35 }
0x372f   :  { %v8947_v44 = vpop.permute.xlu0 %8946  ;;  %v10593_v29 = vrot.slane %v16907_v12, %v14911_v39  ;;  %v10607_v61 = vrot.slane %v16907_v12, %v14998_v54  ;;  %v10621_v23 = vrot.slane %v16907_v12, %v15007_v4  ;;  %v10635_v3 = vrot.slane %v16907_v12, %v15011_v7 }
0x3730   :  { %v16917_v20 = vadd.f32 %v8947_v44, %v8939_v8 }
0x377e   :  { %v9888_v9 = vpop.f32.mrb[90].mxu0 }
0x377f   :  { %v16881_v10 = vadd.f32 %v9888_v9, %v16768_v40  ;;  %v12788_v18 = vpop.f32.mrb[91].mxu0 }
0x3780   :  { %v13838_v18 = vld [vmem:[#allocation8 + $0x18] sm:$0xff] }
0x37bb   :  { %v9910_v55 = vpop.xlane.xlu1 %9909 }
0x37bc   :  { %v9911_v32 = vcvt.f32.s32 %v9910_v55  ;;  %v13839_v55 = vld [vmem:[#allocation8 + $0x10] sm:$0xff] }
0x37be   :  { %v9914_v47 = vadd.s32 %v9913_v17, %v9911_v32 }
0x37c0   :  { %vm9915_vm14 = vcmp.eq.s32.totalorder %v14959_v30, %v9914_v47  ;;  %11645 = vst.msk [vmem:[%s17330_s13 + $0x30] sm:$0xff] %vm1532_vm13, %v9914_v47 }
0x37c1   :  { %v16889_v2 = vsel %vm9915_vm14, 1.0, %v17328_v13 }
0x37c2   :  { %v9928_v40 = vrot.slane %v16889_v2, %v14989_v46  ;;  %v9921_v62 = vrot.slane %v16889_v2, %v14911_v39  ;;  %v9935_v1 = vrot.slane %v16889_v2, %v14998_v54  ;;  %v9942_v34 = vrot.slane %v16889_v2, %v15003_v59 }
0x37c3   :  { %v9949_v14 = vrot.slane %v16889_v2, %v15007_v4  ;;  %v9956_v63 = vrot.slane %v16889_v2, %v14995_v53  ;;  %v9963_v33 = vrot.slane %v16889_v2, %v15011_v7  ;;  %v9970_v19 = vrot.slane %v16889_v2, %v15023_v36 }
0x37c4   :  { %9930 = vbcast.lane.b32.xlu0 %v9928_v40, 256  ;;  %9923 = vbcast.lane.b32.xlu1 %v9921_v62, 256 }
0x37c8   :  { %9937 = vbcast.lane.b32.xlu0 %v9935_v1, 256  ;;  %9944 = vbcast.lane.b32.xlu1 %v9942_v34, 256 }
0x37cc   :  { %9951 = vbcast.lane.b32.xlu0 %v9949_v14, 256  ;;  %9958 = vbcast.lane.b32.xlu1 %v9956_v63, 256 }
0x37d0   :  { %9965 = vbcast.lane.b32.xlu0 %v9963_v33, 256  ;;  %9972 = vbcast.lane.b32.xlu1 %v9970_v19, 256  ;;  %v13840_v19 = vld [vmem:[#allocation8 + $0x28] sm:$0xff] }
0x37d4   :  { %10368 = vrot.lane.b32.xlu0 %v16917_v20, %s14333_s19  ;;  %10595 = vbcast.lane.b32.xlu1 %v10593_v29, 256 }
0x37d8   :  { %10609 = vbcast.lane.b32.xlu1 %v10607_v61, 256 }
0x37dc   :  { %10623 = vbcast.lane.b32.xlu1 %v10621_v23, 256 }
0x37e0   :  { %10637 = vbcast.lane.b32.xlu1 %v10635_v3, 256 }
0x3836   :  { %v9924_v28 = vpop.permute.xlu1 %9923  ;;  %v9931_v43 = vpop.permute.xlu0 %9930 }
0x3837   :  { %v9974_v37 = vmul.f32 %v13836_v52, %v9924_v28  ;;  %v9975_v58 = vmul.f32 %v13837_v45, %v9931_v43 }
0x3839   :  { %v9982_v57 = vsel %vm320_vm0, %v9974_v37, 0.0  ;;  %v9989_v5 = vsel %vm320_vm0, %v9975_v58, 0.0 }
0x383a   :  { %v9983_v48 = vrot.slane %v9982_v57, 4  ;;  %v9990_v22 = vrot.slane %v9989_v5, 4  ;;  %v9945_v42 = vpop.permute.xlu1 %9944  ;;  %v9938_v9 = vpop.permute.xlu0 %9937 }
0x383b   :  { %v9977_v38 = vmul.f32 %v13838_v18, %v9945_v42  ;;  %v9976_v17 = vmul.f32 %v13839_v55, %v9938_v9  ;;  %v13842_v42 = vld [vmem:[#allocation8 + $0x38] sm:$0xff]  ;;  %v13843_v18 = vld [vmem:[#allocation8 + $0x30] sm:$0xff] }
0x383c   :  { %v9984_v32 = vadd.f32 %v9983_v48, %v9982_v57  ;;  %v9991_v47 = vadd.f32 %v9990_v22, %v9989_v5 }
0x383d   :  { %v10003_v40 = vsel %vm320_vm0, %v9977_v38, 0.0  ;;  %v9996_v62 = vsel %vm320_vm0, %v9976_v17, 0.0 }
0x383e   :  { %v9985_v1 = vrot.slane %v9984_v32, 2  ;;  %v9992_v34 = vrot.slane %v9991_v47, 2  ;;  %v10004_v14 = vrot.slane %v10003_v40, 4  ;;  %v9997_v63 = vrot.slane %v9996_v62, 4  ;;  %v9959_v35 = vpop.permute.xlu1 %9958  ;;  %v9952_v33 = vpop.permute.xlu0 %9951 }
0x383f   :  { %v9979_v44 = vmul.f32 %v13840_v19, %v9959_v35  ;;  %v9978_v8 = vmul.f32 %v13841_v49, %v9952_v33 }
0x3840   :  { %v9986_v29 = vadd.f32 %v9985_v1, %v9984_v32  ;;  %v9993_v61 = vadd.f32 %v9992_v34, %v9991_v47  ;;  %v10005_v23 = vadd.f32 %v10004_v14, %v10003_v40  ;;  %v9998_v3 = vadd.f32 %v9997_v63, %v9996_v62 }
0x3841   :  { %v10017_v28 = vsel %vm320_vm0, %v9979_v44, 0.0  ;;  %v10010_v43 = vsel %vm320_vm0, %v9978_v8, 0.0 }
0x3842   :  { %v9987_v52 = vrot.slane %v9986_v29, 1  ;;  %v9994_v37 = vrot.slane %v9993_v61, 1  ;;  %v10006_v45 = vrot.slane %v10005_v23, 2  ;;  %v9999_v58 = vrot.slane %v9998_v3, 2  ;;  %v9973_v57 = vpop.permute.xlu1 %9972  ;;  %v9966_v5 = vpop.permute.xlu0 %9965 }
0x3843   :  { %v10018_v48 = vrot.slane %v10017_v28, 4  ;;  %v10011_v22 = vrot.slane %v10010_v43, 4  ;;  %v9981_v9 = vmul.f32 %v13842_v42, %v9973_v57  ;;  %v9980_v38 = vmul.f32 %v13843_v18, %v9966_v5 }
0x3844   :  { %v9988_v55 = vadd.f32 %v9987_v52, %v9986_v29  ;;  %v10007_v17 = vadd.f32 %v10006_v45, %v10005_v23  ;;  %v10000_v32 = vadd.f32 %v9999_v58, %v9998_v3  ;;  %v9995_v34 = vadd.f32 %v9994_v37, %v9993_v61 }
0x3845   :  { %v10019_v47 = vadd.f32 %v10018_v48, %v10017_v28  ;;  %v10012_v40 = vadd.f32 %v10011_v22, %v10010_v43  ;;  %v10031_v62 = vsel %vm320_vm0, %v9981_v9, 0.0  ;;  %v10024_v1 = vsel %vm320_vm0, %v9980_v38, 0.0  ;;  %v16937_v22 = vld [vmem:[#allocation25] ss:$0 sm:$0xff] }
0x3846   :  { %v10008_v14 = vrot.slane %v10007_v17, 1  ;;  %v10001_v63 = vrot.slane %v10000_v32, 1  ;;  %v10032_v35 = vrot.slane %v10031_v62, 4  ;;  %v10025_v44 = vrot.slane %v10024_v1, 4 }
0x3847   :  { %v10020_v33 = vrot.slane %v10019_v47, 2  ;;  %v10013_v19 = vrot.slane %v10012_v40, 2  ;;  %v10052_v23 = vsel %vm385_vm2, %v9995_v34, %v9988_v55  ;;  %v9892_v42 = vadd.f32 %v16937_v22, %v16881_v10  ;;  %v13846_v34 = vld [vmem:[%s17238_s20] ss:$0 sm:$0xff] }
0x3848   :  { %v10002_v49 = vadd.f32 %v10001_v63, %v10000_v32  ;;  %v10033_v8 = vadd.f32 %v10032_v35, %v10031_v62  ;;  %v10026_v29 = vadd.f32 %v10025_v44, %v10024_v1  ;;  %v10009_v3 = vadd.f32 %v10008_v14, %v10007_v17 }
0x3849   :  { %v10021_v57 = vadd.f32 %v10020_v33, %v10019_v47  ;;  %v10014_v5 = vadd.f32 %v10013_v19, %v10012_v40  ;;  %13662 = vtanh.f32 %v9892_v42 }
0x384a   :  { %v10034_v28 = vrot.slane %v10033_v8, 2  ;;  %v10053_v43 = vsel %vm387_vm3, %v10002_v49, %v10052_v23  ;;  %v10027_v61 = vrot.slane %v10026_v29, 2  ;;  %v10446_v23 = vld [vmem:[#allocation6 + $0x8] sm:$0xff] }
0x384b   :  { %v10022_v52 = vrot.slane %v10021_v57, 1  ;;  %v10015_v45 = vrot.slane %v10014_v5, 1  ;;  %v10054_v38 = vsel %vm389_vm4, %v10009_v3, %v10053_v43  ;;  %v10447_v43 = vld [vmem:[#allocation6 + $0x10] sm:$0xff] }
0x384c   :  { %v10035_v37 = vadd.f32 %v10034_v28, %v10033_v8  ;;  %v10028_v48 = vadd.f32 %v10027_v61, %v10026_v29  ;;  %v13847_v8 = vld [vmem:[#allocation32] ss:$0 sm:$0xff] }
0x384d   :  { %v10016_v58 = vadd.f32 %v10015_v45, %v10014_v5  ;;  %v10023_v9 = vadd.f32 %v10022_v52, %v10021_v57  ;;  %v10445_v29 = vld [vmem:[#allocation6] sm:$0xff]  ;;  %v10448_v45 = vld [vmem:[#allocation6 + $0x18] sm:$0xff] }
0x384e   :  { %v10036_v18 = vrot.slane %v10035_v37, 1  ;;  %v10029_v55 = vrot.slane %v10028_v48, 1 }
0x384f   :  { %v10055_v17 = vsel %vm391_vm5, %v10016_v58, %v10054_v38 }
0x3850   :  { %v10037_v32 = vadd.f32 %v10036_v18, %v10035_v37  ;;  %v10030_v47 = vadd.f32 %v10029_v55, %v10028_v48  ;;  %v10056_v40 = vsel %vm393_vm6, %v10023_v9, %v10055_v17  ;;  %v10449_v37 = vld [vmem:[#allocation6 + $0x20] sm:$0xff]  ;;  %v10450_v48 = vld [vmem:[#allocation6 + $0x28] sm:$0xff]  ;;  %v10451_v9 = vld [vmem:[#allocation6 + $0x30] sm:$0xff]  ;;  %v10596_v17 = vpop.permute.xlu1 %10595 }
0x3852   :  { %v10057_v62 = vsel %vm395_vm7, %v10030_v47, %v10056_v40 }
0x3853   :  { %v10058_v1 = vsel %vm397_vm8, %v10037_v32, %v10057_v62  ;;  %v13663_v10 = vpop.eup %13662 }
0x3854   :  { %10748 = vrot.lane.b32.xlu1 %v10058_v1, %s14333_s19  ;;  %12798 = vmatmul.mubr.msk.f32.vlgmr.msra.gmra.mrb[66].mxu1 %vm320_vm0, %v10058_v1  ;;  %v10610_v40 = vpop.permute.xlu1 %10609 }
0x3855   :  { %12809 = vmatmul.mubr.msk.f32.vlgmr.msra.gmra.mrb[92].mxu0 %vm320_vm0, %v10058_v1  ;;  %13289 = vmatpush3.bf16.msra.mxu1 %v14799_v24  ;;  %v10369_v24 = vpop.permute.xlu0 %10368 }
0x3856   :  { %13295 = vmatpush3.bf16.msra.mxu0 %v14801_v25  ;;  %13290 = vmatprep.subr.bf16.mxu1 %v17329_v41  ;;  %v10600_v25 = vrot.slane %v16907_v12, %v14989_v46 }
0x3857   :  { %13296 = vmatprep.subr.bf16.mxu0 %v17329_v41  ;;  %12819 = vmatprep.mubr.msk.f32.mxu1 %vm14329_vm1, %v17328_v13 }
0x3858   :  { %12830 = vmatprep.mubr.msk.f32.mxu0 %vm14329_vm1, %v17328_v13  ;;  %10602 = vbcast.lane.b32.xlu0 %v10600_v25, 256 }
0x3859   :  { %13292 = vmatpush3.bf16.msra.mxu1 %v14803_v26  ;;  %v10614_v26 = vrot.slane %v16907_v12, %v15003_v59 }
0x385a   :  { %13298 = vmatpush3.bf16.msra.mxu0 %v14814_v31  ;;  %13299 = vmatprep.subr.bf16.mxu1 %v17329_v41  ;;  %v10628_v31 = vrot.slane %v16907_v12, %v14995_v53 }
0x385b   :  { %13306 = vmatprep.subr.bf16.mxu0 %v15202_v27 }
0x385c   :  { %12820 = vmatmul.mubr.msk.f32.vlgmr.msra.gmra.mrb[68].mxu1 %vm320_vm0, %v13663_v10  ;;  %10616 = vbcast.lane.b32.xlu0 %v10614_v26, 256 }
0x385d   :  { %12831 = vmatmul.mubr.msk.f32.vlgmr.msra.gmra.mrb[94].mxu0 %vm320_vm0, %v10058_v1  ;;  %13301 = vmatpush3.bf16.msra.mxu1 %v15181_v50 }
0x385e   :  { %13302 = vmatprep.subr.bf16.mxu1 %v17329_v41  ;;  %12841 = vmatprep.mubr.msk.f32.mxu1 %vm14329_vm1, %v17328_v13 }
0x385f   :  { %13308 = vmatpush3.bf16.msra.mxu0 %v15202_v27 }
0x3860   :  { %13310 = vmatprep.subr.bf16.mxu0 %v15206_v16  ;;  %10630 = vbcast.lane.b32.xlu0 %v10628_v31, 256 }
0x3861   :  { %13304 = vmatpush3.bf16.msra.mxu1 %v15188_v21 }
0x3862   :  { %13313 = vmatprep.subr.bf16.mxu1 %v17329_v41 }
0x3863   :  { %13312 = vmatpush3.bf16.msra.mxu0 %v15206_v16 }
0x3864   :  { %12842 = vmatmul.mubr.msk.f32.vlgmr.msra.gmra.mrb[70].mxu1 %vm320_vm0, %v10369_v24  ;;  %13325 = vmatprep.subr.bf16.mxu0 %v17329_v41  ;;  %v10624_v24 = vpop.permute.xlu1 %10623 }
0x3865   :  { %13315 = vmatpush3.bf16.msra.mxu1 %v14872_v56  ;;  %12872 = vmatprep.mubr.msk.f32.mxu1 %vm14329_vm1, %v17328_v13  ;;  %v10642_v56 = vrot.slane %v16907_v12, %v15023_v36 }
0x3866   :  { %13316 = vmatprep.subr.bf16.mxu1 %v17329_v41 }
0x3867   :  { %10644 = vbcast.lane.b32.xlu0 %v10642_v56, 256 }
0x3869   :  { %13318 = vmatpush3.bf16.msra.mxu1 %v14876_v60  ;;  %v13845_v60 = vld [vmem:[%s17236_s18] ss:$0 sm:$0xff] }
0x386a   :  { %13319 = vmatprep.subr.bf16.mxu1 %v17329_v41 }
0x38ca   :  { %v10603_v55 = vpop.permute.xlu0 %10602 }
0x38ce   :  { %v10617_v32 = vpop.permute.xlu0 %10616 }
0x38d2   :  { %v10631_v1 = vpop.permute.xlu0 %10630 }
0x3927   :  { %v10127_v50 = vpop.f32.mrb[66].mxu1 }
0x3928   :  { %v10128_v21 = vadd.f32 %v13845_v60, %v10127_v50  ;;  %v10199_v27 = vpop.f32.mrb[92].mxu0  ;;  %v12799_v16 = vpop.f32.mrb[67].mxu1 }
0x3929   :  { %v10200_v14 = vadd.f32 %v13846_v34, %v10199_v27  ;;  %v12810_v63 = vpop.f32.mrb[93].mxu0 }
0x392a   :  { %10132 = vst.msk [vmem:[#allocation6 + $0x38] sm:$0xff] %vm320_vm0, %v10128_v21  ;;  %v10645_v21 = vpop.permute.xlu0 %10644 }
0x392b   :  { %10204 = vst.msk [vmem:[#allocation7 + $0x38] sm:$0xff] %vm320_vm0, %v10200_v14 }
0x392f   :  { %v10274_v12 = vpop.f32.mrb[68].mxu1 }
0x3930   :  { %v10344_v35 = vpop.f32.mrb[94].mxu0  ;;  %v12821_v33 = vpop.f32.mrb[69].mxu1 }
0x3931   :  { %v16996_v19 = vadd.f32 %v10344_v35, %v10274_v12  ;;  %v12832_v44 = vpop.f32.mrb[95].mxu0 }
0x3932   :  { %v10638_v44 = vpop.permute.xlu1 %10637 }
0x3937   :  { %v10438_v49 = vpop.f32.mrb[70].mxu1 }
0x3938   :  { %v10439_v57 = vadd.f32 %v13847_v8, %v10438_v49  ;;  %v12843_v5 = vpop.f32.mrb[71].mxu1 }
0x393a   :  { %v10453_v3 = vmul.f32 %v10445_v29, %v10439_v57  ;;  %v10454_v28 = vmul.f32 %v10446_v23, %v10439_v57  ;;  %v10455_v52 = vmul.f32 %v10447_v43, %v10439_v57  ;;  %v10456_v61 = vmul.f32 %v10448_v45, %v10439_v57 }
0x393b   :  { %v10457_v58 = vmul.f32 %v10449_v37, %v10439_v57  ;;  %v10458_v42 = vmul.f32 %v10450_v48, %v10439_v57  ;;  %v10459_v18 = vmul.f32 %v10451_v9, %v10439_v57 }
0x393c   :  { %12852 = vmatprep.mubr.msk.f32.mxu0 %vm320_vm0, %v10453_v3 }
0x393d   :  { %12853 = vmatmul.mubr.msk.f32.vlgmr.msra.gmra.mrb[96].mxu0 %vm320_vm0, %v10454_v28 }
0x393e   :  { %12855 = vmatprep.mubr.msk.f32.mxu0 %vm320_vm0, %v10455_v52  ;;  %13327 = vmatpush3.bf16.msra.mxu0 %v15035_v11  ;;  %v10452_v11 = vld [vmem:[#allocation6 + $0x38] sm:$0xff] }
0x393f   :  { %13328 = vmatprep.subr.bf16.mxu0 %v17329_v41  ;;  %v10460_v38 = vmul.f32 %v10452_v11, %v10439_v57 }
0x3941   :  { %12856 = vmatmul.mubr.msk.f32.gmra.mrb[98].mxu0 %vm320_vm0, %v10456_v61 }
0x3942   :  { %12858 = vmatprep.mubr.msk.f32.mxu0 %vm320_vm0, %v10457_v58  ;;  %13330 = vmatpush3.bf16.msra.mxu0 %v15049_v6 }
0x3945   :  { %12859 = vmatmul.mubr.msk.f32.gmra.mrb[100].mxu0 %vm320_vm0, %v10458_v42 }
0x3946   :  { %12861 = vmatprep.mubr.msk.f32.mxu0 %vm320_vm0, %v10459_v18 }
0x3949   :  { %12862 = vmatmul.mubr.msk.f32.gmra.mrb[102].mxu0 %vm320_vm0, %v10460_v38 }
0x394a   :  { %12894 = vmatprep.mubr.msk.f32.mxu0 %vm14329_vm1, %v17328_v13 }
0x3a10   :  { %v12854_v47 = vpop.f32.mrb[96].mxu0 }
0x3a11   :  { %v10551_v6 = vpop.f32.mrb[97].mxu0  ;;  %v10647_v25 = vadd.f32 %v12854_v47, %v10603_v55 }
0x3a12   :  { %v10646_v26 = vadd.f32 %v10596_v17, %v10551_v6 }
0x3a13   :  { %v10655_v27 = vsel %vm320_vm0, %v10647_v25, -inf }
0x3a14   :  { %v12857_v62 = vpop.f32.mrb[98].mxu0  ;;  %v10654_v14 = vsel %vm320_vm0, %v10646_v26, -inf }
0x3a15   :  { %v10561_v10 = vpop.f32.mrb[99].mxu0  ;;  %v10649_v16 = vadd.f32 %v12857_v62, %v10617_v32 }
0x3a16   :  { %v10648_v63 = vadd.f32 %v10610_v40, %v10561_v10 }
0x3a17   :  { %v10657_v29 = vsel %vm320_vm0, %v10649_v16, -inf }
0x3a18   :  { %v12860_v31 = vpop.f32.mrb[100].mxu0  ;;  %v10656_v28 = vsel %vm320_vm0, %v10648_v63, -inf }
0x3a19   :  { %v10651_v56 = vadd.f32 %v12860_v31, %v10631_v1  ;;  %v10571_v50 = vpop.f32.mrb[101].mxu0 }
0x3a1a   :  { %v10650_v60 = vadd.f32 %v10624_v24, %v10571_v50 }
0x3a1b   :  { %v10660_v34 = vsel %vm320_vm0, %v10651_v56, -inf }
0x3a1c   :  { %v10661_v12 = vmax.f32 %v10655_v27, %v10660_v34  ;;  %v10658_v35 = vsel %vm320_vm0, %v10650_v60, -inf  ;;  %v12863_v33 = vpop.f32.mrb[102].mxu0 }
0x3a1d   :  { %v10659_v49 = vmax.f32 %v10654_v14, %v10658_v35  ;;  %v10653_v8 = vadd.f32 %v12863_v33, %v10645_v21  ;;  %v10581_v57 = vpop.f32.mrb[103].mxu0 }
0x3a1e   :  { %v10652_v5 = vadd.f32 %v10638_v44, %v10581_v57 }
0x3a1f   :  { %v10666_v23 = vmax.f32 %v10659_v49, %v10661_v12  ;;  %v10664_v3 = vsel %vm320_vm0, %v10653_v8, -inf }
0x3a20   :  { %v10665_v43 = vmax.f32 %v10657_v29, %v10664_v3  ;;  %v10662_v52 = vsel %vm320_vm0, %v10652_v5, -inf }
0x3a21   :  { %v10663_v45 = vmax.f32 %v10656_v28, %v10662_v52 }
0x3a23   :  { %v10667_v61 = vmax.f32 %v10663_v45, %v10665_v43 }
0x3a25   :  { %v10668_v37 = vmax.f32 %v10666_v23, %v10667_v61 }
0x3a27   :  { %v10669_v58 = vsub.f32 %v10646_v26, %v10668_v37  ;;  %v10670_v48 = vsub.f32 %v10647_v25, %v10668_v37  ;;  %v10671_v42 = vsub.f32 %v10648_v63, %v10668_v37  ;;  %v10672_v9 = vsub.f32 %v10649_v16, %v10668_v37 }
0x3a28   :  { %v10673_v18 = vsub.f32 %v10650_v60, %v10668_v37  ;;  %v10674_v11 = vsub.f32 %v10651_v56, %v10668_v37  ;;  %v10675_v38 = vsub.f32 %v10652_v5, %v10668_v37  ;;  %v10676_v55 = vsub.f32 %v10653_v8, %v10668_v37 }
0x3a29   :  { %v10677_v17 = vmul.f32 1.442695, %v10669_v58  ;;  %v10679_v32 = vmul.f32 1.442695, %v10670_v48  ;;  %v10681_v47 = vmul.f32 1.442695, %v10671_v42 }
0x3a2a   :  { %v10683_v40 = vmul.f32 1.442695, %v10672_v9  ;;  %v10685_v6 = vmul.f32 1.442695, %v10673_v18  ;;  %v10687_v62 = vmul.f32 1.442695, %v10674_v11 }
0x3a2b   :  { %13664 = vpow2.f32 %v10677_v17  ;;  %v10689_v1 = vmul.f32 1.442695, %v10675_v38  ;;  %v10691_v10 = vmul.f32 1.442695, %v10676_v55  ;;  %v10717_v42 = vld [vmem:[#allocation7] sm:$0xff]  ;;  %v10718_v9 = vld [vmem:[#allocation7 + $0x8] sm:$0xff] }
0x3a2c   :  { %13666 = vpow2.f32 %v10679_v32  ;;  %v10719_v18 = vld [vmem:[#allocation7 + $0x10] sm:$0xff]  ;;  %v10720_v17 = vld [vmem:[#allocation7 + $0x18] sm:$0xff] }
0x3a2d   :  { %13668 = vpow2.f32 %v10681_v47 }
0x3a2e   :  { %13670 = vpow2.f32 %v10683_v40 }
0x3a2f   :  { %13672 = vpow2.f32 %v10685_v6  ;;  %v10721_v6 = vld [vmem:[#allocation7 + $0x20] sm:$0xff] }
0x3a30   :  { %13674 = vpow2.f32 %v10687_v62 }
0x3a31   :  { %13676 = vpow2.f32 %v10689_v1 }
0x3a32   :  { %13678 = vpow2.f32 %v10691_v10 }
0x3a35   :  { %v13665_v24 = vpop.eup %13664 }
0x3a36   :  { %v13667_v25 = vpop.eup %13666  ;;  %v10693_v26 = vsel %vm320_vm0, %v13665_v24, 0.0 }
0x3a37   :  { %v13669_v31 = vpop.eup %13668  ;;  %v10694_v56 = vsel %vm320_vm0, %v13667_v25, 0.0 }
0x3a38   :  { %v13671_v50 = vpop.eup %13670  ;;  %v10695_v60 = vadd.f32 %v10694_v56, %v10693_v26  ;;  %v10696_v21 = vsel %vm320_vm0, %v13669_v31, 0.0  ;;  %v10723_v56 = vld [vmem:[#allocation7 + $0x30] sm:$0xff] }
0x3a39   :  { %v13673_v27 = vpop.eup %13672  ;;  %v10698_v34 = vsel %vm320_vm0, %v13671_v50, 0.0 }
0x3a3a   :  { %v10697_v16 = vadd.f32 %v10696_v21, %v10695_v60  ;;  %v13675_v14 = vpop.eup %13674  ;;  %v10700_v12 = vsel %vm320_vm0, %v13673_v27, 0.0 }
0x3a3b   :  { %v13677_v35 = vpop.eup %13676  ;;  %v10702_v44 = vsel %vm320_vm0, %v13675_v14, 0.0 }
0x3a3c   :  { %v10699_v63 = vadd.f32 %v10698_v34, %v10697_v16  ;;  %v13679_v49 = vpop.eup %13678  ;;  %v10704_v57 = vsel %vm320_vm0, %v13677_v35, 0.0 }
0x3a3d   :  { %v10706_v29 = vsel %vm320_vm0, %v13679_v49, 0.0 }
0x3a3e   :  { %v10701_v33 = vadd.f32 %v10700_v12, %v10699_v63 }
0x3a40   :  { %v10703_v8 = vadd.f32 %v10702_v44, %v10701_v33 }
0x3a42   :  { %v10705_v5 = vadd.f32 %v10704_v57, %v10703_v8 }
0x3a44   :  { %v10707_v23 = vadd.f32 %v10706_v29, %v10705_v5 }
0x3a46   :  { %13680 = vrcp.f32 %v10707_v23 }
0x3a50   :  { %v13681_v3 = vpop.eup %13680 }
0x3a51   :  { %v10709_v28 = vmul.f32 %v13681_v3, %v13665_v24  ;;  %v10710_v43 = vmul.f32 %v13681_v3, %v13667_v25  ;;  %v10711_v52 = vmul.f32 %v13681_v3, %v13669_v31  ;;  %v10712_v45 = vmul.f32 %v13681_v3, %v13671_v50  ;;  %v10722_v24 = vld [vmem:[#allocation7 + $0x28] sm:$0xff] }
0x3a52   :  { %v10713_v61 = vmul.f32 %v13681_v3, %v13673_v27  ;;  %v10714_v37 = vmul.f32 %v13681_v3, %v13675_v14  ;;  %v10715_v58 = vmul.f32 %v13681_v3, %v13677_v35  ;;  %v10716_v48 = vmul.f32 %v13681_v3, %v13679_v49  ;;  %v10724_v27 = vld [vmem:[#allocation7 + $0x38] sm:$0xff] }
0x3a53   :  { %v10725_v11 = vmul.f32 %v10717_v42, %v10709_v28  ;;  %v10726_v38 = vmul.f32 %v10718_v9, %v10710_v43  ;;  %v10727_v55 = vmul.f32 %v10719_v18, %v10711_v52  ;;  %v10728_v32 = vmul.f32 %v10720_v17, %v10712_v45  ;;  %v13848_v49 = vld [vmem:[#allocation22] ss:$0 sm:$0xff]  ;;  %v10749_v28 = vpop.permute.xlu1 %10748 }
0x3a54   :  { %v10729_v1 = vmul.f32 %v10721_v6, %v10713_v61  ;;  %v10730_v26 = vmul.f32 %v10722_v24, %v10714_v37  ;;  %v10731_v60 = vmul.f32 %v10723_v56, %v10715_v58  ;;  %v10732_v34 = vmul.f32 %v10724_v27, %v10716_v48  ;;  %v13849_v58 = vld [vmem:[#allocation28] ss:$0 sm:$0xff]  ;;  %v17072_v27 = vld [vmem:[#allocation11 + $0x10] sm:$0xff] }
0x3a55   :  { %v10733_v47 = vsel %vm320_vm0, %v10725_v11, 0.0  ;;  %v10734_v40 = vsel %vm320_vm0, %v10726_v38, 0.0  ;;  %v10736_v10 = vsel %vm320_vm0, %v10727_v55, 0.0  ;;  %v10738_v31 = vsel %vm320_vm0, %v10728_v32, 0.0 }
0x3a56   :  { %v10735_v62 = vadd.f32 %v10734_v40, %v10733_v47  ;;  %v10740_v21 = vsel %vm320_vm0, %v10729_v1, 0.0  ;;  %v10742_v14 = vsel %vm320_vm0, %v10730_v26, 0.0  ;;  %v10744_v12 = vsel %vm320_vm0, %v10731_v60, 0.0 }
0x3a57   :  { %v10746_v33 = vsel %vm320_vm0, %v10732_v34, 0.0  ;;  %v17037_v8 = vadd.f32 %v13848_v49, %v16996_v19 }
0x3a58   :  { %v10737_v25 = vadd.f32 %v10736_v10, %v10735_v62 }
0x3a59   :  { %v11650_v57 = vmul.f32 -1.442695, %v17037_v8 }
0x3a5a   :  { %v10739_v50 = vadd.f32 %v10738_v31, %v10737_v25  ;;  %v17064_v25 = vld [vmem:[#allocation11] sm:$0xff] }
0x3a5b   :  { %13682 = vpow2.f32 %v11650_v57  ;;  %v17086_v57 = vld [vmem:[#allocation11 + $0x38] sm:$0xff] }
0x3a5c   :  { %v10741_v16 = vadd.f32 %v10740_v21, %v10739_v50  ;;  %v17069_v21 = vld [vmem:[#allocation11 + $0x8] sm:$0xff] }
0x3a5e   :  { %v10743_v63 = vadd.f32 %v10742_v14, %v10741_v16  ;;  %v17076_v14 = vld [vmem:[#allocation11 + $0x20] sm:$0xff] }
0x3a60   :  { %v10745_v35 = vadd.f32 %v10744_v12, %v10743_v63  ;;  %v17079_v12 = vld [vmem:[#allocation11 + $0x28] sm:$0xff] }
0x3a62   :  { %v10747_v44 = vadd.f32 %v10746_v33, %v10745_v35  ;;  %v17082_v33 = vld [vmem:[#allocation11 + $0x18] sm:$0xff] }
0x3a64   :  { %10754 = vrot.lane.b32.xlu0 %v10747_v44, %s14333_s19 }
0x3a65   :  { %v13683_v5 = vpop.eup %13682 }
0x3a66   :  { %v10352_v29 = vadd.f32 1.0, %v13683_v5 }
0x3a68   :  { %13684 = vrcp.f32 %v10352_v29  ;;  %v17089_v29 = vld [vmem:[#allocation11 + $0x30] sm:$0xff] }
0x3a72   :  { %v17040_v23 = vpop.eup %13684 }
0x3a73   :  { %v10752_v3 = vsub.f32 1.0, %v17040_v23  ;;  %v10751_v52 = vmul.f32 %v17040_v23, %v10749_v28 }
0x3ad6   :  { %v10755_v43 = vpop.permute.xlu0 %10754 }
0x3ad7   :  { %v10757_v45 = vmul.f32 %v10755_v43, %v10752_v3  ;;  %v13858_v43 = vld [vmem:[#allocation29] ss:$0 sm:$0xff] }
0x3ad9   :  { %v10758_v61 = vadd.f32 %v10757_v45, %v10751_v52 }
0x3adb   :  { %10760 = vrot.lane.b32.xlu1 %v10758_v61, %s14332_s9 }
0x3b4d   :  { %v10761_v19 = vpop.permute.xlu1 %10760 }
0x3b4e   :  { %12873 = vmatmul.mubr.msk.f32.vlgmr.msra.gmra.mrb[72].mxu1 %vm320_vm0, %v10761_v19 }
0x3b4f   :  { %13321 = vmatpush3.bf16.msra.mxu1 %v17332_v15  ;;  %12883 = vmatprep.mubr.msk.f32.mxu1 %vm14329_vm1, %v17328_v13 }
0x3b50   :  { %13322 = vmatprep.subr.bf16.mxu1 %v17329_v41 }
0x3b53   :  { %13324 = vmatpush3.bf16.msra.mxu1 %v17350_v51 }
0x3b56   :  { %12884 = vmatmul.mubr.msk.f32.vlgmr.msra.gmra.mrb[74].mxu1 %vm320_vm0, %v10761_v19 }
0x3c21   :  { %v10830_v37 = vpop.f32.mrb[72].mxu1 }
0x3c22   :  { %v10831_v48 = vadd.f32 %v13849_v58, %v10830_v37  ;;  %v12874_v42 = vpop.f32.mrb[73].mxu1 }
0x3c24   :  { %v10835_v9 = vcombine.high %v10831_v48, %v10831_v48  ;;  %v10842_v18 = vrot.slane %v10831_v48, %v17382_v0 }
0x3c26   :  { %v10849_v11 = vrot.slane %v10835_v9, %v17382_v0  ;;  %v10850_v38 = vcombine.high %v10842_v18, %v10842_v18  ;;  %v10858_v15 = vrot.slane %v10842_v18, %v17382_v0 }
0x3c28   :  { %v10851_v55 = vcombine.high %v10849_v11, %v10849_v11  ;;  %v10865_v17 = vrot.slane %v10849_v11, %v17382_v0  ;;  %v10872_v41 = vrot.slane %v10850_v38, %v17382_v0  ;;  %v10880_v51 = vcombine.high %v10858_v15, %v10858_v15 }
0x3c29   :  { %v10887_v32 = vrot.slane %v10858_v15, %v14911_v39  ;;  %v17058_v47 = vpop.f32.mrb[74].mxu1 }
0x3c2a   :  { %v10879_v40 = vrot.slane %v10851_v55, %v17382_v0  ;;  %v10882_v6 = vcombine.high %v10872_v41, %v10872_v41  ;;  %v10891_v62 = vrot.slane %v10872_v41, %v14911_v39  ;;  %v12885_v1 = vpop.f32.mrb[75].mxu1  ;;  %v10895_v10 = vrot.slane %v10880_v51, %v14911_v39 }
0x3c2b   :  { %v10903_v24 = vrot.slane %v10865_v17, %v14911_v39  ;;  %v10924_v26 = vadd.f32 %v17064_v25, %v10887_v32  ;;  %v10881_v60 = vcombine.high %v10865_v17, %v10865_v17 }
0x3c2c   :  { %v10883_v31 = vcombine.high %v10879_v40, %v10879_v40  ;;  %v10899_v56 = vrot.slane %v10882_v6, %v14911_v39  ;;  %v10907_v50 = vrot.slane %v10879_v40, %v14911_v39  ;;  %v10925_v0 = vadd.f32 %v17069_v21, %v10891_v62 }
0x3c2d   :  { %v10926_v16 = vadd.f32 %v17072_v27, %v10895_v10  ;;  %13686 = vtanh.f32 %v10924_v26  ;;  %v10928_v63 = vadd.f32 %v17076_v14, %v10903_v24  ;;  %v10911_v49 = vrot.slane %v10881_v60, %v14911_v39 }
0x3c2e   :  { %v10915_v34 = vrot.slane %v10883_v31, %v14911_v39  ;;  %v10929_v35 = vadd.f32 %v17079_v12, %v10907_v50  ;;  %13688 = vtanh.f32 %v10925_v0  ;;  %v10927_v44 = vadd.f32 %v17082_v33, %v10899_v56  ;;  %v17389_v56 = vld [vmem:[#allocation52_spill] sm:$0xff] }
0x3c2f   :  { %13690 = vtanh.f32 %v10926_v16  ;;  %v10930_v3 = vadd.f32 %v17089_v29, %v10911_v49 }
0x3c30   :  { %v10931_v5 = vadd.f32 %v17086_v57, %v10915_v34  ;;  %13692 = vtanh.f32 %v10928_v63 }
0x3c31   :  { %13694 = vtanh.f32 %v10929_v35 }
0x3c32   :  { %13696 = vtanh.f32 %v10927_v44 }
0x3c33   :  { %13698 = vtanh.f32 %v10931_v5 }
0x3c34   :  { %13700 = vtanh.f32 %v10930_v3 }
0x3c37   :  { %v13687_v28 = vpop.eup %13686 }
0x3c38   :  { %v10940_v52 = vmul.f32 %v13858_v43, %v13687_v28  ;;  %v13689_v45 = vpop.eup %13688 }
0x3c39   :  { %v13691_v61 = vpop.eup %13690  ;;  %v10941_v37 = vmul.f32 %v13858_v43, %v13689_v45 }
0x3c3a   :  { %v10948_v19 = vsel %vm320_vm0, %v10940_v52, 0.0  ;;  %v10942_v58 = vmul.f32 %v13858_v43, %v13691_v61  ;;  %v13693_v48 = vpop.eup %13692 }
0x3c3b   :  { %10949 = vadd.xlane.f32.xlu0 %v10948_v19  ;;  %v10951_v42 = vsel %vm320_vm0, %v10941_v37, 0.0  ;;  %v13695_v9 = vpop.eup %13694  ;;  %v10944_v15 = vmul.f32 %v13858_v43, %v13693_v48 }
0x3c3c   :  { %10952 = vadd.xlane.f32.xlu1 %v10951_v42  ;;  %v13697_v18 = vpop.eup %13696  ;;  %v10954_v11 = vsel %vm320_vm0, %v10942_v58, 0.0  ;;  %v10945_v38 = vmul.f32 %v13858_v43, %v13695_v9 }
0x3c3d   :  { %v13699_v55 = vpop.eup %13698  ;;  %v10960_v51 = vsel %vm320_vm0, %v10944_v15, 0.0  ;;  %v10943_v32 = vmul.f32 %v13858_v43, %v13697_v18 }
0x3c3e   :  { %v10963_v17 = vsel %vm320_vm0, %v10945_v38, 0.0  ;;  %v10947_v41 = vmul.f32 %v13858_v43, %v13699_v55  ;;  %v13701_v40 = vpop.eup %13700 }
0x3c3f   :  { %10955 = vadd.xlane.f32.xlu0 %v10954_v11  ;;  %v10957_v62 = vsel %vm320_vm0, %v10943_v32, 0.0  ;;  %v10946_v1 = vmul.f32 %v13858_v43, %v13701_v40 }
0x3c40   :  { %10964 = vadd.xlane.f32.xlu1 %v10963_v17  ;;  %v10969_v6 = vsel %vm320_vm0, %v10947_v41, 0.0 }
0x3c41   :  { %v10966_v10 = vsel %vm320_vm0, %v10946_v1, 0.0 }
0x3c43   :  { %10961 = vadd.xlane.f32.xlu0 %v10960_v51 }
0x3c44   :  { %10970 = vadd.xlane.f32.xlu1 %v10969_v6 }
0x3c47   :  { %10958 = vadd.xlane.f32.xlu0 %v10957_v62 }
0x3c4b   :  { %10967 = vadd.xlane.f32.xlu0 %v10966_v10 }
0x3cc8   :  { %v10950_v24 = vpop.xlane.xlu0 %10949 }
0x3cc9   :  { %v10953_v26 = vpop.xlane.xlu1 %10952  ;;  %v10983_v0 = vrot.slane %v10950_v24, %v17389_v56 }
0x3cca   :  { %v10987_v50 = vrot.slane %v10953_v26, %v17389_v56 }
0x3ccc   :  { %v10956_v31 = vpop.xlane.xlu0 %10955  ;;  %v11012_v63 = vsel %vm385_vm2, %v10987_v50, %v10983_v0 }
0x3ccd   :  { %v10965_v16 = vpop.xlane.xlu1 %10964  ;;  %v10991_v34 = vrot.slane %v10956_v31, %v17389_v56  ;;  %v10042_v31 = vsub.f32 1.0, %v16889_v2 }
0x3cce   :  { %v11003_v3 = vrot.slane %v10965_v16, %v17389_v56 }
0x3ccf   :  { %v11013_v49 = vsel %vm387_vm3, %v10991_v34, %v11012_v63 }
0x3cd0   :  { %v10962_v60 = vpop.xlane.xlu0 %10961 }
0x3cd1   :  { %v10999_v5 = vrot.slane %v10962_v60, %v17389_v56  ;;  %v10971_v28 = vpop.xlane.xlu1 %10970 }
0x3cd2   :  { %v11011_v37 = vrot.slane %v10971_v28, %v17389_v56 }
0x3cd4   :  { %v10959_v35 = vpop.xlane.xlu0 %10958 }
0x3cd5   :  { %v10995_v44 = vrot.slane %v10959_v35, %v17389_v56 }
0x3cd7   :  { %v11014_v43 = vsel %vm389_vm4, %v10995_v44, %v11013_v49 }
0x3cd8   :  { %v11015_v52 = vsel %vm391_vm5, %v10999_v5, %v11014_v43  ;;  %v10968_v45 = vpop.xlane.xlu0 %10967 }
0x3cd9   :  { %v11007_v61 = vrot.slane %v10968_v45, %v17389_v56  ;;  %v11016_v19 = vsel %vm393_vm6, %v11003_v3, %v11015_v52  ;;  %v17391_v56 = vld [vmem:[#allocation57_spill] sm:$0xff] }
0x3cda   :  { %v17129_v50 = vmul.f32 %v10042_v31, %v17391_v56 }
0x3cdb   :  { %v11017_v58 = vsel %vm395_vm7, %v11007_v61, %v11016_v19 }
0x3cdc   :  { %v11018_v48 = vsel %vm397_vm8, %v11011_v37, %v11017_v58 }
0x3cdd   :  { %v11020_v9 = vsel %vm475_vm9, %v11018_v48, -1e+30 }
0x3cde   :  { %v11021_v18 = vsel %vm411_vm10, %v11020_v9, -inf }
0x3cdf   :  { %11022 = vmax.xlane.f32.xlu0 %v11021_v18 }
0x3d6c   :  { %v11023_v11 = vpop.xlane.xlu0 %11022 }
0x3d6d   :  { %v11024_v38 = vsub.f32 %v11020_v9, %v11023_v11 }
0x3d6f   :  { %v11025_v15 = vmul.f32 1.442695, %v11024_v38 }
0x3d71   :  { %13702 = vpow2.f32 %v11025_v15 }
0x3d7b   :  { %v13703_v55 = vpop.eup %13702 }
0x3d7c   :  { %v11027_v17 = vsel %vm411_vm10, %v13703_v55, 0.0 }
0x3d7d   :  { %11028 = vadd.xlane.f32.xlu1 %v11027_v17 }
0x3e0a   :  { %v11029_v41 = vpop.xlane.xlu1 %11028 }
0x3e0b   :  { %13704 = vrcp.f32 %v11029_v41 }
0x3e0c   :  { %13706 = vtanh.f32 %v17037_v8 }
0x3e15   :  { %v13705_v51 = vpop.eup %13704 }
0x3e16   :  { %v11031_v32 = vmul.f32 %v13705_v51, %v13703_v55  ;;  %v13707_v34 = vpop.eup %13706 }
0x3e18   :  { %11456 = vst.msk [vmem:[#allocation37 + $0x38] sm:$0xff] %vm411_vm10, %v11031_v32  ;;  %v11042_v40 = vrot.slane %v11031_v32, %v14989_v46  ;;  %v11035_v6 = vrot.slane %v11031_v32, %v14911_v39  ;;  %v11070_v62 = vrot.slane %v11031_v32, %v14995_v53  ;;  %v11049_v1 = vrot.slane %v11031_v32, %v14998_v54 }
0x3e19   :  { %v11056_v10 = vrot.slane %v11031_v32, %v15003_v59  ;;  %v11063_v24 = vrot.slane %v11031_v32, %v15007_v4  ;;  %v11077_v26 = vrot.slane %v11031_v32, %v15011_v7  ;;  %v11311_v60 = vmul.f32 %v11031_v32, %v17129_v50 }
0x3e1a   :  { %11044 = vbcast.lane.b32.xlu0 %v11042_v40, 256  ;;  %11037 = vbcast.lane.b32.xlu1 %v11035_v6, 256  ;;  %v11084_v16 = vrot.slane %v11031_v32, %v15023_v36 }
0x3e1b   :  { %v11312_v0 = vsel %vm411_vm10, %v11311_v60, -inf }
0x3e1e   :  { %11072 = vbcast.lane.b32.xlu0 %v11070_v62, 256  ;;  %11051 = vbcast.lane.b32.xlu1 %v11049_v1, 256 }
0x3e22   :  { %11058 = vbcast.lane.b32.xlu1 %v11056_v10, 256 }
0x3e26   :  { %11065 = vbcast.lane.b32.xlu1 %v11063_v24, 256 }
0x3e2a   :  { %11079 = vbcast.lane.b32.xlu1 %v11077_v26, 256 }
0x3e3d   :  { %11313 = vmax.xlane.f32.xlu0 %v11312_v0 }
0x3e53   :  { %11086 = vbcast.lane.b32.xlu0 %v11084_v16, 256 }
0x3e57   :  { %10358 = vrot.lane.b32.xlu0 %v13707_v34, %s14331_s29  ;;  %s14335_s29 = smov [#allocation37]  }
0x3e8c   :  { %v11038_v63 = vpop.permute.xlu1 %11037  ;;  %v11045_v2 = vpop.permute.xlu0 %11044 }
0x3e8d   :  { %v11089_v5 = vmul.f32 %v17069_v21, %v11045_v2  ;;  %v11088_v3 = vmul.f32 %v17064_v25, %v11038_v63 }
0x3e8f   :  { %v11103_v52 = vsel %vm320_vm0, %v11089_v5, 0.0  ;;  %v11096_v45 = vsel %vm320_vm0, %v11088_v3, 0.0 }
0x3e90   :  { %v11052_v35 = vpop.permute.xlu1 %11051  ;;  %v11073_v19 = vpop.permute.xlu0 %11072  ;;  %v11104_v48 = vrot.slane %v11103_v52, 4  ;;  %v11097_v21 = vrot.slane %v11096_v45, 4 }
0x3e91   :  { %v11090_v28 = vmul.f32 %v17072_v27, %v11052_v35 }
0x3e92   :  { %v11105_v18 = vadd.f32 %v11104_v48, %v11103_v52  ;;  %v11098_v11 = vadd.f32 %v11097_v21, %v11096_v45 }
0x3e93   :  { %v11110_v37 = vsel %vm320_vm0, %v11090_v28, 0.0 }
0x3e94   :  { %v11059_v44 = vpop.permute.xlu1 %11058  ;;  %v11111_v42 = vrot.slane %v11110_v37, 4  ;;  %v11106_v32 = vrot.slane %v11105_v18, 2  ;;  %v11099_v40 = vrot.slane %v11098_v11, 2 }
0x3e95   :  { %v11091_v43 = vmul.f32 %v17082_v33, %v11059_v44  ;;  %v11093_v33 = vmul.f32 %v17079_v12, %v11073_v19 }
0x3e96   :  { %v11112_v55 = vadd.f32 %v11111_v42, %v11110_v37  ;;  %v11107_v10 = vadd.f32 %v11106_v32, %v11105_v18  ;;  %v11100_v24 = vadd.f32 %v11099_v40, %v11098_v11 }
0x3e97   :  { %v11117_v58 = vsel %vm320_vm0, %v11091_v43, 0.0  ;;  %v11131_v15 = vsel %vm320_vm0, %v11093_v33, 0.0 }
0x3e98   :  { %v11066_v49 = vpop.permute.xlu1 %11065  ;;  %v11132_v6 = vrot.slane %v11131_v15, 4  ;;  %v11113_v62 = vrot.slane %v11112_v55, 2  ;;  %v11108_v44 = vrot.slane %v11107_v10, 1  ;;  %v11101_v2 = vrot.slane %v11100_v24, 1 }
0x3e99   :  { %v11092_v8 = vmul.f32 %v17076_v14, %v11066_v49  ;;  %v11118_v14 = vrot.slane %v11117_v58, 4 }
0x3e9a   :  { %v11133_v26 = vadd.f32 %v11132_v6, %v11131_v15  ;;  %v11114_v56 = vadd.f32 %v11113_v62, %v11112_v55  ;;  %v11109_v19 = vadd.f32 %v11108_v44, %v11107_v10  ;;  %v11102_v37 = vadd.f32 %v11101_v2, %v11100_v24 }
0x3e9b   :  { %v11124_v25 = vsel %vm320_vm0, %v11092_v8, 0.0  ;;  %v11119_v17 = vadd.f32 %v11118_v14, %v11117_v58 }
0x3e9c   :  { %v11080_v61 = vpop.permute.xlu1 %11079  ;;  %v11125_v9 = vrot.slane %v11124_v25, 4  ;;  %v11134_v49 = vrot.slane %v11133_v26, 2  ;;  %v11115_v28 = vrot.slane %v11114_v56, 1  ;;  %v11230_v14 = vsel %vm385_vm2, %v11109_v19, %v11102_v37 }
0x3e9d   :  { %v11094_v27 = vmul.f32 %v17089_v29, %v11080_v61  ;;  %v11120_v29 = vrot.slane %v11119_v17, 2 }
0x3e9e   :  { %v11126_v41 = vadd.f32 %v11125_v9, %v11124_v25  ;;  %v11135_v58 = vadd.f32 %v11134_v49, %v11133_v26  ;;  %v11116_v21 = vadd.f32 %v11115_v28, %v11114_v56 }
0x3e9f   :  { %v11138_v38 = vsel %vm320_vm0, %v11094_v27, 0.0  ;;  %v11121_v0 = vadd.f32 %v11120_v29, %v11119_v17 }
0x3ea0   :  { %v11139_v51 = vrot.slane %v11138_v38, 4  ;;  %v11127_v1 = vrot.slane %v11126_v41, 2  ;;  %v11136_v9 = vrot.slane %v11135_v58, 1  ;;  %v11231_v18 = vsel %vm387_vm3, %v11116_v21, %v11230_v14 }
0x3ea1   :  { %v11122_v8 = vrot.slane %v11121_v0, 1 }
0x3ea2   :  { %v11140_v12 = vadd.f32 %v11139_v51, %v11138_v38  ;;  %v11128_v34 = vadd.f32 %v11127_v1, %v11126_v41  ;;  %v11137_v17 = vadd.f32 %v11136_v9, %v11135_v58 }
0x3ea3   :  { %v11123_v25 = vadd.f32 %v11122_v8, %v11121_v0  ;;  %v10356_v8 = vmul.f32 %v17040_v23, %v16917_v20 }
0x3ea4   :  { %v11141_v63 = vrot.slane %v11140_v12, 2  ;;  %v11129_v45 = vrot.slane %v11128_v34, 1 }
0x3ea5   :  { %v11232_v11 = vsel %vm389_vm4, %v11123_v25, %v11231_v18 }
0x3ea6   :  { %v11142_v61 = vadd.f32 %v11141_v63, %v11140_v12  ;;  %v11130_v33 = vadd.f32 %v11129_v45, %v11128_v34 }
0x3ea8   :  { %v11143_v42 = vrot.slane %v11142_v61, 1  ;;  %v11233_v15 = vsel %vm391_vm5, %v11130_v33, %v11232_v11 }
0x3ea9   :  { %v11234_v32 = vsel %vm393_vm6, %v11137_v17, %v11233_v15 }
0x3eaa   :  { %v11144_v55 = vadd.f32 %v11143_v42, %v11142_v61 }
0x3eac   :  { %v11235_v40 = vsel %vm395_vm7, %v11144_v55, %v11234_v32 }
0x3eca   :  { %v11314_v31 = vpop.xlane.xlu0 %11313 }
0x3ecb   :  { %vm11315_vm1 = vcmp.eq.f32.partialorder %v11311_v60, %v11314_v31 }
0x3ecc   :  { %v11316_v16 = vsel %vm11315_vm1, %v14959_v30, 8 }
0x3ecd   :  { %v11317_v35 = vsel %vm411_vm10, %v11316_v16, 2147483647 }
0x3ece   :  { %v11319_v5 = vshra.s32 %v11317_v35, 16  ;;  %v11087_v3 = vpop.permute.xlu0 %11086  ;;  %v11318_v62 = vand.u32 65535, %v11317_v35 }
0x3ecf   :  { %v11095_v43 = vmul.f32 %v17086_v57, %v11087_v3 }
0x3ed0   :  { %v11321_v52 = vcvt.s32.f32 %v11319_v5  ;;  %v11320_v1 = vcvt.s32.f32 %v11318_v62 }
0x3ed1   :  { %v11145_v60 = vsel %vm320_vm0, %v11095_v43, 0.0 }
0x3ed2   :  { %v11146_v48 = vrot.slane %v11145_v60, 4  ;;  %11322 = vmin.xlane.f32.xlu1 %v11321_v52  ;;  %v10359_v10 = vpop.permute.xlu0 %10358 }
0x3ed3   :  { %v10361_v24 = vmul.f32 %v17040_v23, %v10359_v10 }
0x3ed4   :  { %v11147_v27 = vadd.f32 %v11146_v48, %v11145_v60 }
0x3ed6   :  { %v11148_v57 = vrot.slane %v11147_v27, 2 }
0x3ed8   :  { %v11149_v38 = vadd.f32 %v11148_v57, %v11147_v27 }
0x3eda   :  { %v11150_v41 = vrot.slane %v11149_v38, 1 }
0x3edc   :  { %v11151_v51 = vadd.f32 %v11150_v41, %v11149_v38 }
0x3ede   :  { %v11236_v6 = vsel %vm397_vm8, %v11151_v51, %v11235_v40 }
0x3edf   :  { %12895 = vmatmul.mubr.msk.f32.vlgmr.msra.gmra.mrb[104].mxu0 %vm320_vm0, %v11236_v6 }
0x3f5f   :  { %v11323_v29 = vpop.xlane.xlu1 %11322 }
0x3f60   :  { %vm11324_vm9 = vcmp.eq.f32.partialorder %v11321_v52, %v11323_v29  ;;  %v11329_v34 = vcvt.f32.s32 %v11323_v29 }
0x3f61   :  { %v11325_v12 = vsel %vm11324_vm9, %v11320_v1, inf }
0x3f62   :  { %11326 = vmin.xlane.f32.xlu0 %v11325_v12  ;;  %v11330_v35 = vshll.u32 %v11329_v34, 16 }
0x3f78   :  { %10363 = vrot.lane.b32.xlu0 %v10361_v24, %s14332_s9  ;;  %s11490_s9 = sshll.u32 %s14335_s29, 4  ;;  %s11491_s9 = int_to_ptr.vmem [resolvable:$true] %s11490_s9 }
0x3f79   :  { %p14268_p5 = scmp.lt.s32.totalorder %s11491_s9, %s11491_s9 }
0x3fb2   :  { %v11305_v26 = vpop.f32.mrb[104].mxu0 }
0x3fb3   :  { %v11306_v31 = vadd.f32 %v11305_v26, %v17058_v47  ;;  %v12896_v56 = vpop.f32.mrb[105].mxu0 }
0x3fb5   :  { %v11309_v0 = vadd.f32 %v16937_v22, %v11306_v31 }
0x3fb7   :  { %13708 = vtanh.f32 %v11309_v0 }
0x3fc1   :  { %v13709_v16 = vpop.eup %13708 }
0x3fc2   :  { %11461 = vst.msk [vmem:[#allocation2] sm:$0xff] %vm320_vm0, %v13709_v16 }
0x3fef   :  { %v11327_v63 = vpop.xlane.xlu0 %11326 }
0x3ff0   :  { %v11328_v44 = vcvt.f32.s32 %v11327_v63 }
0x3ff2   :  { %v11331_v2 = vadd.s32 %v11330_v35, %v11328_v44 }
0x3ff4   :  { %vm11332_vm15 = vcmp.eq.s32.totalorder %v14959_v30, %v11331_v2  ;;  %11664 = vst.msk [vmem:[%s17330_s13 + $0x38] sm:$0xff] %vm1532_vm13, %v11331_v2  ;;  %s14263_s13 = scalar_lea.vmem %s11491_s9, 1024 }
0x3ff5   :  { %v11663_v47 = vsel %vm11332_vm15, 1.0, %v17328_v13  ;;  %p14264_p4 = scmp.ne.s32.totalorder %s11491_s9, %s14263_s13  ;;  %p14269_p6 = scmp.lt.s32.totalorder %s14263_s13, %s14263_s13 }
0x3ff6   :  { %v11459_v49 = vsub.f32 1.0, %v11663_v47  ;;  %v11359_v22 = vrot.slane %v11663_v47, %v15003_v59  ;;  %v11338_v5 = vrot.slane %v11663_v47, %v14911_v39  ;;  %v11373_v30 = vrot.slane %v11663_v47, %v14995_v53 }
0x3ff7   :  { %v11345_v28 = vrot.slane %v11663_v47, %v14989_v46  ;;  %v11387_v43 = vrot.slane %v11663_v47, %v15023_v36  ;;  %v11352_v13 = vrot.slane %v11663_v47, %v14998_v54  ;;  %v11366_v39 = vrot.slane %v11663_v47, %v15007_v4  ;;  %p14270_p7 = por %p14269_p6, %p14268_p5 }
0x3ff8   :  { %v11460_v3 = vmul.f32 %v11459_v49, %v17129_v50  ;;  %11361 = vbcast.lane.b32.xlu0 %v11359_v22, 256  ;;  %11340 = vbcast.lane.b32.xlu1 %v11338_v5, 256  ;;  %v11380_v59 = vrot.slane %v11663_v47, %v15011_v7  ;;  %v10364_v50 = vpop.permute.xlu0 %10363 }
0x3ff9   :  { %v10366_v53 = vadd.f32 %v10364_v50, %v10356_v8  ;;  %p14271_p8 = pnand %p14270_p7, %p14264_p4 }
0x3ffa   :  { %11484 = vst.msk [vmem:[#allocation5] sm:$0xff] %vm411_vm10, %v11460_v3 }
0x3ffc   :  { %11375 = vbcast.lane.b32.xlu0 %v11373_v30, 256  ;;  %11347 = vbcast.lane.b32.xlu1 %v11345_v28, 256 }
0x4000   :  { %11389 = vbcast.lane.b32.xlu0 %v11387_v43, 256  ;;  %11354 = vbcast.lane.b32.xlu1 %v11352_v13, 256 }
0x4004   :  { %11368 = vbcast.lane.b32.xlu1 %v11366_v39, 256 }
0x4008   :  { %11382 = vbcast.lane.b32.xlu1 %v11380_v59, 256 }
0x400c   :  { %11463 = vrot.lane.b32.xlu1 %v10366_v53, %s14333_s19 }
0x400d   :  { %14274 = shalt.err (!%p14271_p8)
}
0x400e   :  { %s17392_s12 = sld [smem:[#allocation66_spill]] }
0x4014   :  { %s14275_s4 = scalar_lea.hbm %s17392_s12, 1024 }
0x4015   :  { %p14276_p9 = scmp.ne.s32.totalorder %s17392_s12, %s14275_s4  ;;  %p14279_p10 = scmp.lt.u32.totalorder %s14275_s4, %s17392_s12 }
0x4017   :  { %p14281_p11 = pnand %p14279_p10, %p14276_p9 }
0x4019   :  { %14284 = shalt.err (!%p14281_p11)
}
0x401a   :  { %11496 = dma.vmem_to_hbm [thread:$0]  %s11491_s9, 1024, %s17392_s12, [#allocation10], %s17316_s7, %s17316_s7, %s17315_s24   ;;  %v13859_v4 = vld [vmem:[#allocation8] sm:$0xff]  ;;  %v13860_v36 = vld [vmem:[#allocation8 + $0x18] sm:$0xff]  ;;  %v13861_v37 = vld [vmem:[#allocation8 + $0x8] sm:$0xff] }
0x401b   :  { %v13862_v48 = vld [vmem:[#allocation8 + $0x28] sm:$0xff]  ;;  %v13863_v11 = vld [vmem:[#allocation8 + $0x10] sm:$0xff]  ;;  %v13864_v15 = vld [vmem:[#allocation8 + $0x38] sm:$0xff] }
0x401c   :  { %v13865_v10 = vld [vmem:[#allocation8 + $0x20] sm:$0xff]  ;;  %v13866_v49 = vld [vmem:[#allocation8 + $0x30] sm:$0xff] }
0x406a   :  { %v11341_v46 = vpop.permute.xlu1 %11340  ;;  %v11362_v54 = vpop.permute.xlu0 %11361 }
0x406b   :  { %v11391_v7 = vmul.f32 %v13859_v4, %v11341_v46  ;;  %v11394_v20 = vmul.f32 %v13860_v36, %v11362_v54 }
0x406d   :  { %v11399_v23 = vsel %vm320_vm0, %v11391_v7, 0.0  ;;  %v11420_v52 = vsel %vm320_vm0, %v11394_v20, 0.0 }
0x406e   :  { %v11400_v45 = vrot.slane %v11399_v23, 4  ;;  %v11421_v61 = vrot.slane %v11420_v52, 4  ;;  %v11348_v60 = vpop.permute.xlu1 %11347  ;;  %v11376_v19 = vpop.permute.xlu0 %11375 }
0x406f   :  { %v11392_v58 = vmul.f32 %v13861_v37, %v11348_v60  ;;  %v11396_v21 = vmul.f32 %v13862_v48, %v11376_v19 }
0x4070   :  { %v11401_v25 = vadd.f32 %v11400_v45, %v11399_v23  ;;  %v11422_v42 = vadd.f32 %v11421_v61, %v11420_v52 }
0x4071   :  { %v11406_v27 = vsel %vm320_vm0, %v11392_v58, 0.0  ;;  %v11434_v33 = vsel %vm320_vm0, %v11396_v21, 0.0 }
0x4072   :  { %v11407_v14 = vrot.slane %v11406_v27, 4  ;;  %v11355_v9 = vpop.permute.xlu1 %11354  ;;  %v11390_v57 = vpop.permute.xlu0 %11389  ;;  %v11435_v18 = vrot.slane %v11434_v33, 4  ;;  %v11402_v17 = vrot.slane %v11401_v25, 2  ;;  %v11423_v40 = vrot.slane %v11422_v42, 2 }
0x4073   :  { %v11393_v38 = vmul.f32 %v13863_v11, %v11355_v9  ;;  %v11398_v55 = vmul.f32 %v13864_v15, %v11390_v57 }
0x4074   :  { %v11408_v41 = vadd.f32 %v11407_v14, %v11406_v27  ;;  %v11436_v29 = vadd.f32 %v11435_v18, %v11434_v33  ;;  %v11403_v26 = vadd.f32 %v11402_v17, %v11401_v25  ;;  %v11424_v44 = vadd.f32 %v11423_v40, %v11422_v42 }
0x4075   :  { %v11413_v51 = vsel %vm320_vm0, %v11393_v38, 0.0  ;;  %v11448_v32 = vsel %vm320_vm0, %v11398_v55, 0.0 }
0x4076   :  { %v11409_v6 = vrot.slane %v11408_v41, 2  ;;  %v11369_v62 = vpop.permute.xlu1 %11368  ;;  %v11414_v1 = vrot.slane %v11413_v51, 4  ;;  %v11449_v12 = vrot.slane %v11448_v32, 4  ;;  %v11437_v2 = vrot.slane %v11436_v29, 2 }
0x4077   :  { %v11395_v24 = vmul.f32 %v13865_v10, %v11369_v62  ;;  %v11404_v5 = vrot.slane %v11403_v26, 1  ;;  %v11425_v8 = vrot.slane %v11424_v44, 1 }
0x4078   :  { %v11410_v31 = vadd.f32 %v11409_v6, %v11408_v41  ;;  %v11415_v56 = vadd.f32 %v11414_v1, %v11413_v51  ;;  %v11450_v0 = vadd.f32 %v11449_v12, %v11448_v32  ;;  %v11438_v53 = vadd.f32 %v11437_v2, %v11436_v29 }
0x4079   :  { %v11427_v16 = vsel %vm320_vm0, %v11395_v24, 0.0  ;;  %v11405_v54 = vadd.f32 %v11404_v5, %v11403_v26  ;;  %v11426_v61 = vadd.f32 %v11425_v8, %v11424_v44 }
0x407a   :  { %v11411_v34 = vrot.slane %v11410_v31, 1  ;;  %v11428_v63 = vrot.slane %v11427_v16, 4  ;;  %v11383_v35 = vpop.permute.xlu1 %11382  ;;  %v11416_v47 = vrot.slane %v11415_v56, 2  ;;  %v11451_v28 = vrot.slane %v11450_v0, 2 }
0x407b   :  { %v11397_v22 = vmul.f32 %v13866_v49, %v11383_v35  ;;  %v11439_v60 = vrot.slane %v11438_v53, 1 }
0x407c   :  { %v11429_v3 = vadd.f32 %v11428_v63, %v11427_v16  ;;  %v11417_v30 = vadd.f32 %v11416_v47, %v11415_v56  ;;  %v11412_v13 = vadd.f32 %v11411_v34, %v11410_v31  ;;  %v11452_v20 = vadd.f32 %v11451_v28, %v11450_v0 }
0x407d   :  { %v11441_v43 = vsel %vm320_vm0, %v11397_v22, 0.0  ;;  %v11440_v33 = vadd.f32 %v11439_v60, %v11438_v53 }
0x407e   :  { %v11430_v39 = vrot.slane %v11429_v3, 2  ;;  %v11442_v59 = vrot.slane %v11441_v43, 4  ;;  %v11464_v50 = vpop.permute.xlu1 %11463  ;;  %v11418_v46 = vrot.slane %v11417_v30, 1  ;;  %v11475_v23 = vsel %vm385_vm2, %v11412_v13, %v11405_v54 }
0x407f   :  { %11466 = vst.msk [vmem:[#allocation3] sm:$0xff] %vm320_vm0, %v11464_v50  ;;  %v11453_v48 = vrot.slane %v11452_v20, 1 }
0x4080   :  { %v11431_v4 = vadd.f32 %v11430_v39, %v11429_v3  ;;  %v11443_v7 = vadd.f32 %v11442_v59, %v11441_v43  ;;  %v11419_v36 = vadd.f32 %v11418_v46, %v11417_v30 }
0x4081   :  { %v11454_v14 = vadd.f32 %v11453_v48, %v11452_v20 }
0x4082   :  { %v11432_v52 = vrot.slane %v11431_v4, 1  ;;  %v11444_v45 = vrot.slane %v11443_v7, 2  ;;  %v11476_v19 = vsel %vm387_vm3, %v11419_v36, %v11475_v23 }
0x4083   :  { %v11477_v21 = vsel %vm389_vm4, %v11426_v61, %v11476_v19 }
0x4084   :  { %v11433_v37 = vadd.f32 %v11432_v52, %v11431_v4  ;;  %v11445_v58 = vadd.f32 %v11444_v45, %v11443_v7 }
0x4086   :  { %v11478_v25 = vsel %vm391_vm5, %v11433_v37, %v11477_v21  ;;  %v11446_v27 = vrot.slane %v11445_v58, 1 }
0x4087   :  { %v11479_v9 = vsel %vm393_vm6, %v11440_v33, %v11478_v25 }
0x4088   :  { %v11447_v42 = vadd.f32 %v11446_v27, %v11445_v58 }
0x408a   :  { %v11480_v57 = vsel %vm395_vm7, %v11447_v42, %v11479_v9 }
0x408b   :  { %v11481_v18 = vsel %vm397_vm8, %v11454_v14, %v11480_v57 }
0x408c   :  { %11483 = vst.msk [vmem:[#allocation4] sm:$0xff] %vm320_vm0, %v11481_v18 }
0x408d   :  { %14305 = dma.done.wait [#allocation10], 1024  }
0x408e   :  { %14306 = vsyncadd [#allocation10], 4294966272 }
0x408f   :  { %11504 = vsyncpa [#allocation9], 1 }
0x4090   :  { %11505 = vsyncpa [#allocation12], 1 }
0x4091   :  { %11506 = vsyncpa [#allocation15], 1 }
0x4092   :  { %11507 = vsyncpa [#allocation18], 1 }
0x4093   :  { %11508 = vsyncpa [#allocation21], 1 }
0x4094   :  { %11509 = vsyncpa [#allocation24], 1 }
0x4095   :  { %11510 = vsyncpa [#allocation27], 1 }
0x4096   :  { %11511 = vsyncpa [#allocation30], 1 }
0x4097   :  { %11512 = vsyncpa [#allocation33], 1 }
0x4098   :  { %11513 = vsyncpa [#allocation36], 1 }
0x4099   :  { %11514 = vsyncpa [#allocation10], 1 }

</bundles_post_ra>
